<compile_context>
chip_gen: v6e
topology: v6e:2x2x1
jax: 0.10.0
libtpu: 0.0.40
codegen_flags: <defaults>
</compile_context>

<pallas_src>
import functools

import jax
import jax.numpy as jnp
from jax.experimental import pallas as pl
from jax.experimental.pallas import tpu as pltpu


# ---------------------------------------------------------------------------
# Fused conv(KxK, padding='same') + bias + ReLU + MaxPool(2,2) kernel.
# Grid = (batch, row_tiles): each step computes TH pre-pool output rows.
# ---------------------------------------------------------------------------
def _conv_relu_pool_kernel(x_ref, w_ref, b_ref, o_ref, *,
                           TH, W, K, Cin, Cout, fold):
    # x_ref: (1, Hp, Wp, Cin) padded image (stays resident across row tiles)
    # w_ref: (K*K*Cin, Cout) ["full"], (K, K*Cin, Cout) ["row"],
    #        or (K*K, Cin, Cout) ["none"]                            [bf16]
    # b_ref: (1, Cout) f32
    # o_ref: (1, TH//2, W//2, Cout)
    ri = pl.program_id(1)
    r0 = pl.multiple_of(ri * TH, TH)     # first padded input row of this tile

    def tap(kh, kw):
        # (TH, W, Cin) shifted window of the padded image for tap (kh, kw).
        return x_ref[0, pl.ds(r0 + kh, TH), kw:kw + W, :]

    if fold == "full":
        # All K*K taps folded into a single deep contraction
        # (conv1: K=72, conv2: K=576) -> one MXU pass over the tile.
        parts = [tap(kh, kw) for kh in range(K) for kw in range(K)]
        patch = jnp.concatenate(parts, axis=-1).reshape(TH * W, K * K * Cin)
        acc = jnp.dot(patch, w_ref[...], preferred_element_type=jnp.float32)
    elif fold == "row":
        # Fold the K horizontal taps per kernel row (conv3: 640, conv4: 768).
        acc = None
        for kh in range(K):
            parts = [tap(kh, kw) for kw in range(K)]
            patch = jnp.concatenate(parts, axis=-1).reshape(TH * W, K * Cin)
            c = jnp.dot(patch, w_ref[kh], preferred_element_type=jnp.float32)
            acc = c if acc is None else acc + c
    else:
        # Fallback: per-tap dots (no lane-dim concatenation needed).  Correct on
        # any Mosaic version; only used if the folded path fails to lower.
        acc = None
        for kh in range(K):
            for kw in range(K):
                patch = tap(kh, kw).reshape(TH * W, Cin)
                c = jnp.dot(patch, w_ref[kh * K + kw],
                            preferred_element_type=jnp.float32)
                acc = c if acc is None else acc + c

    acc = jnp.maximum(acc + b_ref[...], 0.0)             # bias + ReLU (f32)

    # 2x2 max-pool, stride 2: row pool via outer-dim regroup (free), column
    # pool via one small in-tile reshape + reduce.
    y = acc.reshape(TH // 2, 2, W, Cout)
    y = jnp.maximum(y[:, 0], y[:, 1])                    # (TH//2, W, Cout)
    y = y.reshape(TH // 2, W // 2, 2, Cout)
    y = jnp.max(y, axis=2)                               # (TH//2, W//2, Cout)
    o_ref[...] = y[None].astype(o_ref.dtype)


def _conv_pallas(xp, wk, b2, w_spec, fold, B, H, W, Hp, Wp, Cin, Cout, K, TH,
                 out_dtype):
    kern = functools.partial(_conv_relu_pool_kernel, TH=TH, W=W, K=K,
                             Cin=Cin, Cout=Cout, fold=fold)
    return pl.pallas_call(
        kern,
        out_shape=jax.ShapeDtypeStruct((B, H // 2, W // 2, Cout), out_dtype),
        grid_spec=pltpu.PrefetchScalarGridSpec(
            num_scalar_prefetch=0,
            grid=(B, H // TH),
            in_specs=[
                pl.BlockSpec((1, Hp, Wp, Cin), lambda bi, ri: (bi, 0, 0, 0)),
                w_spec,
                pl.BlockSpec((1, Cout), lambda bi, ri: (0, 0)),
            ],
            out_specs=pl.BlockSpec((1, TH // 2, W // 2, Cout),
                                   lambda bi, ri: (bi, ri, 0, 0)),
        ),
        compiler_params=pltpu.CompilerParams(
            # Every (batch, row-tile) step writes a disjoint output block ->
            # both axes can be sharded across TensorCores (v7x megacore).
            dimension_semantics=("parallel", "parallel"),
            # Well under v7x's 64 MiB physical VMEM; actual need is a few MiB.
            vmem_limit_bytes=48 * 1024 * 1024,
        ),
    )(xp, wk, b2)


_FOLD_OK = True  # flipped to False if the lane-concat (folded) path cannot lower


def conv_relu_pool(x, w, b):
    """x: (B, H, W, Cin) NHWC bf16; w: (K, K, Cin, Cout); b: (Cout,) f32."""
    global _FOLD_OK
    B, H, W, Cin = x.shape
    K = w.shape[0]
    Cout = w.shape[3]
    assert H % 2 == 0 and W % 2 == 0, (H, W)
    p = K // 2                                           # padding='same', stride 1

    # Pad tiny channel counts (Cin=1 for layer 1) to a multiple of 8 with zeros;
    # mathematically a no-op since the extra weights are zero.
    if Cin % 8 != 0:
        cpad = 8 - Cin % 8
        x = jnp.pad(x, ((0, 0), (0, 0), (0, 0), (0, cpad)))
        w = jnp.pad(w, ((0, 0), (0, 0), (0, cpad), (0, 0)))
        Cin += cpad

    xp = jnp.pad(x, ((0, 0), (p, p), (p, p), (0, 0)))
    Hp, Wp = H + 2 * p, W + 2 * p

    # Row-tile size: even, divides H, keeps the per-tile accumulator ~256 KiB.
    TH = 8 if (H % 8 == 0 and H >= 8) else (4 if (H % 4 == 0 and H >= 4) else 2)

    w = w.astype(jnp.bfloat16)
    b2 = b.reshape(1, Cout).astype(jnp.float32)

    preferred = "full" if K * K * Cin <= 1024 else "row"
    modes = ([preferred] if _FOLD_OK else []) + ["none"]
    for fold in modes:
        if fold == "full":
            wk = w.reshape(K * K * Cin, Cout)
            w_spec = pl.BlockSpec((K * K * Cin, Cout), lambda bi, ri: (0, 0))
        elif fold == "row":
            wk = w.reshape(K, K * Cin, Cout)
            w_spec = pl.BlockSpec((K, K * Cin, Cout), lambda bi, ri: (0, 0, 0))
        else:
            wk = w.reshape(K * K, Cin, Cout)
            w_spec = pl.BlockSpec((K * K, Cin, Cout), lambda bi, ri: (0, 0, 0))
        try:
            return _conv_pallas(xp, wk, b2, w_spec, fold, B, H, W, Hp, Wp,
                                Cin, Cout, K, TH, x.dtype)
        except Exception:
            if fold == "none":
                raise
            # Folded path needs lane-dim (minor) concatenation in-kernel; fall
            # back to per-tap dots if this Mosaic build rejects it.
            _FOLD_OK = False
    raise AssertionError("unreachable")


# ---------------------------------------------------------------------------
# Linear (+ optional fused ReLU) kernel: K-tiled accumulating matmul, bf16
# inputs, f32 accumulation in a VMEM scratch.
# ---------------------------------------------------------------------------
def _fc_kernel(x_ref, w_ref, b_ref, o_ref, acc_ref, *, apply_relu):
    k = pl.program_id(0)

    @pl.when(k == 0)
    def _():
        acc_ref[...] = jnp.zeros_like(acc_ref)

    acc_ref[...] += jnp.dot(x_ref[...].astype(jnp.bfloat16),
                            w_ref[...].astype(jnp.bfloat16),
                            preferred_element_type=jnp.float32)

    @pl.when(k == pl.num_programs(0) - 1)
    def _():
        r = acc_ref[...] + b_ref[...]
        if apply_relu:
            r = jnp.maximum(r, 0.0)
        o_ref[...] = r.astype(o_ref.dtype)


def linear(x, w, b, *, apply_relu=False, tk=2048, out_dtype=jnp.float32):
    """x: (B, K); w: (K, N) bf16; b: (N,) f32."""
    B, Kdim = x.shape
    N = w.shape[1]
    tk = min(tk, Kdim)
    while Kdim % tk != 0:            # keep a K-tile that divides Kdim exactly
        tk //= 2
    kern = functools.partial(_fc_kernel, apply_relu=apply_relu)
    return pl.pallas_call(
        kern,
        out_shape=jax.ShapeDtypeStruct((B, N), out_dtype),
        grid_spec=pltpu.PrefetchScalarGridSpec(
            num_scalar_prefetch=0,
            grid=(Kdim // tk,),
            in_specs=[
                pl.BlockSpec((B, tk), lambda k: (0, k)),
                pl.BlockSpec((tk, N), lambda k: (k, 0)),
                pl.BlockSpec((1, N), lambda k: (0, 0)),
            ],
            out_specs=pl.BlockSpec((B, N), lambda k: (0, 0)),
            scratch_shapes=[pltpu.VMEM((B, N), jnp.float32)],
        ),
        compiler_params=pltpu.CompilerParams(
            dimension_semantics=("arbitrary",),
        ),
    )(x, w, b.reshape(1, N).astype(jnp.float32))


# ---------------------------------------------------------------------------
# Model: deterministic synthetic parameters + forward pass.
# ---------------------------------------------------------------------------
class CNNModelPallas:
    def __init__(self, num_classes=7, input_channels=1, spatial=32,
                 key=jax.random.PRNGKey(42)):
        assert spatial % 16 == 0, "4 pooling stages require spatial % 16 == 0"
        self.num_classes = num_classes
        self.spatial = spatial
        ks = jax.random.split(key, 12)

        def conv_w(k, kh, kw, cin, cout):
            fan_in = kh * kw * cin
            return (jax.random.normal(k, (kh, kw, cin, cout), jnp.float32)
                    / jnp.sqrt(float(fan_in))).astype(jnp.bfloat16)

        def bias(k, n):
            return 0.01 * jax.random.normal(k, (n,), jnp.float32)

        self.w1, self.b1 = conv_w(ks[0], 3, 3, input_channels, 64), bias(ks[1], 64)
        self.w2, self.b2 = conv_w(ks[2], 3, 3, 64, 128), bias(ks[3], 128)
        self.w3, self.b3 = conv_w(ks[4], 5, 5, 128, 256), bias(ks[5], 256)
        self.w4, self.b4 = conv_w(ks[6], 3, 3, 256, 512), bias(ks[7], 512)

        hh = ww = spatial // 16
        flat = 512 * hh * ww                     # 512*8*8 for canonical 128x128
        # fc1 weight created in PyTorch NCHW-flatten row order, then
        # pre-permuted to NHWC-flatten order so the runtime flatten needs no
        # transpose of the conv4 activation (same math as the reference).
        fc1_w = (jax.random.normal(ks[8], (flat, 256), jnp.float32)
                 / jnp.sqrt(float(flat)))
        self.fc1_w = (fc1_w.reshape(512, hh, ww, 256)
                      .transpose(1, 2, 0, 3)
                      .reshape(flat, 256)
                      .astype(jnp.bfloat16))
        self.fc1_b = bias(ks[9], 256)
        self.fc2_w = (jax.random.normal(ks[10], (256, num_classes), jnp.float32)
                      / jnp.sqrt(256.0)).astype(jnp.bfloat16)
        self.fc2_b = bias(ks[11], num_classes)

    def forward(self, x_nchw, return_features=False):
        # NCHW (PyTorch) -> NHWC (kernel layout); bf16 activations, f32 accum.
        x = jnp.transpose(x_nchw, (0, 2, 3, 1)).astype(jnp.bfloat16)
        x = conv_relu_pool(x, self.w1, self.b1)   # conv1+relu1+pool1
        x = conv_relu_pool(x, self.w2, self.b2)   # conv2+relu2+pool2
        x = conv_relu_pool(x, self.w3, self.b3)   # conv3+relu3+(drop3=id)+pool3
        x = conv_relu_pool(x, self.w4, self.b4)   # conv4+relu4+(drop4=id)+pool4
        B = x.shape[0]
        x = x.reshape(B, -1)                      # NHWC flatten (fc1_w pre-permuted)
        features = linear(x, self.fc1_w, self.fc1_b, apply_relu=True)   # fc1+relu
        if return_features:
            return features
        # TODO(synk): drop_fc1 is identity at inference; training-mode dropout RNG not implemented.
        return linear(features, self.fc2_w, self.fc2_b, apply_relu=False)  # fc2 logits


if __name__ == "__main__":
    key = jax.random.PRNGKey(0)
    B, C, H, W = 2, 1, 32, 32          # small demo shapes (canonical module uses 128x128)
    x = jax.random.normal(key, (B, C, H, W), jnp.float32)

    model = CNNModelPallas(num_classes=7, input_channels=C, spatial=H)
    logits = jax.block_until_ready(model.forward(x))
    assert logits.shape == (B, 7), logits.shape
    feats = jax.block_until_ready(model.forward(x, return_features=True))
    assert feats.shape == (B, 256), feats.shape
    print("KERNEL_OK")
</pallas_src>

<mosaic_0001>
module attributes {stable_mosaic.version = 11 : i64} {
  func.func @_conv_relu_pool_kernel(%arg0: i32, %arg1: i32, %arg2: memref<1x34x34x8xbf16, #tpu.memory_space<vmem>>, %arg3: memref<72x64xbf16, #tpu.memory_space<vmem>>, %arg4: memref<1x64xf32, #tpu.memory_space<vmem>>, %arg5: memref<1x4x16x64xbf16, #tpu.memory_space<vmem>>) attributes {dimension_semantics = [#tpu.dimension_semantics<parallel>, #tpu.dimension_semantics<parallel>], iteration_bounds = array<i64: 2, 4>, scalar_prefetch = 0 : i64, scratch_operands = 0 : i64, tpu.core_type = #tpu.core_type<tc>, window_params = [{transform_indices = @transform_0, window_bounds = array<i64: 1, 34, 34, 8>}, {pipeline_mode = #tpu.pipeline_mode<synchronous>, transform_indices = @transform_1, window_bounds = array<i64: 72, 64>}, {pipeline_mode = #tpu.pipeline_mode<synchronous>, transform_indices = @transform_2, window_bounds = array<i64: 1, 64>}, {transform_indices = @transform_3, window_bounds = array<i64: 1, 4, 16, 64>}]} {
    %c8_i32 = arith.constant 8 : i32
    %0 = arith.muli %arg1, %c8_i32 : i32
    %1 = tpu.assume_multiple %0, 8 : i32
    %c0_i32 = arith.constant 0 : i32
    %2 = arith.addi %1, %c0_i32 : i32
    %c0 = arith.constant 0 : index
    %3 = arith.index_cast %2 : i32 to index
    %c0_0 = arith.constant 0 : index
    %c0_1 = arith.constant 0 : index
    %4 = vector.load %arg2[%c0, %3, %c0_0, %c0_1] : memref<1x34x34x8xbf16, #tpu.memory_space<vmem>>, vector<1x8x32x8xbf16>
    %5 = vector.shape_cast %4 : vector<1x8x32x8xbf16> to vector<8x32x8xbf16>
    %c0_i32_2 = arith.constant 0 : i32
    %6 = arith.addi %1, %c0_i32_2 : i32
    %c0_3 = arith.constant 0 : index
    %7 = arith.index_cast %6 : i32 to index
    %c1 = arith.constant 1 : index
    %c0_4 = arith.constant 0 : index
    %8 = vector.load %arg2[%c0_3, %7, %c1, %c0_4] : memref<1x34x34x8xbf16, #tpu.memory_space<vmem>>, vector<1x8x32x8xbf16>
    %9 = vector.shape_cast %8 : vector<1x8x32x8xbf16> to vector<8x32x8xbf16>
    %c0_i32_5 = arith.constant 0 : i32
    %10 = arith.addi %1, %c0_i32_5 : i32
    %c0_6 = arith.constant 0 : index
    %11 = arith.index_cast %10 : i32 to index
    %c2 = arith.constant 2 : index
    %c0_7 = arith.constant 0 : index
    %12 = vector.load %arg2[%c0_6, %11, %c2, %c0_7] : memref<1x34x34x8xbf16, #tpu.memory_space<vmem>>, vector<1x8x32x8xbf16>
    %13 = vector.shape_cast %12 : vector<1x8x32x8xbf16> to vector<8x32x8xbf16>
    %c1_i32 = arith.constant 1 : i32
    %14 = arith.addi %1, %c1_i32 : i32
    %c0_8 = arith.constant 0 : index
    %15 = arith.index_cast %14 : i32 to index
    %c0_9 = arith.constant 0 : index
    %c0_10 = arith.constant 0 : index
    %16 = vector.load %arg2[%c0_8, %15, %c0_9, %c0_10] : memref<1x34x34x8xbf16, #tpu.memory_space<vmem>>, vector<1x8x32x8xbf16>
    %17 = vector.shape_cast %16 : vector<1x8x32x8xbf16> to vector<8x32x8xbf16>
    %c1_i32_11 = arith.constant 1 : i32
    %18 = arith.addi %1, %c1_i32_11 : i32
    %c0_12 = arith.constant 0 : index
    %19 = arith.index_cast %18 : i32 to index
    %c1_13 = arith.constant 1 : index
    %c0_14 = arith.constant 0 : index
    %20 = vector.load %arg2[%c0_12, %19, %c1_13, %c0_14] : memref<1x34x34x8xbf16, #tpu.memory_space<vmem>>, vector<1x8x32x8xbf16>
    %21 = vector.shape_cast %20 : vector<1x8x32x8xbf16> to vector<8x32x8xbf16>
    %c1_i32_15 = arith.constant 1 : i32
    %22 = arith.addi %1, %c1_i32_15 : i32
    %c0_16 = arith.constant 0 : index
    %23 = arith.index_cast %22 : i32 to index
    %c2_17 = arith.constant 2 : index
    %c0_18 = arith.constant 0 : index
    %24 = vector.load %arg2[%c0_16, %23, %c2_17, %c0_18] : memref<1x34x34x8xbf16, #tpu.memory_space<vmem>>, vector<1x8x32x8xbf16>
    %25 = vector.shape_cast %24 : vector<1x8x32x8xbf16> to vector<8x32x8xbf16>
    %c2_i32 = arith.constant 2 : i32
    %26 = arith.addi %1, %c2_i32 : i32
    %c0_19 = arith.constant 0 : index
    %27 = arith.index_cast %26 : i32 to index
    %c0_20 = arith.constant 0 : index
    %c0_21 = arith.constant 0 : index
    %28 = vector.load %arg2[%c0_19, %27, %c0_20, %c0_21] : memref<1x34x34x8xbf16, #tpu.memory_space<vmem>>, vector<1x8x32x8xbf16>
    %29 = vector.shape_cast %28 : vector<1x8x32x8xbf16> to vector<8x32x8xbf16>
    %c2_i32_22 = arith.constant 2 : i32
    %30 = arith.addi %1, %c2_i32_22 : i32
    %c0_23 = arith.constant 0 : index
    %31 = arith.index_cast %30 : i32 to index
    %c1_24 = arith.constant 1 : index
    %c0_25 = arith.constant 0 : index
    %32 = vector.load %arg2[%c0_23, %31, %c1_24, %c0_25] : memref<1x34x34x8xbf16, #tpu.memory_space<vmem>>, vector<1x8x32x8xbf16>
    %33 = vector.shape_cast %32 : vector<1x8x32x8xbf16> to vector<8x32x8xbf16>
    %c2_i32_26 = arith.constant 2 : i32
    %34 = arith.addi %1, %c2_i32_26 : i32
    %c0_27 = arith.constant 0 : index
    %35 = arith.index_cast %34 : i32 to index
    %c2_28 = arith.constant 2 : index
    %c0_29 = arith.constant 0 : index
    %36 = vector.load %arg2[%c0_27, %35, %c2_28, %c0_29] : memref<1x34x34x8xbf16, #tpu.memory_space<vmem>>, vector<1x8x32x8xbf16>
    %37 = vector.shape_cast %36 : vector<1x8x32x8xbf16> to vector<8x32x8xbf16>
    %38 = tpu.concatenate %5, %9, %13, %17, %21, %25, %29, %33, %37 in 2 : vector<8x32x8xbf16>, vector<8x32x8xbf16>, vector<8x32x8xbf16>, vector<8x32x8xbf16>, vector<8x32x8xbf16>, vector<8x32x8xbf16>, vector<8x32x8xbf16>, vector<8x32x8xbf16>, vector<8x32x8xbf16> -> vector<8x32x72xbf16>
    %39 = vector.shape_cast %38 : vector<8x32x72xbf16> to vector<256x72xbf16>
    %c0_30 = arith.constant 0 : index
    %c0_31 = arith.constant 0 : index
    %40 = vector.load %arg3[%c0_30, %c0_31] : memref<72x64xbf16, #tpu.memory_space<vmem>>, vector<72x64xbf16>
    %cst = arith.constant dense<0.000000e+00> : vector<256x64xf32>
    %41 = tpu.matmul %39, %40, %cst {dimension_numbers = #tpu.dot_dimension_numbers<[1], [0], [0], [1], [0, 0, 1, 1], [], []>} : vector<256x72xbf16>, vector<72x64xbf16>, vector<256x64xf32> -> vector<256x64xf32>
    %c0_32 = arith.constant 0 : index
    %c0_33 = arith.constant 0 : index
    %42 = vector.load %arg4[%c0_32, %c0_33] : memref<1x64xf32, #tpu.memory_space<vmem>>, vector<1x64xf32>
    %43 = vector.broadcast %42 : vector<1x64xf32> to vector<256x64xf32>
    %44 = arith.addf %41, %43 : vector<256x64xf32>
    %cst_34 = arith.constant 0.000000e+00 : f32
    %45 = vector.broadcast %cst_34 : f32 to vector<256x64xf32>
    %46 = arith.maximumf %44, %45 : vector<256x64xf32>
    %47 = vector.shape_cast %46 : vector<256x64xf32> to vector<4x2x32x64xf32>
    %48 = vector.extract_strided_slice %47 {offsets = [0, 0, 0, 0], sizes = [4, 1, 32, 64], strides = [1, 1, 1, 1]} : vector<4x2x32x64xf32> to vector<4x1x32x64xf32>
    %49 = vector.shape_cast %48 : vector<4x1x32x64xf32> to vector<4x32x64xf32>
    %50 = vector.extract_strided_slice %47 {offsets = [0, 1, 0, 0], sizes = [4, 1, 32, 64], strides = [1, 1, 1, 1]} : vector<4x2x32x64xf32> to vector<4x1x32x64xf32>
    %51 = vector.shape_cast %50 : vector<4x1x32x64xf32> to vector<4x32x64xf32>
    %52 = arith.maximumf %49, %51 : vector<4x32x64xf32>
    %53 = vector.shape_cast %52 : vector<4x32x64xf32> to vector<4x16x2x64xf32>
    %cst_35 = arith.constant dense<0xFF800000> : vector<4x16x64xf32>
    %54 = vector.multi_reduction <maximumf>, %53, %cst_35 [2] : vector<4x16x2x64xf32> to vector<4x16x64xf32>
    %55 = vector.shape_cast %54 : vector<4x16x64xf32> to vector<1x4x16x64xf32>
    %56 = arith.truncf %55 : vector<1x4x16x64xf32> to vector<1x4x16x64xbf16>
    %c0_36 = arith.constant 0 : index
    %c0_37 = arith.constant 0 : index
    %c0_38 = arith.constant 0 : index
    %c0_39 = arith.constant 0 : index
    %57 = vector.load %arg5[%c0_36, %c0_37, %c0_38, %c0_39] : memref<1x4x16x64xbf16, #tpu.memory_space<vmem>>, vector<1x4x16x64xbf16>
    tpu.vector_store %arg5[%c0_36, %c0_37, %c0_38, %c0_39], %56 {strides = array<i32>} : memref<1x4x16x64xbf16, #tpu.memory_space<vmem>>, vector<1x4x16x64xbf16>,
    return
  }
  func.func @transform_0(%arg0: i32, %arg1: i32) -> (i32, i32, i32, i32) {
    %c0_i32 = arith.constant 0 : i32
    %c0_i32_0 = arith.constant 0 : i32
    %c0_i32_1 = arith.constant 0 : i32
    %c0_i32_2 = arith.constant 0 : i32
    return %arg0, %c0_i32, %c0_i32_0, %c0_i32_1 : i32, i32, i32, i32
  }
  func.func @transform_1(%arg0: i32, %arg1: i32) -> (i32, i32) {
    %c0_i32 = arith.constant 0 : i32
    %c0_i32_0 = arith.constant 0 : i32
    %c0_i32_1 = arith.constant 0 : i32
    return %c0_i32, %c0_i32_0 : i32, i32
  }
  func.func @transform_2(%arg0: i32, %arg1: i32) -> (i32, i32) {
    %c0_i32 = arith.constant 0 : i32
    %c0_i32_0 = arith.constant 0 : i32
    %c0_i32_1 = arith.constant 0 : i32
    return %c0_i32, %c0_i32_0 : i32, i32
  }
  func.func @transform_3(%arg0: i32, %arg1: i32) -> (i32, i32, i32, i32) {
    %c0_i32 = arith.constant 0 : i32
    %c0_i32_0 = arith.constant 0 : i32
    %c0_i32_1 = arith.constant 0 : i32
    return %arg0, %arg1, %c0_i32, %c0_i32_0 : i32, i32, i32, i32
  }
}

module attributes {stable_mosaic.version = 11 : i64} {
  func.func @_conv_relu_pool_kernel(%arg0: i32, %arg1: i32, %arg2: memref<1x34x34x8xbf16, #tpu.memory_space<vmem>>, %arg3: memref<9x8x64xbf16, #tpu.memory_space<vmem>>, %arg4: memref<1x64xf32, #tpu.memory_space<vmem>>, %arg5: memref<1x4x16x64xbf16, #tpu.memory_space<vmem>>) attributes {dimension_semantics = [#tpu.dimension_semantics<parallel>, #tpu.dimension_semantics<parallel>], iteration_bounds = array<i64: 2, 4>, scalar_prefetch = 0 : i64, scratch_operands = 0 : i64, tpu.core_type = #tpu.core_type<tc>, window_params = [{transform_indices = @transform_0, window_bounds = array<i64: 1, 34, 34, 8>}, {pipeline_mode = #tpu.pipeline_mode<synchronous>, transform_indices = @transform_1, window_bounds = array<i64: 9, 8, 64>}, {pipeline_mode = #tpu.pipeline_mode<synchronous>, transform_indices = @transform_2, window_bounds = array<i64: 1, 64>}, {transform_indices = @transform_3, window_bounds = array<i64: 1, 4, 16, 64>}]} {
    %c8_i32 = arith.constant 8 : i32
    %0 = arith.muli %arg1, %c8_i32 : i32
    %1 = tpu.assume_multiple %0, 8 : i32
    %c0_i32 = arith.constant 0 : i32
    %2 = arith.addi %1, %c0_i32 : i32
    %c0 = arith.constant 0 : index
    %3 = arith.index_cast %2 : i32 to index
    %c0_0 = arith.constant 0 : index
    %c0_1 = arith.constant 0 : index
    %4 = vector.load %arg2[%c0, %3, %c0_0, %c0_1] : memref<1x34x34x8xbf16, #tpu.memory_space<vmem>>, vector<1x8x32x8xbf16>
    %5 = vector.shape_cast %4 : vector<1x8x32x8xbf16> to vector<8x32x8xbf16>
    %6 = vector.shape_cast %5 : vector<8x32x8xbf16> to vector<256x8xbf16>
    %c0_2 = arith.constant 0 : index
    %c0_3 = arith.constant 0 : index
    %c0_4 = arith.constant 0 : index
    %7 = vector.load %arg3[%c0_2, %c0_3, %c0_4] : memref<9x8x64xbf16, #tpu.memory_space<vmem>>, vector<1x8x64xbf16>
    %8 = vector.shape_cast %7 : vector<1x8x64xbf16> to vector<8x64xbf16>
    %cst = arith.constant dense<0.000000e+00> : vector<256x64xf32>
    %9 = tpu.matmul %6, %8, %cst {dimension_numbers = #tpu.dot_dimension_numbers<[1], [0], [0], [1], [0, 0, 1, 1], [], []>} : vector<256x8xbf16>, vector<8x64xbf16>, vector<256x64xf32> -> vector<256x64xf32>
    %c0_i32_5 = arith.constant 0 : i32
    %10 = arith.addi %1, %c0_i32_5 : i32
    %c0_6 = arith.constant 0 : index
    %11 = arith.index_cast %10 : i32 to index
    %c1 = arith.constant 1 : index
    %c0_7 = arith.constant 0 : index
    %12 = vector.load %arg2[%c0_6, %11, %c1, %c0_7] : memref<1x34x34x8xbf16, #tpu.memory_space<vmem>>, vector<1x8x32x8xbf16>
    %13 = vector.shape_cast %12 : vector<1x8x32x8xbf16> to vector<8x32x8xbf16>
    %14 = vector.shape_cast %13 : vector<8x32x8xbf16> to vector<256x8xbf16>
    %c1_8 = arith.constant 1 : index
    %c0_9 = arith.constant 0 : index
    %c0_10 = arith.constant 0 : index
    %15 = vector.load %arg3[%c1_8, %c0_9, %c0_10] : memref<9x8x64xbf16, #tpu.memory_space<vmem>>, vector<1x8x64xbf16>
    %16 = vector.shape_cast %15 : vector<1x8x64xbf16> to vector<8x64xbf16>
    %cst_11 = arith.constant dense<0.000000e+00> : vector<256x64xf32>
    %17 = tpu.matmul %14, %16, %cst_11 {dimension_numbers = #tpu.dot_dimension_numbers<[1], [0], [0], [1], [0, 0, 1, 1], [], []>} : vector<256x8xbf16>, vector<8x64xbf16>, vector<256x64xf32> -> vector<256x64xf32>
    %18 = arith.addf %9, %17 : vector<256x64xf32>
    %c0_i32_12 = arith.constant 0 : i32
    %19 = arith.addi %1, %c0_i32_12 : i32
    %c0_13 = arith.constant 0 : index
    %20 = arith.index_cast %19 : i32 to index
    %c2 = arith.constant 2 : index
    %c0_14 = arith.constant 0 : index
    %21 = vector.load %arg2[%c0_13, %20, %c2, %c0_14] : memref<1x34x34x8xbf16, #tpu.memory_space<vmem>>, vector<1x8x32x8xbf16>
    %22 = vector.shape_cast %21 : vector<1x8x32x8xbf16> to vector<8x32x8xbf16>
    %23 = vector.shape_cast %22 : vector<8x32x8xbf16> to vector<256x8xbf16>
    %c2_15 = arith.constant 2 : index
    %c0_16 = arith.constant 0 : index
    %c0_17 = arith.constant 0 : index
    %24 = vector.load %arg3[%c2_15, %c0_16, %c0_17] : memref<9x8x64xbf16, #tpu.memory_space<vmem>>, vector<1x8x64xbf16>
    %25 = vector.shape_cast %24 : vector<1x8x64xbf16> to vector<8x64xbf16>
    %cst_18 = arith.constant dense<0.000000e+00> : vector<256x64xf32>
    %26 = tpu.matmul %23, %25, %cst_18 {dimension_numbers = #tpu.dot_dimension_numbers<[1], [0], [0], [1], [0, 0, 1, 1], [], []>} : vector<256x8xbf16>, vector<8x64xbf16>, vector<256x64xf32> -> vector<256x64xf32>
    %27 = arith.addf %18, %26 : vector<256x64xf32>
    %c1_i32 = arith.constant 1 : i32
    %28 = arith.addi %1, %c1_i32 : i32
    %c0_19 = arith.constant 0 : index
    %29 = arith.index_cast %28 : i32 to index
    %c0_20 = arith.constant 0 : index
    %c0_21 = arith.constant 0 : index
    %30 = vector.load %arg2[%c0_19, %29, %c0_20, %c0_21] : memref<1x34x34x8xbf16, #tpu.memory_space<vmem>>, vector<1x8x32x8xbf16>
    %31 = vector.shape_cast %30 : vector<1x8x32x8xbf16> to vector<8x32x8xbf16>
    %32 = vector.shape_cast %31 : vector<8x32x8xbf16> to vector<256x8xbf16>
    %c3 = arith.constant 3 : index
    %c0_22 = arith.constant 0 : index
    %c0_23 = arith.constant 0 : index
    %33 = vector.load %arg3[%c3, %c0_22, %c0_23] : memref<9x8x64xbf16, #tpu.memory_space<vmem>>, vector<1x8x64xbf16>
    %34 = vector.shape_cast %33 : vector<1x8x64xbf16> to vector<8x64xbf16>
    %cst_24 = arith.constant dense<0.000000e+00> : vector<256x64xf32>
    %35 = tpu.matmul %32, %34, %cst_24 {dimension_numbers = #tpu.dot_dimension_numbers<[1], [0], [0], [1], [0, 0, 1, 1], [], []>} : vector<256x8xbf16>, vector<8x64xbf16>, vector<256x64xf32> -> vector<256x64xf32>
    %36 = arith.addf %27, %35 : vector<256x64xf32>
    %c1_i32_25 = arith.constant 1 : i32
    %37 = arith.addi %1, %c1_i32_25 : i32
    %c0_26 = arith.constant 0 : index
    %38 = arith.index_cast %37 : i32 to index
    %c1_27 = arith.constant 1 : index
    %c0_28 = arith.constant 0 : index
    %39 = vector.load %arg2[%c0_26, %38, %c1_27, %c0_28] : memref<1x34x34x8xbf16, #tpu.memory_space<vmem>>, vector<1x8x32x8xbf16>
    %40 = vector.shape_cast %39 : vector<1x8x32x8xbf16> to vector<8x32x8xbf16>
    %41 = vector.shape_cast %40 : vector<8x32x8xbf16> to vector<256x8xbf16>
    %c4 = arith.constant 4 : index
    %c0_29 = arith.constant 0 : index
    %c0_30 = arith.constant 0 : index
    %42 = vector.load %arg3[%c4, %c0_29, %c0_30] : memref<9x8x64xbf16, #tpu.memory_space<vmem>>, vector<1x8x64xbf16>
    %43 = vector.shape_cast %42 : vector<1x8x64xbf16> to vector<8x64xbf16>
    %cst_31 = arith.constant dense<0.000000e+00> : vector<256x64xf32>
    %44 = tpu.matmul %41, %43, %cst_31 {dimension_numbers = #tpu.dot_dimension_numbers<[1], [0], [0], [1], [0, 0, 1, 1], [], []>} : vector<256x8xbf16>, vector<8x64xbf16>, vector<256x64xf32> -> vector<256x64xf32>
    %45 = arith.addf %36, %44 : vector<256x64xf32>
    %c1_i32_32 = arith.constant 1 : i32
    %46 = arith.addi %1, %c1_i32_32 : i32
    %c0_33 = arith.constant 0 : index
    %47 = arith.index_cast %46 : i32 to index
    %c2_34 = arith.constant 2 : index
    %c0_35 = arith.constant 0 : index
    %48 = vector.load %arg2[%c0_33, %47, %c2_34, %c0_35] : memref<1x34x34x8xbf16, #tpu.memory_space<vmem>>, vector<1x8x32x8xbf16>
    %49 = vector.shape_cast %48 : vector<1x8x32x8xbf16> to vector<8x32x8xbf16>
    %50 = vector.shape_cast %49 : vector<8x32x8xbf16> to vector<256x8xbf16>
    %c5 = arith.constant 5 : index
    %c0_36 = arith.constant 0 : index
    %c0_37 = arith.constant 0 : index
    %51 = vector.load %arg3[%c5, %c0_36, %c0_37] : memref<9x8x64xbf16, #tpu.memory_space<vmem>>, vector<1x8x64xbf16>
    %52 = vector.shape_cast %51 : vector<1x8x64xbf16> to vector<8x64xbf16>
    %cst_38 = arith.constant dense<0.000000e+00> : vector<256x64xf32>
    %53 = tpu.matmul %50, %52, %cst_38 {dimension_numbers = #tpu.dot_dimension_numbers<[1], [0], [0], [1], [0, 0, 1, 1], [], []>} : vector<256x8xbf16>, vector<8x64xbf16>, vector<256x64xf32> -> vector<256x64xf32>
    %54 = arith.addf %45, %53 : vector<256x64xf32>
    %c2_i32 = arith.constant 2 : i32
    %55 = arith.addi %1, %c2_i32 : i32
    %c0_39 = arith.constant 0 : index
    %56 = arith.index_cast %55 : i32 to index
    %c0_40 = arith.constant 0 : index
    %c0_41 = arith.constant 0 : index
    %57 = vector.load %arg2[%c0_39, %56, %c0_40, %c0_41] : memref<1x34x34x8xbf16, #tpu.memory_space<vmem>>, vector<1x8x32x8xbf16>
    %58 = vector.shape_cast %57 : vector<1x8x32x8xbf16> to vector<8x32x8xbf16>
    %59 = vector.shape_cast %58 : vector<8x32x8xbf16> to vector<256x8xbf16>
    %c6 = arith.constant 6 : index
    %c0_42 = arith.constant 0 : index
    %c0_43 = arith.constant 0 : index
    %60 = vector.load %arg3[%c6, %c0_42, %c0_43] : memref<9x8x64xbf16, #tpu.memory_space<vmem>>, vector<1x8x64xbf16>
    %61 = vector.shape_cast %60 : vector<1x8x64xbf16> to vector<8x64xbf16>
    %cst_44 = arith.constant dense<0.000000e+00> : vector<256x64xf32>
    %62 = tpu.matmul %59, %61, %cst_44 {dimension_numbers = #tpu.dot_dimension_numbers<[1], [0], [0], [1], [0, 0, 1, 1], [], []>} : vector<256x8xbf16>, vector<8x64xbf16>, vector<256x64xf32> -> vector<256x64xf32>
    %63 = arith.addf %54, %62 : vector<256x64xf32>
    %c2_i32_45 = arith.constant 2 : i32
    %64 = arith.addi %1, %c2_i32_45 : i32
    %c0_46 = arith.constant 0 : index
    %65 = arith.index_cast %64 : i32 to index
    %c1_47 = arith.constant 1 : index
    %c0_48 = arith.constant 0 : index
    %66 = vector.load %arg2[%c0_46, %65, %c1_47, %c0_48] : memref<1x34x34x8xbf16, #tpu.memory_space<vmem>>, vector<1x8x32x8xbf16>
    %67 = vector.shape_cast %66 : vector<1x8x32x8xbf16> to vector<8x32x8xbf16>
    %68 = vector.shape_cast %67 : vector<8x32x8xbf16> to vector<256x8xbf16>
    %c7 = arith.constant 7 : index
    %c0_49 = arith.constant 0 : index
    %c0_50 = arith.constant 0 : index
    %69 = vector.load %arg3[%c7, %c0_49, %c0_50] : memref<9x8x64xbf16, #tpu.memory_space<vmem>>, vector<1x8x64xbf16>
    %70 = vector.shape_cast %69 : vector<1x8x64xbf16> to vector<8x64xbf16>
    %cst_51 = arith.constant dense<0.000000e+00> : vector<256x64xf32>
    %71 = tpu.matmul %68, %70, %cst_51 {dimension_numbers = #tpu.dot_dimension_numbers<[1], [0], [0], [1], [0, 0, 1, 1], [], []>} : vector<256x8xbf16>, vector<8x64xbf16>, vector<256x64xf32> -> vector<256x64xf32>
    %72 = arith.addf %63, %71 : vector<256x64xf32>
    %c2_i32_52 = arith.constant 2 : i32
    %73 = arith.addi %1, %c2_i32_52 : i32
    %c0_53 = arith.constant 0 : index
    %74 = arith.index_cast %73 : i32 to index
    %c2_54 = arith.constant 2 : index
    %c0_55 = arith.constant 0 : index
    %75 = vector.load %arg2[%c0_53, %74, %c2_54, %c0_55] : memref<1x34x34x8xbf16, #tpu.memory_space<vmem>>, vector<1x8x32x8xbf16>
    %76 = vector.shape_cast %75 : vector<1x8x32x8xbf16> to vector<8x32x8xbf16>
    %77 = vector.shape_cast %76 : vector<8x32x8xbf16> to vector<256x8xbf16>
    %c8 = arith.constant 8 : index
    %c0_56 = arith.constant 0 : index
    %c0_57 = arith.constant 0 : index
    %78 = vector.load %arg3[%c8, %c0_56, %c0_57] : memref<9x8x64xbf16, #tpu.memory_space<vmem>>, vector<1x8x64xbf16>
    %79 = vector.shape_cast %78 : vector<1x8x64xbf16> to vector<8x64xbf16>
    %cst_58 = arith.constant dense<0.000000e+00> : vector<256x64xf32>
    %80 = tpu.matmul %77, %79, %cst_58 {dimension_numbers = #tpu.dot_dimension_numbers<[1], [0], [0], [1], [0, 0, 1, 1], [], []>} : vector<256x8xbf16>, vector<8x64xbf16>, vector<256x64xf32> -> vector<256x64xf32>
    %81 = arith.addf %72, %80 : vector<256x64xf32>
    %c0_59 = arith.constant 0 : index
    %c0_60 = arith.constant 0 : index
    %82 = vector.load %arg4[%c0_59, %c0_60] : memref<1x64xf32, #tpu.memory_space<vmem>>, vector<1x64xf32>
    %83 = vector.broadcast %82 : vector<1x64xf32> to vector<256x64xf32>
    %84 = arith.addf %81, %83 : vector<256x64xf32>
    %cst_61 = arith.constant 0.000000e+00 : f32
    %85 = vector.broadcast %cst_61 : f32 to vector<256x64xf32>
    %86 = arith.maximumf %84, %85 : vector<256x64xf32>
    %87 = vector.shape_cast %86 : vector<256x64xf32> to vector<4x2x32x64xf32>
    %88 = vector.extract_strided_slice %87 {offsets = [0, 0, 0, 0], sizes = [4, 1, 32, 64], strides = [1, 1, 1, 1]} : vector<4x2x32x64xf32> to vector<4x1x32x64xf32>
    %89 = vector.shape_cast %88 : vector<4x1x32x64xf32> to vector<4x32x64xf32>
    %90 = vector.extract_strided_slice %87 {offsets = [0, 1, 0, 0], sizes = [4, 1, 32, 64], strides = [1, 1, 1, 1]} : vector<4x2x32x64xf32> to vector<4x1x32x64xf32>
    %91 = vector.shape_cast %90 : vector<4x1x32x64xf32> to vector<4x32x64xf32>
    %92 = arith.maximumf %89, %91 : vector<4x32x64xf32>
    %93 = vector.shape_cast %92 : vector<4x32x64xf32> to vector<4x16x2x64xf32>
    %cst_62 = arith.constant dense<0xFF800000> : vector<4x16x64xf32>
    %94 = vector.multi_reduction <maximumf>, %93, %cst_62 [2] : vector<4x16x2x64xf32> to vector<4x16x64xf32>
    %95 = vector.shape_cast %94 : vector<4x16x64xf32> to vector<1x4x16x64xf32>
    %96 = arith.truncf %95 : vector<1x4x16x64xf32> to vector<1x4x16x64xbf16>
    %c0_63 = arith.constant 0 : index
    %c0_64 = arith.constant 0 : index
    %c0_65 = arith.constant 0 : index
    %c0_66 = arith.constant 0 : index
    %97 = vector.load %arg5[%c0_63, %c0_64, %c0_65, %c0_66] : memref<1x4x16x64xbf16, #tpu.memory_space<vmem>>, vector<1x4x16x64xbf16>
    tpu.vector_store %arg5[%c0_63, %c0_64, %c0_65, %c0_66], %96 {strides = array<i32>} : memref<1x4x16x64xbf16, #tpu.memory_space<vmem>>, vector<1x4x16x64xbf16>,
    return
  }
  func.func @transform_0(%arg0: i32, %arg1: i32) -> (i32, i32, i32, i32) {
    %c0_i32 = arith.constant 0 : i32
    %c0_i32_0 = arith.constant 0 : i32
    %c0_i32_1 = arith.constant 0 : i32
    %c0_i32_2 = arith.constant 0 : i32
    return %arg0, %c0_i32, %c0_i32_0, %c0_i32_1 : i32, i32, i32, i32
  }
  func.func @transform_1(%arg0: i32, %arg1: i32) -> (i32, i32, i32) {
    %c0_i32 = arith.constant 0 : i32
    %c0_i32_0 = arith.constant 0 : i32
    %c0_i32_1 = arith.constant 0 : i32
    %c0_i32_2 = arith.constant 0 : i32
    return %c0_i32, %c0_i32_0, %c0_i32_1 : i32, i32, i32
  }
  func.func @transform_2(%arg0: i32, %arg1: i32) -> (i32, i32) {
    %c0_i32 = arith.constant 0 : i32
    %c0_i32_0 = arith.constant 0 : i32
    %c0_i32_1 = arith.constant 0 : i32
    return %c0_i32, %c0_i32_0 : i32, i32
  }
  func.func @transform_3(%arg0: i32, %arg1: i32) -> (i32, i32, i32, i32) {
    %c0_i32 = arith.constant 0 : i32
    %c0_i32_0 = arith.constant 0 : i32
    %c0_i32_1 = arith.constant 0 : i32
    return %arg0, %arg1, %c0_i32, %c0_i32_0 : i32, i32, i32, i32
  }
}

</mosaic_0001>

<bundles_post_ra>
// kernel: tpu_custom_call.1
= control target key start
LH: loop header
LB: loop body
LE: loop exit
PB: predicated region body
PF: predicated region fallthrough
CT: control target
= control target key end

     0   :  { %8 = vsyncpa [#allocation3], 0  ;;  %s5741_s0 = inlined_call_operand.vmem [shape: bf16[2,34,34,8], index: 0, kind: input, shape index: {}]   ;;  %s5742_s1 = inlined_call_operand.vmem [shape: bf16[72,64], index: 1, kind: input, shape index: {}]   ;;  %s5743_s2 = inlined_call_operand.vmem [shape: f32[1,64], index: 2, kind: input, shape index: {}]   ;;  %s5744_s3 = inlined_call_operand.hbm [shape: bf16[2,16,16,64], index: 3, kind: output, shape index: {}]  }
   0x1   :  { %10 = vsyncpa [#allocation3 + $0x1], 0  ;;  %s4203_s12 = smov 0   ;;  %s4205_s13 = smov 0  }
   0x2   :  { %s4207_s14 = smov 0   ;;  %s4209_s15 = smov 0  }
   0x3   :  { %s4211_s16 = smov 0   ;;  %s4213_s17 = smov 0  }
   0x4   :  { %s4215_s18 = smov 0   ;;  %s4217_s19 = smov 0  }
   0x5 LB: > { %s3448_s20 = sadd.s32 4294967295, %s4170_s19   ;;  %s3449_s21 = sadd.s32 4294967294, %s4170_s19   ;;  %s4170_s19 = sphi %s4217_s19, %s16_s19   ;;  %s4166_s18 = sphi %s4215_s18, %s5753_s18   ;;  %s4162_s17 = sphi %s4213_s17, %s5752_s17   ;;  %s4158_s16 = sphi %s4211_s16, %s5751_s16   ;;  %s4154_s15 = sphi %s4209_s15, %s5750_s15   ;;  %s4150_s14 = sphi %s4207_s14, %s5749_s14   ;;  %s4146_s13 = sphi %s4205_s13, %s5748_s13   ;;  %s4142_s12 = sphi %s4203_s12, %s5747_s12  }
   0x6   : > { %s25_s22 = sadd.s32 1, %s4162_s17  ;;  %s28_s23 = sadd.s32 1, %s4166_s18 }
   0x7   : > { %p26_p0 = scmp.ge.s32.totalorder %s25_s22, 4  ;;  %p115_p1 = scmp.ne.s32.totalorder %s4150_s14, %s4146_s13 }
   0x8   : > { %p116_p2 = scmp.eq.s32.totalorder %s3448_s20, 7  ;;  %p121_p5 = scmp.ne.s32.totalorder %s4146_s13, %s4142_s12 }
   0x9   : > { %s5755_s22 = smov (%p26_p0, %s25_s22), 0  ;;  %s5757_s23 = smov (!%p26_p0, %s28_s23), %s4166_s18 }
   0xa   : > { %s101_s24 = ssub.s32 %s4162_s17, %s5755_s22  ;;  %p4254_p3 = por %p116_p2, %p115_p1 }
   0xb   : > { %p30_p4 = scmp.ge.s32.totalorder %s5757_s23, 2  ;;  %p122_p6 = scmp.eq.s32.totalorder %s3449_s21, 7 }
   0xc   : > { %p3452_p7 = scmp.ge.s32.totalorder %s4170_s19, 1  ;;  %p154_p9 = scmp.lt.s32.totalorder %s4170_s19, 9 }
   0xd   : > { %s5759_s23 = smov (%p30_p4, %s5757_s23), 0  ;;  %p4263_p8 = por %p122_p6, %p121_p5 }
   0xe   : > { %s100_s27 = ssub.s32 %s4166_s18, %s5759_s23  ;;  %s105_s28 = sadd.s32 1, %s4150_s14 }
   0xf   : > { %s102_s29 = sor.u32 %s101_s24, %s100_s27  ;;  %p155_p10 = pnand %p3452_p7, %p154_p9 }
  0x10   : > { %p103_p11 = scmp.eq.s32.totalorder %s102_s29, 0  ;;  %p178_p12 = scmp.lt.s32.totalorder (!%p155_p10), %s4158_s16, 1 }
  0x11   : > { %158 = sbr.rel (%p155_p10) target bundleno = 713 (0x2c9), region = 32  ;;  %s4172_s11 = smov (!%p155_p10), 24  }
  0x12   : > { %s4272_s30 = scalar_select %p103_p11, %s4150_s14, %s105_s28  }
  0x13   : > { %s3747_s5 = smul.u32 (!%p155_p10), 160, %s4154_s15  ;;  %s4173_s20 = smov (!%p155_p10), 16  }
  0x14   : > { %s4174_s21 = smov (!%p155_p10), 8   ;;  %s4175_s24 = smov (!%p155_p10), 32  }
  0x15   : > { %s4176_s27 = smov (!%p155_p10), 40   ;;  %s4177_s28 = smov (!%p155_p10), 48  }
  0x16   : > { %s179_s4 = scalar_select %p178_p12, %s4158_s16, 1  ;;  %vm662_vm0 = vcmask 1046528   ;;  %vm445_vm1 = vsmask.f32 7424  ;;  %vm1923_vm2 = vcmask 1043456   ;;  %vm1583_vm3 = vcmask 64512  }
  0x17   : > { %s4178_s29 = smov 56   ;;  %vm1616_vm4 = vcmask 130048   ;;  %vm1649_vm5 = vcmask 195584   ;;  %vm1682_vm6 = vcmask 261120   ;;  %vm1715_vm7 = vcmask 326656  }
  0x18   : > { %s3888_s6 = smul.u32 680, %s179_s4  ;;  %s4179_s4 = smov 64   ;;  %vm1748_vm8 = vcmask 392192   ;;  %vm1781_vm9 = vcmask 457728   ;;  %vm1814_vm10 = vcmask 523264   ;;  %vm1890_vm11 = vcmask 588800  }
  0x19   : > { %vm2488_vm12 = vcmask 517120   ;;  %vm3257_vm13 = vcmask 1041409   ;;  %vm3259_vm14 = vcmask 1042434   ;;  %vm3261_vm15 = vcmask 1043459  }
  0x1a   : > { %s182_s9 = scalar_lea.vmem %s5741_s0, %s3888_s6 }
  0x1b   : > { %s4280_s10 = scalar_lea.vmem %s182_s9, %s3747_s5  ;;  %s3743_s5 = sshll.u32 %s4158_s16, 5 }
  0x1c   : > { %v3476_v0 = vld [vmem:[%s4280_s10 + $0x64] sm:$0xf]  ;;  %v4284_v1 = vld [vmem:[%s4280_s10 + $0x68] sm:$0xf]  ;;  %v3460_v3 = vld [vmem:[%s4280_s10 + $0x14] sm:$0xf] }
  0x1d   : > { %v4287_v2 = vcombine.low %v3476_v0, %v4284_v1  ;;  %v4291_v4 = vld [vmem:[%s4280_s10 + $0x18] sm:$0xf]  ;;  %v206_v6 = vld [vmem:[%s4280_s10 + $0x54] sm:$0xf]  ;;  %v233_v7 = vld [vmem:[%s4280_s10 + $0x50] sm:$0xe] }
  0x1e   : > { %v4294_v5 = vcombine.low %v3460_v3, %v4291_v4  ;;  %v3974_v8 = vld [vmem:[%s4280_s10 + $0x58] sm:$0xff]   ;;  %v205_v9 = vld [vmem:[%s4280_s10 + $0x50] sm:$0xf]  ;;  %v3586_v10 = vcombine.low %v233_v7, %v206_v6  ;;  %v190_v11 = vld [vmem:[%s4280_s10 + $0x4] sm:$0xf] }
  0x1f   : > { %831 = vrot.lane.b32.xlu1 %v4287_v2, %s4172_s11  ;;  %v3977_v12 = vld [vmem:[%s4280_s10 + $0x8] sm:$0xff]   ;;  %v684_v13 = vrot.slane %v3974_v8, 1  ;;  %v229_v14 = vld [vmem:[%s4280_s10] sm:$0xe]  ;;  %v534_v15 = vshll.u32 %v3974_v8, 16  ;;  %v4308_v20 = vcombine.low %v205_v9, %v206_v6  ;;  %v538_v36 = vshrl.u32 %v3974_v8, 16 }
  0x20   : > { %815 = vrot.lane.b32.xlu0 %v4294_v5, %s4172_s11  ;;  %v683_v16 = vrot.slane %v3586_v10, 1  ;;  %v3582_v17 = vcombine.low %v229_v14, %v190_v11  ;;  %v664_v18 = vrot.slane %v3977_v12, 1  ;;  %v189_v19 = vld [vmem:[%s4280_s10] sm:$0xf]  ;;  %v454_v23 = vshll.u32 %v3977_v12, 16  ;;  %v4328_v50 = vld [vmem:[%s4280_s10 + $0x6c] sm:$0xff]  }
  0x21   : > { %v4310_v21 = vcombine.low %v189_v19, %v190_v11  ;;  %v3980_v22 = vld [vmem:[%s4280_s10 + $0x60] ss:$0 sps:$4 sm:$0x11]   ;;  %v3981_v26 = vld [vmem:[%s4280_s10 + $0x10] ss:$0 sps:$4 sm:$0x11]  }
  0x22   : > { %v685_v24 = vsel %vm662_vm0, %v683_v16, %v684_v13  ;;  %v663_v25 = vrot.slane %v3582_v17, 1  ;;  %v458_v27 = vshrl.u32 %v3977_v12, 16  ;;  %v536_v28 = vrot.slane %v534_v15, 1  ;;  %v4334_v54 = vld [vmem:[%s4280_s10 + $0x1c] sm:$0xff]   ;;  %v3504_v9 = vld [vmem:[%s4280_s10 + $0x64] sm:$0xe] }
  0x23   : > { %719 = vrot.lane.b32.xlu1 %v685_v24, %s4173_s20  ;;  %v686_v29 = vrot.slane %v3980_v22, 1  ;;  %v456_v30 = vrot.slane %v454_v23, 1  ;;  %v447_v31 = vshrl.u32 %v4310_v21, 16  ;;  %v449_v32 = vshll.u32 %v4310_v21, 16 }
  0x24   : > { %v665_v33 = vsel %vm662_vm0, %v663_v25, %v664_v18  ;;  %v666_v34 = vrot.slane %v3981_v26, 1  ;;  %v462_v35 = vshll.u32 %v3981_v26, 16  ;;  %v542_v40 = vshll.u32 %v3980_v22, 16  ;;  %v3984_v60 = vld [vmem:[%s4280_s10 + $0x74] ss:$0 sps:$4 sm:$0x11]  }
  0x25   : > { %703 = vrot.lane.b32.xlu0 %v665_v33, %s4173_s20  ;;  %v687_v37 = vsel %vm662_vm0, %v684_v13, %v686_v29  ;;  %v460_v38 = vor.u32 %v458_v27, %v456_v30  ;;  %v451_v39 = vrot.slane %v449_v32, 1  ;;  %v527_v44 = vshrl.u32 %v4308_v20, 16  ;;  %v3985_v62 = vld [vmem:[%s4280_s10 + $0x24] ss:$0 sps:$4 sm:$0x11]  }
  0x26   : > { %v667_v41 = vsel %vm662_vm0, %v664_v18, %v666_v34  ;;  %v464_v42 = vrot.slane %v462_v35, 1  ;;  %v529_v45 = vshll.u32 %v4308_v20, 16  ;;  %v954_v46 = vshll.u32 %v4287_v2, 16  ;;  %v3500_v13 = vld [vmem:[%s4280_s10 + $0x14] sm:$0xe] }
  0x27   : > { %721 = vrot.lane.b32.xlu1 %v687_v37, %s4173_s20  ;;  %v452_v43 = vor.u32 %v451_v39, %v447_v31  ;;  %v540_v48 = vor.u32 %v538_v36, %v536_v28  ;;  %v544_v49 = vrot.slane %v542_v40, 1  ;;  %v874_v52 = vshll.u32 %v4294_v5, 16  ;;  %v3526_v26 = vld [vmem:[%s4280_s10 + $0x78] sm:$0xf]  ;;  %v4366_v27 = vld [vmem:[%s4280_s10 + $0x7c] sm:$0xf] }
  0x28   : > { %v465_v47 = vsel %vm445_vm1, %v460_v38, %v464_v42  ;;  %v531_v51 = vrot.slane %v529_v45, 1  ;;  %v952_v57 = vshrl.u32 %v4287_v2, 16  ;;  %v956_v58 = vrot.slane %v954_v46, 1  ;;  %v4373_v31 = vld [vmem:[%s4280_s10 + $0x2c] sm:$0xf]  ;;  %v4383_v40 = vld [vmem:[%s4280_s10 + $0x80] sm:$0xff]  }
  0x29   : > { %705 = vrot.lane.b32.xlu0 %v667_v41, %s4173_s20  ;;  %v457_v53 = vsel %vm445_vm1, %v452_v43, %v456_v30  ;;  %v545_v56 = vsel %vm445_vm1, %v540_v48, %v544_v49  ;;  %v959_v59 = vshll.u32 %v4328_v50, 16  ;;  %v872_v61 = vshrl.u32 %v4294_v5, 16  ;;  %v3510_v30 = vld [vmem:[%s4280_s10 + $0x28] sm:$0xf]  ;;  %v4388_v43 = vld [vmem:[%s4280_s10 + $0x30] sm:$0xff]  }
  0x2a   : > { %v532_v55 = vor.u32 %v531_v51, %v527_v44  ;;  %v876_v0 = vrot.slane %v874_v52, 1  ;;  %v879_v3 = vshll.u32 %v4334_v54, 16  ;;  %v957_v6 = vor.u32 %v956_v58, %v952_v57  ;;  %v209_v48 = vld [vmem:[%s4280_s10 + $0x64] sm:$0xf]  ;;  %v4398_v49 = vld [vmem:[%s4280_s10 + $0x68] sm:$0xf] }
  0x2b   : > { %608 = vrot.lane.b32.xlu1 %v465_v47, %s4174_s21  ;;  %v961_v7 = vrot.slane %v959_v59, 1  ;;  %v963_v2 = vshrl.u32 %v4328_v50, 16  ;;  %v967_v8 = vshll.u32 %v3984_v60, 16  ;;  %v883_v5 = vshrl.u32 %v4334_v54, 16  ;;  %v4409_v57 = vld [vmem:[%s4280_s10 + $0x18] sm:$0xf] }
  0x2c   : > { %v537_v63 = vsel %vm445_vm1, %v532_v55, %v536_v28  ;;  %v877_v10 = vor.u32 %v876_v0, %v872_v61  ;;  %v881_v11 = vrot.slane %v879_v3, 1  ;;  %v887_v12 = vshll.u32 %v3985_v62, 16  ;;  %v4393_v47 = vld [vmem:[%s4280_s10 + $0x88] ss:$0 sps:$4 sm:$0x11]  }
  0x2d   : > { %606 = vrot.lane.b32.xlu0 %v457_v53, %s4174_s21  ;;  %v3618_v14 = vcombine.low %v3504_v9, %v4284_v1  ;;  %v962_v15 = vsel %vm445_vm1, %v957_v6, %v961_v7  ;;  %v965_v16 = vor.u32 %v963_v2, %v961_v7  ;;  %v969_v17 = vrot.slane %v967_v8, 1  ;;  %v3550_v58 = vld [vmem:[%s4280_s10 + $0x28] sm:$0xe] }
  0x2e   : > { %v3614_v18 = vcombine.low %v3500_v13, %v4291_v4  ;;  %v882_v19 = vsel %vm445_vm1, %v877_v10, %v881_v11  ;;  %v885_v22 = vor.u32 %v883_v5, %v881_v11  ;;  %v889_v23 = vrot.slane %v887_v12, 1  ;;  %v4427_v11 = vld [vmem:[%s4280_s10 + $0x6c] sm:$0xff]  }
  0x2f   : > { %624 = vrot.lane.b32.xlu1 %v545_v56, %s4174_s21  ;;  %v970_v1 = vsel %vm445_vm1, %v965_v16, %v969_v17  ;;  %v1107_v24 = vrot.slane %v3618_v14, 1  ;;  %v1108_v25 = vrot.slane %v4328_v50, 1  ;;  %v1088_v29 = vrot.slane %v4334_v54, 1  ;;  %v193_v56 = vld [vmem:[%s4280_s10 + $0x14] sm:$0xf]  ;;  %v4435_v16 = vld [vmem:[%s4280_s10 + $0x1c] sm:$0xff]  }
  0x30   : > { %v890_v4 = vsel %vm445_vm1, %v885_v22, %v889_v23  ;;  %v1087_v28 = vrot.slane %v3614_v18, 1  ;;  %v1110_v33 = vrot.slane %v3984_v60, 1  ;;  %v3630_v34 = vcombine.low %v3526_v26, %v4366_v27 }
  0x31   : > { %622 = vrot.lane.b32.xlu0 %v537_v63, %s4174_s21  ;;  %v1109_v32 = vsel %vm662_vm0, %v1107_v24, %v1108_v25  ;;  %v1090_v36 = vrot.slane %v3985_v62, 1  ;;  %v3622_v37 = vcombine.low %v3510_v30, %v4373_v31  ;;  %v1383_v46 = vshll.u32 %v4383_v40, 16 }
  0x32   : > { %v1089_v35 = vsel %vm662_vm0, %v1087_v28, %v1088_v29  ;;  %v1111_v38 = vsel %vm662_vm0, %v1108_v25, %v1110_v33  ;;  %v1378_v39 = vshll.u32 %v3630_v34, 16  ;;  %v1376_v44 = vshrl.u32 %v3630_v34, 16  ;;  %v3998_v33 = vld [vmem:[%s4280_s10 + $0x74] ss:$0 sps:$4 sm:$0x11]  }
  0x33   : > { %833 = vrot.lane.b32.xlu1 %v4328_v50, %s4172_s11  ;;  %v1091_v41 = vsel %vm662_vm0, %v1088_v29, %v1090_v36  ;;  %v1298_v42 = vshll.u32 %v3622_v37, 16  ;;  %v3554_v50 = vld [vmem:[%s4280_s10 + $0x78] sm:$0xe]  ;;  %v1296_v51 = vshrl.u32 %v3622_v37, 16  ;;  %v1303_v53 = vshll.u32 %v4388_v43, 16 }
  0x34   : > { %v1380_v45 = vrot.slane %v1378_v39, 1  ;;  %v1387_v55 = vshrl.u32 %v4383_v40, 16  ;;  %v1385_v60 = vrot.slane %v1383_v46, 1  ;;  %v1391_v61 = vshll.u32 %v4393_v47, 16 }
  0x35   : > { %817 = vrot.lane.b32.xlu0 %v4334_v54, %s4172_s11  ;;  %v1300_v52 = vrot.slane %v1298_v42, 1  ;;  %v4403_v54 = vld [vmem:[%s4280_s10 + $0x38] ss:$0 sps:$4 sm:$0x11]   ;;  %v4414_v62 = vcombine.low %v209_v48, %v4398_v49  ;;  %v1307_v63 = vshrl.u32 %v4388_v43, 16  ;;  %v1305_v3 = vrot.slane %v1303_v53, 1 }
  0x36   : > { %v1381_v59 = vor.u32 %v1380_v45, %v1376_v44  ;;  %v1311_v6 = vshll.u32 %v4403_v54, 16  ;;  %v4420_v7 = vcombine.low %v193_v56, %v4409_v57  ;;  %v3650_v2 = vcombine.low %v3554_v50, %v4366_v27  ;;  %v234_v42 = vld [vmem:[%s4280_s10 + $0x64] sm:$0xe]  ;;  %v230_v48 = vld [vmem:[%s4280_s10 + $0x14] sm:$0xe] }
  0x37   : > { %1047 = vrot.lane.b32.xlu1 %v962_v15, %s4175_s24  ;;  %v1301_v0 = vor.u32 %v1300_v52, %v1296_v51  ;;  %v1389_v9 = vor.u32 %v1387_v55, %v1385_v60  ;;  %v1393_v10 = vrot.slane %v1391_v61, 1  ;;  %v549_v5 = vshll.u32 %v4414_v62, 16  ;;  %v4476_v61 = vld [vmem:[%s4280_s10 + $0x7c] sm:$0xf] }
  0x38   : > { %v1386_v8 = vsel %vm445_vm1, %v1381_v59, %v1385_v60  ;;  %v3646_v12 = vcombine.low %v3550_v58, %v4373_v31  ;;  %v1309_v14 = vor.u32 %v1307_v63, %v1305_v3  ;;  %v1313_v15 = vrot.slane %v1311_v6, 1  ;;  %v4483_v6 = vld [vmem:[%s4280_s10 + $0x2c] sm:$0xf] }
  0x39   : > { %1031 = vrot.lane.b32.xlu0 %v882_v19, %s4175_s24  ;;  %v1306_v13 = vsel %vm445_vm1, %v1301_v0, %v1305_v3  ;;  %v469_v17 = vshll.u32 %v4420_v7, 16  ;;  %v1531_v18 = vrot.slane %v3650_v2, 1  ;;  %v1532_v19 = vrot.slane %v4383_v40, 1 }
  0x3a   : > { %v1394_v22 = vsel %vm445_vm1, %v1389_v9, %v1393_v10  ;;  %v547_v23 = vshrl.u32 %v4414_v62, 16  ;;  %v554_v24 = vshll.u32 %v4427_v11, 16  ;;  %v1511_v25 = vrot.slane %v3646_v12, 1  ;;  %v4034_v10 = vld [vmem:[%s5742_s1 + $0x20] ss:$0 sps:$4 sm:$0xff]  }
  0x3b   : > { %1049 = vrot.lane.b32.xlu1 %v970_v1, %s4175_s24  ;;  %v551_v1 = vrot.slane %v549_v5, 1  ;;  %v1512_v26 = vrot.slane %v4388_v43, 1  ;;  %v1314_v27 = vsel %vm445_vm1, %v1309_v14, %v1313_v15  ;;  %v471_v28 = vrot.slane %v469_v17, 1  ;;  %v4496_v15 = vld [vmem:[%s4280_s10 + $0x80] sm:$0xff]   ;;  %3886 = vmatprep.subr.msk.bf16.mxu0 %vm1923_vm2, %v4034_v10 }
  0x3c   : > { %v474_v29 = vshll.u32 %v4435_v16, 16  ;;  %v1533_v30 = vsel %vm662_vm0, %v1531_v18, %v1532_v19  ;;  %v1534_v39 = vrot.slane %v4393_v47, 1  ;;  %v1514_v44 = vrot.slane %v4403_v54, 1  ;;  %3887 = vmatprep.subr.msk.bf16.mxu1 %vm1923_vm2, %v4034_v10 }
  0x3d   : > { %1033 = vrot.lane.b32.xlu0 %v890_v4, %s4175_s24  ;;  %v467_v4 = vshrl.u32 %v4420_v7, 16  ;;  %v552_v31 = vor.u32 %v551_v1, %v547_v23  ;;  %v478_v45 = vshrl.u32 %v4435_v16, 16  ;;  %v3587_v52 = vcombine.low %v234_v42, %v4398_v49  ;;  %v3480_v49 = vld [vmem:[%s4280_s10 + $0x78] sm:$0xf] }
  0x3e   : > { %v476_v36 = vrot.slane %v474_v29, 1  ;;  %v1535_v47 = vsel %vm662_vm0, %v1532_v19, %v1534_v39  ;;  %v1515_v53 = vsel %vm662_vm0, %v1512_v26, %v1514_v44  ;;  %v3583_v56 = vcombine.low %v230_v48, %v4409_v57  ;;  %v3464_v57 = vld [vmem:[%s4280_s10 + $0x28] sm:$0xf]  ;;  %v4504_v19 = vld [vmem:[%s4280_s10 + $0x30] sm:$0xff]  }
  0x3f   : > { %1143 = vrot.lane.b32.xlu1 %v1109_v32, %s4176_s27  ;;  %v556_v32 = vrot.slane %v554_v24, 1  ;;  %v688_v59 = vrot.slane %v3587_v52, 1  ;;  %v689_v60 = vrot.slane %v4427_v11, 1  ;;  %v669_v3 = vrot.slane %v4435_v16, 1  ;;  %v4035_v16 = vld [vmem:[%s5742_s1 + $0x18] sm:$0xff]  }
  0x40   : > { %v480_v54 = vor.u32 %v478_v45, %v476_v36  ;;  %v668_v0 = vrot.slane %v3583_v56, 1  ;;  %v3600_v9 = vcombine.low %v3480_v49, %v4476_v61  ;;  %v3592_v12 = vcombine.low %v3464_v57, %v4483_v6  ;;  %v4508_v23 = vld [vmem:[%s4280_s10 + $0x88] ss:$0 sps:$4 sm:$0x11]   ;;  %v4044_v45 = vld [vmem:[%s5742_s1] sm:$0xff]  }
  0x41   : > { %1127 = vrot.lane.b32.xlu0 %v1089_v35, %s4176_s27  ;;  %v472_v35 = vor.u32 %v471_v28, %v467_v4  ;;  %v690_v2 = vsel %vm662_vm0, %v688_v59, %v689_v60  ;;  %v899_v29 = vshll.u32 %v4504_v19, 16  ;;  %v1093_v59 = vrot.slane %v4504_v19, 1  ;;  %v4554_v49 = vld [vmem:[%s4280_s10 + $0x40] sm:$0xf] }
  0x42   : > { %v974_v14 = vshll.u32 %v3600_v9, 16  ;;  %v894_v18 = vshll.u32 %v3592_v12, 16  ;;  %v972_v1 = vshrl.u32 %v3600_v9, 16  ;;  %v892_v4 = vshrl.u32 %v3592_v12, 16 }
  0x43   : > { %1145 = vrot.lane.b32.xlu1 %v1111_v38, %s4176_s27  ;;  %v557_v38 = vsel %vm445_vm1, %v552_v31, %v556_v32 }
  0x44   : > { %v976_v24 = vrot.slane %v974_v14, 1  ;;  %v896_v28 = vrot.slane %v894_v18, 1 }
  0x45   : > { %1129 = vrot.lane.b32.xlu0 %v1091_v41, %s4176_s27  ;;  %v562_v41 = vshll.u32 %v3998_v33, 16 }
  0x47   : > { %1255 = vrot.lane.b32.xlu1 %v3630_v34, %s4177_s28  ;;  %v1513_v34 = vsel %vm662_vm0, %v1511_v25, %v1512_v26  ;;  %v564_v51 = vrot.slane %v562_v41, 1  ;;  %v979_v25 = vshll.u32 %v4496_v15, 16  ;;  %v4036_v26 = vld [vmem:[%s5742_s1 + $0x10] sm:$0xff]  }
  0x49   : > { %1239 = vrot.lane.b32.xlu0 %v3622_v37, %s4177_s28  ;;  %v3999_v37 = vld [vmem:[%s4280_s10 + $0x24] ss:$0 sps:$4 sm:$0x11]   ;;  %v981_v31 = vrot.slane %v979_v25, 1  ;;  %v4590_v25 = vld [vmem:[%s4280_s10 + $0x2c] sm:$0xf] }
  0x4a   : > { %v482_v46 = vshll.u32 %v3999_v37, 16  ;;  %v671_v5 = vrot.slane %v3999_v37, 1  ;;  %v901_v37 = vrot.slane %v899_v29, 1 }
  0x4b   : > { %1257 = vrot.lane.b32.xlu1 %v4383_v40, %s4177_s28  ;;  %v558_v40 = vshrl.u32 %v4427_v11, 16  ;;  %v670_v11 = vsel %vm662_vm0, %v668_v0, %v669_v3 }
  0x4c   : > { %v484_v55 = vrot.slane %v482_v46, 1  ;;  %v672_v17 = vsel %vm662_vm0, %v669_v3, %v671_v5  ;;  %v4571_v5 = vld [vmem:[%s4280_s10 + $0x44] sm:$0xff]  }
  0x4d   : > { %1241 = vrot.lane.b32.xlu0 %v4388_v43, %s4177_s28  ;;  %v477_v43 = vsel %vm445_vm1, %v472_v35, %v476_v36  ;;  %v560_v50 = vor.u32 %v558_v40, %v556_v32  ;;  %v983_v32 = vshrl.u32 %v4496_v15, 16  ;;  %v3505_v35 = vld [vmem:[%s4280_s10 + $0x78] sm:$0xe]  ;;  %v897_v36 = vor.u32 %v896_v28, %v892_v4  ;;  %v3501_v40 = vld [vmem:[%s4280_s10 + $0x28] sm:$0xe] }
  0x4e   : > { %v485_v63 = vsel %vm445_vm1, %v480_v54, %v484_v55  ;;  %v3619_v41 = vcombine.low %v3505_v35, %v4476_v61  ;;  %v3615_v46 = vcombine.low %v3501_v40, %v4483_v6  ;;  %v3530_v54 = vld [vmem:[%s4280_s10 + $0x8c] sm:$0xf]  ;;  %v4547_v55 = vld [vmem:[%s4280_s10 + $0x90] sm:$0xf]  ;;  %v4610_v40 = vld [vmem:[%s4280_s10 + $0x80] sm:$0xff]  }
  0x4f   : > { %1471 = vrot.lane.b32.xlu1 %v1386_v8, %s4178_s29  ;;  %v565_v58 = vsel %vm445_vm1, %v560_v50, %v564_v51  ;;  %v691_v8 = vrot.slane %v3998_v33, 1  ;;  %v987_v33 = vshll.u32 %v4508_v23, 16  ;;  %v902_v48 = vsel %vm445_vm1, %v897_v36, %v901_v37 }
  0x50   : > { %v1112_v52 = vrot.slane %v3619_v41, 1  ;;  %v3632_v0 = vcombine.low %v3530_v54, %v4547_v55 }
  0x51   : > { %1455 = vrot.lane.b32.xlu0 %v1306_v13, %s4178_s29  ;;  %v692_v13 = vsel %vm662_vm0, %v689_v60, %v691_v8  ;;  %v989_v44 = vrot.slane %v987_v33, 1  ;;  %v3514_v60 = vld [vmem:[%s4280_s10 + $0x3c] sm:$0xf] }
  0x52   : > { %v3624_v6 = vcombine.low %v3514_v60, %v4554_v49 }
  0x53   : > { %1473 = vrot.lane.b32.xlu1 %v1394_v22, %s4178_s29  ;;  %v1925_v22 = vsel %vm1923_vm2, %v4034_v10, 0  ;;  %vm3267_vm2 = vcmask 1046534  }
  0x54   : > { %3835 = vmatpush3.bf16.msra.mxu0 %v1925_v22  ;;  %3881 = vmatpush3.bf16.msra.mxu1 %v1925_v22  ;;  %v1316_v18 = vshrl.u32 %v3624_v6, 16  ;;  %v1323_v22 = vshll.u32 %v4571_v5, 16 }
  0x55   : > { %1457 = vrot.lane.b32.xlu0 %v1314_v27, %s4178_s29  ;;  %3836 = vmatprep.subr.bf16.mxu0 %v4035_v16  ;;  %v4516_v27 = vld [vmem:[%s4280_s10 + $0x38] ss:$0 sps:$4 sm:$0x11]  }
  0x56   : > { %3877 = vmatprep.subr.bf16.mxu1 %v4035_v16  ;;  %v907_v39 = vshll.u32 %v4516_v27, 16  ;;  %v1095_v57 = vrot.slane %v4516_v27, 1  ;;  %v1325_v33 = vrot.slane %v1323_v22, 1 }
  0x57   : > { %1567 = vrot.lane.b32.xlu1 %v1533_v30, %s4179_s4  ;;  %v977_v30 = vor.u32 %v976_v24, %v972_v1  ;;  %v197_v24 = vld [vmem:[%s4280_s10 + $0x28] sm:$0xf] }
  0x58   : > { %3837 = vmatpush3.bf16.msra.mxu0 %v4035_v16  ;;  %3882 = vmatpush3.bf16.msra.mxu1 %v4035_v16  ;;  %v909_v50 = vrot.slane %v907_v39, 1  ;;  %v1096_v10 = vsel %vm662_vm0, %v1093_v59, %v1095_v57  ;;  %v213_v16 = vld [vmem:[%s4280_s10 + $0x78] sm:$0xf]  ;;  %v4603_v35 = vcombine.low %v197_v24, %v4590_v25 }
  0x59   : > { %1551 = vrot.lane.b32.xlu0 %v1513_v34, %s4179_s4  ;;  %3838 = vmatprep.subr.bf16.mxu0 %v4036_v26  ;;  %v4041_v34 = vld [vmem:[%s5742_s1 + $0x8] sm:$0xff]   ;;  %v982_v42 = vsel %vm445_vm1, %v977_v30, %v981_v31  ;;  %v1327_v30 = vshrl.u32 %v4571_v5, 16 }
  0x5a   : > { %3878 = vmatprep.subr.bf16.mxu1 %v4036_v26 }
  0x5b   : > { %626 = vrot.lane.b32.xlu1 %v557_v38, %s4174_s21  ;;  %v903_v38 = vshrl.u32 %v4504_v19, 16 }
  0x5c   : > { %3839 = vmatpush3.bf16.msra.mxu0 %v4036_v26  ;;  %3883 = vmatpush3.bf16.msra.mxu1 %v4036_v26  ;;  %v3555_v26 = vld [vmem:[%s4280_s10 + $0x8c] sm:$0xe] }
  0x5d   : > { %610 = vrot.lane.b32.xlu0 %v477_v43, %s4174_s21  ;;  %v985_v43 = vor.u32 %v983_v32, %v981_v31  ;;  %3840 = vmatprep.subr.bf16.mxu0 %v4041_v34  ;;  %v3551_v31 = vld [vmem:[%s4280_s10 + $0x3c] sm:$0xe]  ;;  %v3651_v36 = vcombine.low %v3555_v26, %v4547_v55  ;;  %v574_v55 = vshll.u32 %v4610_v40, 16 }
  0x5e   : > { %3879 = vmatprep.subr.bf16.mxu1 %v4041_v34 }
  0x5f   : > { %1569 = vrot.lane.b32.xlu1 %v1535_v47, %s4179_s4  ;;  %v905_v47 = vor.u32 %v903_v38, %v901_v37  ;;  %v990_v51 = vsel %vm445_vm1, %v985_v43, %v989_v44  ;;  %v1329_v44 = vor.u32 %v1327_v30, %v1325_v33  ;;  %v576_v57 = vrot.slane %v574_v55, 1 }
  0x60   : > { %3841 = vmatpush3.bf16.msra.mxu0 %v4041_v34  ;;  %3884 = vmatpush3.bf16.msra.mxu1 %v4041_v34 }
  0x61   : > { %1553 = vrot.lane.b32.xlu0 %v1515_v53, %s4179_s4  ;;  %v1113_v53 = vrot.slane %v4496_v15, 1  ;;  %3842 = vmatprep.subr.bf16.mxu0 %v4044_v45  ;;  %v910_v56 = vsel %vm445_vm1, %v905_v47, %v909_v50  ;;  %v1536_v50 = vrot.slane %v3651_v36, 1 }
  0x62   : > { %3880 = vmatprep.subr.bf16.mxu1 %v4044_v45 }
  0x63   : > { %628 = vrot.lane.b32.xlu1 %v565_v58, %s4174_s21  ;;  %v1092_v58 = vrot.slane %v3615_v46, 1  ;;  %v1114_v61 = vsel %vm662_vm0, %v1112_v52, %v1113_v53  ;;  %v4618_v46 = vld [vmem:[%s4280_s10 + $0x30] sm:$0xff]  }
  0x64   : > { %3843 = vmatpush3.bf16.msra.mxu0 %v4044_v45  ;;  %3885 = vmatpush3.bf16.msra.mxu1 %v4044_v45  ;;  %v498_v24 = vshrl.u32 %v4618_v46, 16 }
  0x65   : > { %612 = vrot.lane.b32.xlu0 %v485_v63, %s4174_s21  ;;  %v1115_v63 = vrot.slane %v4508_v23, 1  ;;  %v1094_v3 = vsel %vm662_vm0, %v1092_v58, %v1093_v59  ;;  %v4585_v23 = vld [vmem:[%s4280_s10 + $0x4c] ss:$0 sps:$4 sm:$0x11]   ;;  %v1517_v59 = vrot.slane %v4571_v5, 1 }
  0x66   : > { %v1331_v34 = vshll.u32 %v4585_v23, 16 }
  0x67   : > { %723 = vrot.lane.b32.xlu1 %v690_v2, %s4173_s20  ;;  %v4565_v2 = vld [vmem:[%s4280_s10 + $0x94] sm:$0xff]   ;;  %v1116_v8 = vsel %vm662_vm0, %v1113_v53, %v1115_v63  ;;  %v494_v63 = vshll.u32 %v4618_v46, 16 }
  0x68   : > { %v1407_v4 = vshrl.u32 %v4565_v2, 16  ;;  %v1333_v45 = vrot.slane %v1331_v34, 1 }
  0x69   : > { %707 = vrot.lane.b32.xlu0 %v670_v11, %s4173_s20  ;;  %v1318_v11 = vshll.u32 %v3624_v6, 16 }
  0x6a   : > { %v1334_v60 = vsel %vm445_vm1, %v1329_v44, %v1333_v45  ;;  %v674_v45 = vrot.slane %v4618_v46, 1 }
  0x6b   : > { %725 = vrot.lane.b32.xlu1 %v692_v13, %s4173_s20  ;;  %v1396_v13 = vshrl.u32 %v3632_v0, 16 }
  0x6d   : > { %709 = vrot.lane.b32.xlu0 %v672_v17, %s4173_s20  ;;  %v4581_v17 = vld [vmem:[%s4280_s10 + $0x7c] sm:$0xf] }
  0x6e   : > { %v4596_v29 = vcombine.low %v213_v16, %v4581_v17 }
  0x6f   : > { %835 = vrot.lane.b32.xlu1 %v3600_v9, %s4172_s11  ;;  %v1398_v9 = vshll.u32 %v3632_v0, 16 }
  0x70   : > { %v569_v41 = vshll.u32 %v4596_v29, 16  ;;  %v567_v53 = vshrl.u32 %v4596_v29, 16 }
  0x71   : > { %819 = vrot.lane.b32.xlu0 %v3592_v12, %s4172_s11  ;;  %v1403_v12 = vshll.u32 %v4565_v2, 16  ;;  %v1400_v14 = vrot.slane %v1398_v9, 1 }
  0x72   : > { %v571_v54 = vrot.slane %v569_v41, 1 }
  0x73   : > { %837 = vrot.lane.b32.xlu1 %v4496_v15, %s4172_s11  ;;  %v4576_v15 = vld [vmem:[%s4280_s10 + $0x9c] ss:$0 sps:$4 sm:$0x11]   ;;  %v1405_v1 = vrot.slane %v1403_v12, 1  ;;  %v1401_v27 = vor.u32 %v1400_v14, %v1396_v13  ;;  %v578_v14 = vshrl.u32 %v4610_v40, 16 }
  0x74   : > { %v1411_v28 = vshll.u32 %v4576_v15, 16  ;;  %v1539_v13 = vrot.slane %v4576_v15, 1  ;;  %v231_v15 = vld [vmem:[%s4280_s10 + $0x28] sm:$0xe] }
  0x75   : > { %821 = vrot.lane.b32.xlu0 %v4504_v19, %s4172_s11  ;;  %v1320_v19 = vrot.slane %v1318_v11, 1  ;;  %v1406_v37 = vsel %vm445_vm1, %v1401_v27, %v1405_v1  ;;  %v1409_v38 = vor.u32 %v1407_v4, %v1405_v1  ;;  %v4023_v11 = vld [vmem:[%s4280_s10 + $0x38] ss:$0 sps:$4 sm:$0x11]   ;;  %v1519_v1 = vrot.slane %v4585_v23, 1 }
  0x76   : > { %v1413_v39 = vrot.slane %v1411_v28, 1  ;;  %v502_v26 = vshll.u32 %v4023_v11, 16  ;;  %v580_v28 = vor.u32 %v578_v14, %v576_v57  ;;  %v3584_v36 = vcombine.low %v231_v15, %v4590_v25 }
  0x77   : > { %1051 = vrot.lane.b32.xlu1 %v982_v42, %s4175_s24  ;;  %v1321_v32 = vor.u32 %v1320_v19, %v1316_v18  ;;  %v3647_v42 = vcombine.low %v3551_v31, %v4554_v49  ;;  %v487_v49 = vshrl.u32 %v4603_v35, 16  ;;  %v235_v19 = vld [vmem:[%s4280_s10 + $0x78] sm:$0xe]  ;;  %v1520_v23 = vsel %vm662_vm0, %v1517_v59, %v1519_v1 }
  0x78   : > { %v1414_v52 = vsel %vm445_vm1, %v1409_v38, %v1413_v39  ;;  %v3588_v31 = vcombine.low %v235_v19, %v4581_v17  ;;  %v504_v34 = vrot.slane %v502_v26, 1  ;;  %v694_v17 = vrot.slane %v4610_v40, 1  ;;  %v4721_v19 = vld [vmem:[%s4280_s10 + $0x4c] ss:$0 sps:$4 sm:$0x11]  }
  0x79   : > { %1035 = vrot.lane.b32.xlu0 %v902_v48, %s4175_s24  ;;  %v1326_v43 = vsel %vm445_vm1, %v1321_v32, %v1325_v33  ;;  %v489_v48 = vshll.u32 %v4603_v35, 16  ;;  %v1516_v58 = vrot.slane %v3647_v42, 1  ;;  %v3484_v42 = vld [vmem:[%s4280_s10 + $0x8c] sm:$0xf]  ;;  %v673_v25 = vrot.slane %v3584_v36, 1 }
  0x7a   : > { %v693_v39 = vrot.slane %v3588_v31, 1  ;;  %v676_v55 = vrot.slane %v4023_v11, 1  ;;  %v4714_v11 = vld [vmem:[%s4280_s10 + $0x9c] ss:$0 sps:$4 sm:$0x11]  }
  0x7b   : > { %1053 = vrot.lane.b32.xlu1 %v990_v51, %s4175_s24  ;;  %v1537_v51 = vrot.slane %v4565_v2, 1  ;;  %v675_v46 = vsel %vm662_vm0, %v673_v25, %v674_v45  ;;  %v1007_v15 = vshll.u32 %v4714_v11, 16 }
  0x7c   : > { %v695_v40 = vsel %vm662_vm0, %v693_v39, %v694_v17 }
  0x7d   : > { %1037 = vrot.lane.b32.xlu0 %v910_v56, %s4175_s24  ;;  %v1540_v4 = vsel %vm662_vm0, %v1537_v51, %v1539_v13 }
  0x7f   : > { %1147 = vrot.lane.b32.xlu1 %v1114_v61, %s4176_s27  ;;  %v491_v61 = vrot.slane %v489_v48, 1 }
  0x81   : > { %1131 = vrot.lane.b32.xlu0 %v1094_v3, %s4176_s27  ;;  %v572_v3 = vor.u32 %v571_v54, %v567_v53  ;;  %v492_v9 = vor.u32 %v491_v61, %v487_v49  ;;  %v4700_v61 = vld [vmem:[%s4280_s10 + $0x94] sm:$0xff]  }
  0x82   : > { %v1003_v26 = vshrl.u32 %v4700_v61, 16 }
  0x83   : > { %1149 = vrot.lane.b32.xlu1 %v1116_v8, %s4176_s27  ;;  %v1518_v8 = vsel %vm662_vm0, %v1516_v58, %v1517_v59  ;;  %v577_v12 = vsel %vm445_vm1, %v572_v3, %v576_v57  ;;  %v4707_v57 = vld [vmem:[%s4280_s10 + $0x44] sm:$0xff]  }
  0x85   : > { %1133 = vrot.lane.b32.xlu0 %v1096_v10, %s4176_s27  ;;  %v496_v10 = vrot.slane %v494_v63, 1 }
  0x87   : > { %1259 = vrot.lane.b32.xlu1 %v3632_v0, %s4177_s28  ;;  %v1538_v0 = vsel %vm662_vm0, %v1536_v50, %v1537_v51  ;;  %v497_v22 = vsel %vm445_vm1, %v492_v9, %v496_v10  ;;  %v500_v33 = vor.u32 %v498_v24, %v496_v10  ;;  %v3468_v50 = vld [vmem:[%s4280_s10 + $0x3c] sm:$0xf]  ;;  %v4686_v51 = vld [vmem:[%s4280_s10 + $0x40] sm:$0xf]  ;;  %v999_v10 = vshll.u32 %v4700_v61, 16 }
  0x88   : > { %v3594_v58 = vcombine.low %v3468_v50, %v4686_v51 }
  0x89   : > { %1243 = vrot.lane.b32.xlu0 %v3624_v6, %s4177_s28  ;;  %v4022_v6 = vld [vmem:[%s4280_s10 + $0x88] ss:$0 sps:$4 sm:$0x11]   ;;  %v505_v44 = vsel %vm445_vm1, %v500_v33, %v504_v34  ;;  %v1001_v24 = vrot.slane %v999_v10, 1  ;;  %v927_v33 = vshll.u32 %v4721_v19, 16 }
  0x8a   : > { %v582_v16 = vshll.u32 %v4022_v6, 16  ;;  %v914_v3 = vshll.u32 %v3594_v58, 16  ;;  %v912_v13 = vshrl.u32 %v3594_v58, 16  ;;  %v3502_v34 = vld [vmem:[%s4280_s10 + $0x3c] sm:$0xe] }
  0x8b   : > { %1261 = vrot.lane.b32.xlu1 %v4565_v2, %s4177_s28  ;;  %v3616_v25 = vcombine.low %v3502_v34, %v4686_v51 }
  0x8c   : > { %v584_v30 = vrot.slane %v582_v16, 1  ;;  %v916_v14 = vrot.slane %v914_v3, 1  ;;  %v919_v16 = vshll.u32 %v4707_v57, 16 }
  0x8d   : > { %1245 = vrot.lane.b32.xlu0 %v4571_v5, %s4177_s28  ;;  %v1097_v3 = vrot.slane %v3616_v25, 1 }
  0x8e   : > { %v585_v38 = vsel %vm445_vm1, %v580_v28, %v584_v30  ;;  %v917_v30 = vor.u32 %v916_v14, %v912_v13  ;;  %v921_v31 = vrot.slane %v919_v16, 1  ;;  %v1120_v13 = vrot.slane %v4714_v11, 1 }
  0x8f   : > { %1475 = vrot.lane.b32.xlu1 %v1406_v37, %s4178_s29 }
  0x91   : > { %v4622_v47 = vpop.permute.xlu1 %831  ;;  %1459 = vrot.lane.b32.xlu0 %v1326_v43, %s4178_s29  ;;  %v4677_v43 = vld [vmem:[%s4280_s10 + $0x90] sm:$0xf] }
  0x92   : > { %v4629_v56 = vpop.permute.xlu0 %815  ;;  %v3602_v53 = vcombine.low %v3484_v42, %v4677_v43  ;;  %v1009_v42 = vrot.slane %v1007_v15, 1  ;;  %v4783_v15 = vld [vmem:[%s4280_s10 + $0x58] sm:$0xff]  }
  0x93   : > { %1477 = vrot.lane.b32.xlu1 %v1414_v52, %s4178_s29  ;;  %v696_v52 = vrot.slane %v4022_v6, 1  ;;  %v1343_v25 = vshll.u32 %v4783_v15, 16 }
  0x94   : > { %v994_v49 = vshll.u32 %v3602_v53, 16 }
  0x95   : > { %1461 = vrot.lane.b32.xlu0 %v1334_v60, %s4178_s29  ;;  %v4639_v2 = vpop.permute.xlu1 %719  ;;  %v697_v60 = vsel %vm662_vm0, %v694_v17, %v696_v52  ;;  %v1005_v17 = vor.u32 %v1003_v26, %v1001_v24 }
  0x96   : > { %v996_v9 = vrot.slane %v994_v49, 1  ;;  %v4761_v49 = vld [vmem:[%s4280_s10 + $0x54] sm:$0xf] }
  0x97   : > { %v4643_v5 = vpop.permute.xlu0 %703  ;;  %1571 = vrot.lane.b32.xlu1 %v1538_v0, %s4179_s4  ;;  %v677_v0 = vsel %vm662_vm0, %v674_v45, %v676_v55  ;;  %v922_v45 = vsel %vm445_vm1, %v917_v30, %v921_v31  ;;  %v3556_v30 = vld [vmem:[%s4280_s10 + $0xa0] sm:$0xe] }
  0x99   : > { %1555 = vrot.lane.b32.xlu0 %v1518_v8, %s4179_s4  ;;  %v4650_v18 = vpop.permute.xlu1 %721  ;;  %v992_v8 = vshrl.u32 %v3602_v53, 16 }
  0x9b   : > { %v4656_v27 = vpop.permute.xlu0 %705  ;;  %630 = vrot.lane.b32.xlu1 %v577_v12, %s4174_s21  ;;  %v997_v1 = vor.u32 %v996_v9, %v992_v8  ;;  %v1098_v8 = vrot.slane %v4707_v57, 1 }
  0x9d   : > { %614 = vrot.lane.b32.xlu0 %v497_v22, %s4174_s21  ;;  %v4663_v32 = vpop.permute.xlu1 %608  ;;  %v1002_v39 = vsel %vm445_vm1, %v997_v1, %v1001_v24  ;;  %v4779_v1 = vld [vmem:[%s4280_s10 + $0xa8] sm:$0xff]   ;;  %v1099_v24 = vsel %vm662_vm0, %v1097_v3, %v1098_v8 }
  0x9e   : > { %v1423_v34 = vshll.u32 %v4779_v1, 16 }
  0x9f   : > { %v4667_v37 = vpop.permute.xlu0 %606  ;;  %1573 = vrot.lane.b32.xlu1 %v1540_v4, %s4179_s4  ;;  %v3506_v4 = vld [vmem:[%s4280_s10 + $0x8c] sm:$0xe] }
  0xa1   : > { %1557 = vrot.lane.b32.xlu0 %v1520_v23, %s4179_s4  ;;  %v4673_v41 = vpop.permute.xlu1 %624  ;;  %v923_v23 = vshrl.u32 %v4707_v57, 16 }
  0xa3   : > { %v4681_v48 = vpop.permute.xlu0 %622  ;;  %632 = vrot.lane.b32.xlu1 %v585_v38, %s4174_s21  ;;  %v3620_v38 = vcombine.low %v3506_v4, %v4677_v43  ;;  %v925_v50 = vor.u32 %v923_v23, %v921_v31  ;;  %v3534_v43 = vld [vmem:[%s4280_s10 + $0xa0] sm:$0xf]  ;;  %v4794_v31 = vld [vmem:[%s4280_s10 + $0x50] sm:$0xe] }
  0xa4   : > { %v1601_v11 = vsel %vm1583_vm3, %v4308_v20, %v4681_v48 }
  0xa5   : > { %616 = vrot.lane.b32.xlu0 %v505_v44, %s4174_s21  ;;  %v4691_v54 = vpop.permute.xlu1 %833  ;;  %v1117_v55 = vrot.slane %v3620_v38, 1  ;;  %v4804_v38 = vld [vmem:[%s4280_s10 + $0xb0] ss:$0 sps:$4 sm:$0x11]  }
  0xa7   : > { %v4695_v59 = vpop.permute.xlu0 %817  ;;  %727 = vrot.lane.b32.xlu1 %v695_v40, %s4173_s20  ;;  %v929_v40 = vrot.slane %v927_v33, 1  ;;  %v1585_v33 = vsel %vm1583_vm3, %v4310_v21, %v4667_v37 }
  0xa9   : > { %711 = vrot.lane.b32.xlu0 %v675_v46, %s4173_s20  ;;  %v4703_v63 = vpop.permute.xlu1 %1047  ;;  %v1010_v46 = vsel %vm445_vm1, %v1005_v17, %v1009_v42 }
  0xab   : > { %v4709_v6 = vpop.permute.xlu0 %1031  ;;  %729 = vrot.lane.b32.xlu1 %v697_v60, %s4173_s20  ;;  %v3518_v60 = vld [vmem:[%s4280_s10 + $0x50] sm:$0xf] }
  0xac   : > { %v4772_v14 = vcombine.low %v3518_v60, %v4761_v49  ;;  %v1427_v60 = vshrl.u32 %v4779_v1, 16 }
  0xad   : > { %713 = vrot.lane.b32.xlu0 %v677_v0, %s4173_s20  ;;  %v4717_v12 = vpop.permute.xlu1 %1049  ;;  %v930_v0 = vsel %vm445_vm1, %v925_v50, %v929_v40  ;;  %v4814_v50 = vld [vmem:[%s4280_s10 + $0x60] ss:$0 sps:$4 sm:$0x11]  }
  0xae   : > { %v1338_v23 = vshll.u32 %v4772_v14, 16  ;;  %v1336_v40 = vshrl.u32 %v4772_v14, 16 }
  0xaf   : > { %v4723_v22 = vpop.permute.xlu0 %1033  ;;  %839 = vrot.lane.b32.xlu1 %v3602_v53, %s4172_s11  ;;  %v4752_v53 = vld [vmem:[%s4280_s10 + $0xa4] sm:$0xf] }
  0xb0   : > { %v3634_v9 = vcombine.low %v3534_v43, %v4752_v53  ;;  %v3652_v37 = vcombine.low %v3556_v30, %v4752_v53  ;;  %v1340_v43 = vrot.slane %v1338_v23, 1 }
  0xb1   : > { %823 = vrot.lane.b32.xlu0 %v3594_v58, %s4172_s11  ;;  %v4730_v28 = vpop.permute.xlu1 %1143  ;;  %v1118_v58 = vrot.slane %v4700_v61, 1 }
  0xb2   : > { %v1418_v26 = vshll.u32 %v3634_v9, 16  ;;  %v1416_v17 = vshrl.u32 %v3634_v9, 16  ;;  %v1341_v30 = vor.u32 %v1340_v43, %v1336_v40 }
  0xb3   : > { %v4735_v36 = vpop.permute.xlu0 %1127  ;;  %841 = vrot.lane.b32.xlu1 %v4700_v61, %s4172_s11  ;;  %v1119_v61 = vsel %vm662_vm0, %v1117_v55, %v1118_v58 }
  0xb4   : > { %v1420_v42 = vrot.slane %v1418_v26, 1  ;;  %v4841_v26 = vrot.slane %v3652_v37, 1 }
  0xb5   : > { %825 = vrot.lane.b32.xlu0 %v4707_v57, %s4172_s11  ;;  %v4743_v44 = vpop.permute.xlu1 %1145  ;;  %v1100_v57 = vrot.slane %v4721_v19, 1  ;;  %v1121_v19 = vsel %vm662_vm0, %v1118_v58, %v1120_v13  ;;  %v1425_v58 = vrot.slane %v1423_v34, 1 }
  0xb6   : > { %v1421_v3 = vor.u32 %v1420_v42, %v1416_v17 }
  0xb7   : > { %v4747_v52 = vpop.permute.xlu0 %1129  ;;  %1055 = vrot.lane.b32.xlu1 %v1002_v39, %s4175_s24  ;;  %v1101_v48 = vsel %vm662_vm0, %v1098_v8, %v1100_v57  ;;  %v1634_v39 = vsel %vm1616_vm4, %v1601_v11, %v4639_v2  ;;  %v1618_v2 = vsel %vm1616_vm4, %v1585_v33, %v4643_v5  ;;  %v4828_v5 = vld [vmem:[%s4280_s10 + $0x90] sm:$0xf]  ;;  %v1345_v8 = vrot.slane %v1343_v25, 1  ;;  %v4845_v11 = vld [vmem:[%s4280_s10 + $0x40] sm:$0xf]  ;;  %v4878_v25 = vld [vmem:[%s4280_s10 + $0x94] sm:$0xff]  }
  0xb8   : > { %v1667_v55 = vsel %vm1649_vm5, %v1634_v39, %v4622_v47  ;;  %v1347_v47 = vshrl.u32 %v4783_v15, 16 }
  0xb9   : > { %1039 = vrot.lane.b32.xlu0 %v922_v45, %s4175_s24  ;;  %v4757_v51 = vpop.permute.xlu1 %1255  ;;  %v3648_v45 = vcombine.low %v4794_v31, %v4761_v49  ;;  %v1431_v49 = vshll.u32 %v4804_v38, 16  ;;  %v4071_v31 = vld [vmem:[%s4280_s10 + $0x58] sm:$0xff]  }
  0xbb   : > { %v4766_v10 = vpop.permute.xlu0 %1239  ;;  %1057 = vrot.lane.b32.xlu1 %v1010_v46, %s4175_s24  ;;  %v217_v46 = vld [vmem:[%s4280_s10 + $0x8c] sm:$0xf]  ;;  %v1433_v39 = vrot.slane %v1431_v49, 1 }
  0xbd   : > { %1041 = vrot.lane.b32.xlu0 %v930_v0, %s4175_s24  ;;  %v4775_v16 = vpop.permute.xlu1 %1257  ;;  %v1700_v0 = vsel %vm1682_vm6, %v1667_v55, %v4703_v63  ;;  %v201_v63 = vld [vmem:[%s4280_s10 + $0x3c] sm:$0xf] }
  0xbe   : > { %v1733_v13 = vsel %vm1715_vm7, %v1700_v0, %v4730_v28  ;;  %v4852_v28 = vcombine.low %v217_v46, %v4828_v5  ;;  %v4866_v17 = vcombine.low %v201_v63, %v4845_v11  ;;  %v1346_v46 = vsel %vm445_vm1, %v1341_v30, %v1345_v8 }
  0xbf   : > { %v4788_v4 = vpop.permute.xlu0 %1241  ;;  %1151 = vrot.lane.b32.xlu1 %v1119_v61, %s4176_s27  ;;  %v1651_v61 = vsel %vm1649_vm5, %v1618_v2, %v4629_v56  ;;  %v1766_v56 = vsel %vm1748_vm8, %v1733_v13, %v4757_v51  ;;  %v1349_v2 = vor.u32 %v1347_v47, %v1345_v8 }
  0xc0   : > { %v509_v0 = vshll.u32 %v4866_v17, 16  ;;  %v587_v13 = vshrl.u32 %v4852_v28, 16 }
  0xc1   : > { %1135 = vrot.lane.b32.xlu0 %v1099_v24, %s4176_s27  ;;  %v1472_v20 = vpop.permute.xlu1 %1471  ;;  %v1351_v24 = vshll.u32 %v4814_v50, 16 }
  0xc2   : > { %v1799_v33 = vsel %vm1781_vm9, %v1766_v56, %v1472_v20  ;;  %v507_v56 = vshrl.u32 %v4866_v17, 16  ;;  %v511_v30 = vrot.slane %v509_v0, 1 }
  0xc3   : > { %v1456_v21 = vpop.permute.xlu0 %1455  ;;  %1153 = vrot.lane.b32.xlu1 %v1121_v19, %s4176_s27  ;;  %v1684_v19 = vsel %vm1682_vm6, %v1651_v61, %v4709_v6  ;;  %v1353_v55 = vrot.slane %v1351_v24, 1 }
  0xc4   : > { %v1717_v23 = vsel %vm1715_vm7, %v1684_v19, %v4735_v36 }
  0xc5   : > { %1137 = vrot.lane.b32.xlu0 %v1101_v48, %s4176_s27  ;;  %v4823_v53 = vpop.permute.xlu1 %1473  ;;  %v1429_v48 = vor.u32 %v1427_v60, %v1425_v58  ;;  %v1750_v51 = vsel %vm1748_vm8, %v1717_v23, %v4766_v10  ;;  %v1426_v10 = vsel %vm445_vm1, %v1421_v3, %v1425_v58  ;;  %v1521_v58 = vrot.slane %v3648_v45, 1 }
  0xc6   : > { %v1783_v20 = vsel %vm1781_vm9, %v1750_v51, %v1456_v21  ;;  %v589_v21 = vshll.u32 %v4852_v28, 16  ;;  %v1522_v45 = vrot.slane %v4783_v15, 1  ;;  %v1354_v63 = vsel %vm445_vm1, %v1349_v2, %v1353_v55 }
  0xc7   : > { %v4837_v57 = vpop.permute.xlu0 %1457  ;;  %1263 = vrot.lane.b32.xlu1 %v3634_v9, %s4177_s28  ;;  %v1603_v9 = vsel %vm1583_vm3, %v4071_v31, %v4673_v41  ;;  %v4072_v41 = vld [vmem:[%s4280_s10 + $0x8] sm:$0xff]  }
  0xc8   : > { %v1587_v36 = vsel %vm1583_vm3, %v4072_v41, %v4663_v32  ;;  %v1636_v37 = vsel %vm1616_vm4, %v1603_v9, %v4650_v18  ;;  %v4893_v18 = vld [vmem:[%s4280_s10 + $0x44] sm:$0xff]   ;;  %v1544_v41 = vrot.slane %v4804_v38, 1  ;;  %v232_v38 = vld [vmem:[%s4280_s10 + $0x3c] sm:$0xe] }
  0xc9   : > { %1247 = vrot.lane.b32.xlu0 %v4772_v14, %s4177_s28  ;;  %v1568_v6 = vpop.permute.xlu1 %1567  ;;  %v1542_v14 = vrot.slane %v4779_v1, 1  ;;  %v1669_v40 = vsel %vm1649_vm5, %v1636_v37, %v4691_v54  ;;  %v1620_v60 = vsel %vm1616_vm4, %v1587_v36, %v4656_v27  ;;  %v1434_v54 = vsel %vm445_vm1, %v1429_v48, %v1433_v39 }
  0xca   : > { %v1832_v34 = vsel %vm1814_vm10, %v1799_v33, %v1568_v6  ;;  %v1702_v49 = vsel %vm1682_vm6, %v1669_v40, %v4717_v12  ;;  %v1653_v3 = vsel %vm1649_vm5, %v1620_v60, %v4695_v59  ;;  %v594_v27 = vshll.u32 %v4878_v25, 16  ;;  %v4051_v33 = vld [vmem:[%s4280_s10 + $0x9c] ss:$0 sps:$4 sm:$0x11]  }
  0xcb   : > { %v1552_v42 = vpop.permute.xlu0 %1551  ;;  %1265 = vrot.lane.b32.xlu1 %v4779_v1, %s4177_s28  ;;  %3860 = vmatprep.mubr.msk.bf16.mxu1 %vm1890_vm11, %v1832_v34  ;;  %v1735_v8 = vsel %vm1715_vm7, %v1702_v49, %v4743_v44  ;;  %v1686_v12 = vsel %vm1682_vm6, %v1653_v3, %v4723_v22  ;;  %v591_v59 = vrot.slane %v589_v21, 1  ;;  %v514_v22 = vshll.u32 %v4893_v18, 16  ;;  %v4052_v34 = vld [vmem:[%s4280_s10 + $0x4c] ss:$0 sps:$4 sm:$0x11]  }
  0xcc   : > { %v1816_v32 = vsel %vm1814_vm10, %v1783_v20, %v1552_v42  ;;  %v1768_v61 = vsel %vm1748_vm8, %v1735_v8, %v4775_v16  ;;  %v1719_v44 = vsel %vm1715_vm7, %v1686_v12, %v4747_v52  ;;  %v596_v23 = vrot.slane %v594_v27, 1  ;;  %v4978_v12 = vld [vmem:[%s4280_s10 + $0xa4] sm:$0xf] }
  0xcd   : > { %1249 = vrot.lane.b32.xlu0 %v4783_v15, %s4177_s28  ;;  %3844 = vmatprep.mubr.msk.bf16.mxu0 %vm1890_vm11, %v1816_v32  ;;  %v4889_v43 = vpop.permute.xlu1 %626  ;;  %v1801_v24 = vsel %vm1781_vm9, %v1768_v61, %v4823_v53  ;;  %v1752_v16 = vsel %vm1748_vm8, %v1719_v44, %v4788_v4  ;;  %v1543_v4 = vsel %vm662_vm0, %v4841_v26, %v1542_v14  ;;  %v516_v51 = vrot.slane %v514_v22, 1  ;;  %v3472_v44 = vld [vmem:[%s4280_s10 + $0x50] sm:$0xf] }
  0xce   : > { %v1785_v52 = vsel %vm1781_vm9, %v1752_v16, %v4837_v57  ;;  %v592_v9 = vor.u32 %v591_v59, %v587_v13  ;;  %v1523_v6 = vsel %vm662_vm0, %v1521_v58, %v1522_v45  ;;  %v512_v48 = vor.u32 %v511_v30, %v507_v56 }
  0xcf   : > { %v4905_v47 = vpop.permute.xlu0 %610  ;;  %1479 = vrot.lane.b32.xlu1 %v1426_v10, %s4178_s29  ;;  %v598_v36 = vshrl.u32 %v4878_v25, 16  ;;  %v602_v20 = vshll.u32 %v4051_v33, 16  ;;  %v236_v10 = vld [vmem:[%s4280_s10 + $0x8c] sm:$0xe]  ;;  %v1524_v32 = vrot.slane %v4814_v50, 1  ;;  %v518_v2 = vshrl.u32 %v4893_v18, 16 }
  0xd0   : > { %v597_v26 = vsel %vm445_vm1, %v592_v9, %v596_v23  ;;  %v517_v37 = vsel %vm445_vm1, %v512_v48, %v516_v51  ;;  %v522_v21 = vshll.u32 %v4052_v34, 16  ;;  %v3589_v60 = vcombine.low %v236_v10, %v4828_v5 }
  0xd1   : > { %1463 = vrot.lane.b32.xlu0 %v1346_v46, %s4178_s29  ;;  %v1570_v15 = vpop.permute.xlu1 %1569  ;;  %v1545_v46 = vsel %vm662_vm0, %v1542_v14, %v1544_v41  ;;  %v600_v55 = vor.u32 %v598_v36, %v596_v23  ;;  %v604_v58 = vrot.slane %v602_v20, 1  ;;  %v1525_v49 = vsel %vm662_vm0, %v1522_v45, %v1524_v32  ;;  %v3488_v45 = vld [vmem:[%s4280_s10 + $0xa0] sm:$0xf]  ;;  %v4059_v41 = vld [vmem:[%s4280_s10 + $0xb0] ss:$0 sps:$4 sm:$0x11]  }
  0xd2   : > { %v1834_v19 = vsel %vm1814_vm10, %v1801_v24, %v1570_v15  ;;  %v524_v0 = vrot.slane %v522_v21, 1  ;;  %v3585_v3 = vcombine.low %v232_v38, %v4845_v11  ;;  %v698_v8 = vrot.slane %v3589_v60, 1  ;;  %v4987_v24 = vld [vmem:[%s4280_s10 + $0x54] sm:$0xf]  ;;  %v3507_v60 = vld [vmem:[%s4280_s10 + $0xa0] sm:$0xe] }
  0xd3   : > { %v1554_v53 = vpop.permute.xlu0 %1553  ;;  %1481 = vrot.lane.b32.xlu1 %v1434_v54, %s4178_s29  ;;  %3861 = vmatmul.mubr.msk.bf16.vlgmr.msra.gmra.mxu1 %vm1890_vm11, %v1834_v19  ;;  %v520_v54 = vor.u32 %v518_v2, %v516_v51  ;;  %v605_v14 = vsel %vm445_vm1, %v600_v55, %v604_v58  ;;  %v699_v5 = vrot.slane %v4878_v25, 1  ;;  %v679_v13 = vrot.slane %v4893_v18, 1  ;;  %v4060_v32 = vld [vmem:[%s4280_s10 + $0x60] ss:$0 sps:$4 sm:$0x11]  }
  0xd4   : > { %v1818_v31 = vsel %vm1814_vm10, %v1785_v52, %v1554_v53  ;;  %v678_v11 = vrot.slane %v3585_v3, 1  ;;  %v3604_v22 = vcombine.low %v3488_v45, %v4978_v12  ;;  %v681_v56 = vrot.slane %v4052_v34, 1 }
  0xd5   : > { %1465 = vrot.lane.b32.xlu0 %v1354_v63, %s4178_s29  ;;  %3845 = vmatmul.mubr.msk.bf16.vlgmr.msra.gmra.mxu0 %vm1890_vm11, %v1818_v31  ;;  %v4938_v57 = vpop.permute.xlu1 %628  ;;  %v525_v61 = vsel %vm445_vm1, %v520_v54, %v524_v0  ;;  %v700_v15 = vsel %vm662_vm0, %v698_v8, %v699_v5  ;;  %v701_v63 = vrot.slane %v4051_v33, 1  ;;  %v3596_v30 = vcombine.low %v3472_v44, %v4987_v24  ;;  %v5001_v31 = vld [vmem:[%s4280_s10 + $0xa8] sm:$0xff]   ;;  %v5008_v33 = vld [vmem:[%s4280_s10 + $0x58] sm:$0xff]   ;;  %v3503_v8 = vld [vmem:[%s4280_s10 + $0x50] sm:$0xe] }
  0xd6   : > { %v680_v19 = vsel %vm662_vm0, %v678_v11, %v679_v13  ;;  %v682_v23 = vsel %vm662_vm0, %v679_v13, %v681_v56  ;;  %v1012_v51 = vshrl.u32 %v3604_v22, 16  ;;  %v1027_v55 = vshll.u32 %v4059_v41, 16 }
  0xd7   : > { %v4942_v39 = vpop.permute.xlu0 %612  ;;  %1575 = vrot.lane.b32.xlu1 %v1543_v4, %s4179_s4  ;;  %v702_v53 = vsel %vm662_vm0, %v699_v5, %v701_v63  ;;  %v1014_v4 = vshll.u32 %v3604_v22, 16  ;;  %v932_v20 = vshrl.u32 %v3596_v30, 16  ;;  %v943_v0 = vshrl.u32 %v5008_v33, 16 }
  0xd8   : > { %v947_v3 = vshll.u32 %v4060_v32, 16  ;;  %v3621_v11 = vcombine.low %v3507_v60, %v4978_v12 }
  0xd9   : > { %1559 = vrot.lane.b32.xlu0 %v1523_v6, %s4179_s4  ;;  %v4949_v42 = vpop.permute.xlu1 %723  ;;  %v934_v6 = vshll.u32 %v3596_v30, 16  ;;  %v1016_v34 = vrot.slane %v1014_v4, 1  ;;  %v3538_v4 = vld [vmem:[%s4280_s10 + $0xb4] sm:$0xf] }
  0xda   : > { %v949_v63 = vrot.slane %v947_v3, 1  ;;  %v1122_v12 = vrot.slane %v3621_v11, 1  ;;  %v5076_v3 = vld [vmem:[%s4280_s10 + $0x6c] sm:$0xff]  }
  0xdb   : > { %v4955_v40 = vpop.permute.xlu0 %707  ;;  %634 = vrot.lane.b32.xlu1 %v597_v26, %s4174_s21  ;;  %v1019_v26 = vshll.u32 %v5001_v31, 16  ;;  %v936_v10 = vrot.slane %v934_v6, 1  ;;  %v1017_v21 = vor.u32 %v1016_v34, %v1012_v51 }
  0xdd   : > { %618 = vrot.lane.b32.xlu0 %v517_v37, %s4174_s21  ;;  %v4964_v50 = vpop.permute.xlu1 %725  ;;  %v939_v37 = vshll.u32 %v5008_v33, 16  ;;  %v1021_v38 = vrot.slane %v1019_v26, 1  ;;  %v3522_v26 = vld [vmem:[%s4280_s10 + $0x64] sm:$0xf] }
  0xdf   : > { %v4968_v1 = vpop.permute.xlu0 %709  ;;  %1577 = vrot.lane.b32.xlu1 %v1545_v46, %s4179_s4  ;;  %v1023_v46 = vshrl.u32 %v5001_v31, 16  ;;  %v941_v54 = vrot.slane %v939_v37, 1  ;;  %v1022_v5 = vsel %vm445_vm1, %v1017_v21, %v1021_v38 }
  0xe1   : > { %1561 = vrot.lane.b32.xlu0 %v1525_v49, %s4179_s4  ;;  %v4974_v27 = vpop.permute.xlu1 %835  ;;  %v937_v49 = vor.u32 %v936_v10, %v932_v20  ;;  %v1025_v45 = vor.u32 %v1023_v46, %v1021_v38  ;;  %v5057_v20 = vld [vmem:[%s4280_s10 + $0x68] sm:$0xf]  ;;  %v1125_v10 = vrot.slane %v4059_v41, 1 }
  0xe2   : > { %v3628_v46 = vcombine.low %v3522_v26, %v5057_v20 }
  0xe3   : > { %v4982_v59 = vpop.permute.xlu0 %819  ;;  %636 = vrot.lane.b32.xlu1 %v605_v14, %s4174_s21  ;;  %v942_v44 = vsel %vm445_vm1, %v937_v49, %v941_v54  ;;  %v5071_v49 = vld [vmem:[%s4280_s10 + $0xbc] sm:$0xff]  }
  0xe5   : > { %620 = vrot.lane.b32.xlu0 %v525_v61, %s4174_s21  ;;  %v4992_v16 = vpop.permute.xlu1 %837  ;;  %v1029_v61 = vrot.slane %v1027_v55, 1 }
  0xe7   : > { %v4996_v52 = vpop.permute.xlu0 %821  ;;  %731 = vrot.lane.b32.xlu1 %v700_v15, %s4173_s20  ;;  %v945_v15 = vor.u32 %v943_v0, %v941_v54  ;;  %v1030_v56 = vsel %vm445_vm1, %v1025_v45, %v1029_v61  ;;  %v5083_v45 = vld [vmem:[%s4280_s10 + $0xc4] ss:$0 sps:$4 sm:$0x11]  }
  0xe9   : > { %715 = vrot.lane.b32.xlu0 %v680_v19, %s4173_s20  ;;  %v5004_v9 = vpop.permute.xlu1 %1051  ;;  %v950_v6 = vsel %vm445_vm1, %v945_v15, %v949_v63  ;;  %v1443_v15 = vshll.u32 %v5071_v49, 16  ;;  %v1589_v63 = vsel %vm1583_vm3, %v4420_v7, %v4905_v47 }
  0xeb   : > { %v5010_v48 = vpop.permute.xlu0 %1035  ;;  %733 = vrot.lane.b32.xlu1 %v702_v53, %s4173_s20 }
  0xed   : > { %717 = vrot.lane.b32.xlu0 %v682_v23, %s4173_s20  ;;  %v5016_v36 = vpop.permute.xlu1 %1053  ;;  %v5050_v23 = vld [vmem:[%s4280_s10 + $0xb8] sm:$0xf]  ;;  %s175_s20 = sand.u32 1, %s4146_s13  }
  0xee   : > { %v3636_v37 = vcombine.low %v3538_v4, %v5050_v23  ;;  %v1363_v4 = vshll.u32 %v5076_v3, 16  ;;  %s3453_s21 = sshll.u32 %s175_s20, 5 }
  0xef   : > { %v5020_v2 = vpop.permute.xlu0 %1037  ;;  %843 = vrot.lane.b32.xlu1 %v3604_v22, %s4172_s11  ;;  %v3617_v22 = vcombine.low %v3503_v8, %v4987_v24  ;;  %v1103_v24 = vrot.slane %v5008_v33, 1  ;;  %v1605_v8 = vsel %vm1583_vm3, %v4414_v62, %v4889_v43  ;;  %v1356_v43 = vshrl.u32 %v3628_v46, 16 }
  0xf0   : > { %v1438_v41 = vshll.u32 %v3636_v37, 16  ;;  %v1638_v61 = vsel %vm1616_vm4, %v1605_v8, %v4949_v42  ;;  %v1436_v11 = vshrl.u32 %v3636_v37, 16  ;;  %v1622_v42 = vsel %vm1616_vm4, %v1589_v63, %v4955_v40 }
  0xf1   : > { %827 = vrot.lane.b32.xlu0 %v3596_v30, %s4172_s11  ;;  %v5025_v58 = vpop.permute.xlu1 %1147  ;;  %v1123_v30 = vrot.slane %v5001_v31, 1  ;;  %v1102_v51 = vrot.slane %v3617_v22, 1  ;;  %v1671_v22 = vsel %vm1649_vm5, %v1638_v61, %v4974_v27  ;;  %v1655_v7 = vsel %vm1649_vm5, %v1622_v42, %v4982_v59 }
  0xf2   : > { %v1451_v40 = vshll.u32 %v5083_v45, 16  ;;  %v1445_v59 = vrot.slane %v1443_v15, 1 }
  0xf3   : > { %v5029_v14 = vpop.permute.xlu0 %1131  ;;  %845 = vrot.lane.b32.xlu1 %v5001_v31, %s4172_s11  ;;  %v1124_v31 = vsel %vm662_vm0, %v1122_v12, %v1123_v30  ;;  %v1104_v38 = vsel %vm662_vm0, %v1102_v51, %v1103_v24  ;;  %v1126_v60 = vsel %vm662_vm0, %v1123_v30, %v1125_v10  ;;  %v1704_v12 = vsel %vm1682_vm6, %v1671_v22, %v5004_v9 }
  0xf4   : > { %v1737_v47 = vsel %vm1715_vm7, %v1704_v12, %v5025_v58  ;;  %v1688_v9 = vsel %vm1682_vm6, %v1655_v7, %v5010_v48  ;;  %v1367_v10 = vshrl.u32 %v5076_v3, 16 }
  0xf5   : > { %829 = vrot.lane.b32.xlu0 %v5008_v33, %s4172_s11  ;;  %v5038_v13 = vpop.permute.xlu1 %1149  ;;  %v1105_v33 = vrot.slane %v4060_v32, 1  ;;  %v1358_v32 = vshll.u32 %v3628_v46, 16  ;;  %v1721_v26 = vsel %vm1715_vm7, %v1688_v9, %v5029_v14  ;;  %v1527_v9 = vrot.slane %v5076_v3, 1 }
  0xf7   : > { %v5042_v19 = vpop.permute.xlu0 %1133  ;;  %1059 = vrot.lane.b32.xlu1 %v1022_v5, %s4175_s24  ;;  %v1106_v0 = vsel %vm662_vm0, %v1103_v24, %v1105_v33  ;;  %v1360_v30 = vrot.slane %v1358_v32, 1  ;;  %v1453_v32 = vrot.slane %v1451_v40, 1 }
  0xf9   : > { %1043 = vrot.lane.b32.xlu0 %v942_v44, %s4175_s24  ;;  %v1260_v53 = vpop.permute.xlu1 %1259  ;;  %v1440_v44 = vrot.slane %v1438_v41, 1  ;;  %v1361_v33 = vor.u32 %v1360_v30, %v1356_v43  ;;  %v4073_v41 = vld [vmem:[%s4280_s10 + $0x6c] sm:$0xff]  }
  0xfa   : > { %v1770_v51 = vsel %vm1748_vm8, %v1737_v47, %v1260_v53  ;;  %v1607_v14 = vsel %vm1583_vm3, %v4073_v41, %v4938_v57 }
  0xfb   : > { %v1244_v34 = vpop.permute.xlu0 %1243  ;;  %1061 = vrot.lane.b32.xlu1 %v1030_v56, %s4175_s24  ;;  %v5097_v56 = vld [vmem:[%s4280_s10 + $0x74] ss:$0 sps:$4 sm:$0x11]   ;;  %v1441_v24 = vor.u32 %v1440_v44, %v1436_v11  ;;  %v1640_v8 = vsel %vm1616_vm4, %v1607_v14, %v4964_v50  ;;  %v4074_v44 = vld [vmem:[%s4280_s10 + $0x1c] sm:$0xff]  }
  0xfc   : > { %v1754_v48 = vsel %vm1748_vm8, %v1721_v26, %v1244_v34  ;;  %v3553_v34 = vld [vmem:[%s4280_s10 + $0x64] sm:$0xe]  ;;  %v1673_v15 = vsel %vm1649_vm5, %v1640_v8, %v4992_v16 }
  0xfd   : > { %1045 = vrot.lane.b32.xlu0 %v950_v6, %s4175_s24  ;;  %v5062_v21 = vpop.permute.xlu1 %1261  ;;  %v1447_v6 = vshrl.u32 %v5071_v49, 16  ;;  %v1446_v11 = vsel %vm445_vm1, %v1441_v24, %v1445_v59  ;;  %v3649_v42 = vcombine.low %v3553_v34, %v5057_v20  ;;  %v1547_v20 = vrot.slane %v5071_v49, 1  ;;  %s5442_s24 = scalar_lea.vmem [#allocation2], %s3453_s21  ;;  %s4181_s21 = smov [#allocation2]  }
  0xfe   : > { %v1549_v24 = vrot.slane %v5083_v45, 1  ;;  %s3362_s16 = sshll.u32 %s5442_s24, 4  ;;  %s5682_s16 = int_to_ptr.vmem [resolvable:$true] %s3362_s16 }
  0xff   : > { %v5066_v55 = vpop.permute.xlu0 %1245  ;;  %1155 = vrot.lane.b32.xlu1 %v1124_v31, %s4176_s27  ;;  %s4078_s11 = scalar_lea.vmem %s5682_s16, 512 }
 0x100   : > { %v1550_v26 = vsel %vm662_vm0, %v1547_v20, %v1549_v24  ;;  %p4079_p13 = scmp.ne.s32.totalorder %s5682_s16, %s4078_s11 }
 0x101   : > { %1139 = vrot.lane.b32.xlu0 %v1104_v38, %s4176_s27  ;;  %v1476_v54 = vpop.permute.xlu1 %1475  ;;  %v3557_v38 = vld [vmem:[%s4280_s10 + $0xb4] sm:$0xe] }
 0x102   : > { %v1803_v58 = vsel %vm1781_vm9, %v1770_v51, %v1476_v54  ;;  %v3653_v57 = vcombine.low %v3557_v38, %v5050_v23  ;;  %v1706_v23 = vsel %vm1682_vm6, %v1673_v15, %v5016_v36  ;;  %p4080_p0 = pnand %p4079_p13, %p4254_p3 }
 0x103   : > { %v1460_v5 = vpop.permute.xlu0 %1459  ;;  %1157 = vrot.lane.b32.xlu1 %v1126_v60, %s4176_s27  ;;  %v1365_v60 = vrot.slane %v1363_v4, 1  ;;  %v1739_v12 = vsel %vm1715_vm7, %v1706_v23, %v5038_v13 }
 0x104   : > { %v1772_v36 = vsel %vm1748_vm8, %v1739_v12, %v5062_v21  ;;  %v1546_v7 = vrot.slane %v3653_v57, 1  ;;  %v1526_v21 = vrot.slane %v3649_v42, 1  ;;  %p4081_p1 = pneg %p4080_p0 }
 0x105   : > { %1141 = vrot.lane.b32.xlu0 %v1106_v0, %s4176_s27  ;;  %v5094_v62 = vpop.permute.xlu1 %1477  ;;  %v1449_v0 = vor.u32 %v1447_v6, %v1445_v59  ;;  %v1369_v50 = vor.u32 %v1367_v10, %v1365_v60  ;;  %s4082_s27 = sshll.u32 %s4181_s21, 4  ;;  %s4083_s27 = int_to_ptr.vmem [resolvable:$false] %s4082_s27 }
 0x106   : > { %v1805_v13 = vsel %vm1781_vm9, %v1772_v36, %v5094_v62  ;;  %v1548_v51 = vsel %vm662_vm0, %v1546_v7, %v1547_v20  ;;  %v4075_v7 = vld [vmem:[%s4280_s10 + $0x80] sm:$0xff]   ;;  %p4085_p2 = scmp.lt.s32.totalorder %s5682_s16, %s4083_s27 }
 0x107   : > { %v5108_v27 = vpop.permute.xlu0 %1461  ;;  %1267 = vrot.lane.b32.xlu1 %v3636_v37, %s4177_s28  ;;  %v1371_v37 = vshll.u32 %v5097_v56, 16  ;;  %v1454_v4 = vsel %vm445_vm1, %v1449_v0, %v1453_v32 }
 0x109   : > { %1251 = vrot.lane.b32.xlu0 %v3628_v46, %s4177_s28  ;;  %v1572_v31 = vpop.permute.xlu1 %1571  ;;  %v1787_v46 = vsel %vm1781_vm9, %v1754_v48, %v1460_v5  ;;  %v1591_v5 = vsel %vm1583_vm3, %v4074_v44, %v4942_v39  ;;  %v1373_v22 = vrot.slane %v1371_v37, 1  ;;  %v1366_v39 = vsel %vm445_vm1, %v1361_v33, %v1365_v60 }
 0x10a   : > { %v1836_v53 = vsel %vm1814_vm10, %v1803_v58, %v1572_v31  ;;  %v1624_v43 = vsel %vm1616_vm4, %v1591_v5, %v4968_v1 }
 0x10b   : > { %v1556_v54 = vpop.permute.xlu0 %1555  ;;  %1269 = vrot.lane.b32.xlu1 %v5071_v49, %s4177_s28  ;;  %3864 = vmatprep.mubr.msk.bf16.mxu1 %vm1890_vm11, %v1836_v53  ;;  %v1657_v16 = vsel %vm1649_vm5, %v1624_v43, %v4996_v52  ;;  %v1374_v6 = vsel %vm445_vm1, %v1369_v50, %v1373_v22  ;;  %vm3265_vm1 = vcmask 1045509  }
 0x10c   : > { %v1820_v61 = vsel %vm1814_vm10, %v1787_v46, %v1556_v54  ;;  %v1690_v1 = vsel %vm1682_vm6, %v1657_v16, %v5020_v2 }
 0x10d   : > { %1253 = vrot.lane.b32.xlu0 %v5076_v3, %s4177_s28  ;;  %3848 = vmatprep.mubr.msk.bf16.mxu0 %vm1890_vm11, %v1820_v61  ;;  %v5146_v63 = vpop.permute.xlu1 %630  ;;  %v1723_v52 = vsel %vm1715_vm7, %v1690_v1, %v5042_v19  ;;  %v1528_v3 = vsel %vm662_vm0, %v1526_v21, %v1527_v9  ;;  %s4084_s28 = scalar_lea.vmem %s4083_s27, 1024 }
 0x10e   : > { %v1756_v2 = vsel %vm1748_vm8, %v1723_v52, %v5066_v55  ;;  %v1609_v44 = vsel %vm1583_vm3, %v4596_v29, %v5146_v63  ;;  %p4086_p4 = scmp.lt.s32.totalorder %s4084_s28, %s4078_s11 }
 0x10f   : > { %v615_v30 = vpop.permute.xlu0 %614  ;;  %1483 = vrot.lane.b32.xlu1 %v1446_v11, %s4178_s29  ;;  %v1789_v49 = vsel %vm1781_vm9, %v1756_v2, %v5108_v27  ;;  %v1529_v27 = vrot.slane %v5097_v56, 1  ;;  %v4076_v2 = vld [vmem:[%s4280_s10 + $0x30] sm:$0xff]   ;;  %s5688_s10 = scalar_lea.sflag [#allocation3], %s175_s20 }
 0x110   : > { %v1593_v50 = vsel %vm1583_vm3, %v4603_v35, %v615_v30  ;;  %p4087_p5 = por %p4086_p4, %p4085_p2 }
 0x111   : > { %1467 = vrot.lane.b32.xlu0 %v1366_v39, %s4178_s29  ;;  %v1574_v47 = vpop.permute.xlu1 %1573  ;;  %v1530_v31 = vsel %vm662_vm0, %v1527_v9, %v1529_v27  ;;  %vm3263_vm0 = vcmask 1044484  }
 0x112   : > { %v1838_v40 = vsel %vm1814_vm10, %v1805_v13, %v1574_v47  ;;  %p4088_p6 = pnand %p4087_p5, %p4081_p1 }
 0x113   : > { %v1558_v19 = vpop.permute.xlu0 %1557  ;;  %1485 = vrot.lane.b32.xlu1 %v1454_v4, %s4178_s29  ;;  %3865 = vmatmul.mubr.msk.bf16.gmra.mxu1 %vm1890_vm11, %v1838_v40 }
 0x114   : > { %v1822_v62 = vsel %vm1814_vm10, %v1789_v49, %v1558_v19 }
 0x115   : > { %1469 = vrot.lane.b32.xlu0 %v1374_v6, %s4178_s29  ;;  %3849 = vmatmul.mubr.msk.bf16.gmra.mxu0 %vm1890_vm11, %v1822_v62  ;;  %v633_v55 = vpop.permute.xlu1 %632  ;;  %s3812_s29 = sshll.u32 %s4154_s15, 3 }
 0x116   : > { %v1611_v20 = vsel %vm1583_vm3, %v4075_v7, %v633_v55  ;;  %s3359_s6 = sadd.s32 %s3812_s29, %s3743_s5 }
 0x117   : > { %v617_v59 = vpop.permute.xlu0 %616  ;;  %1579 = vrot.lane.b32.xlu1 %v1548_v51, %s4179_s4  ;;  %s3744_s15 = sshll.u32 %s3359_s6, 6 }
 0x118   : > { %v1595_v40 = vsel %vm1583_vm3, %v4076_v2, %v617_v59  ;;  %s5680_s9 = scalar_lea.hbm %s5744_s3, %s3744_s15 }
 0x119   : > { %1563 = vrot.lane.b32.xlu0 %v1528_v3, %s4179_s4  ;;  %v728_v58 = vpop.permute.xlu1 %727 }
 0x11a   : > { %v1642_v15 = vsel %vm1616_vm4, %v1609_v44, %v728_v58 }
 0x11b   : > { %v712_v45 = vpop.permute.xlu0 %711  ;;  %1581 = vrot.lane.b32.xlu1 %v1550_v26, %s4179_s4 }
 0x11c   : > { %v1626_v23 = vsel %vm1616_vm4, %v1593_v50, %v712_v45 }
 0x11d   : > { %1565 = vrot.lane.b32.xlu0 %v1530_v31, %s4179_s4  ;;  %v730_v10 = vpop.permute.xlu1 %729 }
 0x11e   : > { %v1644_v47 = vsel %vm1616_vm4, %v1611_v20, %v730_v10 }
 0x11f   : > { %v714_v37 = vpop.permute.xlu0 %713 }
 0x120   : > { %v1628_v49 = vsel %vm1616_vm4, %v1595_v40, %v714_v37 }
 0x121   : > { %v840_v38 = vpop.permute.xlu1 %839 }
 0x122   : > { %v1675_v22 = vsel %vm1649_vm5, %v1642_v15, %v840_v38 }
 0x123   : > { %v824_v48 = vpop.permute.xlu0 %823 }
 0x124   : > { %v1659_v42 = vsel %vm1649_vm5, %v1626_v23, %v824_v48 }
 0x125   : > { %v842_v56 = vpop.permute.xlu1 %841 }
 0x126   : > { %v1677_v21 = vsel %vm1649_vm5, %v1644_v47, %v842_v56 }
 0x127   : > { %v826_v53 = vpop.permute.xlu0 %825 }
 0x128   : > { %v1661_v62 = vsel %vm1649_vm5, %v1628_v49, %v826_v53 }
 0x129   : > { %v1056_v33 = vpop.permute.xlu1 %1055 }
 0x12a   : > { %v1708_v39 = vsel %vm1682_vm6, %v1675_v22, %v1056_v33 }
 0x12b   : > { %v1040_v60 = vpop.permute.xlu0 %1039 }
 0x12c   : > { %v1692_v63 = vsel %vm1682_vm6, %v1659_v42, %v1040_v60 }
 0x12d   : > { %v1058_v41 = vpop.permute.xlu1 %1057 }
 0x12e   : > { %v1710_v19 = vsel %vm1682_vm6, %v1677_v21, %v1058_v41 }
 0x12f   : > { %v1042_v14 = vpop.permute.xlu0 %1041 }
 0x130   : > { %v1694_v55 = vsel %vm1682_vm6, %v1661_v62, %v1042_v14 }
 0x131   : > { %v1152_v46 = vpop.permute.xlu1 %1151 }
 0x132   : > { %v1741_v16 = vsel %vm1715_vm7, %v1708_v39, %v1152_v46 }
 0x133   : > { %v1136_v54 = vpop.permute.xlu0 %1135 }
 0x134   : > { %v1725_v4 = vsel %vm1715_vm7, %v1692_v63, %v1136_v54 }
 0x135   : > { %v1154_v0 = vpop.permute.xlu1 %1153 }
 0x136   : > { %v1743_v51 = vsel %vm1715_vm7, %v1710_v19, %v1154_v0 }
 0x137   : > { %v1138_v32 = vpop.permute.xlu0 %1137 }
 0x138   : > { %v1727_v27 = vsel %vm1715_vm7, %v1694_v55, %v1138_v32 }
 0x139   : > { %v1264_v34 = vpop.permute.xlu1 %1263 }
 0x13a   : > { %v1774_v12 = vsel %vm1748_vm8, %v1741_v16, %v1264_v34 }
 0x13b   : > { %v1248_v8 = vpop.permute.xlu0 %1247 }
 0x13c   : > { %v1758_v1 = vsel %vm1748_vm8, %v1725_v4, %v1248_v8 }
 0x13d   : > { %v1266_v61 = vpop.permute.xlu1 %1265 }
 0x13e   : > { %v1776_v3 = vsel %vm1748_vm8, %v1743_v51, %v1266_v61 }
 0x13f   : > { %v1250_v11 = vpop.permute.xlu0 %1249 }
 0x140   : > { %v1760_v58 = vsel %vm1748_vm8, %v1727_v27, %v1250_v11 }
 0x141   : > { %v1480_v57 = vpop.permute.xlu1 %1479 }
 0x142   : > { %v1807_v35 = vsel %vm1781_vm9, %v1774_v12, %v1480_v57 }
 0x143   : > { %v1464_v5 = vpop.permute.xlu0 %1463 }
 0x144   : > { %v1791_v52 = vsel %vm1781_vm9, %v1758_v1, %v1464_v5 }
 0x145   : > { %v1482_v43 = vpop.permute.xlu1 %1481 }
 0x146   : > { %v1809_v59 = vsel %vm1781_vm9, %v1776_v3, %v1482_v43 }
 0x147   : > { %v1466_v29 = vpop.permute.xlu0 %1465 }
 0x148   : > { %v1793_v45 = vsel %vm1781_vm9, %v1760_v58, %v1466_v29 }
 0x149   : > { %v1576_v30 = vpop.permute.xlu1 %1575 }
 0x14a   : > { %v1840_v36 = vsel %vm1814_vm10, %v1807_v35, %v1576_v30 }
 0x14b   : > { %v1560_v13 = vpop.permute.xlu0 %1559  ;;  %3868 = vmatprep.mubr.msk.bf16.mxu1 %vm1890_vm11, %v1840_v36 }
 0x14c   : > { %v1824_v6 = vsel %vm1814_vm10, %v1791_v52, %v1560_v13 }
 0x14d   : > { %3852 = vmatprep.mubr.msk.bf16.mxu0 %vm1890_vm11, %v1824_v6  ;;  %v635_v9 = vpop.permute.xlu1 %634 }
 0x14e   : > { %v1613_v23 = vsel %vm1583_vm3, %v4852_v28, %v635_v9 }
 0x14f   : > { %v619_v24 = vpop.permute.xlu0 %618 }
 0x150   : > { %v1597_v16 = vsel %vm1583_vm3, %v4866_v17, %v619_v24 }
 0x151   : > { %v1578_v26 = vpop.permute.xlu1 %1577 }
 0x152   : > { %v1842_v31 = vsel %vm1814_vm10, %v1809_v59, %v1578_v26 }
 0x153   : > { %v1562_v10 = vpop.permute.xlu0 %1561  ;;  %3869 = vmatmul.mubr.msk.bf16.gmra.mxu1 %vm1890_vm11, %v1842_v31 }
 0x154   : > { %v1826_v37 = vsel %vm1814_vm10, %v1793_v45, %v1562_v10 }
 0x155   : > { %3853 = vmatmul.mubr.msk.bf16.gmra.mxu0 %vm1890_vm11, %v1826_v37  ;;  %v637_v38 = vpop.permute.xlu1 %636 }
 0x156   : > { %v1615_v35 = vsel %vm1583_vm3, %v4878_v25, %v637_v38 }
 0x157   : > { %v621_v48 = vpop.permute.xlu0 %620 }
 0x158   : > { %v1599_v20 = vsel %vm1583_vm3, %v4893_v18, %v621_v48  ;;  %vm3269_vm3 = vcmask 1047559  }
 0x159   : > { %v732_v56 = vpop.permute.xlu1 %731 }
 0x15a   : > { %v1646_v42 = vsel %vm1616_vm4, %v1613_v23, %v732_v56  ;;  %v4180_v56 = vmov 1983009808  }
 0x15b   : > { %v716_v53 = vpop.permute.xlu0 %715 }
 0x15c   : > { %v1630_v12 = vsel %vm1616_vm4, %v1597_v16, %v716_v53  ;;  %v2154_v53 = vunpack.c.l.s4 %v4180_v56 }
 0x15d   : > { %v734_v33 = vpop.permute.xlu1 %733 }
 0x15e   : > { %v1648_v36 = vsel %vm1616_vm4, %v1615_v35, %v734_v33  ;;  %v2156_v33 = vlaneseq }
 0x15f   : > { %v718_v60 = vpop.permute.xlu0 %717 }
 0x160   : > { %v1632_v6 = vsel %vm1616_vm4, %v1599_v20, %v718_v60  ;;  %vm3336_vm4 = vcmask 519168  }
 0x161   : > { %v844_v41 = vpop.permute.xlu1 %843 }
 0x162   : > { %v1679_v29 = vsel %vm1649_vm5, %v1646_v42, %v844_v41  ;;  %v5276_v41 = vld [vmem:[%s5743_s2] ss:$0 sm:$0xff] }
 0x163   : > { %v828_v14 = vpop.permute.xlu0 %827 }
 0x164   : > { %v1663_v30 = vsel %vm1649_vm5, %v1630_v12, %v828_v14 }
 0x165   : > { %v846_v46 = vpop.permute.xlu1 %845 }
 0x166   : > { %v1681_v52 = vsel %vm1649_vm5, %v1648_v36, %v846_v46  ;;  %v2155_v46 = vunpack.c.0.s8 %v2154_v53 }
 0x167   : > { %v830_v54 = vpop.permute.xlu0 %829 }
 0x168   : > { %v1665_v9 = vsel %vm1649_vm5, %v1632_v6, %v830_v54  ;;  %v2157_v54 = vshrl.u32 %v2156_v33, 7 }
 0x169   : > { %v1060_v0 = vpop.permute.xlu1 %1059 }
 0x16a   : > { %v1712_v4 = vsel %vm1682_vm6, %v1679_v29, %v1060_v0 }
 0x16b   : > { %v1044_v32 = vpop.permute.xlu0 %1043 }
 0x16c   : > { %v1696_v7 = vsel %vm1682_vm6, %v1663_v30, %v1044_v32 }
 0x16d   : > { %v1062_v34 = vpop.permute.xlu1 %1061 }
 0x16e   : > { %v1714_v2 = vsel %vm1682_vm6, %v1681_v52, %v1062_v34 }
 0x16f   : > { %v1046_v8 = vpop.permute.xlu0 %1045 }
 0x170   : > { %v1698_v62 = vsel %vm1682_vm6, %v1665_v9, %v1046_v8 }
 0x171   : > { %v1156_v61 = vpop.permute.xlu1 %1155 }
 0x172   : > { %v1745_v28 = vsel %vm1715_vm7, %v1712_v4, %v1156_v61 }
 0x173   : > { %v1140_v11 = vpop.permute.xlu0 %1139 }
 0x174   : > { %v1729_v13 = vsel %vm1715_vm7, %v1696_v7, %v1140_v11 }
 0x175   : > { %v1158_v57 = vpop.permute.xlu1 %1157 }
 0x176   : > { %v1747_v49 = vsel %vm1715_vm7, %v1714_v2, %v1158_v57  ;;  %v5281_v57 = vsub.s32 %v2155_v46, %v2157_v54 }
 0x177   : > { %v1142_v44 = vpop.permute.xlu0 %1141 }
 0x178   : > { %v1731_v55 = vsel %vm1715_vm7, %v1698_v62, %v1142_v44 }
 0x179   : > { %v1268_v5 = vpop.permute.xlu1 %1267 }
 0x17a   : > { %v1778_v17 = vsel %vm1748_vm8, %v1745_v28, %v1268_v5 }
 0x17b   : > { %v1252_v15 = vpop.permute.xlu0 %1251 }
 0x17c   : > { %v1762_v40 = vsel %vm1748_vm8, %v1729_v13, %v1252_v15 }
 0x17d   : > { %v1270_v50 = vpop.permute.xlu1 %1269 }
 0x17e   : > { %v1780_v51 = vsel %vm1748_vm8, %v1747_v49, %v1270_v50 }
 0x17f   : > { %v1254_v22 = vpop.permute.xlu0 %1253 }
 0x180   : > { %v1764_v59 = vsel %vm1748_vm8, %v1731_v55, %v1254_v22 }
 0x181   : > { %v1484_v43 = vpop.permute.xlu1 %1483 }
 0x182   : > { %v1811_v25 = vsel %vm1781_vm9, %v1778_v17, %v1484_v43 }
 0x183   : > { %v1468_v39 = vpop.permute.xlu0 %1467 }
 0x184   : > { %v1795_v18 = vsel %vm1781_vm9, %v1762_v40, %v1468_v39 }
 0x185   : > { %v1486_v63 = vpop.permute.xlu1 %1485 }
 0x186   : > { %v1813_v3 = vsel %vm1781_vm9, %v1780_v51, %v1486_v63 }
 0x187   : > { %v1470_v1 = vpop.permute.xlu0 %1469 }
 0x188   : > { %v1797_v58 = vsel %vm1781_vm9, %v1764_v59, %v1470_v1 }
 0x189   : > { %v1580_v47 = vpop.permute.xlu1 %1579 }
 0x18a   : > { %v1844_v21 = vsel %vm1814_vm10, %v1811_v25, %v1580_v47 }
 0x18b   : > { %v1564_v19 = vpop.permute.xlu0 %1563  ;;  %3872 = vmatprep.mubr.msk.bf16.mxu1 %vm1890_vm11, %v1844_v21 }
 0x18c   : > { %v1828_v24 = vsel %vm1814_vm10, %v1795_v18, %v1564_v19 }
 0x18d   : > { %3856 = vmatprep.mubr.msk.bf16.mxu0 %vm1890_vm11, %v1828_v24  ;;  %v1582_v27 = vpop.permute.xlu1 %1581 }
 0x18e   : > { %v1846_v26 = vsel %vm1814_vm10, %v1813_v3, %v1582_v27 }
 0x18f   : > { %v1566_v31 = vpop.permute.xlu0 %1565  ;;  %3873 = vmatmul.mubr.msk.bf16.gmra.mxu1 %vm1890_vm11, %v1846_v26 }
 0x190   : > { %v1830_v45 = vsel %vm1814_vm10, %v1797_v58, %v1566_v31 }
 0x191   : > { %3857 = vmatmul.mubr.msk.bf16.gmra.mxu0 %vm1890_vm11, %v1830_v45 }
 0x193   : > { %v3862_v10 = vpop.f32.mrf.mxu1 }
 0x194   : > { %v2034_v32 = vadd.f32 %v3862_v10, %v5276_v41 }
 0x195   : > { %v3846_v37 = vpop.f32.mrf.mxu0  ;;  %v2025_v38 = vpop.f32.mrf.mxu1 }
 0x196   : > { %v1970_v34 = vadd.f32 %v3846_v37, %v5276_v41  ;;  %v2026_v8 = vadd.f32 %v5276_v41, %v2025_v38  ;;  %v2106_v39 = vmax.f32 %v2034_v32, 0.0 }
 0x197   : > { %v1961_v48 = vpop.f32.mrf.mxu0  ;;  %v3863_v60 = vpop.f32.mrf.mxu1 }
 0x198   : > { %v1962_v5 = vadd.f32 %v5276_v41, %v1961_v48  ;;  %v5289_v50 = vadd.f32 %v3863_v60, %v5276_v41  ;;  %v2090_v63 = vmax.f32 %v1970_v34, 0.0  ;;  %v2104_v12 = vmax.f32 %v2026_v8, 0.0 }
 0x199   : > { %v3847_v14 = vpop.f32.mrf.mxu0  ;;  %v2028_v0 = vpop.f32.mrf.mxu1 }
 0x19a   : > { %v5286_v15 = vadd.f32 %v3847_v14, %v5276_v41  ;;  %v5292_v22 = vadd.f32 %v5276_v41, %v2028_v0  ;;  %v2088_v17 = vmax.f32 %v1962_v5, 0.0  ;;  %v2107_v52 = vmax.f32 %v5289_v50, 0.0 }
 0x19b   : > { %v1964_v61 = vpop.f32.mrf.mxu0 }
 0x19c   : > { %v5297_v4 = vadd.f32 %v5276_v41, %v1964_v61  ;;  %v2091_v20 = vmax.f32 %v5286_v15, 0.0  ;;  %v2105_v13 = vmax.f32 %v5292_v22, 0.0 }
 0x19e   : > { %v2089_v21 = vmax.f32 %v5297_v4, 0.0 }
 0x1d3   : > { %v3866_v11 = vpop.f32.mrf.mxu1 }
 0x1d4   : > { %v2050_v44 = vadd.f32 %v3866_v11, %v5276_v41 }
 0x1d5   : > { %v3850_v43 = vpop.f32.mrf.mxu0  ;;  %v2041_v23 = vpop.f32.mrf.mxu1 }
 0x1d6   : > { %v1986_v42 = vadd.f32 %v3850_v43, %v5276_v41  ;;  %v2110_v16 = vmax.f32 %v2050_v44, 0.0  ;;  %v2042_v29 = vadd.f32 %v5276_v41, %v2041_v23 }
 0x1d7   : > { %v1977_v35 = vpop.f32.mrf.mxu0  ;;  %v3867_v7 = vpop.f32.mrf.mxu1 }
 0x1d8   : > { %v2094_v30 = vmax.f32 %v1986_v42, 0.0  ;;  %v2130_v28 = vmax.f32 %v2106_v39, %v2110_v16  ;;  %v1978_v1 = vadd.f32 %v5276_v41, %v1977_v35  ;;  %v2108_v36 = vmax.f32 %v2042_v29, 0.0 }
 0x1d9   : > { %v3851_v25 = vpop.f32.mrf.mxu0  ;;  %v5311_v18 = vadd.f32 %v3867_v7, %v5276_v41 }
 0x1da   : > { %v2122_v47 = vmax.f32 %v2090_v63, %v2094_v30  ;;  %v2322_v6 = vcombine.high %v2130_v28, %v2130_v28  ;;  %v2329_v2 = vrot.slane %v2130_v28, %v5281_v57  ;;  %v2092_v40 = vmax.f32 %v1978_v1, 0.0 }
 0x1db   : > { %v5305_v9 = vmax.f32 %v2104_v12, %v2108_v36  ;;  %v5308_v49 = vadd.f32 %v3851_v25, %v5276_v41 }
 0x1dc   : > { %v2186_v19 = vcombine.high %v2122_v47, %v2122_v47  ;;  %v2193_v62 = vrot.slane %v2122_v47, %v5281_v57  ;;  %v2336_v51 = vrot.slane %v2322_v6, %v5281_v57  ;;  %v2337_v24 = vcombine.high %v2329_v2, %v2329_v2 }
 0x1dd   : > { %v2769_v55 = vsel %vm2488_vm12, %v2329_v2, -inf  ;;  %v5316_v3 = vmax.f32 %v2088_v17, %v2092_v40  ;;  %v2288_v27 = vcombine.high %v5305_v9, %v5305_v9  ;;  %v5322_v59 = vrot.slane %v5305_v9, %v5281_v57 }
 0x1de   : > { %v2200_v26 = vrot.slane %v2186_v19, %v5281_v57  ;;  %v2201_v58 = vcombine.high %v2193_v62, %v2193_v62  ;;  %v2545_v31 = vsel %vm2488_vm12, %v2193_v62, -inf  ;;  %v2338_v45 = vcombine.high %v2336_v51, %v2336_v51 }
 0x1df   : > { %v2546_v10 = vrot.slane %v2545_v31, 4  ;;  %v2770_v37 = vrot.slane %v2769_v55, 4  ;;  %v2776_v38 = vsel %vm2488_vm12, %v2337_v24, -inf  ;;  %v2783_v48 = vsel %vm2488_vm12, %v2336_v51, -inf }
 0x1e0   : > { %v2202_v56 = vcombine.high %v2200_v26, %v2200_v26  ;;  %v2552_v53 = vsel %vm2488_vm12, %v2201_v58, -inf  ;;  %v2559_v33 = vsel %vm2488_vm12, %v2200_v26, -inf  ;;  %v2777_v60 = vrot.slane %v2776_v38, 4 }
 0x1e1   : > { %v2547_v14 = vmax.f32 %v2545_v31, %v2546_v10  ;;  %v2553_v46 = vrot.slane %v2552_v53, 4  ;;  %v2560_v54 = vrot.slane %v2559_v33, 4  ;;  %v2771_v0 = vmax.f32 %v2769_v55, %v2770_v37 }
 0x1e2   : > { %v2566_v32 = vsel %vm2488_vm12, %v2202_v56, -inf  ;;  %v2778_v34 = vmax.f32 %v2776_v38, %v2777_v60  ;;  %v2784_v8 = vrot.slane %v2783_v48, 4  ;;  %v2790_v61 = vsel %vm2488_vm12, %v2338_v45, -inf }
 0x1e3   : > { %v2548_v11 = vrot.slane %v2547_v14, 2  ;;  %v2554_v44 = vmax.f32 %v2552_v53, %v2553_v46  ;;  %v2561_v5 = vmax.f32 %v2559_v33, %v2560_v54  ;;  %v2567_v43 = vrot.slane %v2566_v32, 4 }
 0x1e4   : > { %v2772_v23 = vrot.slane %v2771_v0, 2  ;;  %v2779_v39 = vrot.slane %v2778_v34, 2  ;;  %v2785_v42 = vmax.f32 %v2783_v48, %v2784_v8  ;;  %v2791_v16 = vrot.slane %v2790_v61, 4 }
 0x1e5   : > { %v2549_v29 = vmax.f32 %v2547_v14, %v2548_v11  ;;  %v2555_v63 = vrot.slane %v2554_v44, 2  ;;  %v2562_v12 = vrot.slane %v2561_v5, 2  ;;  %v2568_v35 = vmax.f32 %v2566_v32, %v2567_v43 }
 0x1e6   : > { %v2773_v30 = vmax.f32 %v2771_v0, %v2772_v23  ;;  %v2780_v28 = vmax.f32 %v2778_v34, %v2779_v39  ;;  %v2786_v1 = vrot.slane %v2785_v42, 2  ;;  %v2792_v36 = vmax.f32 %v2790_v61, %v2791_v16 }
 0x1e7   : > { %v2550_v7 = vrot.slane %v2549_v29, 1  ;;  %v2556_v17 = vmax.f32 %v2554_v44, %v2555_v63  ;;  %v2563_v25 = vmax.f32 %v2561_v5, %v2562_v12  ;;  %v2569_v47 = vrot.slane %v2568_v35, 2 }
 0x1e8   : > { %v2774_v6 = vrot.slane %v2773_v30, 1  ;;  %v2781_v2 = vrot.slane %v2780_v28, 1  ;;  %v2787_v40 = vmax.f32 %v2785_v42, %v2786_v1  ;;  %v2793_v19 = vrot.slane %v2792_v36, 2 }
 0x1e9   : > { %v2551_v62 = vmax.f32 %v2549_v29, %v2550_v7  ;;  %v2557_v51 = vrot.slane %v2556_v17, 1  ;;  %v2564_v24 = vrot.slane %v2563_v25, 1  ;;  %v2570_v55 = vmax.f32 %v2568_v35, %v2569_v47 }
 0x1ea   : > { %v2775_v26 = vmax.f32 %v2773_v30, %v2774_v6  ;;  %v2782_v58 = vmax.f32 %v2780_v28, %v2781_v2  ;;  %v2788_v31 = vrot.slane %v2787_v40, 1  ;;  %v2794_v45 = vmax.f32 %v2792_v36, %v2793_v19 }
 0x1eb   : > { %v2558_v10 = vmax.f32 %v2556_v17, %v2557_v51  ;;  %v2565_v37 = vmax.f32 %v2563_v25, %v2564_v24  ;;  %v2571_v38 = vrot.slane %v2570_v55, 1  ;;  %v3756_v48 = vpack.c.bf16 %v2551_v62, %v2551_v62 }
 0x1ec   : > { %v2789_v56 = vmax.f32 %v2787_v40, %v2788_v31  ;;  %v2795_v53 = vrot.slane %v2794_v45, 1  ;;  %v3788_v33 = vpack.c.bf16 %v2775_v26, %v2775_v26  ;;  %v3789_v60 = vpack.c.bf16 %v2782_v58, %v2782_v58 }
 0x1ed   : > { %v2572_v14 = vmax.f32 %v2570_v55, %v2571_v38  ;;  %v3757_v46 = vpack.c.bf16 %v2558_v10, %v2558_v10  ;;  %v3758_v54 = vpack.c.bf16 %v2565_v37, %v2565_v37  ;;  %v3201_v0 = vunpack.c.l.b16 %v3756_v48 }
 0x1ee   : > { %v2796_v32 = vmax.f32 %v2794_v45, %v2795_v53  ;;  %v3790_v34 = vpack.c.bf16 %v2789_v56, %v2789_v56  ;;  %v3233_v8 = vunpack.c.l.b16 %v3788_v33  ;;  %v3234_v61 = vunpack.c.l.b16 %v3789_v60 }
 0x1ef   : > { %v3759_v11 = vpack.c.bf16 %v2572_v14, %v2572_v14  ;;  %v3202_v44 = vunpack.c.l.b16 %v3757_v46  ;;  %v3203_v5 = vunpack.c.l.b16 %v3758_v54  ;;  %v2152_v43 = vcombine.high %v5316_v3, %v5316_v3 }
 0x1f0   : > { %v3791_v23 = vpack.c.bf16 %v2796_v32, %v2796_v32  ;;  %v5334_v39 = vunpack.c.l.b16 %v3790_v34  ;;  %v2159_v42 = vrot.slane %v5316_v3, %v5281_v57  ;;  %v2111_v16 = vmax.f32 %v5311_v18, 0.0 }
 0x1f1   : > { %v3271_v29 = vsel %vm3257_vm13, %v3202_v44, %v3201_v0  ;;  %v5341_v63 = vsel %vm3257_vm13, %v3234_v61, %v3233_v8  ;;  %v2166_v12 = vrot.slane %v2152_v43, %v5281_v57  ;;  %v2302_v35 = vrot.slane %v2288_v27, %v5281_v57 }
 0x1f2   : > { %v5348_v30 = vunpack.c.l.b16 %v3759_v11  ;;  %v5351_v28 = vsel %vm3259_vm14, %v3203_v5, %v3271_v29  ;;  %v5353_v3 = vunpack.c.l.b16 %v3791_v23  ;;  %v2167_v1 = vcombine.high %v2159_v42, %v2159_v42 }
 0x1f3   : > { %v2168_v36 = vcombine.high %v2166_v12, %v2166_v12  ;;  %v2489_v7 = vsel %vm2488_vm12, %v2159_v42, -inf  ;;  %v2503_v17 = vsel %vm2488_vm12, %v2166_v12, -inf  ;;  %v2303_v25 = vcombine.high %v5322_v59, %v5322_v59 }
 0x1f4   : > { %v2490_v47 = vrot.slane %v2489_v7, 4  ;;  %v2496_v9 = vsel %vm2488_vm12, %v2167_v1, -inf  ;;  %v2504_v27 = vrot.slane %v2503_v17, 4  ;;  %v2304_v6 = vcombine.high %v2302_v35, %v2302_v35 }
 0x1f5   : > { %v2497_v2 = vrot.slane %v2496_v9, 4  ;;  %v2510_v40 = vsel %vm2488_vm12, %v2168_v36, -inf  ;;  %v2713_v19 = vsel %vm2488_vm12, %v5322_v59, -inf  ;;  %v2720_v62 = vsel %vm2488_vm12, %v2303_v25, -inf }
 0x1f6   : > { %v2491_v51 = vmax.f32 %v2489_v7, %v2490_v47  ;;  %v2505_v24 = vmax.f32 %v2503_v17, %v2504_v27  ;;  %v2511_v55 = vrot.slane %v2510_v40, 4  ;;  %v2714_v26 = vrot.slane %v2713_v19, 4 }
 0x1f7   : > { %v2498_v58 = vmax.f32 %v2496_v9, %v2497_v2  ;;  %v2721_v31 = vrot.slane %v2720_v62, 4  ;;  %v2727_v45 = vsel %vm2488_vm12, %v2302_v35, -inf  ;;  %v2734_v10 = vsel %vm2488_vm12, %v2304_v6, -inf }
 0x1f8   : > { %v2492_v37 = vrot.slane %v2491_v51, 2  ;;  %v2506_v38 = vrot.slane %v2505_v24, 2  ;;  %v2512_v48 = vmax.f32 %v2510_v40, %v2511_v55  ;;  %v2715_v56 = vmax.f32 %v2713_v19, %v2714_v26  ;;  %v2044_v55 = vpop.f32.mrf.mxu1 }
 0x1f9   : > { %v2499_v53 = vrot.slane %v2498_v58, 2  ;;  %v2722_v33 = vmax.f32 %v2720_v62, %v2721_v31  ;;  %v2728_v60 = vrot.slane %v2727_v45, 4  ;;  %v2735_v59 = vrot.slane %v2734_v10, 4 }
 0x1fa   : > { %v2493_v14 = vmax.f32 %v2491_v51, %v2492_v37  ;;  %v2507_v46 = vmax.f32 %v2505_v24, %v2506_v38  ;;  %v2513_v54 = vrot.slane %v2512_v48, 2  ;;  %v2716_v0 = vrot.slane %v2715_v56, 2 }
 0x1fb   : > { %v2500_v32 = vmax.f32 %v2498_v58, %v2499_v53  ;;  %v2723_v34 = vrot.slane %v2722_v33, 2  ;;  %v2729_v8 = vmax.f32 %v2727_v45, %v2728_v60  ;;  %v2736_v61 = vmax.f32 %v2734_v10, %v2735_v59  ;;  %v1980_v60 = vpop.f32.mrf.mxu0 }
 0x1fc   : > { %v2494_v11 = vrot.slane %v2493_v14, 1  ;;  %v2508_v44 = vrot.slane %v2507_v46, 1  ;;  %v2514_v5 = vmax.f32 %v2512_v48, %v2513_v54  ;;  %v2717_v43 = vmax.f32 %v2715_v56, %v2716_v0 }
 0x1fd   : > { %v2501_v23 = vrot.slane %v2500_v32, 1  ;;  %v2724_v42 = vmax.f32 %v2722_v33, %v2723_v34  ;;  %v2730_v29 = vrot.slane %v2729_v8, 2  ;;  %v2737_v12 = vrot.slane %v2736_v61, 2 }
 0x1fe   : > { %v2495_v35 = vmax.f32 %v2493_v14, %v2494_v11  ;;  %v2509_v1 = vmax.f32 %v2507_v46, %v2508_v44  ;;  %v2515_v36 = vrot.slane %v2514_v5, 1  ;;  %v2718_v7 = vrot.slane %v2717_v43, 1 }
 0x1ff   : > { %v2502_v17 = vmax.f32 %v2500_v32, %v2501_v23  ;;  %v2725_v25 = vrot.slane %v2724_v42, 1  ;;  %v2731_v47 = vmax.f32 %v2729_v8, %v2730_v29  ;;  %v2738_v9 = vmax.f32 %v2736_v61, %v2737_v12 }
 0x200   : > { %v2516_v27 = vmax.f32 %v2514_v5, %v2515_v36  ;;  %v3748_v6 = vpack.c.bf16 %v2495_v35, %v2495_v35  ;;  %v3750_v2 = vpack.c.bf16 %v2509_v1, %v2509_v1  ;;  %v2719_v40 = vmax.f32 %v2717_v43, %v2718_v7 }
 0x201   : > { %v3749_v19 = vpack.c.bf16 %v2502_v17, %v2502_v17  ;;  %v2726_v62 = vmax.f32 %v2724_v42, %v2725_v25  ;;  %v2732_v51 = vrot.slane %v2731_v47, 1  ;;  %v2739_v24 = vrot.slane %v2738_v9, 1 }
 0x202   : > { %v3751_v26 = vpack.c.bf16 %v2516_v27, %v2516_v27  ;;  %v3193_v58 = vunpack.c.l.b16 %v3748_v6  ;;  %v3195_v31 = vunpack.c.l.b16 %v3750_v2  ;;  %v3780_v45 = vpack.c.bf16 %v2719_v40, %v2719_v40 }
 0x203   : > { %v3194_v10 = vunpack.c.l.b16 %v3749_v19  ;;  %v2733_v37 = vmax.f32 %v2731_v47, %v2732_v51  ;;  %v2740_v38 = vmax.f32 %v2738_v9, %v2739_v24  ;;  %v3781_v48 = vpack.c.bf16 %v2726_v62, %v2726_v62 }
 0x204   : > { %v3300_v56 = vsel %vm3259_vm14, %v5334_v39, %v5341_v63  ;;  %v5369_v53 = vunpack.c.l.b16 %v3751_v26  ;;  %v2095_v33 = vmax.f32 %v5308_v49, 0.0  ;;  %v5373_v59 = vadd.f32 %v5276_v41, %v2044_v55 }
 0x205   : > { %v3258_v14 = vsel %vm3257_vm13, %v3194_v10, %v3193_v58  ;;  %v3782_v46 = vpack.c.bf16 %v2733_v37, %v2733_v37  ;;  %v3783_v54 = vpack.c.bf16 %v2740_v38, %v2740_v38  ;;  %v3226_v0 = vunpack.c.l.b16 %v3781_v48 }
 0x206   : > { %v3225_v32 = vunpack.c.l.b16 %v3780_v45  ;;  %v2123_v34 = vmax.f32 %v2091_v20, %v2095_v33  ;;  %v5381_v39 = vsel %vm3261_vm15, %v5348_v30, %v5351_v28  ;;  %v2131_v49 = vmax.f32 %v2107_v52, %v2111_v16 }
 0x207   : > { %v5388_v63 = vsel %vm3259_vm14, %v3195_v31, %v3258_v14  ;;  %v5390_v8 = vunpack.c.l.b16 %v3782_v46  ;;  %v5394_v61 = vsel %vm3261_vm15, %v5353_v3, %v3300_v56  ;;  %v1981_v15 = vadd.f32 %v5276_v41, %v1980_v60 }
 0x208   : > { %v2203_v20 = vcombine.high %v2123_v34, %v2123_v34  ;;  %v2210_v30 = vrot.slane %v2123_v34, %v5281_v57  ;;  %v2339_v28 = vcombine.high %v2131_v49, %v2131_v49  ;;  %v2346_v18 = vrot.slane %v2131_v49, %v5281_v57 }
 0x209   : > { %v5399_v11 = vunpack.c.l.b16 %v3783_v54  ;;  %v5402_v50 = vsel %vm3257_vm13, %v3226_v0, %v3225_v32  ;;  %v2093_v52 = vmax.f32 %v1981_v15, 0.0  ;;  %v2109_v16 = vmax.f32 %v5373_v59, 0.0 }
 0x20a   : > { %v2217_v44 = vrot.slane %v2203_v20, %v5281_v57  ;;  %v2218_v3 = vcombine.high %v2210_v30, %v2210_v30  ;;  %v2573_v5 = vsel %vm2488_vm12, %v2210_v30, -inf  ;;  %v2353_v43 = vrot.slane %v2339_v28, %v5281_v57 }
 0x20b   : > { %v2574_v23 = vrot.slane %v2573_v5, 4  ;;  %v2354_v42 = vcombine.high %v2346_v18, %v2346_v18  ;;  %v2797_v29 = vsel %vm2488_vm12, %v2346_v18, -inf  ;;  %v5411_v12 = vmax.f32 %v2089_v21, %v2093_v52 }
 0x20c   : > { %v2219_v35 = vcombine.high %v2217_v44, %v2217_v44  ;;  %v2580_v1 = vsel %vm2488_vm12, %v2218_v3, -inf  ;;  %v2587_v36 = vsel %vm2488_vm12, %v2217_v44, -inf  ;;  %v2355_v7 = vcombine.high %v2353_v43, %v2353_v43 }
 0x20d   : > { %v2575_v17 = vmax.f32 %v2573_v5, %v2574_v23  ;;  %v2581_v25 = vrot.slane %v2580_v1, 4  ;;  %v2588_v47 = vrot.slane %v2587_v36, 4  ;;  %v2798_v9 = vrot.slane %v2797_v29, 4 }
 0x20e   : > { %v2594_v27 = vsel %vm2488_vm12, %v2219_v35, -inf  ;;  %v2804_v6 = vsel %vm2488_vm12, %v2354_v42, -inf  ;;  %v2811_v2 = vsel %vm2488_vm12, %v2353_v43, -inf  ;;  %v2818_v4 = vsel %vm2488_vm12, %v2355_v7, -inf }
 0x20f   : > { %v2576_v21 = vrot.slane %v2575_v17, 2  ;;  %v2582_v40 = vmax.f32 %v2580_v1, %v2581_v25  ;;  %v2589_v19 = vmax.f32 %v2587_v36, %v2588_v47  ;;  %v2595_v62 = vrot.slane %v2594_v27, 4 }
 0x210   : > { %v2799_v51 = vmax.f32 %v2797_v29, %v2798_v9  ;;  %v2805_v24 = vrot.slane %v2804_v6, 4  ;;  %v2812_v55 = vrot.slane %v2811_v2, 4  ;;  %v2819_v26 = vrot.slane %v2818_v4, 4 }
 0x211   : > { %v2577_v58 = vmax.f32 %v2575_v17, %v2576_v21  ;;  %v2583_v31 = vrot.slane %v2582_v40, 2  ;;  %v2590_v45 = vrot.slane %v2589_v19, 2  ;;  %v2596_v10 = vmax.f32 %v2594_v27, %v2595_v62 }
 0x212   : > { %v2800_v37 = vrot.slane %v2799_v51, 2  ;;  %v2806_v38 = vmax.f32 %v2804_v6, %v2805_v24  ;;  %v2813_v48 = vmax.f32 %v2811_v2, %v2812_v55  ;;  %v2820_v56 = vmax.f32 %v2818_v4, %v2819_v26 }
 0x213   : > { %v2578_v33 = vrot.slane %v2577_v58, 1  ;;  %v2584_v60 = vmax.f32 %v2582_v40, %v2583_v31  ;;  %v2591_v14 = vmax.f32 %v2589_v19, %v2590_v45  ;;  %v2597_v46 = vrot.slane %v2596_v10, 2 }
 0x214   : > { %v2801_v54 = vmax.f32 %v2799_v51, %v2800_v37  ;;  %v2807_v0 = vrot.slane %v2806_v38, 2  ;;  %v2814_v32 = vrot.slane %v2813_v48, 2  ;;  %v2821_v34 = vrot.slane %v2820_v56, 2 }
 0x215   : > { %v2579_v49 = vmax.f32 %v2577_v58, %v2578_v33  ;;  %v2585_v15 = vrot.slane %v2584_v60, 1  ;;  %v2592_v20 = vrot.slane %v2591_v14, 1  ;;  %v2598_v30 = vmax.f32 %v2596_v10, %v2597_v46 }
 0x216   : > { %v2802_v28 = vrot.slane %v2801_v54, 1  ;;  %v2808_v18 = vmax.f32 %v2806_v38, %v2807_v0  ;;  %v2815_v52 = vmax.f32 %v2813_v48, %v2814_v32  ;;  %v2822_v44 = vmax.f32 %v2820_v56, %v2821_v34 }
 0x217   : > { %v2586_v3 = vmax.f32 %v2584_v60, %v2585_v15  ;;  %v2593_v5 = vmax.f32 %v2591_v14, %v2592_v20  ;;  %v2599_v43 = vrot.slane %v2598_v30, 1  ;;  %v3760_v23 = vpack.c.bf16 %v2579_v49, %v2579_v49 }
 0x218   : > { %v2803_v42 = vmax.f32 %v2801_v54, %v2802_v28  ;;  %v2809_v29 = vrot.slane %v2808_v18, 1  ;;  %v2816_v35 = vrot.slane %v2815_v52, 1  ;;  %v2823_v1 = vrot.slane %v2822_v44, 1 }
 0x219   : > { %v2600_v36 = vmax.f32 %v2598_v30, %v2599_v43  ;;  %v3761_v7 = vpack.c.bf16 %v2586_v3, %v2586_v3  ;;  %v3762_v17 = vpack.c.bf16 %v2593_v5, %v2593_v5  ;;  %v3205_v25 = vunpack.c.l.b16 %v3760_v23 }
 0x21a   : > { %v2810_v47 = vmax.f32 %v2808_v18, %v2809_v29  ;;  %v2817_v9 = vmax.f32 %v2815_v52, %v2816_v35  ;;  %v2824_v27 = vmax.f32 %v2822_v44, %v2823_v1  ;;  %v3792_v6 = vpack.c.bf16 %v2803_v42, %v2803_v42 }
 0x21b   : > { %v3763_v2 = vpack.c.bf16 %v2600_v36, %v2600_v36  ;;  %v3206_v4 = vunpack.c.l.b16 %v3761_v7  ;;  %v3207_v21 = vunpack.c.l.b16 %v3762_v17  ;;  %v3274_v40 = vsel %vm3263_vm0, %v3205_v25, %v5381_v39 }
 0x21c   : > { %v3793_v19 = vpack.c.bf16 %v2810_v47, %v2810_v47  ;;  %v3794_v62 = vpack.c.bf16 %v2817_v9, %v2817_v9  ;;  %v3795_v51 = vpack.c.bf16 %v2824_v27, %v2824_v27  ;;  %v3237_v24 = vunpack.c.l.b16 %v3792_v6 }
 0x21d   : > { %v3208_v55 = vunpack.c.l.b16 %v3763_v2  ;;  %v3275_v26 = vsel %vm3265_vm1, %v3206_v4, %v3274_v40  ;;  %v2169_v58 = vcombine.high %v5411_v12, %v5411_v12  ;;  %v2176_v31 = vrot.slane %v5411_v12, %v5281_v57 }
 0x21e   : > { %v3276_v45 = vsel %vm3267_vm2, %v3207_v21, %v3275_v26  ;;  %v3238_v10 = vunpack.c.l.b16 %v3793_v19  ;;  %v3239_v37 = vunpack.c.l.b16 %v3794_v62  ;;  %v3240_v39 = vunpack.c.l.b16 %v3795_v51 }
 0x21f   : > { %v3277_v38 = vsel %vm3269_vm3, %v3208_v55, %v3276_v45  ;;  %v3302_v48 = vsel %vm3263_vm0, %v3237_v24, %v5394_v61  ;;  %v2183_v56 = vrot.slane %v2169_v58, %v5281_v57  ;;  %v2184_v33 = vcombine.high %v2176_v31, %v2176_v31 }
 0x220   : > { %v3321_v60 = vpack.c.b16 %v3277_v38, %v3277_v38  ;;  %v3303_v14 = vsel %vm3265_vm1, %v3238_v10, %v3302_v48  ;;  %v2517_v46 = vsel %vm2488_vm12, %v2176_v31, -inf  ;;  %v2129_v12 = vmax.f32 %v2105_v13, %v2109_v16 }
 0x221   : > { %v3304_v54 = vsel %vm3267_vm2, %v3239_v37, %v3303_v14  ;;  %v2185_v0 = vcombine.high %v2183_v56, %v2183_v56  ;;  %v2518_v32 = vrot.slane %v2517_v46, 4  ;;  %v2524_v34 = vsel %vm2488_vm12, %v2184_v33, -inf }
 0x222   : > { %3338 = vst.msk [vmem:[%s5442_s24 + $0x4] sm:$0xf] %vm3336_vm4, %v3321_v60  ;;  %v3305_v61 = vsel %vm3269_vm3, %v3240_v39, %v3304_v54  ;;  %v2525_v49 = vrot.slane %v2524_v34, 4  ;;  %v2531_v59 = vsel %vm2488_vm12, %v2183_v56, -inf  ;;  %v2305_v15 = vcombine.high %v2129_v12, %v2129_v12 }
 0x223   : > { %v3325_v22 = vpack.c.b16 %v3305_v61, %v3305_v61  ;;  %v2519_v13 = vmax.f32 %v2517_v46, %v2518_v32  ;;  %v2532_v16 = vrot.slane %v2531_v59, 4  ;;  %v2538_v20 = vsel %vm2488_vm12, %v2185_v0, -inf }
 0x224   : > { %v2526_v30 = vmax.f32 %v2524_v34, %v2525_v49  ;;  %v2539_v28 = vrot.slane %v2538_v20, 4  ;;  %v2312_v18 = vrot.slane %v2129_v12, %v5281_v57  ;;  %v2319_v52 = vrot.slane %v2305_v15, %v5281_v57 }
 0x225   : > { %v5454_v44 = vsel %vm3259_vm14, %v5390_v8, %v5402_v50  ;;  %3342 = vst.msk [vmem:[%s5442_s24 + $0x14] sm:$0xf] %vm3336_vm4, %v3325_v22  ;;  %v2520_v3 = vrot.slane %v2519_v13, 2  ;;  %v2533_v5 = vmax.f32 %v2531_v59, %v2532_v16  ;;  %v3262_v43 = vsel %vm3261_vm15, %v5369_v53, %v5388_v63 }
 0x226   : > { %v2527_v23 = vrot.slane %v2526_v30, 2  ;;  %v2540_v42 = vmax.f32 %v2538_v20, %v2539_v28  ;;  %v2320_v29 = vcombine.high %v2312_v18, %v2312_v18  ;;  %v2321_v35 = vcombine.high %v2319_v52, %v2319_v52 }
 0x227   : > { %v2521_v1 = vmax.f32 %v2519_v13, %v2520_v3  ;;  %v2534_v36 = vrot.slane %v2533_v5, 2  ;;  %v2741_v7 = vsel %vm2488_vm12, %v2312_v18, -inf  ;;  %v2755_v17 = vsel %vm2488_vm12, %v2319_v52, -inf }
 0x228   : > { %v2528_v8 = vmax.f32 %v2526_v30, %v2527_v23  ;;  %v2541_v50 = vrot.slane %v2540_v42, 2  ;;  %v2742_v25 = vrot.slane %v2741_v7, 4  ;;  %v2748_v47 = vsel %vm2488_vm12, %v2320_v29, -inf }
 0x229   : > { %v2522_v9 = vrot.slane %v2521_v1, 1  ;;  %v2535_v27 = vmax.f32 %v2533_v5, %v2534_v36  ;;  %v2749_v6 = vrot.slane %v2748_v47, 4  ;;  %v2756_v2 = vrot.slane %v2755_v17, 4 }
 0x22a   : > { %v2529_v53 = vrot.slane %v2528_v8, 1  ;;  %v2542_v63 = vmax.f32 %v2540_v42, %v2541_v50  ;;  %v2743_v4 = vmax.f32 %v2741_v7, %v2742_v25  ;;  %v2762_v21 = vsel %vm2488_vm12, %v2321_v35, -inf }
 0x22b   : > { %v2523_v40 = vmax.f32 %v2521_v1, %v2522_v9  ;;  %v2536_v19 = vrot.slane %v2535_v27, 1  ;;  %v2750_v62 = vmax.f32 %v2748_v47, %v2749_v6  ;;  %v2757_v51 = vmax.f32 %v2755_v17, %v2756_v2 }
 0x22c   : > { %v2530_v24 = vmax.f32 %v2528_v8, %v2529_v53  ;;  %v2543_v55 = vrot.slane %v2542_v63, 1  ;;  %v2744_v26 = vrot.slane %v2743_v4, 2  ;;  %v2763_v58 = vrot.slane %v2762_v21, 4 }
 0x22d   : > { %v2537_v31 = vmax.f32 %v2535_v27, %v2536_v19  ;;  %v3752_v45 = vpack.c.bf16 %v2523_v40, %v2523_v40  ;;  %v2751_v10 = vrot.slane %v2750_v62, 2  ;;  %v2758_v37 = vrot.slane %v2757_v51, 2 }
 0x22e   : > { %v2544_v39 = vmax.f32 %v2542_v63, %v2543_v55  ;;  %v3753_v38 = vpack.c.bf16 %v2530_v24, %v2530_v24  ;;  %v2745_v48 = vmax.f32 %v2743_v4, %v2744_v26  ;;  %v2764_v56 = vmax.f32 %v2762_v21, %v2763_v58 }
 0x22f   : > { %v3754_v33 = vpack.c.bf16 %v2537_v31, %v2537_v31  ;;  %v3197_v60 = vunpack.c.l.b16 %v3752_v45  ;;  %v2752_v14 = vmax.f32 %v2750_v62, %v2751_v10  ;;  %v2759_v46 = vmax.f32 %v2757_v51, %v2758_v37 }
 0x230   : > { %v3755_v12 = vpack.c.bf16 %v2544_v39, %v2544_v39  ;;  %v3198_v54 = vunpack.c.l.b16 %v3753_v38  ;;  %v2746_v0 = vrot.slane %v2745_v48, 1  ;;  %v2765_v32 = vrot.slane %v2764_v56, 2 }
 0x231   : > { %v3199_v34 = vunpack.c.l.b16 %v3754_v33  ;;  %v3264_v61 = vsel %vm3263_vm0, %v3197_v60, %v3262_v43  ;;  %v2753_v49 = vrot.slane %v2752_v14, 1  ;;  %v2760_v59 = vrot.slane %v2759_v46, 1 }
 0x232   : > { %v3200_v15 = vunpack.c.l.b16 %v3755_v12  ;;  %v3266_v22 = vsel %vm3265_vm1, %v3198_v54, %v3264_v61  ;;  %v2747_v13 = vmax.f32 %v2745_v48, %v2746_v0  ;;  %v2766_v16 = vmax.f32 %v2764_v56, %v2765_v32 }
 0x233   : > { %v3268_v20 = vsel %vm3267_vm2, %v3199_v34, %v3266_v22  ;;  %v2754_v30 = vmax.f32 %v2752_v14, %v2753_v49  ;;  %v2761_v28 = vmax.f32 %v2759_v46, %v2760_v59  ;;  %v3294_v42 = vsel %vm3261_vm15, %v5399_v11, %v5454_v44  ;;  %v3870_v11 = vpop.f32.mrf.mxu1  ;;  %v3854_v44 = vpop.f32.mrf.mxu0 }
 0x234   : > { %v3270_v18 = vsel %vm3269_vm3, %v3200_v15, %v3268_v20  ;;  %v2767_v52 = vrot.slane %v2766_v16, 1  ;;  %v3784_v3 = vpack.c.bf16 %v2747_v13, %v2747_v13  ;;  %v2066_v4 = vadd.f32 %v3870_v11, %v5276_v41 }
 0x235   : > { %v3320_v5 = vpack.c.b16 %v3270_v18, %v3270_v18  ;;  %v3785_v23 = vpack.c.bf16 %v2754_v30, %v2754_v30  ;;  %v3786_v43 = vpack.c.bf16 %v2761_v28, %v2761_v28  ;;  %v2057_v27 = vpop.f32.mrf.mxu1  ;;  %v1993_v6 = vpop.f32.mrf.mxu0  ;;  %v2002_v40 = vadd.f32 %v3854_v44, %v5276_v41 }
 0x236   : > { %v2768_v29 = vmax.f32 %v2766_v16, %v2767_v52  ;;  %v3229_v35 = vunpack.c.l.b16 %v3784_v3  ;;  %v1994_v19 = vadd.f32 %v5276_v41, %v1993_v6  ;;  %v2058_v24 = vadd.f32 %v5276_v41, %v2057_v27 }
 0x237   : > { %3337 = vst.msk [vmem:[%s5442_s24] sm:$0xf] %vm3336_vm4, %v3320_v5  ;;  %v3230_v1 = vunpack.c.l.b16 %v3785_v23  ;;  %v3231_v36 = vunpack.c.l.b16 %v3786_v43  ;;  %v3871_v2 = vpop.f32.mrf.mxu1  ;;  %v3855_v53 = vpop.f32.mrf.mxu0  ;;  %v2114_v10 = vmax.f32 %v2066_v4, 0.0  ;;  %v2098_v48 = vmax.f32 %v2002_v40, 0.0 }
 0x238   : > { %v3787_v7 = vpack.c.bf16 %v2768_v29, %v2768_v29  ;;  %v3295_v17 = vsel %vm3263_vm0, %v3229_v35, %v3294_v42  ;;  %v5486_v55 = vadd.f32 %v3855_v53, %v5276_v41  ;;  %v5489_v26 = vadd.f32 %v3871_v2, %v5276_v41 }
 0x239   : > { %v3296_v8 = vsel %vm3265_vm1, %v3230_v1, %v3295_v17  ;;  %v2060_v63 = vpop.f32.mrf.mxu1  ;;  %v1996_v21 = vpop.f32.mrf.mxu0  ;;  %v2096_v56 = vmax.f32 %v1994_v19, 0.0  ;;  %v2112_v32 = vmax.f32 %v2058_v24, 0.0 }
 0x23a   : > { %v3232_v50 = vunpack.c.l.b16 %v3787_v7  ;;  %v3297_v25 = vsel %vm3267_vm2, %v3231_v36, %v3296_v8  ;;  %v5492_v58 = vadd.f32 %v5276_v41, %v1996_v21  ;;  %v5497_v33 = vadd.f32 %v5276_v41, %v2060_v63 }
 0x23b   : > { %v2099_v34 = vmax.f32 %v5486_v55, 0.0  ;;  %v2115_v61 = vmax.f32 %v5489_v26, 0.0 }
 0x23c   : > { %v3298_v47 = vsel %vm3269_vm3, %v3232_v50, %v3297_v25  ;;  %v2097_v49 = vmax.f32 %v5492_v58, 0.0  ;;  %v2113_v20 = vmax.f32 %v5497_v33, 0.0 }
 0x23d   : > { %v3324_v9 = vpack.c.b16 %v3298_v47, %v3298_v47 }
 0x23f   : > { %3341 = vst.msk [vmem:[%s5442_s24 + $0x10] sm:$0xf] %vm3336_vm4, %v3324_v9 }
 0x24f   : > { %v3874_v62 = vpop.f32.mrf.mxu1 }
 0x250   : > { %v2082_v51 = vadd.f32 %v3874_v62, %v5276_v41 }
 0x251   : > { %v3858_v31 = vpop.f32.mrf.mxu0  ;;  %v2073_v45 = vpop.f32.mrf.mxu1 }
 0x252   : > { %v2018_v37 = vadd.f32 %v3858_v31, %v5276_v41  ;;  %v2118_v39 = vmax.f32 %v2082_v51, 0.0  ;;  %v2074_v38 = vadd.f32 %v5276_v41, %v2073_v45 }
 0x253   : > { %v2009_v60 = vpop.f32.mrf.mxu0  ;;  %v3875_v0 = vpop.f32.mrf.mxu1 }
 0x254   : > { %v2102_v14 = vmax.f32 %v2018_v37, 0.0  ;;  %v2134_v46 = vmax.f32 %v2114_v10, %v2118_v39  ;;  %v2010_v12 = vadd.f32 %v5276_v41, %v2009_v60  ;;  %v2116_v54 = vmax.f32 %v2074_v38, 0.0 }
 0x255   : > { %v3859_v59 = vpop.f32.mrf.mxu0  ;;  %v5511_v18 = vadd.f32 %v3875_v0, %v5276_v41 }
 0x256   : > { %v2126_v15 = vmax.f32 %v2098_v48, %v2102_v14  ;;  %v2390_v22 = vcombine.high %v2134_v46, %v2134_v46  ;;  %v2397_v13 = vrot.slane %v2134_v46, %v5281_v57  ;;  %v2100_v16 = vmax.f32 %v2010_v12, 0.0 }
 0x257   : > { %v5505_v30 = vmax.f32 %v2112_v32, %v2116_v54  ;;  %v5508_v28 = vadd.f32 %v3859_v59, %v5276_v41 }
 0x258   : > { %v2254_v52 = vcombine.high %v2126_v15, %v2126_v15  ;;  %v2261_v3 = vrot.slane %v2126_v15, %v5281_v57  ;;  %v2404_v5 = vrot.slane %v2390_v22, %v5281_v57  ;;  %v2405_v23 = vcombine.high %v2397_v13, %v2397_v13 }
 0x259   : > { %v2881_v43 = vsel %vm2488_vm12, %v2397_v13, -inf  ;;  %v5516_v42 = vmax.f32 %v2096_v56, %v2100_v16  ;;  %v2356_v29 = vcombine.high %v5505_v30, %v5505_v30  ;;  %v5522_v35 = vrot.slane %v5505_v30, %v5281_v57 }
 0x25a   : > { %v2268_v41 = vrot.slane %v2254_v52, %v5281_v57  ;;  %v2269_v1 = vcombine.high %v2261_v3, %v2261_v3  ;;  %v2657_v36 = vsel %vm2488_vm12, %v2261_v3, -inf  ;;  %v2406_v7 = vcombine.high %v2404_v5, %v2404_v5 }
 0x25b   : > { %v2658_v17 = vrot.slane %v2657_v36, 4  ;;  %v2882_v8 = vrot.slane %v2881_v43, 4  ;;  %v2888_v50 = vsel %vm2488_vm12, %v2405_v23, -inf  ;;  %v2895_v25 = vsel %vm2488_vm12, %v2404_v5, -inf }
 0x25c   : > { %v2270_v47 = vcombine.high %v2268_v41, %v2268_v41  ;;  %v2664_v9 = vsel %vm2488_vm12, %v2269_v1, -inf  ;;  %v2671_v11 = vsel %vm2488_vm12, %v2268_v41, -inf  ;;  %v2889_v44 = vrot.slane %v2888_v50, 4 }
 0x25d   : > { %v2659_v27 = vmax.f32 %v2657_v36, %v2658_v17  ;;  %v2665_v6 = vrot.slane %v2664_v9, 4  ;;  %v2672_v2 = vrot.slane %v2671_v11, 4  ;;  %v2883_v53 = vmax.f32 %v2881_v43, %v2882_v8 }
 0x25e   : > { %v2678_v63 = vsel %vm2488_vm12, %v2270_v47, -inf  ;;  %v2890_v4 = vmax.f32 %v2888_v50, %v2889_v44  ;;  %v2896_v21 = vrot.slane %v2895_v25, 4  ;;  %v2902_v40 = vsel %vm2488_vm12, %v2406_v7, -inf }
 0x25f   : > { %v2660_v19 = vrot.slane %v2659_v27, 2  ;;  %v2666_v62 = vmax.f32 %v2664_v9, %v2665_v6  ;;  %v2673_v51 = vmax.f32 %v2671_v11, %v2672_v2  ;;  %v2679_v24 = vrot.slane %v2678_v63, 4 }
 0x260   : > { %v2884_v31 = vrot.slane %v2883_v53, 2  ;;  %v2891_v45 = vrot.slane %v2890_v4, 2  ;;  %v2897_v10 = vmax.f32 %v2895_v25, %v2896_v21  ;;  %v2903_v37 = vrot.slane %v2902_v40, 4 }
 0x261   : > { %v2661_v39 = vmax.f32 %v2659_v27, %v2660_v19  ;;  %v2667_v38 = vrot.slane %v2666_v62, 2  ;;  %v2674_v48 = vrot.slane %v2673_v51, 2  ;;  %v2680_v56 = vmax.f32 %v2678_v63, %v2679_v24 }
 0x262   : > { %v2885_v60 = vmax.f32 %v2883_v53, %v2884_v31  ;;  %v2892_v14 = vmax.f32 %v2890_v4, %v2891_v45  ;;  %v2898_v46 = vrot.slane %v2897_v10, 2  ;;  %v2904_v12 = vmax.f32 %v2902_v40, %v2903_v37 }
 0x263   : > { %v2662_v54 = vrot.slane %v2661_v39, 1  ;;  %v2668_v0 = vmax.f32 %v2666_v62, %v2667_v38  ;;  %v2675_v32 = vmax.f32 %v2673_v51, %v2674_v48  ;;  %v2681_v59 = vrot.slane %v2680_v56, 2 }
 0x264   : > { %v2886_v15 = vrot.slane %v2885_v60, 1  ;;  %v2893_v22 = vrot.slane %v2892_v14, 1  ;;  %v2899_v13 = vmax.f32 %v2897_v10, %v2898_v46  ;;  %v2905_v16 = vrot.slane %v2904_v12, 2 }
 0x265   : > { %v2663_v52 = vmax.f32 %v2661_v39, %v2662_v54  ;;  %v2669_v3 = vrot.slane %v2668_v0, 1  ;;  %v2676_v5 = vrot.slane %v2675_v32, 1  ;;  %v2682_v23 = vmax.f32 %v2680_v56, %v2681_v59 }
 0x266   : > { %v2887_v43 = vmax.f32 %v2885_v60, %v2886_v15  ;;  %v2894_v41 = vmax.f32 %v2892_v14, %v2893_v22  ;;  %v2900_v1 = vrot.slane %v2899_v13, 1  ;;  %v2906_v36 = vmax.f32 %v2904_v12, %v2905_v16 }
 0x267   : > { %v2670_v7 = vmax.f32 %v2668_v0, %v2669_v3  ;;  %v2677_v17 = vmax.f32 %v2675_v32, %v2676_v5  ;;  %v2683_v8 = vrot.slane %v2682_v23, 1  ;;  %v3772_v50 = vpack.c.bf16 %v2663_v52, %v2663_v52 }
 0x268   : > { %v2901_v25 = vmax.f32 %v2899_v13, %v2900_v1  ;;  %v2907_v47 = vrot.slane %v2906_v36, 1  ;;  %v3804_v9 = vpack.c.bf16 %v2887_v43, %v2887_v43  ;;  %v3805_v11 = vpack.c.bf16 %v2894_v41, %v2894_v41 }
 0x269   : > { %v2684_v44 = vmax.f32 %v2682_v23, %v2683_v8  ;;  %v3773_v27 = vpack.c.bf16 %v2670_v7, %v2670_v7  ;;  %v3774_v6 = vpack.c.bf16 %v2677_v17, %v2677_v17  ;;  %v3217_v2 = vunpack.c.l.b16 %v3772_v50 }
 0x26a   : > { %v2908_v53 = vmax.f32 %v2906_v36, %v2907_v47  ;;  %v3806_v63 = vpack.c.bf16 %v2901_v25, %v2901_v25  ;;  %v3249_v4 = vunpack.c.l.b16 %v3804_v9  ;;  %v3250_v21 = vunpack.c.l.b16 %v3805_v11 }
 0x26b   : > { %v3775_v40 = vpack.c.bf16 %v2684_v44, %v2684_v44  ;;  %v3218_v19 = vunpack.c.l.b16 %v3773_v27  ;;  %v3219_v62 = vunpack.c.l.b16 %v3774_v6  ;;  %v2220_v51 = vcombine.high %v5516_v42, %v5516_v42 }
 0x26c   : > { %v3807_v24 = vpack.c.bf16 %v2908_v53, %v2908_v53  ;;  %v5534_v31 = vunpack.c.l.b16 %v3806_v63  ;;  %v2227_v45 = vrot.slane %v5516_v42, %v5281_v57  ;;  %v2119_v10 = vmax.f32 %v5511_v18, 0.0 }
 0x26d   : > { %v3285_v37 = vsel %vm3257_vm13, %v3218_v19, %v3217_v2  ;;  %v5541_v39 = vsel %vm3257_vm13, %v3250_v21, %v3249_v4  ;;  %v2234_v38 = vrot.slane %v2220_v51, %v5281_v57  ;;  %v2370_v48 = vrot.slane %v2356_v29, %v5281_v57 }
 0x26e   : > { %v5548_v56 = vunpack.c.l.b16 %v3775_v40  ;;  %v5551_v60 = vsel %vm3259_vm14, %v3219_v62, %v3285_v37  ;;  %v5553_v42 = vunpack.c.l.b16 %v3807_v24  ;;  %v2235_v14 = vcombine.high %v2227_v45, %v2227_v45 }
 0x26f   : > { %v2236_v46 = vcombine.high %v2234_v38, %v2234_v38  ;;  %v2601_v12 = vsel %vm2488_vm12, %v2227_v45, -inf  ;;  %v2615_v54 = vsel %vm2488_vm12, %v2234_v38, -inf  ;;  %v2371_v0 = vcombine.high %v5522_v35, %v5522_v35 }
 0x270   : > { %v2602_v32 = vrot.slane %v2601_v12, 4  ;;  %v2608_v30 = vsel %vm2488_vm12, %v2235_v14, -inf  ;;  %v2616_v29 = vrot.slane %v2615_v54, 4  ;;  %v2372_v59 = vcombine.high %v2370_v48, %v2370_v48 }
 0x271   : > { %v2609_v15 = vrot.slane %v2608_v30, 4  ;;  %v2622_v22 = vsel %vm2488_vm12, %v2236_v46, -inf  ;;  %v2825_v13 = vsel %vm2488_vm12, %v5522_v35, -inf  ;;  %v2832_v16 = vsel %vm2488_vm12, %v2371_v0, -inf }
 0x272   : > { %v2603_v52 = vmax.f32 %v2601_v12, %v2602_v32  ;;  %v2617_v3 = vmax.f32 %v2615_v54, %v2616_v29  ;;  %v2623_v5 = vrot.slane %v2622_v22, 4  ;;  %v2826_v23 = vrot.slane %v2825_v13, 4 }
 0x273   : > { %v2610_v43 = vmax.f32 %v2608_v30, %v2609_v15  ;;  %v2833_v41 = vrot.slane %v2832_v16, 4  ;;  %v2839_v1 = vsel %vm2488_vm12, %v2370_v48, -inf  ;;  %v2846_v36 = vsel %vm2488_vm12, %v2372_v59, -inf }
 0x274   : > { %v2604_v7 = vrot.slane %v2603_v52, 2  ;;  %v2618_v17 = vrot.slane %v2617_v3, 2  ;;  %v2624_v8 = vmax.f32 %v2622_v22, %v2623_v5  ;;  %v2827_v50 = vmax.f32 %v2825_v13, %v2826_v23 }
 0x275   : > { %v2611_v25 = vrot.slane %v2610_v43, 2  ;;  %v2834_v47 = vmax.f32 %v2832_v16, %v2833_v41  ;;  %v2840_v9 = vrot.slane %v2839_v1, 4  ;;  %v2847_v35 = vrot.slane %v2846_v36, 4 }
 0x276   : > { %v2605_v11 = vmax.f32 %v2603_v52, %v2604_v7  ;;  %v2619_v44 = vmax.f32 %v2617_v3, %v2618_v17  ;;  %v2625_v27 = vrot.slane %v2624_v8, 2  ;;  %v2828_v6 = vrot.slane %v2827_v50, 2  ;;  %v2076_v3 = vpop.f32.mrf.mxu1 }
 0x277   : > { %v2612_v2 = vmax.f32 %v2610_v43, %v2611_v25  ;;  %v2835_v53 = vrot.slane %v2834_v47, 2  ;;  %v2841_v63 = vmax.f32 %v2839_v1, %v2840_v9  ;;  %v2848_v4 = vmax.f32 %v2846_v36, %v2847_v35  ;;  %v4077_v9 = vld [vmem:[%s5743_s2] ss:$0 sm:$0xff] }
 0x278   : > { %v2606_v21 = vrot.slane %v2605_v11, 1  ;;  %v2620_v40 = vrot.slane %v2619_v44, 1  ;;  %v2626_v19 = vmax.f32 %v2624_v8, %v2625_v27  ;;  %v2829_v62 = vmax.f32 %v2827_v50, %v2828_v6 }
 0x279   : > { %v2613_v51 = vrot.slane %v2612_v2, 1  ;;  %v2836_v24 = vmax.f32 %v2834_v47, %v2835_v53  ;;  %v2842_v45 = vrot.slane %v2841_v63, 2  ;;  %v2849_v37 = vrot.slane %v2848_v4, 2  ;;  %v2012_v47 = vpop.f32.mrf.mxu0 }
 0x27a   : > { %v2607_v38 = vmax.f32 %v2605_v11, %v2606_v21  ;;  %v2621_v48 = vmax.f32 %v2619_v44, %v2620_v40  ;;  %v2627_v14 = vrot.slane %v2626_v19, 1  ;;  %v2830_v46 = vrot.slane %v2829_v62, 1 }
 0x27b   : > { %v2614_v12 = vmax.f32 %v2612_v2, %v2613_v51  ;;  %v2837_v54 = vrot.slane %v2836_v24, 1  ;;  %v2843_v0 = vmax.f32 %v2841_v63, %v2842_v45  ;;  %v2850_v32 = vmax.f32 %v2848_v4, %v2849_v37 }
 0x27c   : > { %v2628_v30 = vmax.f32 %v2626_v19, %v2627_v14  ;;  %v3764_v29 = vpack.c.bf16 %v2607_v38, %v2607_v38  ;;  %v3766_v59 = vpack.c.bf16 %v2621_v48, %v2621_v48  ;;  %v2831_v15 = vmax.f32 %v2829_v62, %v2830_v46 }
 0x27d   : > { %v3765_v22 = vpack.c.bf16 %v2614_v12, %v2614_v12  ;;  %v2838_v13 = vmax.f32 %v2836_v24, %v2837_v54  ;;  %v2844_v16 = vrot.slane %v2843_v0, 1  ;;  %v2851_v52 = vrot.slane %v2850_v32, 1 }
 0x27e   : > { %v3767_v5 = vpack.c.bf16 %v2628_v30, %v2628_v30  ;;  %v3209_v23 = vunpack.c.l.b16 %v3764_v29  ;;  %v3211_v43 = vunpack.c.l.b16 %v3766_v59  ;;  %v3796_v41 = vpack.c.bf16 %v2831_v15, %v2831_v15 }
 0x27f   : > { %v3210_v1 = vunpack.c.l.b16 %v3765_v22  ;;  %v2845_v36 = vmax.f32 %v2843_v0, %v2844_v16  ;;  %v2852_v7 = vmax.f32 %v2850_v32, %v2851_v52  ;;  %v3797_v17 = vpack.c.bf16 %v2838_v13, %v2838_v13 }
 0x280   : > { %v3314_v8 = vsel %vm3259_vm14, %v5534_v31, %v5541_v39  ;;  %v5569_v50 = vunpack.c.l.b16 %v3767_v5  ;;  %v2103_v25 = vmax.f32 %v5508_v28, 0.0  ;;  %v5575_v35 = vadd.f32 %v4077_v9, %v2076_v3 }
 0x281   : > { %v3278_v11 = vsel %vm3257_vm13, %v3210_v1, %v3209_v23  ;;  %v3798_v44 = vpack.c.bf16 %v2845_v36, %v2845_v36  ;;  %v3799_v27 = vpack.c.bf16 %v2852_v7, %v2852_v7  ;;  %v3242_v6 = vunpack.c.l.b16 %v3797_v17 }
 0x282   : > { %v3241_v2 = vunpack.c.l.b16 %v3796_v41  ;;  %v2127_v31 = vmax.f32 %v2099_v34, %v2103_v25  ;;  %v5583_v28 = vsel %vm3261_vm15, %v5548_v56, %v5551_v60  ;;  %v2135_v39 = vmax.f32 %v2115_v61, %v2119_v10 }
 0x283   : > { %v5590_v53 = vsel %vm3259_vm14, %v3211_v43, %v3278_v11  ;;  %v5592_v63 = vunpack.c.l.b16 %v3798_v44  ;;  %v5596_v4 = vsel %vm3261_vm15, %v5553_v42, %v3314_v8  ;;  %v2013_v55 = vadd.f32 %v4077_v9, %v2012_v47 }
 0x284   : > { %v2271_v34 = vcombine.high %v2127_v31, %v2127_v31  ;;  %v2278_v21 = vrot.slane %v2127_v31, %v5281_v57  ;;  %v2407_v56 = vcombine.high %v2135_v39, %v2135_v39  ;;  %v2414_v60 = vrot.slane %v2135_v39, %v5281_v57 }
 0x285   : > { %v5600_v18 = vunpack.c.l.b16 %v3799_v27  ;;  %v5603_v26 = vsel %vm3257_vm13, %v3242_v6, %v3241_v2  ;;  %v2101_v61 = vmax.f32 %v2013_v55, 0.0  ;;  %v2117_v10 = vmax.f32 %v5575_v35, 0.0 }
 0x286   : > { %v2285_v40 = vrot.slane %v2271_v34, %v5281_v57  ;;  %v2286_v19 = vcombine.high %v2278_v21, %v2278_v21  ;;  %v2685_v42 = vsel %vm2488_vm12, %v2278_v21, -inf  ;;  %v2421_v62 = vrot.slane %v2407_v56, %v5281_v57 }
 0x287   : > { %v2686_v51 = vrot.slane %v2685_v42, 4  ;;  %v2422_v24 = vcombine.high %v2414_v60, %v2414_v60  ;;  %v2909_v45 = vsel %vm2488_vm12, %v2414_v60, -inf  ;;  %v5612_v37 = vmax.f32 %v2097_v49, %v2101_v61 }
 0x288   : > { %v2287_v38 = vcombine.high %v2285_v40, %v2285_v40  ;;  %v2692_v48 = vsel %vm2488_vm12, %v2286_v19, -inf  ;;  %v2699_v14 = vsel %vm2488_vm12, %v2285_v40, -inf  ;;  %v2423_v46 = vcombine.high %v2421_v62, %v2421_v62 }
 0x289   : > { %v2687_v12 = vmax.f32 %v2685_v42, %v2686_v51  ;;  %v2693_v54 = vrot.slane %v2692_v48, 4  ;;  %v2700_v0 = vrot.slane %v2699_v14, 4  ;;  %v2910_v32 = vrot.slane %v2909_v45, 4 }
 0x28a   : > { %v2706_v30 = vsel %vm2488_vm12, %v2287_v38, -inf  ;;  %v2916_v29 = vsel %vm2488_vm12, %v2422_v24, -inf  ;;  %v2923_v59 = vsel %vm2488_vm12, %v2421_v62, -inf  ;;  %v2930_v58 = vsel %vm2488_vm12, %v2423_v46, -inf }
 0x28b   : > { %v2688_v49 = vrot.slane %v2687_v12, 2  ;;  %v2694_v15 = vmax.f32 %v2692_v48, %v2693_v54  ;;  %v2701_v22 = vmax.f32 %v2699_v14, %v2700_v0  ;;  %v2707_v13 = vrot.slane %v2706_v30, 4 }
 0x28c   : > { %v2911_v16 = vmax.f32 %v2909_v45, %v2910_v32  ;;  %v2917_v52 = vrot.slane %v2916_v29, 4  ;;  %v2924_v3 = vrot.slane %v2923_v59, 4  ;;  %v2931_v5 = vrot.slane %v2930_v58, 4 }
 0x28d   : > { %v2689_v23 = vmax.f32 %v2687_v12, %v2688_v49  ;;  %v2695_v43 = vrot.slane %v2694_v15, 2  ;;  %v2702_v41 = vrot.slane %v2701_v22, 2  ;;  %v2708_v1 = vmax.f32 %v2706_v30, %v2707_v13 }
 0x28e   : > { %v2912_v36 = vrot.slane %v2911_v16, 2  ;;  %v2918_v7 = vmax.f32 %v2916_v29, %v2917_v52  ;;  %v2925_v17 = vmax.f32 %v2923_v59, %v2924_v3  ;;  %v2932_v8 = vmax.f32 %v2930_v58, %v2931_v5 }
 0x28f   : > { %v2690_v25 = vrot.slane %v2689_v23, 1  ;;  %v2696_v47 = vmax.f32 %v2694_v15, %v2695_v43  ;;  %v2703_v9 = vmax.f32 %v2701_v22, %v2702_v41  ;;  %v2709_v11 = vrot.slane %v2708_v1, 2 }
 0x290   : > { %v2913_v44 = vmax.f32 %v2911_v16, %v2912_v36  ;;  %v2919_v27 = vrot.slane %v2918_v7, 2  ;;  %v2926_v6 = vrot.slane %v2925_v17, 2  ;;  %v2933_v2 = vrot.slane %v2932_v8, 2 }
 0x291   : > { %v2691_v31 = vmax.f32 %v2689_v23, %v2690_v25  ;;  %v2697_v39 = vrot.slane %v2696_v47, 1  ;;  %v2704_v55 = vrot.slane %v2703_v9, 1  ;;  %v2710_v34 = vmax.f32 %v2708_v1, %v2709_v11 }
 0x292   : > { %v2914_v21 = vrot.slane %v2913_v44, 1  ;;  %v2920_v56 = vmax.f32 %v2918_v7, %v2919_v27  ;;  %v2927_v60 = vmax.f32 %v2925_v17, %v2926_v6  ;;  %v2934_v61 = vmax.f32 %v2932_v8, %v2933_v2 }
 0x293   : > { %v2698_v40 = vmax.f32 %v2696_v47, %v2697_v39  ;;  %v2705_v19 = vmax.f32 %v2703_v9, %v2704_v55  ;;  %v2711_v42 = vrot.slane %v2710_v34, 1  ;;  %v3776_v62 = vpack.c.bf16 %v2691_v31, %v2691_v31 }
 0x294   : > { %v2915_v51 = vmax.f32 %v2913_v44, %v2914_v21  ;;  %v2921_v24 = vrot.slane %v2920_v56, 1  ;;  %v2928_v45 = vrot.slane %v2927_v60, 1  ;;  %v2935_v38 = vrot.slane %v2934_v61, 1 }
 0x295   : > { %v2712_v48 = vmax.f32 %v2710_v34, %v2711_v42  ;;  %v3777_v14 = vpack.c.bf16 %v2698_v40, %v2698_v40  ;;  %v3778_v46 = vpack.c.bf16 %v2705_v19, %v2705_v19  ;;  %v3221_v12 = vunpack.c.l.b16 %v3776_v62 }
 0x296   : > { %v2922_v54 = vmax.f32 %v2920_v56, %v2921_v24  ;;  %v2929_v0 = vmax.f32 %v2927_v60, %v2928_v45  ;;  %v2936_v32 = vmax.f32 %v2934_v61, %v2935_v38  ;;  %v3808_v30 = vpack.c.bf16 %v2915_v51, %v2915_v51 }
 0x297   : > { %v3779_v29 = vpack.c.bf16 %v2712_v48, %v2712_v48  ;;  %v3222_v59 = vunpack.c.l.b16 %v3777_v14  ;;  %v3223_v58 = vunpack.c.l.b16 %v3778_v46  ;;  %v3288_v49 = vsel %vm3263_vm0, %v3221_v12, %v5583_v28 }
 0x298   : > { %v3809_v15 = vpack.c.bf16 %v2922_v54, %v2922_v54  ;;  %v3810_v22 = vpack.c.bf16 %v2929_v0, %v2929_v0  ;;  %v3811_v13 = vpack.c.bf16 %v2936_v32, %v2936_v32  ;;  %v3253_v16 = vunpack.c.l.b16 %v3808_v30 }
 0x299   : > { %v3224_v52 = vunpack.c.l.b16 %v3779_v29  ;;  %v3289_v3 = vsel %vm3265_vm1, %v3222_v59, %v3288_v49  ;;  %v2237_v5 = vcombine.high %v5612_v37, %v5612_v37  ;;  %v2244_v23 = vrot.slane %v5612_v37, %v5281_v57 }
 0x29a   : > { %v3290_v43 = vsel %vm3267_vm2, %v3223_v58, %v3289_v3  ;;  %v3254_v41 = vunpack.c.l.b16 %v3809_v15  ;;  %v3255_v1 = vunpack.c.l.b16 %v3810_v22  ;;  %v3256_v36 = vunpack.c.l.b16 %v3811_v13 }
 0x29b   : > { %v3291_v28 = vsel %vm3269_vm3, %v3224_v52, %v3290_v43  ;;  %v3316_v7 = vsel %vm3263_vm0, %v3253_v16, %v5596_v4  ;;  %v2251_v17 = vrot.slane %v2237_v5, %v5281_v57  ;;  %v2252_v8 = vcombine.high %v2244_v23, %v2244_v23 }
 0x29c   : > { %v3323_v25 = vpack.c.b16 %v3291_v28, %v3291_v28  ;;  %v3317_v47 = vsel %vm3265_vm1, %v3254_v41, %v3316_v7  ;;  %v2629_v9 = vsel %vm2488_vm12, %v2244_v23, -inf  ;;  %v2133_v37 = vmax.f32 %v2113_v20, %v2117_v10 }
 0x29d   : > { %v3318_v11 = vsel %vm3267_vm2, %v3255_v1, %v3317_v47  ;;  %v2253_v44 = vcombine.high %v2251_v17, %v2251_v17  ;;  %v2630_v27 = vrot.slane %v2629_v9, 4  ;;  %v2636_v4 = vsel %vm2488_vm12, %v2252_v8, -inf }
 0x29e   : > { %3340 = vst.msk [vmem:[%s5442_s24 + $0xc] sm:$0xf] %vm3336_vm4, %v3323_v25  ;;  %v3319_v6 = vsel %vm3269_vm3, %v3256_v36, %v3318_v11  ;;  %v2637_v2 = vrot.slane %v2636_v4, 4  ;;  %v2643_v31 = vsel %vm2488_vm12, %v2251_v17, -inf  ;;  %v2373_v39 = vcombine.high %v2133_v37, %v2133_v37 }
 0x29f   : > { %v3327_v55 = vpack.c.b16 %v3319_v6, %v3319_v6  ;;  %v2631_v35 = vmax.f32 %v2629_v9, %v2630_v27  ;;  %v2644_v34 = vrot.slane %v2643_v31, 4  ;;  %v2650_v33 = vsel %vm2488_vm12, %v2253_v44, -inf }
 0x2a0   : > { %v2638_v20 = vmax.f32 %v2636_v4, %v2637_v2  ;;  %v2651_v10 = vrot.slane %v2650_v33, 4  ;;  %v2380_v21 = vrot.slane %v2133_v37, %v5281_v57  ;;  %v2387_v56 = vrot.slane %v2373_v39, %v5281_v57 }
 0x2a1   : > { %v5650_v60 = vsel %vm3259_vm14, %v5592_v63, %v5603_v26  ;;  %3344 = vst.msk [vmem:[%s5442_s24 + $0x1c] sm:$0xf] %vm3336_vm4, %v3327_v55  ;;  %v2632_v61 = vrot.slane %v2631_v35, 2  ;;  %v2645_v40 = vmax.f32 %v2643_v31, %v2644_v34  ;;  %v3280_v19 = vsel %vm3261_vm15, %v5569_v50, %v5590_v53 }
 0x2a2   : > { %v2639_v42 = vrot.slane %v2638_v20, 2  ;;  %v2652_v62 = vmax.f32 %v2650_v33, %v2651_v10  ;;  %v2388_v51 = vcombine.high %v2380_v21, %v2380_v21  ;;  %v2389_v24 = vcombine.high %v2387_v56, %v2387_v56 }
 0x2a3   : > { %v2633_v45 = vmax.f32 %v2631_v35, %v2632_v61  ;;  %v2646_v38 = vrot.slane %v2645_v40, 2  ;;  %v2853_v57 = vsel %vm2488_vm12, %v2380_v21, -inf  ;;  %v2867_v48 = vsel %vm2488_vm12, %v2387_v56, -inf }
 0x2a4   : > { %v2640_v63 = vmax.f32 %v2638_v20, %v2639_v42  ;;  %v2653_v26 = vrot.slane %v2652_v62, 2  ;;  %v2854_v14 = vrot.slane %v2853_v57, 4  ;;  %v2860_v46 = vsel %vm2488_vm12, %v2388_v51, -inf }
 0x2a5   : > { %v2634_v12 = vrot.slane %v2633_v45, 1  ;;  %v2647_v54 = vmax.f32 %v2645_v40, %v2646_v38  ;;  %v2861_v0 = vrot.slane %v2860_v46, 4  ;;  %v2868_v32 = vrot.slane %v2867_v48, 4 }
 0x2a6   : > { %v2641_v50 = vrot.slane %v2640_v63, 1  ;;  %v2654_v53 = vmax.f32 %v2652_v62, %v2653_v26  ;;  %v2855_v30 = vmax.f32 %v2853_v57, %v2854_v14  ;;  %v2874_v29 = vsel %vm2488_vm12, %v2389_v24, -inf }
 0x2a7   : > { %v2635_v59 = vmax.f32 %v2633_v45, %v2634_v12  ;;  %v2648_v58 = vrot.slane %v2647_v54, 1  ;;  %v2862_v49 = vmax.f32 %v2860_v46, %v2861_v0  ;;  %v2869_v15 = vmax.f32 %v2867_v48, %v2868_v32 }
 0x2a8   : > { %v2642_v22 = vmax.f32 %v2640_v63, %v2641_v50  ;;  %v2655_v13 = vrot.slane %v2654_v53, 1  ;;  %v2856_v16 = vrot.slane %v2855_v30, 2  ;;  %v2875_v52 = vrot.slane %v2874_v29, 4 }
 0x2a9   : > { %v2649_v3 = vmax.f32 %v2647_v54, %v2648_v58  ;;  %v3768_v5 = vpack.c.bf16 %v2635_v59, %v2635_v59  ;;  %v2863_v23 = vrot.slane %v2862_v49, 2  ;;  %v2870_v43 = vrot.slane %v2869_v15, 2 }
 0x2aa   : > { %v2656_v41 = vmax.f32 %v2654_v53, %v2655_v13  ;;  %v3769_v1 = vpack.c.bf16 %v2642_v22, %v2642_v22  ;;  %v2857_v36 = vmax.f32 %v2855_v30, %v2856_v16  ;;  %v2876_v28 = vmax.f32 %v2874_v29, %v2875_v52 }
 0x2ab   : > { %v3770_v7 = vpack.c.bf16 %v2649_v3, %v2649_v3  ;;  %v3213_v17 = vunpack.c.l.b16 %v3768_v5  ;;  %v2864_v8 = vmax.f32 %v2862_v49, %v2863_v23  ;;  %v2871_v25 = vmax.f32 %v2869_v15, %v2870_v43 }
 0x2ac   : > { %v3771_v47 = vpack.c.bf16 %v2656_v41, %v2656_v41  ;;  %v3214_v9 = vunpack.c.l.b16 %v3769_v1  ;;  %v2858_v37 = vrot.slane %v2857_v36, 1  ;;  %v2877_v11 = vrot.slane %v2876_v28, 2 }
 0x2ad   : > { %v3215_v44 = vunpack.c.l.b16 %v3770_v7  ;;  %v3281_v27 = vsel %vm3263_vm0, %v3213_v17, %v3280_v19  ;;  %v2865_v4 = vrot.slane %v2864_v8, 1  ;;  %v2872_v6 = vrot.slane %v2871_v25, 1 }
 0x2ae   : > { %v3216_v2 = vunpack.c.l.b16 %v3771_v47  ;;  %v3282_v31 = vsel %vm3265_vm1, %v3214_v9, %v3281_v27  ;;  %v2859_v39 = vmax.f32 %v2857_v36, %v2858_v37  ;;  %v2878_v55 = vmax.f32 %v2876_v28, %v2877_v11 }
 0x2af   : > { %v3283_v35 = vsel %vm3267_vm2, %v3215_v44, %v3282_v31  ;;  %v2866_v34 = vmax.f32 %v2864_v8, %v2865_v4  ;;  %v2873_v33 = vmax.f32 %v2871_v25, %v2872_v6  ;;  %v3308_v19 = vsel %vm3261_vm15, %v5600_v18, %v5650_v60 }
 0x2b0   : > { %v3284_v20 = vsel %vm3269_vm3, %v3216_v2, %v3283_v35  ;;  %v2879_v10 = vrot.slane %v2878_v55, 1  ;;  %v3800_v21 = vpack.c.bf16 %v2859_v39, %v2859_v39 }
 0x2b1   : > { %v3322_v56 = vpack.c.b16 %v3284_v20, %v3284_v20  ;;  %v3801_v61 = vpack.c.bf16 %v2866_v34, %v2866_v34  ;;  %v3802_v40 = vpack.c.bf16 %v2873_v33, %v2873_v33 }
 0x2b2   : > { %v2880_v42 = vmax.f32 %v2878_v55, %v2879_v10  ;;  %v3245_v62 = vunpack.c.l.b16 %v3800_v21 }
 0x2b3   : > { %3339 = vst.msk [vmem:[%s5442_s24 + $0x8] sm:$0xf] %vm3336_vm4, %v3322_v56  ;;  %v3246_v51 = vunpack.c.l.b16 %v3801_v61  ;;  %v3247_v24 = vunpack.c.l.b16 %v3802_v40 }
 0x2b4   : > { %v3803_v45 = vpack.c.bf16 %v2880_v42, %v2880_v42  ;;  %v3309_v38 = vsel %vm3263_vm0, %v3245_v62, %v3308_v19 }
 0x2b5   : > { %v3310_v57 = vsel %vm3265_vm1, %v3246_v51, %v3309_v38 }
 0x2b6   : > { %v3248_v48 = vunpack.c.l.b16 %v3803_v45  ;;  %v3311_v63 = vsel %vm3267_vm2, %v3247_v24, %v3310_v57 }
 0x2b8   : > { %v3312_v18 = vsel %vm3269_vm3, %v3248_v48, %v3311_v63 }
 0x2b9   : > { %v3326_v60 = vpack.c.b16 %v3312_v18, %v3312_v18 }
 0x2bb   : > { %3343 = vst.msk [vmem:[%s5442_s24 + $0x18] sm:$0xf] %vm3336_vm4, %v3326_v60 }
 0x2bc   : > { %4091 = shalt.err (!%p4088_p6)
}
 0x2bd   : > { %s4092_s20 = scalar_lea.hbm %s5680_s9, 512  ;;  %s4096_s5 = scalar_lea.hbm %s5744_s3, 4096 }
 0x2be   : > { %p4093_p7 = scmp.ne.s32.totalorder %s5680_s9, %s4092_s20  ;;  %p4097_p11 = scmp.lt.s32.totalorder %s5680_s9, %s5744_s3 }
 0x2bf   : > { %p4098_p12 = scmp.lt.s32.totalorder %s4096_s5, %s4092_s20 }
 0x2c0   : > { %p4094_p9 = pnand %p4093_p7, %p4254_p3 }
 0x2c1   : > { %p4099_p13 = por %p4098_p12, %p4097_p11 }
 0x2c2   : > { %p4095_p10 = pneg %p4094_p9 }
 0x2c4   : > { %p4100_p0 = pnand %p4099_p13, %p4095_p10 }
 0x2c6   : > { %4103 = shalt.err (!%p4100_p0)
}
 0x2c7   : > { %s4182_s7 = smov 4  }
 0x2c8   : > { %3889 = dma.vmem_to_hbm [thread:$0]  (%p4254_p3), %s5682_s16, 512, %s5680_s9, %s5688_s10, %s4179_s4, %s4179_s4, %s4182_s7  }
 0x2c9 PF: > { %p3895_p1 = scmp.ge.s32.totalorder %s4170_s19, 2  ;;  %s3377_s8 = sand.u32 1, %s4142_s12  }
 0x2ca   : > { %s3378_s11 = scalar_lea.sflag [#allocation3], %s3377_s8 }
 0x2cb   : > { %p3892_p2 = pnand %p3895_p1, %p4263_p8 }
 0x2cd   : > { %p3893_p4 = pneg %p3892_p2 }
 0x2cf   : > { %4137 = dma.done.wait (%p3893_p4), %s3378_s11, 512  }
 0x2d0   : > { %4139 = vsyncadd (%p3893_p4), %s3378_s11, 4294966784  ;;  %s16_s19 = sadd.s32 1, %s4170_s19   ;;  %s5747_s12 = smov %s4146_s13 }
 0x2d1   : > { %p13_p5 = scmp.ge.s32.totalorder %s16_s19, 10   ;;  %s5748_s13 = smov %s4150_s14 }
 0x2d2   : > { %s5749_s14 = smov %s4272_s30  ;;  %s5750_s15 = smov %s4162_s17 }
 0x2d3   : > { %s5751_s16 = smov %s4166_s18  ;;  %s5752_s17 = smov %s5755_s22 }
 0x2d4   : > { %s5753_s18 = smov %s5759_s23  ;;  %15 = sbr.rel (!%p13_p5) target bundleno = 5 (0x5), region = 70 }
 0x2d9   :  { %3383 = vsyncpa [#allocation3], 1 }
 0x2da   :  { %3385 = vsyncpa [#allocation3 + $0x1], 1 }

// kernel: tpu_custom_call.1
= control target key start
LH: loop header
LB: loop body
LE: loop exit
PB: predicated region body
PF: predicated region fallthrough
CT: control target
= control target key end

     0   :  { %8 = vsyncpa [#allocation3], 0  ;;  %s10177_s0 = inlined_call_operand.vmem [shape: bf16[2,34,34,8], index: 0, kind: input, shape index: {}]   ;;  %s10178_s1 = inlined_call_operand.vmem [shape: bf16[9,8,64], index: 1, kind: input, shape index: {}]   ;;  %s10179_s2 = inlined_call_operand.vmem [shape: f32[1,64], index: 2, kind: input, shape index: {}]   ;;  %s10180_s3 = inlined_call_operand.hbm [shape: bf16[2,16,16,64], index: 3, kind: output, shape index: {}]  }
   0x1   :  { %10 = vsyncpa [#allocation3 + $0x1], 0  ;;  %s7298_s12 = smov 0   ;;  %s7300_s13 = smov 0  }
   0x2   :  { %s7302_s14 = smov 0   ;;  %s7304_s15 = smov 0  }
   0x3   :  { %s7306_s16 = smov 0   ;;  %s7308_s17 = smov 0  }
   0x4   :  { %s7310_s18 = smov 0   ;;  %s7312_s19 = smov 0  }
   0x5 LB: > { %s5953_s20 = sadd.s32 4294967295, %s7272_s19   ;;  %s5954_s21 = sadd.s32 4294967294, %s7272_s19   ;;  %s7272_s19 = sphi %s7312_s19, %s16_s19   ;;  %s7268_s18 = sphi %s7310_s18, %s10312_s18   ;;  %s7264_s17 = sphi %s7308_s17, %s10311_s17   ;;  %s7260_s16 = sphi %s7306_s16, %s10310_s16   ;;  %s7256_s15 = sphi %s7304_s15, %s10309_s15   ;;  %s7252_s14 = sphi %s7302_s14, %s10308_s14   ;;  %s7248_s13 = sphi %s7300_s13, %s10307_s13   ;;  %s7244_s12 = sphi %s7298_s12, %s10306_s12  }
   0x6   : > { %s25_s22 = sadd.s32 1, %s7264_s17  ;;  %s28_s23 = sadd.s32 1, %s7268_s18 }
   0x7   : > { %p26_p0 = scmp.ge.s32.totalorder %s25_s22, 4  ;;  %p115_p1 = scmp.ne.s32.totalorder %s7252_s14, %s7248_s13 }
   0x8   : > { %p116_p2 = scmp.eq.s32.totalorder %s5953_s20, 7  ;;  %p121_p5 = scmp.ne.s32.totalorder %s7248_s13, %s7244_s12 }
   0x9   : > { %s10314_s22 = smov (%p26_p0, %s25_s22), 0  ;;  %s10316_s23 = smov (!%p26_p0, %s28_s23), %s7268_s18 }
   0xa   : > { %s101_s24 = ssub.s32 %s7264_s17, %s10314_s22  ;;  %p7349_p3 = por %p116_p2, %p115_p1 }
   0xb   : > { %p30_p4 = scmp.ge.s32.totalorder %s10316_s23, 2  ;;  %p122_p6 = scmp.eq.s32.totalorder %s5954_s21, 7 }
   0xc   : > { %p5957_p7 = scmp.ge.s32.totalorder %s7272_s19, 1  ;;  %p154_p9 = scmp.lt.s32.totalorder %s7272_s19, 9 }
   0xd   : > { %s10318_s23 = smov (%p30_p4, %s10316_s23), 0  ;;  %p7358_p8 = por %p122_p6, %p121_p5 }
   0xe   : > { %s100_s27 = ssub.s32 %s7268_s18, %s10318_s23  ;;  %s105_s28 = sadd.s32 1, %s7252_s14 }
   0xf   : > { %s102_s29 = sor.u32 %s101_s24, %s100_s27  ;;  %p155_p10 = pnand %p5957_p7, %p154_p9 }
  0x10   : > { %p103_p11 = scmp.eq.s32.totalorder %s102_s29, 0 }
  0x11   : > { %158 = sbr.rel (%p155_p10) target bundleno = 744 (0x2e8), region = 32 }
  0x12   : > { %s7367_s30 = scalar_select %p103_p11, %s7252_s14, %s105_s28  }
  0x16   : > { %v5963_v0 = vld [vmem:[%s10178_s1 + $0x4] sm:$0xf]  ;;  %vm684_vm0 = vcmask 1043456   ;;  %p178_p12 = scmp.lt.s32.totalorder %s7260_s16, 1  ;;  %v221_v2 = vld [vmem:[%s10178_s1] sm:$0xf] }
  0x17   : > { %7047 = vmatprep.subr.msk.bf16.mxu1 %vm684_vm0, %v5963_v0  ;;  %7046 = vmatprep.subr.msk.bf16.mxu0 %vm684_vm0, %v5963_v0  ;;  %v686_v1 = vsel %vm684_vm0, %v5963_v0, 0  ;;  %v6036_v3 = vld [vmem:[%s10178_s1 + $0x8] sm:$0xf]  ;;  %s6519_s11 = smul.u32 160, %s7256_s15  ;;  %vm230_vm1 = vsmask.f32 3328 }
  0x18   : > { %7045 = vmatpush3.bf16.msra.mxu1 %v686_v1  ;;  %6739 = vmatpush3.bf16.msra.mxu0 %v686_v1  ;;  %s179_s6 = scalar_select %p178_p12, %s7260_s16, 1  ;;  %vm231_vm2 = vsmask.f32 7440  ;;  %v7392_v4 = vsel %vm684_vm0, %v221_v2, 0  ;;  %v7395_v5 = vsel %vm684_vm0, %v6036_v3, 0  ;;  %vm635_vm3 = vcmask 64512  }
  0x19   : > { %7048 = vmatprep.subr.msk.bf16.mxu1 %vm684_vm0, %v221_v2  ;;  %7049 = vmatprep.subr.msk.bf16.mxu0 %vm684_vm0, %v6036_v3  ;;  %vm7434_vm4 = vmor %vm230_vm1, %vm231_vm2  ;;  %vm1165_vm5 = vcmask 1042432   ;;  %vm1166_vm6 = vcmask 1046532   ;;  %vm4993_vm8 = vcmask 517120   ;;  %vm5762_vm9 = vcmask 1041409   ;;  %s175_s29 = sand.u32 1, %s7248_s13   ;;  %s6584_s8 = sshll.u32 %s7256_s15, 3 }
  0x1a   : > { %s7056_s20 = smul.u32 680, %s179_s6  ;;  %vm7690_vm7 = vmor %vm1165_vm5, %vm1166_vm6  ;;  %vm5764_vm10 = vcmask 1042434   ;;  %vm5766_vm11 = vcmask 1043459   ;;  %vm5768_vm12 = vcmask 1044484   ;;  %vm5770_vm13 = vcmask 1045509   ;;  %s5958_s4 = sshll.u32 %s175_s29, 5 }
  0x1b   : > { %vm5772_vm14 = vcmask 1046534   ;;  %vm5774_vm15 = vcmask 1047559   ;;  %s9850_s5 = scalar_lea.vmem [#allocation2], %s5958_s4  ;;  %s6515_s9 = sshll.u32 %s7260_s16, 5 }
  0x1c   : > { %s182_s27 = scalar_lea.vmem %s10177_s0, %s7056_s20  ;;  %s5864_s15 = sadd.s32 %s6584_s8, %s6515_s9 }
  0x1d   : > { %s7389_s28 = scalar_lea.vmem %s182_s27, %s6519_s11  ;;  %s6516_s16 = sshll.u32 %s5864_s15, 6 }
  0x1e   : > { %v7398_v6 = vld [vmem:[%s7389_s28] sm:$0xf]  ;;  %v7401_v7 = vld [vmem:[%s7389_s28 + $0x4] sm:$0xf]  ;;  %v7404_v8 = vld [vmem:[%s7389_s28 + $0x8] sm:$0xf]  ;;  %s10118_s21 = scalar_lea.hbm %s10180_s3, %s6516_s16 }
  0x1f   : > { %v7407_v9 = vld [vmem:[%s7389_s28 + $0xc] sm:$0xf]  ;;  %v234_v10 = vshrl.u32 %v7398_v6, 16  ;;  %v237_v11 = vshll.u32 %v7398_v6, 16  ;;  %v243_v12 = vshll.u32 %v7401_v7, 16  ;;  %v247_v13 = vshrl.u32 %v7401_v7, 16 }
  0x20   : > { %v253_v14 = vshll.u32 %v7404_v8, 16  ;;  %v257_v15 = vshrl.u32 %v7404_v8, 16  ;;  %v7418_v17 = vld [vmem:[%s7389_s28 + $0x50] sm:$0xf]  ;;  %v7421_v18 = vld [vmem:[%s7389_s28 + $0x54] sm:$0xf] }
  0x21   : > { %v236_v20 = vrot.slane %v234_v10, 4  ;;  %v239_v21 = vrot.slane %v237_v11, 5  ;;  %v245_v22 = vrot.slane %v243_v12, 5  ;;  %v249_v23 = vrot.slane %v247_v13, 4  ;;  %v7426_v24 = vld [vmem:[%s7389_s28 + $0x58] sm:$0xf] }
  0x22   : > { %v255_v25 = vrot.slane %v253_v14, 5  ;;  %v259_v26 = vrot.slane %v257_v15, 4  ;;  %v410_v27 = vshrl.u32 %v7418_v17, 16  ;;  %v413_v28 = vshll.u32 %v7418_v17, 16  ;;  %v7441_v46 = vld [vmem:[%s7389_s28 + $0x10] sm:$0x1] }
  0x23   : > { %v240_v29 = vor.u32 %v239_v21, %v236_v20  ;;  %v250_v30 = vor.u32 %v249_v23, %v245_v22  ;;  %v419_v31 = vshll.u32 %v7421_v18, 16  ;;  %v423_v32 = vshrl.u32 %v7421_v18, 16  ;;  %v7449_v51 = vld [vmem:[%s7389_s28 + $0x5c] sm:$0xf]  ;;  %v7458_v63 = vld [vmem:[%s7389_s28 + $0x60] sm:$0x1] }
  0x24   : > { %v260_v34 = vor.u32 %v259_v26, %v255_v25  ;;  %v412_v35 = vrot.slane %v410_v27, 4  ;;  %v415_v36 = vrot.slane %v413_v28, 5  ;;  %v429_v37 = vshll.u32 %v7426_v24, 16  ;;  %v7462_v1 = vld [vmem:[%s7389_s28 + $0x14] sm:$0xf]  ;;  %s5867_s10 = sshll.u32 %s9850_s5, 4  ;;  %s10120_s10 = int_to_ptr.vmem [resolvable:$true] %s5867_s10 }
  0x25   : > { %v241_v38 = vrot.slane %v240_v29, 4  ;;  %v251_v39 = vrot.slane %v250_v30, 4  ;;  %v421_v40 = vrot.slane %v419_v31, 5  ;;  %v425_v41 = vrot.slane %v423_v32, 4  ;;  %v7470_v12 = vld [vmem:[%s7389_s28 + $0x18] sm:$0xf] }
  0x26   : > { %v261_v42 = vrot.slane %v260_v34, 4  ;;  %v416_v43 = vor.u32 %v415_v36, %v412_v35  ;;  %v431_v44 = vrot.slane %v429_v37, 5  ;;  %v433_v45 = vshrl.u32 %v7426_v24, 16  ;;  %v7474_v23 = vld [vmem:[%s7389_s28 + $0x1c] sm:$0xf]  ;;  %s10126_s24 = scalar_lea.sflag [#allocation3], %s175_s29 }
  0x27   : > { %v246_v47 = vsel %vm7434_vm4, %v241_v38, %v245_v22  ;;  %v256_v48 = vsel %vm7434_vm4, %v251_v39, %v255_v25  ;;  %v426_v49 = vor.u32 %v425_v41, %v421_v40  ;;  %v263_v50 = vshll.u32 %v7407_v9, 16  ;;  %v7484_v31 = vld [vmem:[%s7389_s28 + $0x64] sm:$0xf]  ;;  %v7487_v37 = vld [vmem:[%s7389_s28 + $0x68] sm:$0xf]  ;;  %s7180_s27 = scalar_lea.vmem %s10120_s10, 512 }
  0x28   : > { %v5964_v52 = vcombine.low %v246_v47, %v256_v48  ;;  %v417_v53 = vrot.slane %v416_v43, 4  ;;  %v435_v54 = vrot.slane %v433_v45, 4  ;;  %v267_v55 = vshrl.u32 %v7407_v9, 16  ;;  %v7496_v47 = vld [vmem:[%s10178_s1 + $0x10] sm:$0xf]  ;;  %p7181_p13 = scmp.ne.s32.totalorder %s10120_s10, %s7180_s27 }
  0x29   : > { %v427_v56 = vrot.slane %v426_v49, 4  ;;  %v265_v57 = vrot.slane %v263_v50, 5  ;;  %v273_v58 = vshll.u32 %v7441_v46, 16  ;;  %v439_v0 = vshll.u32 %v7449_v51, 16  ;;  %v7499_v50 = vld [vmem:[%s7389_s28 + $0x6c] sm:$0xf] }
  0x2a   : > { %6740 = vmatprep.mubr.msk.bf16.mxu0 %vm635_vm3, %v5964_v52  ;;  %v422_v60 = vsel %vm7434_vm4, %v417_v53, %v421_v40  ;;  %v436_v61 = vor.u32 %v435_v54, %v431_v44  ;;  %v269_v62 = vrot.slane %v267_v55, 4  ;;  %v443_v11 = vshrl.u32 %v7449_v51, 16  ;;  %p7182_p0 = pnand %p7181_p13, %p7349_p3 }
  0x2b   : > { %v432_v2 = vsel %vm7434_vm4, %v427_v56, %v431_v44  ;;  %v266_v3 = vsel %vm7434_vm4, %v261_v42, %v265_v57  ;;  %v275_v10 = vrot.slane %v273_v58, 5  ;;  %v441_v20 = vrot.slane %v439_v0, 5  ;;  %v7508_v58 = vld [vmem:[%s7389_s28 + $0x20] sm:$0xf] }
  0x2c   : > { %v437_v13 = vrot.slane %v436_v61, 4  ;;  %v5972_v14 = vcombine.low %v422_v60, %v432_v2  ;;  %v270_v15 = vor.u32 %v269_v62, %v265_v57  ;;  %v445_v21 = vrot.slane %v443_v11, 4  ;;  %v7514_v2 = vld [vmem:[%s10178_s1 + $0xc] sm:$0xf]  ;;  %p7183_p1 = pneg %p7182_p0 }
  0x2d   : > { %v449_v22 = vshll.u32 %v7458_v63, 16  ;;  %v278_v25 = vshrl.u32 %v7462_v1, 16  ;;  %v281_v26 = vshll.u32 %v7462_v1, 16  ;;  %v287_v29 = vshll.u32 %v7470_v12, 16 }
  0x2e   : > { %6756 = vmatprep.mubr.msk.bf16.mxu1 %vm635_vm3, %v5972_v14  ;;  %v271_v27 = vrot.slane %v270_v15, 4  ;;  %v442_v28 = vsel %vm7434_vm4, %v437_v13, %v441_v20  ;;  %v291_v30 = vshrl.u32 %v7470_v12, 16  ;;  %v446_v32 = vor.u32 %v445_v21, %v441_v20  ;;  %v7520_v13 = vld [vmem:[%s7389_s28 + $0x24] sm:$0x1] }
  0x2f   : > { %v451_v34 = vrot.slane %v449_v22, 5  ;;  %v280_v35 = vrot.slane %v278_v25, 4  ;;  %v283_v36 = vrot.slane %v281_v26, 5  ;;  %v289_v39 = vrot.slane %v287_v29, 5  ;;  %v7531_v22 = vld [vmem:[%s7389_s28 + $0x70] sm:$0xf] }
  0x30   : > { %v276_v38 = vsel %vm7434_vm4, %v271_v27, %v275_v10  ;;  %v293_v40 = vrot.slane %v291_v30, 4  ;;  %v297_v41 = vshll.u32 %v7474_v23, 16  ;;  %v447_v43 = vrot.slane %v446_v32, 4 }
  0x31   : > { %v5965_v42 = vcombine.low %v266_v3, %v276_v38  ;;  %v284_v44 = vor.u32 %v283_v36, %v280_v35  ;;  %v454_v45 = vshrl.u32 %v7484_v31, 16  ;;  %v457_v52 = vshll.u32 %v7484_v31, 16  ;;  %v7539_v38 = vld [vmem:[%s7389_s28 + $0x74] sm:$0x1] }
  0x32   : > { %v294_v48 = vor.u32 %v293_v40, %v289_v39  ;;  %v299_v49 = vrot.slane %v297_v41, 5  ;;  %v463_v53 = vshll.u32 %v7487_v37, 16  ;;  %v452_v54 = vsel %vm7434_vm4, %v447_v43, %v451_v34 }
  0x33   : > { %6741 = vmatmul.mubr.msk.bf16.vlgmr.msra.gmra.mxu0 %vm635_vm3, %v5965_v42  ;;  %v285_v55 = vrot.slane %v284_v44, 4  ;;  %v456_v56 = vrot.slane %v454_v45, 4  ;;  %v467_v57 = vshrl.u32 %v7487_v37, 16  ;;  %v5973_v60 = vcombine.low %v442_v28, %v452_v54  ;;  %v7547_v44 = vld [vmem:[%s7389_s28 + $0x28] sm:$0xf] }
  0x34   : > { %6807 = vmatpush3.bf16.msra.mxu0 %v7395_v5  ;;  %v295_v61 = vrot.slane %v294_v48, 4  ;;  %v459_v62 = vrot.slane %v457_v52, 5  ;;  %v465_v0 = vrot.slane %v463_v53, 5  ;;  %v473_v11 = vshll.u32 %v7499_v50, 16  ;;  %v7552_v53 = vld [vmem:[%s7389_s28 + $0x2c] sm:$0xf] }
  0x35   : > { %v290_v3 = vsel %vm7434_vm4, %v285_v55, %v289_v39  ;;  %v469_v10 = vrot.slane %v467_v57, 4  ;;  %v301_v14 = vshrl.u32 %v7474_v23, 16  ;;  %7051 = vmatprep.subr.msk.bf16.mxu0 %vm684_vm0, %v7496_v47  ;;  %6757 = vmatmul.mubr.msk.bf16.vlgmr.msra.gmra.mxu1 %vm635_vm3, %v5973_v60  ;;  %v307_v20 = vshll.u32 %v7508_v58, 16 }
  0x36   : > { %v300_v5 = vsel %vm7434_vm4, %v295_v61, %v299_v49  ;;  %v460_v15 = vor.u32 %v459_v62, %v456_v56  ;;  %v311_v21 = vshrl.u32 %v7508_v58, 16  ;;  %6773 = vmatpush3.bf16.msra.mxu1 %v7392_v4  ;;  %v475_v27 = vrot.slane %v473_v11, 5  ;;  %v7558_v62 = vld [vmem:[%s7389_s28 + $0x30] sm:$0xf] }
  0x37   : > { %v5966_v25 = vcombine.low %v290_v3, %v300_v5  ;;  %v470_v26 = vor.u32 %v469_v10, %v465_v0  ;;  %v303_v28 = vrot.slane %v301_v14, 4  ;;  %v309_v30 = vrot.slane %v307_v20, 5  ;;  %7050 = vmatprep.subr.msk.bf16.mxu1 %vm684_vm0, %v7514_v2 }
  0x38   : > { %v461_v29 = vrot.slane %v460_v15, 4  ;;  %v313_v32 = vrot.slane %v311_v21, 4  ;;  %v317_v34 = vshll.u32 %v7520_v13, 16  ;;  %v477_v4 = vshrl.u32 %v7499_v50, 16  ;;  %v7567_v15 = vld [vmem:[%s7389_s28 + $0x78] sm:$0xf] }
  0x39   : > { %6744 = vmatprep.mubr.msk.bf16.mxu0 %vm635_vm3, %v5966_v25  ;;  %v471_v35 = vrot.slane %v470_v26, 4  ;;  %v304_v36 = vor.u32 %v303_v28, %v299_v49  ;;  %v483_v39 = vshll.u32 %v7531_v22, 16  ;;  %v487_v43 = vshrl.u32 %v7531_v22, 16 }
  0x3a   : > { %v466_v40 = vsel %vm7434_vm4, %v461_v29, %v465_v0  ;;  %v314_v41 = vor.u32 %v313_v32, %v309_v30  ;;  %v319_v42 = vrot.slane %v317_v34, 5  ;;  %v479_v49 = vrot.slane %v477_v4, 4 }
  0x3b   : > { %v476_v45 = vsel %vm7434_vm4, %v471_v35, %v475_v27  ;;  %v305_v48 = vrot.slane %v304_v36, 4  ;;  %v485_v52 = vrot.slane %v483_v39, 5  ;;  %v489_v56 = vrot.slane %v487_v43, 4  ;;  %v7578_v36 = vld [vmem:[%s7389_s28 + $0x80] sm:$0xf] }
  0x3c   : > { %v5974_v54 = vcombine.low %v466_v40, %v476_v45  ;;  %v315_v55 = vrot.slane %v314_v41, 4  ;;  %v493_v57 = vshll.u32 %v7539_v38, 16  ;;  %v480_v61 = vor.u32 %v479_v49, %v475_v27  ;;  %v7570_v27 = vld [vmem:[%s7389_s28 + $0x7c] sm:$0xf]  ;;  %v7586_v45 = vld [vmem:[%s7389_s28 + $0x34] sm:$0xf] }
  0x3d   : > { %v310_v60 = vsel %vm7434_vm4, %v305_v48, %v309_v30  ;;  %v322_v0 = vshrl.u32 %v7547_v44, 16  ;;  %v325_v3 = vshll.u32 %v7547_v44, 16  ;;  %v490_v11 = vor.u32 %v489_v56, %v485_v52 }
  0x3e   : > { %6760 = vmatprep.mubr.msk.bf16.mxu1 %vm635_vm3, %v5974_v54  ;;  %v320_v10 = vsel %vm7434_vm4, %v315_v55, %v319_v42  ;;  %v495_v14 = vrot.slane %v493_v57, 5  ;;  %v331_v5 = vshll.u32 %v7552_v53, 16  ;;  %v481_v21 = vrot.slane %v480_v61, 4  ;;  %v7591_v61 = vld [vmem:[%s7389_s28 + $0x38] sm:$0x1] }
  0x3f   : > { %v5967_v20 = vcombine.low %v310_v60, %v320_v10  ;;  %v324_v25 = vrot.slane %v322_v0, 4  ;;  %v327_v26 = vrot.slane %v325_v3, 5  ;;  %v491_v28 = vrot.slane %v490_v11, 4 }
  0x40   : > { %v333_v29 = vrot.slane %v331_v5, 5  ;;  %v335_v30 = vshrl.u32 %v7552_v53, 16  ;;  %v341_v32 = vshll.u32 %v7558_v62, 16  ;;  %v486_v34 = vsel %vm7434_vm4, %v481_v21, %v485_v52 }
  0x41   : > { %6745 = vmatmul.mubr.msk.bf16.gmra.mxu0 %vm635_vm3, %v5967_v20  ;;  %v328_v35 = vor.u32 %v327_v26, %v324_v25  ;;  %v498_v4 = vshrl.u32 %v7567_v15, 16  ;;  %v501_v39 = vshll.u32 %v7567_v15, 16  ;;  %v496_v40 = vsel %vm7434_vm4, %v491_v28, %v495_v14  ;;  %v7600_v25 = vld [vmem:[%s7389_s28 + $0x84] sm:$0xf] }
  0x42   : > { %v337_v41 = vrot.slane %v335_v30, 4  ;;  %v343_v42 = vrot.slane %v341_v32, 5  ;;  %v507_v43 = vshll.u32 %v7570_v27, 16  ;;  %v5975_v48 = vcombine.low %v486_v34, %v496_v40  ;;  %v7604_v34 = vld [vmem:[%s7389_s28 + $0x88] sm:$0x1] }
  0x43   : > { %v329_v49 = vrot.slane %v328_v35, 4  ;;  %v500_v52 = vrot.slane %v498_v4, 4  ;;  %v503_v54 = vrot.slane %v501_v39, 5  ;;  %v511_v57 = vshrl.u32 %v7570_v27, 16  ;;  %v7610_v40 = vld [vmem:[%s7389_s28 + $0x3c] sm:$0xf] }
  0x44   : > { %v338_v55 = vor.u32 %v337_v41, %v333_v29  ;;  %v509_v56 = vrot.slane %v507_v43, 5  ;;  %v517_v60 = vshll.u32 %v7578_v36, 16  ;;  %6761 = vmatmul.mubr.msk.bf16.gmra.mxu1 %vm635_vm3, %v5975_v48  ;;  %v345_v10 = vshrl.u32 %v7558_v62, 16 }
  0x45   : > { %v334_v0 = vsel %vm7434_vm4, %v329_v49, %v333_v29  ;;  %v504_v3 = vor.u32 %v503_v54, %v500_v52  ;;  %v351_v11 = vshll.u32 %v7586_v45, 16  ;;  %v513_v5 = vrot.slane %v511_v57, 4 }
  0x46   : > { %v339_v14 = vrot.slane %v338_v55, 4  ;;  %v519_v20 = vrot.slane %v517_v60, 5  ;;  %v355_v21 = vshrl.u32 %v7586_v45, 16  ;;  %v347_v28 = vrot.slane %v345_v10, 4 }
  0x47   : > { %v505_v26 = vrot.slane %v504_v3, 4  ;;  %v353_v30 = vrot.slane %v351_v11, 5  ;;  %v361_v32 = vshll.u32 %v7591_v61, 16  ;;  %v514_v35 = vor.u32 %v513_v5, %v509_v56 }
  0x48   : > { %v344_v29 = vsel %vm7434_vm4, %v339_v14, %v343_v42  ;;  %v357_v4 = vrot.slane %v355_v21, 4  ;;  %v521_v39 = vshrl.u32 %v7578_v36, 16  ;;  %v348_v48 = vor.u32 %v347_v28, %v343_v42 }
  0x49   : > { %v5968_v41 = vcombine.low %v334_v0, %v344_v29  ;;  %v510_v43 = vsel %vm7434_vm4, %v505_v26, %v509_v56  ;;  %v363_v49 = vrot.slane %v361_v32, 5  ;;  %v515_v52 = vrot.slane %v514_v35, 4  ;;  %v7619_v0 = vld [vmem:[%s7389_s28 + $0x40] sm:$0xf]  ;;  %v7627_v29 = vld [vmem:[%s7389_s28 + $0x44] sm:$0xf] }
  0x4a   : > { %v358_v54 = vor.u32 %v357_v4, %v353_v30  ;;  %v523_v55 = vrot.slane %v521_v39, 4  ;;  %v527_v57 = vshll.u32 %v7600_v25, 16  ;;  %v349_v60 = vrot.slane %v348_v48, 4  ;;  %v7630_v35 = vld [vmem:[%s7389_s28 + $0x8c] sm:$0xf] }
  0x4b   : > { %6748 = vmatprep.mubr.msk.bf16.mxu0 %vm635_vm3, %v5968_v41  ;;  %v531_v3 = vshrl.u32 %v7600_v25, 16  ;;  %v537_v10 = vshll.u32 %v7604_v34, 16  ;;  %v366_v56 = vshrl.u32 %v7610_v40, 16  ;;  %v520_v42 = vsel %vm7434_vm4, %v515_v52, %v519_v20  ;;  %10195 = vst [vmem:[#allocation5_spill] sm:$0xff] %v7630_v35 }
  0x4c   : > { %v359_v11 = vrot.slane %v358_v54, 4  ;;  %v524_v14 = vor.u32 %v523_v55, %v519_v20  ;;  %v529_v5 = vrot.slane %v527_v57, 5  ;;  %v5976_v21 = vcombine.low %v510_v43, %v520_v42  ;;  %v7639_v54 = vld [vmem:[%s7389_s28 + $0x90] sm:$0xf]  ;;  %v7647_v42 = vld [vmem:[%s7389_s28 + $0x94] sm:$0xf] }
  0x4d   : > { %v354_v26 = vsel %vm7434_vm4, %v349_v60, %v353_v30  ;;  %v533_v28 = vrot.slane %v531_v3, 4  ;;  %v539_v32 = vrot.slane %v537_v10, 5  ;;  %v368_v41 = vrot.slane %v366_v56, 4 }
  0x4e   : > { %v364_v4 = vsel %vm7434_vm4, %v359_v11, %v363_v49  ;;  %v525_v39 = vrot.slane %v524_v14, 4  ;;  %v369_v20 = vshll.u32 %v7610_v40, 16  ;;  %6764 = vmatprep.mubr.msk.bf16.mxu1 %vm635_vm3, %v5976_v21  ;;  %v375_v30 = vshll.u32 %v7619_v0, 16 }
  0x4f   : > { %v5969_v43 = vcombine.low %v354_v26, %v364_v4  ;;  %v534_v48 = vor.u32 %v533_v28, %v529_v5  ;;  %v379_v52 = vshrl.u32 %v7619_v0, 16  ;;  %v385_v49 = vshll.u32 %v7627_v29, 16 }
  0x50   : > { %v530_v55 = vsel %vm7434_vm4, %v525_v39, %v529_v5  ;;  %v371_v57 = vrot.slane %v369_v20, 5  ;;  %v542_v60 = vshrl.u32 %v7630_v35, 16  ;;  %v377_v10 = vrot.slane %v375_v30, 5 }
  0x51   : > { %6749 = vmatmul.mubr.msk.bf16.gmra.mxu0 %vm635_vm3, %v5969_v43  ;;  %v535_v3 = vrot.slane %v534_v48, 4  ;;  %v381_v56 = vrot.slane %v379_v52, 4  ;;  %v545_v11 = vshll.u32 %v7630_v35, 16  ;;  %v387_v21 = vrot.slane %v385_v49, 5  ;;  %v7655_v43 = vld [vmem:[%s7389_s28 + $0x48] sm:$0xf] }
  0x52   : > { %v372_v14 = vor.u32 %v371_v57, %v368_v41  ;;  %v544_v26 = vrot.slane %v542_v60, 4  ;;  %v551_v5 = vshll.u32 %v7639_v54, 16  ;;  %v555_v20 = vshrl.u32 %v7639_v54, 16  ;;  %v7659_v57 = vld [vmem:[%s7389_s28 + $0x4c] sm:$0x1] }
  0x53   : > { %v540_v28 = vsel %vm7434_vm4, %v535_v3, %v539_v32  ;;  %v382_v4 = vor.u32 %v381_v56, %v377_v10  ;;  %v547_v39 = vrot.slane %v545_v11, 5  ;;  %v561_v41 = vshll.u32 %v7647_v42, 16 }
  0x54   : > { %v5977_v48 = vcombine.low %v530_v55, %v540_v28  ;;  %v373_v30 = vrot.slane %v372_v14, 4  ;;  %v553_v52 = vrot.slane %v551_v5, 5  ;;  %v557_v16 = vrot.slane %v555_v20, 4 }
  0x55   : > { %v383_v49 = vrot.slane %v382_v4, 4  ;;  %v548_v60 = vor.u32 %v547_v39, %v544_v26  ;;  %v389_v32 = vshrl.u32 %v7627_v29, 16  ;;  %v563_v56 = vrot.slane %v561_v41, 5  ;;  %v7670_v4 = vld [vmem:[%s7389_s28 + $0x98] sm:$0xf] }
  0x56   : > { %6765 = vmatmul.mubr.msk.bf16.gmra.mxu1 %vm635_vm3, %v5977_v48  ;;  %v378_v3 = vsel %vm7434_vm4, %v373_v30, %v377_v10  ;;  %v395_v55 = vshll.u32 %v7655_v43, 16  ;;  %v399_v11 = vshrl.u32 %v7655_v43, 16  ;;  %v558_v28 = vor.u32 %v557_v16, %v553_v52  ;;  %10196 = vst [vmem:[#allocation6_spill] sm:$0xff] %v7670_v4  ;;  %v7674_v10 = vld [vmem:[%s7389_s28 + $0x9c] sm:$0x1] }
  0x57   : > { %v388_v14 = vsel %vm7434_vm4, %v383_v49, %v387_v21  ;;  %v549_v5 = vrot.slane %v548_v60, 4  ;;  %v391_v26 = vrot.slane %v389_v32, 4  ;;  %v405_v19 = vshll.u32 %v7659_v57, 16 }
  0x58   : > { %v5970_v39 = vcombine.low %v378_v3, %v388_v14  ;;  %v397_v20 = vrot.slane %v395_v55, 5  ;;  %v401_v48 = vrot.slane %v399_v11, 4  ;;  %v559_v41 = vrot.slane %v558_v28, 4  ;;  %v1141_v55 = vld [vmem:[%s7389_s28] sm:$0xe] }
  0x59   : > { %v554_v30 = vsel %vm7434_vm4, %v549_v5, %v553_v52  ;;  %v392_v59 = vor.u32 %v391_v26, %v387_v21  ;;  %v565_v49 = vshrl.u32 %v7647_v42, 16  ;;  %v407_v60 = vrot.slane %v405_v19, 5 }
  0x5a   : > { %6752 = vmatprep.mubr.msk.bf16.mxu0 %vm635_vm3, %v5970_v39  ;;  %v402_v16 = vor.u32 %v401_v48, %v397_v20  ;;  %v571_v32 = vshll.u32 %v7670_v4, 16  ;;  %v575_v3 = vshrl.u32 %v7670_v4, 16  ;;  %v564_v11 = vsel %vm7434_vm4, %v559_v41, %v563_v56 }
  0x5b   : > { %v393_v14 = vrot.slane %v392_v59, 4  ;;  %v567_v35 = vrot.slane %v565_v49, 4  ;;  %v581_v52 = vshll.u32 %v7674_v10, 16  ;;  %v5978_v21 = vcombine.low %v554_v30, %v564_v11 }
  0x5c   : > { %v403_v5 = vrot.slane %v402_v16, 4  ;;  %v573_v28 = vrot.slane %v571_v32, 5  ;;  %v577_v26 = vrot.slane %v575_v3, 4  ;;  %v6028_v59 = vrot.slane %v1141_v55, 9 }
  0x5d   : > { %v398_v19 = vsel %vm7434_vm4, %v393_v14, %v397_v20  ;;  %v568_v39 = vor.u32 %v567_v35, %v563_v56  ;;  %v583_v48 = vrot.slane %v581_v52, 5  ;;  %6768 = vmatprep.mubr.msk.bf16.mxu1 %vm635_vm3, %v5978_v21  ;;  %v1170_v49 = vrot.slane %v7401_v7, 5  ;;  %v1142_v35 = vld [vmem:[%s7389_s28 + $0x14] sm:$0xe] }
  0x5e   : > { %v408_v30 = vsel %vm7434_vm4, %v403_v5, %v407_v60  ;;  %v578_v41 = vor.u32 %v577_v26, %v573_v28  ;;  %v1173_v20 = vrot.slane %v7404_v8, 5  ;;  %v1176_v32 = vrot.slane %v7407_v9, 5  ;;  %v1143_v26 = vld [vmem:[%s7389_s28 + $0x28] sm:$0xe] }
  0x5f   : > { %v5971_v56 = vcombine.low %v398_v19, %v408_v30  ;;  %v569_v16 = vrot.slane %v568_v39, 4  ;;  %v1171_v55 = vsel %vm7690_vm7, %v6028_v59, %v1170_v49  ;;  %v1172_v11 = vrot.slane %v1170_v49, 4 }
  0x60   : > { %v579_v3 = vrot.slane %v578_v41, 4  ;;  %v1175_v14 = vrot.slane %v1173_v20, 4  ;;  %v1178_v52 = vrot.slane %v1176_v32, 4  ;;  %v6029_v21 = vrot.slane %v1142_v35, 9 }
  0x61   : > { %6753 = vmatmul.mubr.msk.bf16.gmra.mxu0 %vm635_vm3, %v5971_v56  ;;  %v574_v60 = vsel %vm7434_vm4, %v569_v16, %v573_v28  ;;  %v1183_v5 = vrot.slane %v7470_v12, 5  ;;  %v1174_v39 = vsel %vm7690_vm7, %v1172_v11, %v1173_v20  ;;  %v1186_v30 = vrot.slane %v7474_v23, 5 }
  0x62   : > { %v584_v19 = vsel %vm7434_vm4, %v579_v3, %v583_v48  ;;  %v1177_v59 = vsel %vm7690_vm7, %v1175_v14, %v1176_v32  ;;  %v6037_v49 = vcombine.low %v1171_v55, %v1174_v39  ;;  %v10199_v28 = vrot.slane %v7441_v46, 5 }
  0x63   : > { %v5979_v41 = vcombine.low %v574_v60, %v584_v19  ;;  %v1733_v56 = vsel %vm684_vm0, %v7514_v2, 0  ;;  %v1184_v48 = vsel %vm7690_vm7, %v6029_v21, %v1183_v5  ;;  %v1185_v20 = vrot.slane %v1183_v5, 4 }
  0x64   : > { %v1180_v35 = vsel %vm7690_vm7, %v1178_v52, %v10199_v28  ;;  %v1188_v16 = vrot.slane %v1186_v30, 4  ;;  %6808 = vmatprep.mubr.msk.bf16.mxu0 %vm635_vm3, %v6037_v49  ;;  %v1189_v3 = vrot.slane %v7508_v58, 5  ;;  %v1192_v46 = vrot.slane %v7520_v13, 5  ;;  %v1144_v52 = vld [vmem:[%s7389_s28 + $0x3c] sm:$0xe] }
  0x65   : > { %6769 = vmatmul.mubr.msk.bf16.gmra.mxu1 %vm635_vm3, %v5979_v41  ;;  %v6038_v32 = vcombine.low %v1177_v59, %v1180_v35  ;;  %v6030_v55 = vrot.slane %v1143_v26, 9  ;;  %v10200_v11 = vcombine.low %v7398_v6, %v7401_v7  ;;  %v1187_v2 = vsel %vm7690_vm7, %v1185_v20, %v1186_v30  ;;  %v7746_v59 = vld [vmem:[%s10178_s1 + $0x18] sm:$0xf] }
  0x66   : > { %v1196_v14 = vrot.slane %v7552_v53, 5  ;;  %v1199_v60 = vrot.slane %v7558_v62, 5  ;;  %v2419_v21 = vsel %vm684_vm0, %v7496_v47, 0  ;;  %v6039_v5 = vcombine.low %v1184_v48, %v1187_v2 }
  0x67   : > { %6774 = vmatprep.mubr.msk.bf16.mxu1 %vm635_vm3, %v10200_v11  ;;  %v1191_v19 = vrot.slane %v1189_v3, 4  ;;  %v1202_v13 = vrot.slane %v7586_v45, 5  ;;  %v1190_v6 = vsel %vm7690_vm7, %v1188_v16, %v1189_v3  ;;  %v1205_v41 = vrot.slane %v7591_v61, 5 }
  0x68   : > { %v1197_v7 = vsel %vm7690_vm7, %v6030_v55, %v1196_v14  ;;  %v1198_v26 = vrot.slane %v1196_v14, 4  ;;  %v1201_v39 = vrot.slane %v1199_v60, 4  ;;  %v6031_v49 = vrot.slane %v1144_v52, 9 }
  0x69   : > { %6809 = vmatmul.mubr.msk.bf16.vlgmr.msra.gmra.mxu0 %vm635_vm3, %v6038_v32  ;;  %v1193_v47 = vsel %vm7690_vm7, %v1191_v19, %v1192_v46  ;;  %v1204_v30 = vrot.slane %v1202_v13, 4  ;;  %v5998_v28 = vcombine.low %v7462_v1, %v7470_v12  ;;  %v5999_v35 = vcombine.low %v7474_v23, %v7508_v58  ;;  %v1145_v1 = vld [vmem:[%s7389_s28 + $0x50] sm:$0xe] }
  0x6a   : > { %6875 = vmatpush3.bf16.msra.mxu0 %v2419_v21  ;;  %6812 = vmatprep.mubr.msk.bf16.mxu0 %vm635_vm3, %v6039_v5  ;;  %v1200_v48 = vsel %vm7690_vm7, %v1198_v26, %v1199_v60  ;;  %v1209_v20 = vrot.slane %v7619_v0, 5  ;;  %v6040_v16 = vcombine.low %v1190_v6, %v1193_v47  ;;  %v6000_v32 = vcombine.low %v7547_v44, %v7552_v53  ;;  %v7776_v44 = vld [vmem:[%s10178_s1 + $0x14] sm:$0xf]  ;;  %v1146_v21 = vld [vmem:[%s7389_s28 + $0x64] sm:$0xe] }
  0x6b   : > { %v6001_v61 = vcombine.low %v7558_v62, %v7586_v45  ;;  %v1212_v3 = vrot.slane %v7627_v29, 5  ;;  %7053 = vmatprep.subr.msk.bf16.mxu0 %vm684_vm0, %v7746_v59  ;;  %v6041_v12 = vcombine.low %v1197_v7, %v1200_v48  ;;  %v7770_v23 = vsel %vm7690_vm7, %v1201_v39, %v1202_v13 }
  0x6c   : > { %v1211_v58 = vrot.slane %v1209_v20, 4  ;;  %v1215_v46 = vrot.slane %v7655_v43, 5  ;;  %v10201_v53 = vcombine.low %v7404_v8, %v7407_v9  ;;  %v1206_v55 = vsel %vm7690_vm7, %v1204_v30, %v1205_v41 }
  0x6d   : > { %v7786_v11 = vsel %vm7690_vm7, %v6031_v49, %v1209_v20  ;;  %v1214_v2 = vrot.slane %v1212_v3, 4  ;;  %v1218_v14 = vrot.slane %v7659_v57, 5  ;;  %v1222_v8 = vrot.slane %v7421_v18, 5  ;;  %v1147_v49 = vld [vmem:[%s7389_s28 + $0x78] sm:$0xe] }
  0x6e   : > { %6775 = vmatmul.mubr.msk.bf16.vlgmr.msra.gmra.mxu1 %vm635_vm3, %v10201_v53  ;;  %v1213_v60 = vsel %vm7690_vm7, %v1211_v58, %v1212_v3  ;;  %v1217_v52 = vrot.slane %v1215_v46, 4  ;;  %v1225_v9 = vrot.slane %v7426_v24, 5  ;;  %v6002_v5 = vcombine.low %v7610_v40, %v7619_v0 }
  0x6f   : > { %6841 = vmatpush3.bf16.msra.mxu1 %v1733_v56  ;;  %6778 = vmatprep.mubr.msk.bf16.mxu1 %vm635_vm3, %v5998_v28  ;;  %v6003_v19 = vcombine.low %v7627_v29, %v7655_v43  ;;  %v6032_v57 = vrot.slane %v1145_v1, 9  ;;  %v1228_v56 = vrot.slane %v7449_v51, 5  ;;  %v6042_v13 = vcombine.low %v7770_v23, %v1206_v55 }
  0x70   : > { %7052 = vmatprep.subr.msk.bf16.mxu1 %vm684_vm0, %v7776_v44  ;;  %v6043_v6 = vcombine.low %v7786_v11, %v1213_v60  ;;  %v6004_v7 = vcombine.low %v7418_v17, %v7421_v18  ;;  %v1224_v26 = vrot.slane %v1222_v8, 4  ;;  %v7809_v39 = vsel %vm7690_vm7, %v1214_v2, %v1215_v46  ;;  %v1148_v60 = vld [vmem:[%s7389_s28 + $0x8c] sm:$0xe] }
  0x71   : > { %6813 = vmatmul.mubr.msk.bf16.gmra.mxu0 %vm635_vm3, %v6040_v16  ;;  %v7813_v47 = vsel %vm7690_vm7, %v1217_v52, %v1218_v14  ;;  %v1227_v28 = vrot.slane %v1225_v9, 4  ;;  %v7823_v48 = vrot.slane %v1228_v56, 4  ;;  %v6033_v20 = vrot.slane %v1146_v21, 9 }
  0x72   : > { %6816 = vmatprep.mubr.msk.bf16.mxu0 %vm635_vm3, %v6041_v12  ;;  %v1235_v16 = vrot.slane %v7487_v37, 5  ;;  %v7828_v3 = vsel %vm7690_vm7, %v6032_v57, %v1222_v8  ;;  %v1231_v1 = vrot.slane %v7458_v63, 5  ;;  %v1238_v23 = vrot.slane %v7499_v50, 5  ;;  %v10203_v12 = vld [vmem:[#allocation6_spill] sm:$0xff] }
  0x73   : > { %v7836_v58 = vsel %vm7690_vm7, %v1224_v26, %v1225_v9  ;;  %v1241_v55 = vrot.slane %v7531_v22, 5  ;;  %v1244_v63 = vrot.slane %v7539_v38, 5  ;;  %v6034_v14 = vrot.slane %v1147_v49, 9  ;;  %v7974_v38 = vld [vmem:[%s7389_s28 + $0x34] sm:$0xf] }
  0x74   : > { %v7840_v46 = vsel %vm7690_vm7, %v6033_v20, %v1235_v16  ;;  %v1237_v53 = vrot.slane %v1235_v16, 4  ;;  %v1240_v11 = vrot.slane %v1238_v23, 4  ;;  %v1248_v9 = vrot.slane %v7570_v27, 5 }
  0x75   : > { %v1243_v8 = vrot.slane %v1241_v55, 4  ;;  %v1254_v57 = vrot.slane %v7600_v25, 5  ;;  %v1261_v2 = vrot.slane %v7639_v54, 5 }
  0x76   : > { %6779 = vmatmul.mubr.msk.bf16.gmra.mxu1 %vm635_vm3, %v5999_v35  ;;  %v7851_v52 = vsel %vm7690_vm7, %v1237_v53, %v1238_v23  ;;  %v1251_v35 = vrot.slane %v7578_v36, 5  ;;  %v7859_v21 = vsel %vm7690_vm7, %v1240_v11, %v1241_v55  ;;  %v7870_v49 = vsel %vm7690_vm7, %v6034_v14, %v1248_v9  ;;  %v6136_v23 = vld [vmem:[%s7389_s28 + $0x14] sm:$0xf]  ;;  %v6141_v53 = vld [vmem:[%s7389_s28 + $0x28] sm:$0xf] }
  0x77   : > { %6782 = vmatprep.mubr.msk.bf16.mxu1 %vm635_vm3, %v6000_v32  ;;  %v7866_v26 = vsel %vm7690_vm7, %v1243_v8, %v1244_v63  ;;  %v1250_v20 = vrot.slane %v1248_v9, 4  ;;  %v1256_v55 = vrot.slane %v1254_v57, 4  ;;  %v1257_v11 = vrot.slane %v7604_v34, 5  ;;  %v10202_v32 = vld [vmem:[#allocation5_spill] sm:$0xff]  ;;  %v7880_v8 = vld [vmem:[%s7389_s28 + $0x18] sm:$0xf] }
  0x78   : > { %v1253_v16 = vrot.slane %v1251_v35, 4  ;;  %v6035_v9 = vrot.slane %v1148_v60, 9  ;;  %v6044_v60 = vcombine.low %v7809_v39, %v7813_v47  ;;  %v6045_v39 = vcombine.low %v7828_v3, %v7836_v58 }
  0x79   : > { %6817 = vmatmul.mubr.msk.bf16.gmra.mxu0 %vm635_vm3, %v6042_v13  ;;  %v7885_v14 = vsel %vm7690_vm7, %v1250_v20, %v1251_v35  ;;  %v7896_v63 = vsel %vm7690_vm7, %v1256_v55, %v1257_v11  ;;  %v7902_v20 = vld [vmem:[%s7389_s28 + $0x1c] sm:$0xf]  ;;  %v1267_v55 = vrot.slane %v10203_v12, 5  ;;  %v7916_v11 = vld [vmem:[%s7389_s28 + $0x20] sm:$0xf]  ;;  %v1263_v47 = vrot.slane %v1261_v2, 4 }
  0x7a   : > { %6820 = vmatprep.mubr.msk.bf16.mxu0 %vm635_vm3, %v6043_v6  ;;  %v7889_v13 = vsel %vm7690_vm7, %v1253_v16, %v1254_v57  ;;  %v1264_v6 = vrot.slane %v7647_v42, 5  ;;  %v7910_v57 = vsel %vm7690_vm7, %v1227_v28, %v1228_v56  ;;  %v1969_v35 = vshrl.u32 %v6136_v23, 16  ;;  %v7925_v28 = vld [vmem:[%s7389_s28 + $0x24] sm:$0x1] }
  0x7b   : > { %v1972_v56 = vshll.u32 %v6136_v23, 16  ;;  %v1270_v34 = vrot.slane %v7674_v10, 5  ;;  %v1978_v62 = vshll.u32 %v7880_v8, 16  ;;  %v1982_v45 = vshrl.u32 %v7880_v8, 16 }
  0x7c   : > { %v1266_v16 = vrot.slane %v1264_v6, 4  ;;  %v7939_v3 = vsel %vm7690_vm7, %v6035_v9, %v1261_v2  ;;  %v1971_v58 = vrot.slane %v1969_v35, 4  ;;  %v1269_v0 = vrot.slane %v1267_v55, 4  ;;  %v7953_v9 = vld [vmem:[%s7389_s28 + $0x2c] sm:$0xf] }
  0x7d   : > { %v1974_v40 = vrot.slane %v1972_v56, 5  ;;  %v1984_v23 = vrot.slane %v1982_v45, 4  ;;  %v1988_v10 = vshll.u32 %v7902_v20, 16  ;;  %v7948_v41 = vsel %vm7690_vm7, %v1263_v47, %v1264_v6 }
  0x7e   : > { %6783 = vmatmul.mubr.msk.bf16.gmra.mxu1 %vm635_vm3, %v6001_v61  ;;  %v1232_v61 = vsel %vm7690_vm7, %v7823_v48, %v1231_v1  ;;  %v1992_v1 = vshrl.u32 %v7902_v20, 16  ;;  %v1998_v2 = vshll.u32 %v7916_v11, 16 }
  0x7f   : > { %6786 = vmatprep.mubr.msk.bf16.mxu1 %vm635_vm3, %v6002_v5  ;;  %v7941_v5 = vrot.slane %v1978_v62, 5  ;;  %v1975_v48 = vor.u32 %v1974_v40, %v1971_v58  ;;  %v1990_v56 = vrot.slane %v1988_v10, 5  ;;  %v2002_v62 = vshrl.u32 %v7916_v11, 16  ;;  %v7961_v40 = vld [vmem:[%s7389_s28 + $0x30] sm:$0xf] }
  0x80   : > { %v6046_v6 = vcombine.low %v7910_v57, %v1232_v61  ;;  %v1994_v45 = vrot.slane %v1992_v1, 4  ;;  %v2000_v58 = vrot.slane %v1998_v2, 5  ;;  %v2016_v1 = vshll.u32 %v6141_v53, 16 }
  0x81   : > { %6821 = vmatmul.mubr.msk.bf16.gmra.mxu0 %vm635_vm3, %v6044_v60  ;;  %v1985_v35 = vor.u32 %v1984_v23, %v7941_v5  ;;  %v2008_v60 = vshll.u32 %v7925_v28, 16  ;;  %v1976_v47 = vrot.slane %v1975_v48, 4  ;;  %v7971_v23 = vsel %vm7690_vm7, %v1269_v0, %v1270_v34 }
  0x82   : > { %6824 = vmatprep.mubr.msk.bf16.mxu0 %vm635_vm3, %v6045_v39  ;;  %v7967_v39 = vsel %vm7690_vm7, %v1266_v16, %v1267_v55  ;;  %v2004_v10 = vrot.slane %v2002_v62, 4  ;;  %v1995_v61 = vor.u32 %v1994_v45, %v1990_v56  ;;  %v2013_v48 = vshrl.u32 %v6141_v53, 16  ;;  %v6146_v53 = vld [vmem:[%s7389_s28 + $0x3c] sm:$0xf] }
  0x83   : > { %v1986_v57 = vrot.slane %v1985_v35, 4  ;;  %v2010_v16 = vrot.slane %v2008_v60, 5  ;;  %v2022_v55 = vshll.u32 %v7953_v9, 16  ;;  %v2026_v0 = vshrl.u32 %v7953_v9, 16 }
  0x84   : > { %v2005_v34 = vor.u32 %v2004_v10, %v2000_v58  ;;  %v1981_v29 = vsel %vm7434_vm4, %v1976_v47, %v7941_v5  ;;  %v1996_v43 = vrot.slane %v1995_v61, 4  ;;  %v2018_v2 = vrot.slane %v2016_v1, 5 }
  0x85   : > { %v7990_v62 = vrot.slane %v2022_v55, 5  ;;  %v2028_v17 = vrot.slane %v2026_v0, 4  ;;  %v2032_v18 = vshll.u32 %v7961_v40, 16  ;;  %v2036_v5 = vshrl.u32 %v7961_v40, 16 }
  0x86   : > { %6787 = vmatmul.mubr.msk.bf16.gmra.mxu1 %vm635_vm3, %v6003_v19  ;;  %v2015_v19 = vrot.slane %v2013_v48, 4  ;;  %v2006_v35 = vrot.slane %v2005_v34, 4  ;;  %v2042_v47 = vshll.u32 %v7974_v38, 16  ;;  %v10204_v45 = vcombine.low %v7840_v46, %v7851_v52  ;;  %v8012_v34 = vld [vmem:[%s7389_s28 + $0x38] sm:$0x1] }
  0x87   : > { %6790 = vmatprep.mubr.msk.bf16.mxu1 %vm635_vm3, %v6004_v7  ;;  %v1991_v7 = vsel %vm7434_vm4, %v1986_v57, %v1990_v56  ;;  %v2001_v10 = vsel %vm7434_vm4, %v1996_v43, %v2000_v58  ;;  %v2046_v56 = vshrl.u32 %v7974_v38, 16  ;;  %v8009_v57 = vld [vmem:[%s7389_s28 + $0x40] sm:$0xf]  ;;  %v2034_v1 = vrot.slane %v2032_v18, 5 }
  0x88   : > { %v2019_v60 = vor.u32 %v2018_v2, %v2015_v19  ;;  %v2011_v61 = vsel %vm7434_vm4, %v2006_v35, %v2010_v16  ;;  %v2038_v46 = vrot.slane %v2036_v5, 4  ;;  %v8014_v52 = vrot.slane %v2042_v47, 5  ;;  %v8031_v35 = vld [vmem:[%s7389_s28 + $0x44] sm:$0xf]  ;;  %v8044_v5 = vld [vmem:[%s7389_s28 + $0x48] sm:$0xf] }
  0x89   : > { %6825 = vmatmul.mubr.msk.bf16.gmra.mxu0 %vm635_vm3, %v6046_v6  ;;  %v2029_v6 = vor.u32 %v2028_v17, %v7990_v62  ;;  %v8020_v16 = vsel %vm684_vm0, %v7776_v44, 0  ;;  %v2048_v55 = vrot.slane %v2046_v56, 4  ;;  %v2057_v0 = vshrl.u32 %v6146_v53, 16  ;;  %v8062_v56 = vld [vmem:[%s7389_s28 + $0x4c] sm:$0x1] }
  0x8a   : > { %6828 = vmatprep.mubr.msk.bf16.mxu0 %vm635_vm3, %v10204_v45  ;;  %v2020_v48 = vrot.slane %v2019_v60, 4  ;;  %v10205_v43 = vcombine.low %v7426_v24, %v7449_v51  ;;  %v8028_v19 = vsel %vm684_vm0, %v7746_v59, 0  ;;  %v2060_v17 = vshll.u32 %v6146_v53, 16 }
  0x8b   : > { %v2030_v2 = vrot.slane %v2029_v6, 4  ;;  %v2066_v18 = vshll.u32 %v8009_v57, 16  ;;  %v10206_v44 = vcombine.low %v7484_v31, %v7487_v37  ;;  %v8038_v60 = vcombine.low %v1981_v29, %v1991_v7 }
  0x8c   : > { %v8040_v24 = vcombine.low %v2001_v10, %v2011_v61  ;;  %v2052_v51 = vshll.u32 %v8012_v34, 16  ;;  %v2059_v59 = vrot.slane %v2057_v0, 4  ;;  %v2025_v53 = vsel %vm7434_vm4, %v2020_v48, %v7990_v62 }
  0x8d   : > { %v2039_v47 = vor.u32 %v2038_v46, %v2034_v1  ;;  %v2049_v31 = vor.u32 %v2048_v55, %v8014_v52  ;;  %v2062_v37 = vrot.slane %v2060_v17, 5  ;;  %v8050_v45 = vrot.slane %v2066_v18, 5  ;;  %v6151_v55 = vld [vmem:[%s7389_s28 + $0x50] sm:$0xf]  ;;  %v8072_v18 = vld [vmem:[%s7389_s28 + $0x54] sm:$0xf] }
  0x8e   : > { %6791 = vmatmul.mubr.msk.bf16.gmra.mxu1 %vm635_vm3, %v10205_v43  ;;  %v2070_v29 = vshrl.u32 %v8009_v57, 16  ;;  %v2076_v7 = vshll.u32 %v8031_v35, 16  ;;  %v2080_v10 = vshrl.u32 %v8031_v35, 16  ;;  %v10207_v61 = vcombine.low %v7859_v21, %v7866_v26 }
  0x8f   : > { %6794 = vmatprep.mubr.msk.bf16.mxu1 %vm635_vm3, %v10206_v44  ;;  %v2035_v62 = vsel %vm7434_vm4, %v2030_v2, %v2034_v1  ;;  %v2063_v6 = vor.u32 %v2062_v37, %v2059_v59  ;;  %v2086_v48 = vshll.u32 %v8044_v5, 16  ;;  %v2090_v46 = vshrl.u32 %v8044_v5, 16 }
  0x90   : > { %v10208_v0 = vcombine.low %v7870_v49, %v7885_v14  ;;  %v2054_v43 = vrot.slane %v2052_v51, 5  ;;  %v2072_v21 = vrot.slane %v2070_v29, 4  ;;  %v2078_v26 = vrot.slane %v2076_v7, 5  ;;  %v8081_v29 = vld [vmem:[%s7389_s28 + $0x58] sm:$0xf] }
  0x91   : > { %6829 = vmatmul.mubr.msk.bf16.gmra.mxu0 %vm635_vm3, %v10207_v61  ;;  %v2082_v17 = vrot.slane %v2080_v10, 4  ;;  %v2040_v1 = vrot.slane %v2039_v47, 4  ;;  %v2050_v2 = vrot.slane %v2049_v31, 4  ;;  %v2088_v44 = vrot.slane %v2086_v48, 5 }
  0x92   : > { %6832 = vmatprep.mubr.msk.bf16.mxu0 %vm635_vm3, %v10208_v0  ;;  %v2092_v59 = vrot.slane %v2090_v46, 4  ;;  %v2073_v37 = vor.u32 %v2072_v21, %v8050_v45  ;;  %v2096_v58 = vshll.u32 %v8062_v56, 16  ;;  %v2101_v30 = vshrl.u32 %v6151_v55, 16 }
  0x93   : > { %v2083_v61 = vor.u32 %v2082_v17, %v2078_v26  ;;  %v10209_v49 = vcombine.low %v7499_v50, %v7531_v22  ;;  %v2064_v14 = vrot.slane %v2063_v6, 4  ;;  %v2104_v47 = vshll.u32 %v6151_v55, 16  ;;  %v8092_v17 = vld [vmem:[%s7389_s28 + $0x5c] sm:$0xf] }
  0x94   : > { %v2093_v51 = vor.u32 %v2092_v59, %v2088_v44  ;;  %v2110_v31 = vshll.u32 %v8072_v18, 16  ;;  %v10210_v7 = vcombine.low %v7567_v15, %v7570_v27  ;;  %v8088_v10 = vcombine.low %v2025_v53, %v2035_v62  ;;  %v6156_v59 = vld [vmem:[%s7389_s28 + $0x64] sm:$0xf] }
  0x95   : > { %v2074_v48 = vrot.slane %v2073_v37, 4  ;;  %v2084_v46 = vrot.slane %v2083_v61, 4  ;;  %v2103_v50 = vrot.slane %v2101_v30, 4  ;;  %v2098_v0 = vrot.slane %v2096_v58, 5 }
  0x96   : > { %6795 = vmatmul.mubr.msk.bf16.gmra.mxu1 %vm635_vm3, %v10209_v49  ;;  %v2094_v22 = vrot.slane %v2093_v51, 4  ;;  %v2106_v6 = vrot.slane %v2104_v47, 5  ;;  %v2114_v21 = vshrl.u32 %v8072_v18, 16  ;;  %v2045_v55 = vsel %vm7434_vm4, %v2040_v1, %v8014_v52  ;;  %v8137_v47 = vld [vmem:[%s7389_s28 + $0x6c] sm:$0xf] }
  0x97   : > { %6798 = vmatprep.mubr.msk.bf16.mxu1 %vm635_vm3, %v10210_v7  ;;  %v8097_v15 = vrot.slane %v2110_v31, 5  ;;  %v2120_v27 = vshll.u32 %v8081_v29, 16  ;;  %v2124_v53 = vshrl.u32 %v8081_v29, 16  ;;  %v10211_v30 = vcombine.low %v7889_v13, %v7896_v63 }
  0x98   : > { %v2055_v58 = vsel %vm7434_vm4, %v2050_v2, %v2054_v43  ;;  %v2069_v52 = vsel %vm7434_vm4, %v2064_v14, %v8050_v45  ;;  %v2107_v62 = vor.u32 %v2106_v6, %v2103_v50  ;;  %v2116_v1 = vrot.slane %v2114_v21, 4  ;;  %v8127_v14 = vld [vmem:[%s7389_s28 + $0x60] sm:$0x1] }
  0x99   : > { %6833 = vmatmul.mubr.msk.bf16.gmra.mxu0 %vm635_vm3, %v10211_v30  ;;  %v10212_v37 = vcombine.low %v7939_v3, %v7948_v41  ;;  %v2079_v63 = vsel %vm7434_vm4, %v2074_v48, %v2078_v26  ;;  %v8117_v13 = vrot.slane %v2120_v27, 5  ;;  %v2126_v61 = vrot.slane %v2124_v53, 4  ;;  %v8131_v3 = vld [vmem:[%s7389_s28 + $0x68] sm:$0xf] }
  0x9a   : > { %v2130_v43 = vshll.u32 %v8092_v17, 16  ;;  %v2089_v45 = vsel %vm7434_vm4, %v2084_v46, %v2088_v44  ;;  %v2099_v2 = vsel %vm7434_vm4, %v2094_v22, %v2098_v0  ;;  %v8124_v49 = vrot.slane %v2107_v62, 4 }
  0x9b   : > { %6836 = vmatprep.mubr.msk.bf16.mxu0 %vm635_vm3, %v10212_v37  ;;  %v2134_v41 = vshrl.u32 %v8092_v17, 16  ;;  %v2117_v26 = vor.u32 %v2116_v1, %v8097_v15  ;;  %v2145_v31 = vshrl.u32 %v6156_v59, 16  ;;  %v2148_v44 = vshll.u32 %v6156_v59, 16  ;;  %v6161_v1 = vld [vmem:[%s7389_s28 + $0x78] sm:$0xf] }
  0x9c   : > { %v8134_v51 = vrot.slane %v2130_v43, 5  ;;  %v10213_v7 = vcombine.low %v7578_v36, %v7600_v25  ;;  %v8143_v48 = vcombine.low %v2045_v55, %v2055_v58  ;;  %v8145_v46 = vcombine.low %v2069_v52, %v2079_v63  ;;  %v8160_v58 = vld [vmem:[%s7389_s28 + $0x70] sm:$0xf]  ;;  %v8176_v43 = vld [vmem:[%s7389_s28 + $0x74] sm:$0x1] }
  0x9d   : > { %v2127_v50 = vor.u32 %v2126_v61, %v8117_v13  ;;  %v2136_v22 = vrot.slane %v2134_v41, 4  ;;  %v10214_v0 = vcombine.low %v10202_v32, %v7639_v54  ;;  %v2140_v6 = vshll.u32 %v8127_v14, 16 }
  0x9e   : > { %6799 = vmatmul.mubr.msk.bf16.gmra.mxu1 %vm635_vm3, %v10213_v7  ;;  %v2147_v21 = vrot.slane %v2145_v31, 4  ;;  %v2150_v27 = vrot.slane %v2148_v44, 5  ;;  %v2154_v36 = vshll.u32 %v8131_v3, 16  ;;  %v8154_v25 = vcombine.low %v2089_v45, %v2099_v2  ;;  %v8186_v44 = vld [vmem:[%s7389_s28 + $0x7c] sm:$0xf] }
  0x9f   : > { %6802 = vmatprep.mubr.msk.bf16.mxu1 %vm635_vm3, %v10214_v0  ;;  %v2137_v55 = vor.u32 %v2136_v22, %v8134_v51  ;;  %v2158_v53 = vshrl.u32 %v8131_v3, 16  ;;  %v2164_v30 = vshll.u32 %v8137_v47, 16  ;;  %v2113_v54 = vsel %vm7434_vm4, %v8124_v49, %v8097_v15  ;;  %v7147_v15 = vld [vmem:[%s7389_s28 + $0x14] sm:$0xff]  }
  0xa0   : > { %v2118_v32 = vrot.slane %v2117_v26, 4  ;;  %v2151_v52 = vor.u32 %v2150_v27, %v2147_v21  ;;  %v8166_v62 = vrot.slane %v2154_v36, 5  ;;  %v10215_v59 = vcombine.low %v7967_v39, %v7971_v23 }
  0xa1   : > { %v2128_v37 = vrot.slane %v2127_v50, 4  ;;  %v2160_v63 = vrot.slane %v2158_v53, 4  ;;  %v8173_v61 = vrot.slane %v2164_v30, 5  ;;  %v2168_v45 = vshrl.u32 %v8137_v47, 16 }
  0xa2   : > { %6837 = vmatmul.mubr.msk.bf16.gmra.mxu0 %vm635_vm3, %v10215_v59  ;;  %v2138_v2 = vrot.slane %v2137_v55, 4  ;;  %v2142_v49 = vrot.slane %v2140_v6, 5  ;;  %v2174_v39 = vshll.u32 %v8160_v58, 16  ;;  %v2178_v23 = vshrl.u32 %v8160_v58, 16  ;;  %v8195_v6 = vld [vmem:[%s7389_s28 + $0x80] sm:$0xf] }
  0xa3   : > { %6876 = vmatprep.mubr.msk.bf16.mxu0 %vm635_vm3, %v8038_v60  ;;  %v2152_v41 = vrot.slane %v2151_v52, 4  ;;  %v2161_v26 = vor.u32 %v2160_v63, %v8166_v62  ;;  %v2170_v31 = vrot.slane %v2168_v45, 4  ;;  %v2189_v7 = vshrl.u32 %v6161_v1, 16  ;;  %v8220_v63 = vld [vmem:[%s7389_s28 + $0x88] sm:$0x1] }
  0xa4   : > { %v2123_v50 = vsel %vm7434_vm4, %v2118_v32, %v8117_v13  ;;  %v8191_v22 = vrot.slane %v2174_v39, 5  ;;  %v2180_v60 = vrot.slane %v2178_v23, 4  ;;  %v2184_v0 = vshll.u32 %v8176_v43, 16 }
  0xa5   : > { %v10216_v21 = vcombine.low %v7647_v42, %v10203_v12  ;;  %v2133_v27 = vsel %vm7434_vm4, %v2128_v37, %v8134_v51  ;;  %v2162_v36 = vrot.slane %v2161_v26, 4  ;;  %v2171_v13 = vor.u32 %v2170_v31, %v8173_v61  ;;  %v7148_v12 = vld [vmem:[%s7389_s28 + $0x1c] sm:$0xff]   ;;  %v8217_v37 = vld [vmem:[%s7389_s28 + $0x84] sm:$0xf]  ;;  %v6166_v31 = vld [vmem:[%s7389_s28 + $0x8c] sm:$0xf] }
  0xa6   : > { %v2191_v55 = vrot.slane %v2189_v7, 4  ;;  %v2181_v53 = vor.u32 %v2180_v60, %v8191_v22  ;;  %v2192_v30 = vshll.u32 %v6161_v1, 16  ;;  %v2198_v32 = vshll.u32 %v8186_v44, 16  ;;  %v7149_v7 = vld [vmem:[%s7389_s28 + $0x28] sm:$0xff]  }
  0xa7   : > { %6803 = vmatmul.mubr.msk.bf16.gmra.mxu1 %vm635_vm3, %v10216_v21  ;;  %v2202_v42 = vshrl.u32 %v8186_v44, 16  ;;  %v2143_v52 = vsel %vm7434_vm4, %v2138_v2, %v2142_v49  ;;  %v2157_v51 = vsel %vm7434_vm4, %v2152_v41, %v8166_v62  ;;  %v2208_v59 = vshll.u32 %v8195_v6, 16  ;;  %v8228_v2 = vld [vmem:[%s10178_s1 + $0x20] sm:$0xf] }
  0xa8   : > { %6842 = vmatprep.mubr.msk.bf16.mxu1 %vm635_vm3, %v7147_v15  ;;  %v2212_v1 = vshrl.u32 %v8195_v6, 16  ;;  %v2172_v45 = vrot.slane %v2171_v13, 4  ;;  %v2186_v15 = vrot.slane %v2184_v0, 5  ;;  %v2194_v39 = vrot.slane %v2192_v30, 5  ;;  %10217 = vst [vmem:[#allocation5_spill] sm:$0xff] %v8228_v2 }
  0xa9   : > { %v8223_v23 = vrot.slane %v2198_v32, 5  ;;  %v2182_v62 = vrot.slane %v2181_v53, 4  ;;  %v2204_v49 = vrot.slane %v2202_v42, 4  ;;  %v8232_v41 = vrot.slane %v2208_v59, 5  ;;  %v8251_v32 = vld [vmem:[%s7389_s28 + $0x90] sm:$0xf] }
  0xaa   : > { %6877 = vmatmul.mubr.msk.bf16.vlgmr.msra.gmra.mxu0 %vm635_vm3, %v8040_v24  ;;  %v2214_v26 = vrot.slane %v2212_v1, 4  ;;  %v2167_v60 = vsel %vm7434_vm4, %v2162_v36, %v8173_v61  ;;  %v2195_v0 = vor.u32 %v2194_v39, %v2191_v55  ;;  %v2218_v24 = vshll.u32 %v8217_v37, 16 }
  0xab   : > { %6943 = vmatpush3.bf16.msra.mxu0 %v8028_v19  ;;  %6880 = vmatprep.mubr.msk.bf16.mxu0 %vm635_vm3, %v8088_v10  ;;  %v2222_v21 = vshrl.u32 %v8217_v37, 16  ;;  %v8244_v13 = vcombine.low %v2113_v54, %v2123_v50  ;;  %v8246_v53 = vcombine.low %v2133_v27, %v2143_v52  ;;  %v2205_v19 = vor.u32 %v2204_v49, %v8223_v23  ;;  %v8261_v54 = vld [vmem:[%s10178_s1 + $0x1c] sm:$0xf]  ;;  %v8272_v52 = vld [vmem:[%s7389_s28 + $0x94] sm:$0xf] }
  0xac   : > { %v2215_v30 = vor.u32 %v2214_v26, %v8232_v41  ;;  %7055 = vmatprep.subr.msk.bf16.mxu0 %vm684_vm0, %v8228_v2  ;;  %v8255_v10 = vrot.slane %v2218_v24, 5  ;;  %v2228_v36 = vshll.u32 %v8220_v63, 16  ;;  %v2233_v55 = vshrl.u32 %v6166_v31, 16  ;;  %10218 = vst [vmem:[#allocation6_spill] sm:$0xff] %v8261_v54  ;;  %v8278_v49 = vld [vmem:[%s7389_s28 + $0x98] sm:$0xf] }
  0xad   : > { %v2224_v61 = vrot.slane %v2222_v21, 4  ;;  %v8264_v50 = vcombine.low %v2157_v51, %v2167_v60  ;;  %v2177_v27 = vsel %vm7434_vm4, %v2172_v45, %v8191_v22  ;;  %v2187_v42 = vsel %vm7434_vm4, %v2182_v62, %v2186_v15  ;;  %v8294_v60 = vld [vmem:[%s7389_s28 + $0x9c] sm:$0x1] }
  0xae   : > { %v2236_v59 = vshll.u32 %v6166_v31, 16  ;;  %v2196_v1 = vrot.slane %v2195_v0, 4  ;;  %v2235_v51 = vrot.slane %v2233_v55, 4  ;;  %v2242_v39 = vshll.u32 %v8251_v32, 16  ;;  %10219 = vst [vmem:[#allocation7_spill] sm:$0xff] %v8294_v60  ;;  %v7150_v0 = vld [vmem:[%s7389_s28 + $0x30] sm:$0xff]  }
  0xaf   : > { %6843 = vmatmul.mubr.msk.bf16.vlgmr.msra.gmra.mxu1 %vm635_vm3, %v7148_v12  ;;  %v2206_v12 = vrot.slane %v2205_v19, 4  ;;  %v8280_v22 = vrot.slane %v2215_v30, 4  ;;  %v2225_v45 = vor.u32 %v2224_v61, %v8255_v10  ;;  %v8286_v62 = vcombine.low %v2177_v27, %v2187_v42  ;;  %v6171_v61 = vld [vmem:[%s7389_s28 + $0xa0] sm:$0xf] }
  0xb0   : > { %6909 = vmatpush3.bf16.msra.mxu1 %v8020_v16  ;;  %6846 = vmatprep.mubr.msk.bf16.mxu1 %vm635_vm3, %v7149_v7  ;;  %v2238_v15 = vrot.slane %v2236_v59, 5  ;;  %v2246_v16 = vshrl.u32 %v8251_v32, 16  ;;  %v8288_v26 = vrot.slane %v2228_v36, 5  ;;  %v8290_v31 = vrot.slane %v2242_v39, 5  ;;  %v7151_v36 = vld [vmem:[%s7389_s28 + $0x3c] sm:$0xff]  }
  0xb1   : > { %7054 = vmatprep.subr.msk.bf16.mxu1 %vm684_vm0, %v8261_v54  ;;  %v2252_v7 = vshll.u32 %v8272_v52, 16  ;;  %v2256_v19 = vshrl.u32 %v8272_v52, 16  ;;  %v2262_v30 = vshll.u32 %v8278_v49, 16  ;;  %v2201_v55 = vsel %vm7434_vm4, %v2196_v1, %v8223_v23 }
  0xb2   : > { %6881 = vmatmul.mubr.msk.bf16.gmra.mxu0 %vm635_vm3, %v8143_v48  ;;  %v2239_v24 = vor.u32 %v2238_v15, %v2235_v51  ;;  %v2248_v21 = vrot.slane %v2246_v16, 4  ;;  %v2211_v48 = vsel %vm7434_vm4, %v2206_v12, %v8232_v41  ;;  %v2266_v42 = vshrl.u32 %v8278_v49, 16  ;;  %v8320_v15 = vld [vmem:[%s7389_s28 + $0xa4] sm:$0xf]  ;;  %v8326_v12 = vld [vmem:[%s7389_s28 + $0xa8] sm:$0xf] }
  0xb3   : > { %6884 = vmatprep.mubr.msk.bf16.mxu0 %vm635_vm3, %v8145_v46  ;;  %v8311_v27 = vrot.slane %v2252_v7, 5  ;;  %v2221_v59 = vsel %vm7434_vm4, %v8280_v22, %v8255_v10  ;;  %v2226_v51 = vrot.slane %v2225_v45, 4  ;;  %v2258_v39 = vrot.slane %v2256_v19, 4  ;;  %10220 = vst [vmem:[#allocation8_spill] sm:$0xff] %v8320_v15 }
  0xb4   : > { %v2249_v46 = vor.u32 %v2248_v21, %v8290_v31  ;;  %v8322_v23 = vrot.slane %v2262_v30, 5  ;;  %v2268_v1 = vrot.slane %v2266_v42, 4  ;;  %v2272_v41 = vshll.u32 %v8294_v60, 16  ;;  %v7153_v60 = vld [vmem:[%s7389_s28 + $0x50] sm:$0xff]  }
  0xb5   : > { %v2277_v16 = vshrl.u32 %v6171_v61, 16  ;;  %v8329_v7 = vcombine.low %v2201_v55, %v2211_v48  ;;  %v2240_v10 = vrot.slane %v2239_v24, 4  ;;  %v2259_v22 = vor.u32 %v2258_v39, %v8311_v27  ;;  %v8338_v48 = vld [vmem:[%s7389_s28 + $0xac] sm:$0xf] }
  0xb6   : > { %v2280_v45 = vshll.u32 %v6171_v61, 16  ;;  %v2269_v21 = vor.u32 %v2268_v1, %v8322_v23  ;;  %v2286_v30 = vshll.u32 %v8320_v15, 16  ;;  %v2290_v42 = vshrl.u32 %v8320_v15, 16  ;;  %10221 = vst [vmem:[#allocation9_spill] sm:$0xff] %v8338_v48  ;;  %v6209_v15 = vld [vmem:[%s7389_s28 + $0x14] sm:$0xe] }
  0xb7   : > { %6847 = vmatmul.mubr.msk.bf16.gmra.mxu1 %vm635_vm3, %v7150_v0  ;;  %v2279_v19 = vrot.slane %v2277_v16, 4  ;;  %v2250_v54 = vrot.slane %v2249_v46, 4  ;;  %v2260_v0 = vrot.slane %v2259_v22, 4  ;;  %v2296_v24 = vshll.u32 %v8326_v12, 16  ;;  %v7152_v16 = vld [vmem:[%s7389_s28 + $0x44] sm:$0xff]  }
  0xb8   : > { %6850 = vmatprep.mubr.msk.bf16.mxu1 %vm635_vm3, %v7151_v36  ;;  %v2282_v55 = vrot.slane %v2280_v45, 5  ;;  %v2231_v61 = vsel %vm7434_vm4, %v2226_v51, %v8288_v26  ;;  %v2274_v36 = vrot.slane %v2272_v41, 5  ;;  %v2288_v39 = vrot.slane %v2286_v30, 5  ;;  %v8355_v41 = vld [vmem:[%s7389_s28 + $0xb0] sm:$0x1] }
  0xb9   : > { %v2292_v1 = vrot.slane %v2290_v42, 4  ;;  %v2245_v46 = vsel %vm7434_vm4, %v2240_v10, %v8290_v31  ;;  %v2270_v22 = vrot.slane %v2269_v21, 4  ;;  %v2300_v2 = vshrl.u32 %v8326_v12, 16 }
  0xba   : > { %6885 = vmatmul.mubr.msk.bf16.gmra.mxu0 %vm635_vm3, %v8154_v25  ;;  %v2283_v45 = vor.u32 %v2282_v55, %v2279_v19  ;;  %v2298_v51 = vrot.slane %v2296_v24, 5  ;;  %v2306_v30 = vshll.u32 %v8338_v48, 16  ;;  %v2310_v25 = vshrl.u32 %v8338_v48, 16 }
  0xbb   : > { %6888 = vmatprep.mubr.msk.bf16.mxu0 %vm635_vm3, %v8244_v13  ;;  %v2293_v26 = vor.u32 %v2292_v1, %v2288_v39  ;;  %v2255_v31 = vsel %vm7434_vm4, %v2250_v54, %v8311_v27  ;;  %v2265_v10 = vsel %vm7434_vm4, %v2260_v0, %v8322_v23  ;;  %v2302_v19 = vrot.slane %v2300_v2, 4 }
  0xbc   : > { %v2284_v21 = vrot.slane %v2283_v45, 4  ;;  %v8365_v13 = vrot.slane %v2306_v30, 5  ;;  %v2312_v55 = vrot.slane %v2310_v25, 4  ;;  %v6217_v24 = vrot.slane %v6209_v15, 9  ;;  %v7155_v25 = vld [vmem:[%s7389_s28 + $0x64] sm:$0xff]  }
  0xbd   : > { %v2294_v42 = vrot.slane %v2293_v26, 4  ;;  %v2275_v1 = vsel %vm7434_vm4, %v2270_v22, %v2274_v36  ;;  %v2316_v54 = vshll.u32 %v8355_v41, 16  ;;  %v2664_v27 = vrot.slane %v7880_v8, 5 }
  0xbe   : > { %v2289_v48 = vsel %vm7434_vm4, %v2284_v21, %v2288_v39  ;;  %v2303_v15 = vor.u32 %v2302_v19, %v2298_v51  ;;  %v2667_v23 = vrot.slane %v7902_v20, 5  ;;  %v2670_v0 = vrot.slane %v7916_v11, 5  ;;  %v6210_v20 = vld [vmem:[%s7389_s28 + $0x28] sm:$0xe] }
  0xbf   : > { %6851 = vmatmul.mubr.msk.bf16.gmra.mxu1 %vm635_vm3, %v7152_v16  ;;  %v2299_v2 = vsel %vm7434_vm4, %v2294_v42, %v2298_v51  ;;  %v8379_v36 = vcombine.low %v2221_v59, %v2231_v61  ;;  %v2313_v39 = vor.u32 %v2312_v55, %v8365_v13  ;;  %v8384_v16 = vsel %vm7690_vm7, %v6217_v24, %v2664_v27  ;;  %v7154_v51 = vld [vmem:[%s7389_s28 + $0x58] sm:$0xff]  }
  0xc0   : > { %6854 = vmatprep.mubr.msk.bf16.mxu1 %vm635_vm3, %v7153_v60  ;;  %v2666_v8 = vrot.slane %v2664_v27, 4  ;;  %v8386_v60 = vcombine.low %v2245_v46, %v2255_v31  ;;  %v2669_v22 = vrot.slane %v2667_v23, 4  ;;  %v2672_v45 = vrot.slane %v2670_v0, 4  ;;  %v6211_v46 = vld [vmem:[%s7389_s28 + $0x3c] sm:$0xe] }
  0xc1   : > { %v2673_v26 = vrot.slane %v7925_v28, 5  ;;  %v8393_v11 = vcombine.low %v2265_v10, %v2275_v1  ;;  %v8395_v59 = vcombine.low %v2289_v48, %v2299_v2  ;;  %v8397_v61 = vrot.slane %v2316_v54, 5 }
  0xc2   : > { %6889 = vmatmul.mubr.msk.bf16.gmra.mxu0 %vm635_vm3, %v8246_v53  ;;  %v8401_v30 = vsel %vm7690_vm7, %v2666_v8, %v2667_v23  ;;  %v8407_v28 = vrot.slane %v2303_v15, 4  ;;  %v8413_v48 = vsel %vm7690_vm7, %v2669_v22, %v2670_v0  ;;  %v8419_v10 = vrot.slane %v2313_v39, 4  ;;  %v6212_v23 = vld [vmem:[%s7389_s28 + $0x50] sm:$0xe] }
  0xc3   : > { %6892 = vmatprep.mubr.msk.bf16.mxu0 %vm635_vm3, %v8264_v50  ;;  %v6226_v53 = vcombine.low %v8384_v16, %v8401_v30  ;;  %v8417_v31 = vsel %vm7690_vm7, %v2672_v45, %v2673_v26  ;;  %v6218_v19 = vrot.slane %v6210_v20, 9  ;;  %v2677_v50 = vrot.slane %v7953_v9, 5  ;;  %v6213_v45 = vld [vmem:[%s7389_s28 + $0x64] sm:$0xe]  ;;  %v7156_v26 = vld [vmem:[%s7389_s28 + $0x6c] sm:$0xff]  }
  0xc4   : > { %v6227_v21 = vcombine.low %v8413_v48, %v8417_v31  ;;  %v2680_v42 = vrot.slane %v7961_v40, 5  ;;  %v2683_v55 = vrot.slane %v7974_v38, 5  ;;  %v2686_v24 = vrot.slane %v8012_v34, 5  ;;  %v8655_v30 = vld [vmem:[%s7389_s28 + $0x34] sm:$0xf] }
  0xc5   : > { %v6219_v1 = vrot.slane %v6211_v46, 9  ;;  %v8430_v54 = vsel %vm7690_vm7, %v6218_v19, %v2677_v50  ;;  %v2679_v27 = vrot.slane %v2677_v50, 4  ;;  %v2690_v2 = vrot.slane %v8009_v57, 5  ;;  %v7157_v19 = vld [vmem:[%s7389_s28 + $0x78] sm:$0xff]  }
  0xc6   : > { %v2693_v15 = vrot.slane %v8031_v35, 5  ;;  %v2682_v9 = vrot.slane %v2680_v42, 4  ;;  %v2685_v38 = vrot.slane %v2683_v55, 4  ;;  %v2696_v40 = vrot.slane %v8044_v5, 5 }
  0xc7   : > { %6855 = vmatmul.mubr.msk.bf16.gmra.mxu1 %vm635_vm3, %v7154_v51  ;;  %v2699_v34 = vrot.slane %v8062_v56, 5  ;;  %v8440_v0 = vsel %vm7690_vm7, %v2679_v27, %v2680_v42  ;;  %v8444_v57 = vsel %vm7690_vm7, %v6219_v1, %v2690_v2  ;;  %v2692_v35 = vrot.slane %v2690_v2, 4 }
  0xc8   : > { %6858 = vmatprep.mubr.msk.bf16.mxu1 %vm635_vm3, %v7155_v25  ;;  %v2695_v39 = vrot.slane %v2693_v15, 4  ;;  %v6228_v8 = vcombine.low %v8430_v54, %v8440_v0  ;;  %v8450_v5 = vsel %vm7690_vm7, %v2682_v9, %v2683_v55  ;;  %v8454_v56 = vsel %vm7690_vm7, %v2685_v38, %v2686_v24  ;;  %v8680_v54 = vld [vmem:[%s7389_s28 + $0x38] sm:$0x1] }
  0xc9   : > { %v2698_v22 = vrot.slane %v2696_v40, 4  ;;  %v6229_v20 = vcombine.low %v8450_v5, %v8454_v56  ;;  %v8464_v51 = vsel %vm7690_vm7, %v2692_v35, %v2693_v15  ;;  %v6220_v25 = vrot.slane %v6212_v23, 9 }
  0xca   : > { %6893 = vmatmul.mubr.msk.bf16.gmra.mxu0 %vm635_vm3, %v8286_v62  ;;  %v8468_v46 = vsel %vm7690_vm7, %v2695_v39, %v2696_v40  ;;  %v6230_v50 = vcombine.low %v8444_v57, %v8464_v51  ;;  %v2703_v42 = vrot.slane %v8072_v18, 5  ;;  %v2706_v55 = vrot.slane %v8081_v29, 5 }
  0xcb   : > { %6896 = vmatprep.mubr.msk.bf16.mxu0 %vm635_vm3, %v8329_v7  ;;  %v8477_v62 = vsel %vm7690_vm7, %v2698_v22, %v2699_v34  ;;  %v2709_v1 = vrot.slane %v8092_v17, 5  ;;  %v2712_v27 = vrot.slane %v8127_v14, 5  ;;  %v6221_v7 = vrot.slane %v6213_v45, 9  ;;  %v6214_v14 = vld [vmem:[%s7389_s28 + $0x78] sm:$0xe] }
  0xcc   : > { %v6231_v24 = vcombine.low %v8468_v46, %v8477_v62  ;;  %v8487_v2 = vsel %vm7690_vm7, %v6220_v25, %v2703_v42  ;;  %v2705_v15 = vrot.slane %v2703_v42, 4  ;;  %v2708_v9 = vrot.slane %v2706_v55, 4  ;;  %v7158_v42 = vld [vmem:[%s7389_s28 + $0x80] sm:$0xff]   ;;  %v7171_v46 = vld [vmem:[%s7389_s28 + $0x78] sm:$0xff]  }
  0xcd   : > { %v2716_v38 = vrot.slane %v8131_v3, 5  ;;  %v2711_v18 = vrot.slane %v2709_v1, 4  ;;  %v2719_v29 = vrot.slane %v8137_v47, 5  ;;  %v2722_v40 = vrot.slane %v8160_v58, 5 }
  0xce   : > { %v2725_v17 = vrot.slane %v8176_v43, 5  ;;  %v8498_v34 = vsel %vm7690_vm7, %v2705_v15, %v2706_v55  ;;  %v8502_v3 = vsel %vm7690_vm7, %v2708_v9, %v2709_v1  ;;  %v2729_v25 = vrot.slane %v8186_v44, 5  ;;  %v7159_v44 = vld [vmem:[%s7389_s28 + $0x8c] sm:$0xff]  }
  0xcf   : > { %6859 = vmatmul.mubr.msk.bf16.gmra.mxu1 %vm635_vm3, %v7156_v26  ;;  %v8506_v47 = vsel %vm7690_vm7, %v6221_v7, %v2716_v38  ;;  %v2718_v58 = vrot.slane %v2716_v38, 4  ;;  %v6232_v43 = vcombine.low %v8487_v2, %v8498_v34  ;;  %v8512_v23 = vsel %vm7690_vm7, %v2711_v18, %v2712_v27 }
  0xd0   : > { %6862 = vmatprep.mubr.msk.bf16.mxu1 %vm635_vm3, %v7157_v19  ;;  %v2721_v35 = vrot.slane %v2719_v29, 4  ;;  %v2724_v39 = vrot.slane %v2722_v40, 4  ;;  %v6233_v22 = vcombine.low %v8502_v3, %v8512_v23  ;;  %v6222_v26 = vrot.slane %v6214_v14, 9  ;;  %v6215_v19 = vld [vmem:[%s7389_s28 + $0x8c] sm:$0xe] }
  0xd1   : > { %v8518_v45 = vsel %vm7690_vm7, %v2718_v58, %v2719_v29  ;;  %v2732_v7 = vrot.slane %v8195_v6, 5  ;;  %v2731_v9 = vrot.slane %v2729_v25, 4  ;;  %v2735_v38 = vrot.slane %v8217_v37, 5 }
  0xd2   : > { %6897 = vmatmul.mubr.msk.bf16.gmra.mxu0 %vm635_vm3, %v8379_v36  ;;  %v6234_v55 = vcombine.low %v8506_v47, %v8518_v45  ;;  %v8529_v1 = vsel %vm7690_vm7, %v2721_v35, %v2722_v40  ;;  %v8533_v27 = vsel %vm7690_vm7, %v2724_v39, %v2725_v17  ;;  %v8543_v15 = vsel %vm7690_vm7, %v6222_v26, %v2729_v25  ;;  %v6216_v35 = vld [vmem:[%s7389_s28 + $0xa0] sm:$0xe]  ;;  %v10222_v25 = vld [vmem:[#allocation7_spill] sm:$0xff] }
  0xd3   : > { %6900 = vmatprep.mubr.msk.bf16.mxu0 %vm635_vm3, %v8386_v60  ;;  %v2734_v18 = vrot.slane %v2732_v7, 4  ;;  %v2738_v29 = vrot.slane %v8220_v63, 5  ;;  %v6223_v40 = vrot.slane %v6215_v19, 9  ;;  %v2742_v6 = vrot.slane %v8251_v32, 5 }
  0xd4   : > { %v8550_v17 = vsel %vm7690_vm7, %v2731_v9, %v2732_v7  ;;  %v2737_v60 = vrot.slane %v2735_v38, 4  ;;  %v2745_v14 = vrot.slane %v8272_v52, 5  ;;  %v2748_v58 = vrot.slane %v8278_v49, 5 }
  0xd5   : > { %v8560_v63 = vsel %vm7690_vm7, %v2734_v18, %v2735_v38  ;;  %v8564_v32 = vsel %vm7690_vm7, %v6223_v40, %v2742_v6  ;;  %v2744_v39 = vrot.slane %v2742_v6, 4  ;;  %v2751_v19 = vrot.slane %v10222_v25, 5  ;;  %v10223_v38 = vld [vmem:[#allocation8_spill] sm:$0xff]  ;;  %v7161_v25 = vld [vmem:[%s7389_s28 + $0xa0] sm:$0xff]  }
  0xd6   : > { %v8569_v52 = vsel %vm7690_vm7, %v2737_v60, %v2738_v29  ;;  %v2747_v49 = vrot.slane %v2745_v14, 4  ;;  %v2750_v26 = vrot.slane %v2748_v58, 4  ;;  %v6224_v9 = vrot.slane %v6216_v35, 9  ;;  %v7160_v60 = vld [vmem:[%s7389_s28 + $0x94] sm:$0xff]  }
  0xd7   : > { %6863 = vmatmul.mubr.msk.bf16.gmra.mxu1 %vm635_vm3, %v7158_v42  ;;  %v8576_v7 = vsel %vm7690_vm7, %v2744_v39, %v2745_v14  ;;  %v2755_v18 = vrot.slane %v10223_v38, 5  ;;  %v2758_v6 = vrot.slane %v8326_v12, 5  ;;  %v2309_v12 = vsel %vm7434_vm4, %v8407_v28, %v8365_v13  ;;  %v7163_v28 = vld [vmem:[%s7389_s28 + $0x28] sm:$0xff]   ;;  %v6399_v42 = vld [vmem:[%s7389_s28 + $0x3c] sm:$0xe] }
  0xd8   : > { %6866 = vmatprep.mubr.msk.bf16.mxu1 %vm635_vm3, %v7159_v44  ;;  %v8583_v29 = vsel %vm7690_vm7, %v2747_v49, %v2748_v58  ;;  %v8587_v40 = vsel %vm7690_vm7, %v2750_v26, %v2751_v19  ;;  %v10224_v58 = vld [vmem:[#allocation9_spill] sm:$0xff]  ;;  %v2764_v19 = vrot.slane %v8355_v41, 5  ;;  %v7170_v14 = vld [vmem:[%s7389_s28 + $0x6c] sm:$0xff]  }
  0xd9   : > { %v8597_v35 = vsel %vm7690_vm7, %v6224_v9, %v2755_v18  ;;  %v2757_v39 = vrot.slane %v2755_v18, 4  ;;  %v2761_v49 = vrot.slane %v10224_v58, 5  ;;  %v2760_v26 = vrot.slane %v2758_v6, 4  ;;  %v7162_v18 = vld [vmem:[%s7389_s28 + $0xa8] sm:$0xff]  }
  0xda   : > { %6901 = vmatmul.mubr.msk.bf16.gmra.mxu0 %vm635_vm3, %v8393_v11  ;;  %v2319_v11 = vsel %vm7434_vm4, %v8419_v10, %v8397_v61  ;;  %v8712_v10 = vld [vmem:[%s7389_s28 + $0x44] sm:$0xf] }
  0xdb   : > { %6904 = vmatprep.mubr.msk.bf16.mxu0 %vm635_vm3, %v8395_v59  ;;  %v8614_v9 = vsel %vm7690_vm7, %v2757_v39, %v2758_v6  ;;  %v2763_v59 = vrot.slane %v2761_v49, 4  ;;  %v8620_v13 = vsel %vm7690_vm7, %v2760_v26, %v2761_v49  ;;  %v6192_v61 = vcombine.low %v2309_v12, %v2319_v11  ;;  %v7164_v6 = vld [vmem:[%s7389_s28 + $0x30] sm:$0xff]   ;;  %v10225_v39 = vld [vmem:[#allocation5_spill] sm:$0xff]  ;;  %v6325_v49 = vld [vmem:[%s7389_s28 + $0x28] sm:$0xf] }
  0xdc   : > { %v4359_v58 = vsel %vm684_vm0, %v10225_v39, 0  ;;  %v8650_v12 = vld [vmem:[%s7389_s28 + $0x30] sm:$0xf]  ;;  %v10226_v11 = vld [vmem:[#allocation6_spill] sm:$0xff]  ;;  %v3466_v26 = vshll.u32 %v6325_v49, 16  ;;  %v3496_v39 = vshrl.u32 %v8655_v30, 16 }
  0xdd   : > { %v8625_v41 = vsel %vm7690_vm7, %v2763_v59, %v2764_v19  ;;  %v3913_v16 = vsel %vm684_vm0, %v10226_v11, 0  ;;  %vm5841_vm0 = vcmask 519168  }
  0xde   : > { %v3468_v31 = vrot.slane %v3466_v26, 5 }
  0xdf   : > { %6867 = vmatmul.mubr.msk.bf16.gmra.mxu1 %vm635_vm3, %v7160_v60  ;;  %v7165_v60 = vld [vmem:[%s7389_s28 + $0x3c] sm:$0xff]  }
  0xe0   : > { %6870 = vmatprep.mubr.msk.bf16.mxu1 %vm635_vm3, %v7161_v25  ;;  %v8646_v25 = vld [vmem:[%s7389_s28 + $0x2c] sm:$0xf] }
  0xe1   : > { %v3472_v19 = vshll.u32 %v8646_v25, 16  ;;  %v3476_v59 = vshrl.u32 %v8646_v25, 16 }
  0xe2   : > { %6905 = vmatmul.mubr.msk.bf16.gmra.mxu0 %vm635_vm3, %v6192_v61  ;;  %v7166_v61 = vld [vmem:[%s7389_s28 + $0x44] sm:$0xff]  }
  0xe3   : > { %6944 = vmatprep.mubr.msk.bf16.mxu0 %vm635_vm3, %v7163_v28  ;;  %v3482_v28 = vshll.u32 %v8650_v12, 16 }
  0xe7   : > { %6871 = vmatmul.mubr.msk.bf16.gmra.mxu1 %vm635_vm3, %v7162_v18  ;;  %v3486_v18 = vshrl.u32 %v8650_v12, 16 }
  0xe8   : > { %6910 = vmatprep.mubr.msk.bf16.mxu1 %vm635_vm3, %v6226_v53  ;;  %v3463_v53 = vshrl.u32 %v6325_v49, 16  ;;  %v8676_v49 = vrot.slane %v3482_v28, 5  ;;  %v3502_v28 = vshll.u32 %v8680_v54, 16 }
  0xe9   : > { %v3488_v11 = vrot.slane %v3486_v18, 4  ;;  %v6398_v18 = vld [vmem:[%s7389_s28 + $0x28] sm:$0xe] }
  0xea   : > { %6945 = vmatmul.mubr.msk.bf16.vlgmr.msra.gmra.mxu0 %vm635_vm3, %v7164_v6  ;;  %v7167_v6 = vld [vmem:[%s7389_s28 + $0x50] sm:$0xff]   ;;  %v3465_v48 = vrot.slane %v3463_v53, 4 }
  0xeb   : > { %7011 = vmatpush3.bf16.msra.mxu0 %v4359_v58  ;;  %6948 = vmatprep.mubr.msk.bf16.mxu0 %vm635_vm3, %v7165_v60  ;;  %v3492_v60 = vshll.u32 %v8655_v30, 16  ;;  %v3478_v58 = vrot.slane %v3476_v59, 4 }
  0xec   : > { %v3469_v53 = vor.u32 %v3468_v31, %v3465_v48 }
  0xed   : > { %v8682_v0 = vrot.slane %v3492_v60, 5  ;;  %v7169_v60 = vld [vmem:[%s7389_s28 + $0x64] sm:$0xff]  }
  0xee   : > { %v3470_v48 = vrot.slane %v3469_v53, 4 }
  0xef   : > { %6911 = vmatmul.mubr.msk.bf16.vlgmr.msra.gmra.mxu1 %vm635_vm3, %v6227_v21  ;;  %v8673_v21 = vrot.slane %v3472_v19, 5  ;;  %v7168_v19 = vld [vmem:[%s7389_s28 + $0x58] sm:$0xff]  }
  0xf0   : > { %6977 = vmatpush3.bf16.msra.mxu1 %v3913_v16  ;;  %6914 = vmatprep.mubr.msk.bf16.mxu1 %vm635_vm3, %v6228_v8  ;;  %v3498_v8 = vrot.slane %v3496_v39, 4  ;;  %v8708_v39 = vld [vmem:[%s7389_s28 + $0x40] sm:$0xf] }
  0xf1   : > { %v3479_v26 = vor.u32 %v3478_v58, %v8673_v21  ;;  %v6406_v58 = vrot.slane %v6398_v18, 9  ;;  %v4171_v2 = vrot.slane %v8708_v39, 5 }
  0xf2   : > { %6949 = vmatmul.mubr.msk.bf16.gmra.mxu0 %vm635_vm3, %v7166_v61  ;;  %v3489_v61 = vor.u32 %v3488_v11, %v8676_v49  ;;  %v3499_v56 = vor.u32 %v3498_v8, %v8682_v0  ;;  %v4161_v11 = vrot.slane %v8650_v12, 5  ;;  %v4164_v8 = vrot.slane %v8655_v30, 5 }
  0xf3   : > { %6952 = vmatprep.mubr.msk.bf16.mxu0 %vm635_vm3, %v7167_v6  ;;  %v8684_v16 = vpop.f32.mrf.mxu0  ;;  %v4158_v6 = vrot.slane %v8646_v25, 5  ;;  %v3480_v31 = vrot.slane %v3479_v26, 4  ;;  %v3516_v12 = vshll.u32 %v8708_v39, 16  ;;  %v3475_v30 = vsel %vm7434_vm4, %v3470_v48, %v8673_v21 }
  0xf4   : > { %10227 = vst [vmem:[#allocation7_spill] sm:$0xff] %v8684_v16  ;;  %v3490_v51 = vrot.slane %v3489_v61, 4  ;;  %v3500_v53 = vrot.slane %v3499_v56, 4  ;;  %v3526_v61 = vshll.u32 %v8712_v10, 16  ;;  %v4167_v48 = vrot.slane %v8680_v54, 5 }
  0xf5   : > { %v8692_v59 = vpop.f32.mrf.mxu0  ;;  %v8703_v5 = vpop.f32.mrf.mxu1  ;;  %v4160_v25 = vrot.slane %v4158_v6, 4  ;;  %v8733_v56 = vsel %vm7690_vm7, %v6406_v58, %v4158_v6  ;;  %v4166_v6 = vrot.slane %v4164_v8, 4 }
  0xf6   : > { %10228 = vst [vmem:[#allocation8_spill] sm:$0xff] %v8692_v59  ;;  %10229 = vst [vmem:[#allocation9_spill] sm:$0xff] %v8703_v5  ;;  %v3495_v21 = vsel %vm7434_vm4, %v3490_v51, %v8682_v0  ;;  %v8764_v54 = vrot.slane %v3526_v61, 5 }
  0xf7   : > { %6915 = vmatmul.mubr.msk.bf16.gmra.mxu1 %vm635_vm3, %v6229_v20  ;;  %v6330_v20 = vld [vmem:[%s7389_s28 + $0x3c] sm:$0xf]  ;;  %v8715_v57 = vpop.f32.mrf.mxu0  ;;  %v8719_v38 = vpop.f32.mrf.mxu1 }
  0xf8   : > { %6918 = vmatprep.mubr.msk.bf16.mxu1 %vm635_vm3, %v6230_v50  ;;  %10230 = vst [vmem:[#allocation5_spill] sm:$0xff] %v8715_v57  ;;  %v3504_v50 = vrot.slane %v3502_v28, 5  ;;  %10231 = vst [vmem:[#allocation6_spill] sm:$0xff] %v8719_v38  ;;  %v3507_v26 = vshrl.u32 %v6330_v20, 16  ;;  %v3510_v18 = vshll.u32 %v6330_v20, 16  ;;  %v3530_v28 = vshrl.u32 %v8712_v10, 16 }
  0xf9   : > { %v4163_v20 = vrot.slane %v4161_v11, 4  ;;  %v8740_v44 = vpop.f32.mrf.mxu0  ;;  %v8758_v62 = vpop.f32.mrf.mxu1  ;;  %v8924_v57 = vld [vmem:[%s7389_s28 + $0x70] sm:$0xf] }
  0xfa   : > { %6953 = vmatmul.mubr.msk.bf16.gmra.mxu0 %vm635_vm3, %v7168_v19  ;;  %v3520_v19 = vshrl.u32 %v8708_v39, 16  ;;  %10232 = vst [vmem:[#allocation10_spill] sm:$0xff] %v8740_v44  ;;  %10233 = vst [vmem:[#allocation11_spill] sm:$0xff] %v8758_v62  ;;  %v3509_v0 = vrot.slane %v3507_v26, 4  ;;  %v3512_v58 = vrot.slane %v3510_v18, 5 }
  0xfb   : > { %6956 = vmatprep.mubr.msk.bf16.mxu0 %vm635_vm3, %v7169_v60  ;;  %v3485_v60 = vsel %vm7434_vm4, %v3480_v31, %v8676_v49  ;;  %v8747_v49 = vsel %vm7690_vm7, %v4160_v25, %v4161_v11  ;;  %v8751_v31 = vld [vmem:[%s7389_s28 + $0x48] sm:$0xf]  ;;  %v8762_v11 = vrot.slane %v3516_v12, 5  ;;  %v3532_v25 = vrot.slane %v3530_v28, 4  ;;  %v6335_v18 = vld [vmem:[%s7389_s28 + $0x50] sm:$0xf]  ;;  %v8783_v12 = vpop.f32.mrf.mxu1 }
  0xfc   : > { %v3522_v51 = vrot.slane %v3520_v19, 4  ;;  %v3536_v34 = vshll.u32 %v8751_v31, 16  ;;  %v8777_v26 = vsel %vm7690_vm7, %v4163_v20, %v4164_v8  ;;  %10235 = vst [vmem:[#allocation13_spill] sm:$0xff] %v8783_v12  ;;  %v3513_v61 = vor.u32 %v3512_v58, %v3509_v0  ;;  %v8792_v8 = vld [vmem:[%s7389_s28 + $0x54] sm:$0xf]  ;;  %v7172_v58 = vld [vmem:[%s7389_s28 + $0x80] sm:$0xff]  }
  0xfd   : > { %v6407_v28 = vrot.slane %v6399_v42, 9  ;;  %v3533_v20 = vor.u32 %v3532_v25, %v8764_v54  ;;  %v8804_v39 = vld [vmem:[%s7389_s28 + $0x4c] sm:$0x1]  ;;  %v3551_v42 = vshrl.u32 %v6335_v18, 16  ;;  %v3554_v0 = vshll.u32 %v6335_v18, 16 }
  0xfe   : > { %v3560_v25 = vshll.u32 %v8792_v8, 16  ;;  %v3546_v45 = vshll.u32 %v8804_v39, 16 }
  0xff   : > { %6919 = vmatmul.mubr.msk.bf16.gmra.mxu1 %vm635_vm3, %v6231_v24  ;;  %v3505_v24 = vsel %vm7434_vm4, %v3500_v53, %v3504_v50  ;;  %v8773_v53 = vcombine.low %v3475_v30, %v3485_v60  ;;  %v8795_v30 = vld [vmem:[%s7389_s28 + $0x58] sm:$0xf]  ;;  %v3523_v60 = vor.u32 %v3522_v51, %v8762_v11  ;;  %v8836_v62 = vsel %vm7690_vm7, %v6407_v28, %v4171_v2 }
 0x100   : > { %6922 = vmatprep.mubr.msk.bf16.mxu1 %vm635_vm3, %v6232_v43  ;;  %v3540_v43 = vshrl.u32 %v8751_v31, 16  ;;  %v8785_v19 = vcombine.low %v3495_v21, %v3505_v24  ;;  %v4174_v21 = vrot.slane %v8712_v10, 5  ;;  %v8801_v24 = vld [vmem:[%s7389_s28 + $0x5c] sm:$0xf]  ;;  %v3564_v10 = vshrl.u32 %v8792_v8, 16 }
 0x101   : > { %v8771_v50 = vpop.f32.mrf.mxu0  ;;  %v3570_v37 = vshll.u32 %v8795_v30, 16  ;;  %v3580_v18 = vshll.u32 %v8801_v24, 16  ;;  %v3584_v36 = vshrl.u32 %v8801_v24, 16  ;;  %v8832_v12 = vrot.slane %v3523_v60, 4 }
 0x102   : > { %6957 = vmatmul.mubr.msk.bf16.gmra.mxu0 %vm635_vm3, %v7170_v14  ;;  %10234 = vst [vmem:[#allocation12_spill] sm:$0xff] %v8771_v50  ;;  %10236 = vst [vmem:[#allocation14_spill] sm:$0xff] %v8785_v19  ;;  %v8789_v14 = vsel %vm7690_vm7, %v4166_v6, %v4167_v48  ;;  %v8806_v6 = vrot.slane %v3536_v34, 5  ;;  %v3542_v48 = vrot.slane %v3540_v43, 4  ;;  %v3574_v34 = vshrl.u32 %v8795_v30, 16  ;;  %v7173_v43 = vld [vmem:[%s7389_s28 + $0x8c] sm:$0xff]  }
 0x103   : > { %6960 = vmatprep.mubr.msk.bf16.mxu0 %vm635_vm3, %v7171_v46  ;;  %v4173_v46 = vrot.slane %v4171_v2, 4  ;;  %v8813_v51 = vpop.f32.mrf.mxu0  ;;  %v3553_v23 = vrot.slane %v3551_v42, 4  ;;  %v8849_v2 = vrot.slane %v3560_v25, 5  ;;  %v3566_v28 = vrot.slane %v3564_v10, 4 }
 0x104   : > { %10237 = vst [vmem:[#allocation15_spill] sm:$0xff] %v8813_v51  ;;  %v8824_v3 = vpop.f32.mrf.mxu1  ;;  %v8851_v38 = vrot.slane %v3570_v37, 5  ;;  %v4176_v42 = vrot.slane %v4174_v21, 4  ;;  %v8868_v10 = vrot.slane %v3546_v45, 5  ;;  %v10241_v45 = vcombine.low %v8529_v1, %v8533_v27  ;;  %v7175_v27 = vld [vmem:[%s7389_s28 + $0xa0] sm:$0xff]  }
 0x105   : > { %10238 = vst [vmem:[#allocation16_spill] sm:$0xff] %v8824_v3  ;;  %v8840_v47 = vsel %vm7690_vm7, %v4173_v46, %v4174_v21  ;;  %v3556_v3 = vrot.slane %v3554_v0, 5  ;;  %v8847_v60 = vpop.f32.mrf.mxu0  ;;  %v3576_v46 = vrot.slane %v3574_v34, 4  ;;  %v8860_v0 = vrot.slane %v3580_v18, 5 }
 0x106   : > { %10239 = vst [vmem:[#allocation17_spill] sm:$0xff] %v8847_v60  ;;  %v4177_v34 = vrot.slane %v8751_v31, 5  ;;  %v4180_v18 = vrot.slane %v8804_v39, 5  ;;  %v7174_v31 = vld [vmem:[%s7389_s28 + $0x94] sm:$0xff]   ;;  %v3567_v5 = vor.u32 %v3566_v28, %v8849_v2  ;;  %v4187_v39 = vrot.slane %v8795_v30, 5 }
 0x107   : > { %6923 = vmatmul.mubr.msk.bf16.gmra.mxu1 %vm635_vm3, %v6233_v22  ;;  %v8828_v22 = vrot.slane %v3513_v61, 4  ;;  %v3543_v61 = vor.u32 %v3542_v48, %v8806_v6  ;;  %v6340_v48 = vld [vmem:[%s7389_s28 + $0x64] sm:$0xf]  ;;  %v3557_v37 = vor.u32 %v3556_v3, %v3553_v23  ;;  %v8890_v25 = vpop.f32.mrf.mxu0  ;;  %v3577_v60 = vor.u32 %v3576_v46, %v8851_v38 }
 0x108   : > { %6926 = vmatprep.mubr.msk.bf16.mxu1 %vm635_vm3, %v6234_v55  ;;  %v8843_v55 = vrot.slane %v3533_v20, 4  ;;  %v8854_v20 = vpop.f32.mrf.mxu1  ;;  %10242 = vst [vmem:[#allocation19_spill] sm:$0xff] %v8890_v25  ;;  %v10243_v3 = vcombine.low %v8543_v15, %v8550_v17  ;;  %v3598_v46 = vshll.u32 %v6340_v48, 16  ;;  %v4179_v30 = vrot.slane %v4177_v34, 4 }
 0x109   : > { %10240 = vst [vmem:[#allocation18_spill] sm:$0xff] %v8854_v20  ;;  %v8879_v21 = vrot.slane %v3543_v61, 4  ;;  %v8883_v20 = vld [vmem:[%s7389_s28 + $0x68] sm:$0xf]  ;;  %v4184_v61 = vrot.slane %v8792_v8, 5  ;;  %v8908_v8 = vsel %vm7690_vm7, %v4176_v42, %v4177_v34  ;;  %v4190_v25 = vrot.slane %v8801_v24, 5 }
 0x10a   : > { %6961 = vmatmul.mubr.msk.bf16.gmra.mxu0 %vm635_vm3, %v7172_v58  ;;  %v3586_v58 = vrot.slane %v3584_v36, 4  ;;  %v6400_v36 = vld [vmem:[%s7389_s28 + $0x50] sm:$0xe]  ;;  %v8901_v1 = vpop.f32.mrf.mxu1  ;;  %v3604_v15 = vshll.u32 %v8883_v20, 16  ;;  %v3608_v17 = vshrl.u32 %v8883_v20, 16  ;;  %v3568_v34 = vrot.slane %v3567_v5, 4 }
 0x10b   : > { %6964 = vmatprep.mubr.msk.bf16.mxu0 %vm635_vm3, %v7173_v43  ;;  %v8872_v43 = vld [vmem:[%s7389_s28 + $0x60] sm:$0x1]  ;;  %10244 = vst [vmem:[#allocation20_spill] sm:$0xff] %v8901_v1  ;;  %v6408_v1 = vrot.slane %v6400_v36, 9  ;;  %v3578_v51 = vrot.slane %v3577_v60, 4  ;;  %v4186_v50 = vrot.slane %v4184_v61, 4 }
 0x10c   : > { %v3587_v23 = vor.u32 %v3586_v58, %v8860_v0  ;;  %v3590_v28 = vshll.u32 %v8872_v43, 16  ;;  %v3558_v58 = vrot.slane %v3557_v37, 4  ;;  %v4189_v44 = vrot.slane %v4187_v39, 4  ;;  %v8926_v59 = vpop.f32.mrf.mxu1 }
 0x10d   : > { %10246 = vst [vmem:[#allocation22_spill] sm:$0xff] %v8926_v59  ;;  %v3600_v36 = vrot.slane %v3598_v46, 5  ;;  %v4193_v16 = vrot.slane %v8872_v43, 5  ;;  %v3624_v19 = vshll.u32 %v8924_v57, 16  ;;  %v3628_v59 = vshrl.u32 %v8924_v57, 16 }
 0x10e   : > { %v3588_v37 = vrot.slane %v3587_v23, 4  ;;  %v7176_v23 = vld [vmem:[%s7389_s28 + $0xa8] sm:$0xff]   ;;  %v3563_v43 = vsel %vm7434_vm4, %v3558_v58, %v8849_v2  ;;  %v8952_v46 = vsel %vm7690_vm7, %v6408_v1, %v4184_v61  ;;  %v3573_v2 = vsel %vm7434_vm4, %v3568_v34, %v8851_v38 }
 0x10f   : > { %6927 = vmatmul.mubr.msk.bf16.gmra.mxu1 %vm635_vm3, %v10241_v45  ;;  %v3595_v45 = vshrl.u32 %v6340_v48, 16  ;;  %v8918_v48 = vld [vmem:[%s7389_s28 + $0x6c] sm:$0xf]  ;;  %v3583_v61 = vsel %vm7434_vm4, %v3578_v51, %v8860_v0  ;;  %v4197_v51 = vrot.slane %v8883_v20, 5  ;;  %v3630_v0 = vrot.slane %v3628_v59, 4 }
 0x110   : > { %6930 = vmatprep.mubr.msk.bf16.mxu1 %vm635_vm3, %v10243_v3  ;;  %v3549_v3 = vsel %vm7434_vm4, %v8879_v21, %v8868_v10  ;;  %v3592_v10 = vrot.slane %v3590_v28, 5  ;;  %v8929_v21 = vrot.slane %v3604_v15, 5  ;;  %v3614_v5 = vshll.u32 %v8918_v48, 16 }
 0x111   : > { %v8921_v42 = vpop.f32.mrf.mxu0  ;;  %v3597_v24 = vrot.slane %v3595_v45, 4  ;;  %v3618_v60 = vshrl.u32 %v8918_v48, 16  ;;  %v8945_v45 = vsel %vm7690_vm7, %v4179_v30, %v4180_v18  ;;  %v7177_v30 = vld [vmem:[%s7389_s28 + $0xb4] sm:$0xff]   ;;  %v10251_v20 = vsel %vm7434_vm4, %v8828_v22, %v8762_v11 }
 0x112   : > { %6965 = vmatmul.mubr.msk.bf16.gmra.mxu0 %vm635_vm3, %v7174_v31  ;;  %10245 = vst [vmem:[#allocation21_spill] sm:$0xff] %v8921_v42  ;;  %v3610_v31 = vrot.slane %v3608_v17, 4  ;;  %v4192_v42 = vrot.slane %v4190_v25, 4  ;;  %v8978_v1 = vrot.slane %v3614_v5, 5  ;;  %v6401_v17 = vld [vmem:[%s7389_s28 + $0x64] sm:$0xe]  ;;  %v10252_v59 = vsel %vm7434_vm4, %v8843_v55, %v8806_v6 }
 0x113   : > { %6968 = vmatprep.mubr.msk.bf16.mxu0 %vm635_vm3, %v7175_v27  ;;  %v10247_v27 = vcombine.low %v8560_v63, %v8569_v52  ;;  %v8941_v28 = vpop.f32.mrf.mxu0  ;;  %v8956_v63 = vsel %vm7690_vm7, %v4186_v50, %v4187_v39  ;;  %v10248_v52 = vcombine.low %v8564_v32, %v8576_v7  ;;  %v8973_v50 = vsel %vm7690_vm7, %v4189_v44, %v4190_v25  ;;  %v6345_v55 = vld [vmem:[%s7389_s28 + $0x78] sm:$0xf]  ;;  %v9033_v5 = vld [vmem:[%s7389_s28 + $0x80] sm:$0xf] }
 0x114   : > { %v3601_v39 = vor.u32 %v3600_v36, %v3597_v24  ;;  %v3593_v32 = vsel %vm7434_vm4, %v3588_v37, %v3592_v10  ;;  %v3611_v7 = vor.u32 %v3610_v31, %v8929_v21  ;;  %v3620_v15 = vrot.slane %v3618_v60, 4 }
 0x115   : > { %v8982_v38 = vsel %vm7690_vm7, %v4192_v42, %v4193_v16  ;;  %v8986_v44 = vrot.slane %v3624_v19, 5  ;;  %v8991_v58 = vpop.f32.mrf.mxu0  ;;  %v10250_v16 = vsel %vm7434_vm4, %v8832_v12, %v8764_v54  ;;  %v9010_v42 = vcombine.low %v10252_v59, %v3549_v3  ;;  %v9017_v12 = vld [vmem:[%s7389_s28 + $0x74] sm:$0x1]  ;;  %v9027_v3 = vld [vmem:[%s7389_s28 + $0x7c] sm:$0xf] }
 0x116   : > { %v8962_v18 = vpop.f32.mrf.mxu1  ;;  %v9003_v19 = vcombine.low %v10251_v20, %v10250_v16  ;;  %v9020_v11 = vcombine.low %v3563_v43, %v3573_v2  ;;  %v9022_v22 = vcombine.low %v3583_v61, %v3593_v32  ;;  %v3602_v37 = vrot.slane %v3601_v39, 4  ;;  %v9039_v43 = vld [vmem:[%s7389_s28 + $0x84] sm:$0xf]  ;;  %v7178_v61 = vld [vmem:[%s7389_s28 + $0xbc] sm:$0xff]  }
 0x117   : > { %6931 = vmatmul.mubr.msk.bf16.gmra.mxu1 %vm635_vm3, %v10247_v27  ;;  %v4200_v6 = vrot.slane %v8918_v48, 5  ;;  %v3612_v24 = vrot.slane %v3611_v7, 4  ;;  %v3621_v36 = vor.u32 %v3620_v15, %v8978_v1  ;;  %v6409_v31 = vrot.slane %v6401_v17, 9  ;;  %v9047_v2 = vpop.f32.mrf.mxu0 }
 0x118   : > { %6934 = vmatprep.mubr.msk.bf16.mxu1 %vm635_vm3, %v10248_v52  ;;  %v8989_v25 = vpop.f32.mrf.mxu1  ;;  %v4199_v60 = vrot.slane %v4197_v51, 4  ;;  %v3631_v27 = vor.u32 %v3630_v0, %v8986_v44  ;;  %v4203_v48 = vrot.slane %v8924_v57, 5  ;;  %v10253_v52 = vcombine.low %v8583_v29, %v8587_v40 }
 0x119   : > { %10249 = vst [vmem:[#allocation23_spill] sm:$0xff] %v8989_v25  ;;  %v3639_v39 = vshrl.u32 %v6345_v55, 16  ;;  %v3642_v32 = vshll.u32 %v6345_v55, 16  ;;  %v3648_v7 = vshll.u32 %v9027_v3, 16  ;;  %v3652_v15 = vshrl.u32 %v9027_v3, 16 }
 0x11a   : > { %6969 = vmatmul.mubr.msk.bf16.gmra.mxu0 %vm635_vm3, %v7176_v23  ;;  %v3634_v23 = vshll.u32 %v9017_v12, 16  ;;  %v10255_v57 = vcombine.low %v8597_v35, %v8614_v9  ;;  %v3607_v29 = vsel %vm7434_vm4, %v3602_v37, %v8929_v21  ;;  %v4202_v40 = vrot.slane %v4200_v6, 4 }
 0x11b   : > { %6972 = vmatprep.mubr.msk.bf16.mxu0 %vm635_vm3, %v7177_v30  ;;  %v9045_v30 = vpop.f32.mrf.mxu1  ;;  %v3658_v17 = vshll.u32 %v9033_v5, 16  ;;  %v3662_v0 = vshrl.u32 %v9033_v5, 16  ;;  %v3617_v16 = vsel %vm7434_vm4, %v3612_v24, %v8978_v1  ;;  %v3622_v20 = vrot.slane %v3621_v36, 4 }
 0x11c   : > { %10254 = vst [vmem:[#allocation24_spill] sm:$0xff] %v9045_v30  ;;  %v3668_v59 = vshll.u32 %v9039_v43, 16  ;;  %v3672_v35 = vshrl.u32 %v9039_v43, 16  ;;  %v3632_v9 = vrot.slane %v3631_v27, 4  ;;  %v3636_v55 = vrot.slane %v3634_v23, 5 }
 0x11d   : > { %v4206_v21 = vrot.slane %v9017_v12, 5  ;;  %v9067_v37 = vpop.f32.mrf.mxu1  ;;  %v3641_v10 = vrot.slane %v3639_v39, 4  ;;  %v3644_v1 = vrot.slane %v3642_v32, 5  ;;  %v9072_v24 = vrot.slane %v3648_v7, 5  ;;  %v6350_v39 = vld [vmem:[%s7389_s28 + $0x8c] sm:$0xf] }
 0x11e   : > { %10256 = vst [vmem:[#allocation25_spill] sm:$0xff] %v9067_v37  ;;  %v3654_v36 = vrot.slane %v3652_v15, 4  ;;  %v10257_v27 = vcombine.low %v8733_v56, %v8747_v49  ;;  %v9080_v12 = vsel %vm7690_vm7, %v6409_v31, %v4197_v51  ;;  %v9082_v23 = vrot.slane %v3658_v17, 5  ;;  %v6402_v49 = vld [vmem:[%s7389_s28 + $0x78] sm:$0xe] }
 0x11f   : > { %6935 = vmatmul.mubr.msk.bf16.gmra.mxu1 %vm635_vm3, %v10253_v52  ;;  %v4205_v52 = vrot.slane %v4203_v48, 4  ;;  %v3664_v54 = vrot.slane %v3662_v0, 4  ;;  %v9088_v7 = vcombine.low %v3607_v29, %v3617_v16  ;;  %v9092_v56 = vsel %vm7690_vm7, %v4199_v60, %v4200_v6  ;;  %v9111_v6 = vld [vmem:[%s7389_s28 + $0x88] sm:$0x1] }
 0x120   : > { %6938 = vmatprep.mubr.msk.bf16.mxu1 %vm635_vm3, %v10255_v57  ;;  %v9095_v15 = vrot.slane %v3668_v59, 5  ;;  %v3674_v51 = vrot.slane %v3672_v35, 4  ;;  %v3627_v31 = vsel %vm7434_vm4, %v3622_v20, %v8986_v44  ;;  %v9104_v17 = vsel %vm7690_vm7, %v4202_v40, %v4203_v48  ;;  %v9123_v48 = vld [vmem:[%s7389_s28 + $0x90] sm:$0xf] }
 0x121   : > { %v9069_v57 = vpop.f32.mrf.mxu0  ;;  %v9108_v29 = vsel %vm7690_vm7, %v4205_v52, %v4206_v21  ;;  %v10259_v0 = vcombine.low %v8620_v13, %v8625_v41  ;;  %v3645_v16 = vor.u32 %v3644_v1, %v3641_v10  ;;  %v3655_v20 = vor.u32 %v3654_v36, %v9072_v24 }
 0x122   : > { %6973 = vmatmul.mubr.msk.bf16.gmra.mxu0 %vm635_vm3, %v7178_v61  ;;  %v4210_v61 = vrot.slane %v9027_v3, 5  ;;  %v3637_v3 = vsel %vm7434_vm4, %v3632_v9, %v3636_v55  ;;  %v3683_v40 = vshrl.u32 %v6350_v39, 16  ;;  %v3686_v59 = vshll.u32 %v6350_v39, 16 }
 0x123   : > { %7012 = vmatprep.mubr.msk.bf16.mxu0 %vm635_vm3, %v10257_v27  ;;  %v9086_v32 = vpop.f32.mrf.mxu0  ;;  %v3665_v35 = vor.u32 %v3664_v54, %v9082_v23  ;;  %v6410_v9 = vrot.slane %v6402_v49, 9  ;;  %v4213_v13 = vrot.slane %v9033_v5, 5  ;;  %v3675_v1 = vor.u32 %v3674_v51, %v9095_v15  ;;  %v9143_v27 = vld [vmem:[%s7389_s28 + $0x94] sm:$0xf] }
 0x124   : > { %v4212_v55 = vrot.slane %v4210_v61, 4  ;;  %v9139_v36 = vcombine.low %v3627_v31, %v3637_v3  ;;  %v4216_v54 = vrot.slane %v9039_v43, 5  ;;  %v3692_v5 = vshll.u32 %v9123_v48, 16 }
 0x125   : > { %v9113_v60 = vpop.f32.mrf.mxu1  ;;  %v9119_v44 = vpop.f32.mrf.mxu0  ;;  %v3696_v39 = vshrl.u32 %v9123_v48, 16  ;;  %v10262_v21 = vcombine.low %v8777_v26, %v8789_v14  ;;  %v3646_v51 = vrot.slane %v3645_v16, 4  ;;  %v3656_v31 = vrot.slane %v3655_v20, 4  ;;  %v10297_v33 = vld [vmem:[#allocation25_spill] sm:$0xff] }
 0x126   : > { %10258 = vst [vmem:[#allocation26_spill] sm:$0xff] %v9113_v60  ;;  %v3685_v3 = vrot.slane %v3683_v40, 4  ;;  %v3688_v10 = vrot.slane %v3686_v59, 5  ;;  %v10263_v43 = vcombine.low %v8836_v62, %v8840_v47  ;;  %v3666_v34 = vrot.slane %v3665_v35, 4  ;;  %v9170_v47 = vld [vmem:[%s7389_s28 + $0x98] sm:$0xf] }
 0x127   : > { %6939 = vmatmul.mubr.msk.bf16.gmra.mxu1 %vm635_vm3, %v10259_v0  ;;  %v9129_v41 = vpop.f32.mrf.mxu1  ;;  %v9131_v52 = vpop.f32.mrf.mxu0  ;;  %v9163_v26 = vsel %vm7690_vm7, %v4212_v55, %v4213_v13  ;;  %v4215_v14 = vrot.slane %v4213_v13, 4  ;;  %v3676_v20 = vrot.slane %v3675_v1, 4  ;;  %v3702_v59 = vshll.u32 %v9143_v27, 16  ;;  %v10265_v13 = vld [vmem:[#allocation14_spill] sm:$0xff] }
 0x128   : > { %6978 = vmatprep.mubr.msk.bf16.mxu1 %vm635_vm3, %v8773_v53  ;;  %10260 = vst [vmem:[#allocation27_spill] sm:$0xff] %v9129_v41  ;;  %v3678_v53 = vshll.u32 %v9111_v6, 16  ;;  %v3706_v62 = vshrl.u32 %v9143_v27, 16  ;;  %v4218_v35 = vrot.slane %v4216_v54, 4  ;;  %v3698_v55 = vrot.slane %v3696_v39, 4 }
 0x129   : > { %v9147_v49 = vpop.f32.mrf.mxu1  ;;  %v6810_v0 = vpop.f32.mrf.mxu0  ;;  %v3651_v1 = vsel %vm7434_vm4, %v3646_v51, %v9072_v24  ;;  %v3671_v39 = vsel %vm7434_vm4, %v3666_v34, %v9095_v15  ;;  %v3712_v24 = vshll.u32 %v9170_v47, 16  ;;  %v3716_v51 = vshrl.u32 %v9170_v47, 16  ;;  %v10267_v34 = vld [vmem:[#allocation8_spill] sm:$0xff] }
 0x12a   : > { %10261 = vst [vmem:[#allocation28_spill] sm:$0xff] %v9147_v49  ;;  %7013 = vmatmul.mubr.msk.bf16.vlgmr.msra.gmra.mxu0 %vm635_vm3, %v10262_v21  ;;  %v9159_v49 = vsel %vm7690_vm7, %v6410_v9, %v4210_v61  ;;  %v3680_v40 = vrot.slane %v3678_v53, 5  ;;  %v4219_v61 = vrot.slane %v9111_v6, 5  ;;  %v9173_v9 = vrot.slane %v3692_v5, 5  ;;  %v10266_v5 = vld [vmem:[#allocation7_spill] sm:$0xff] }
 0x12b   : > { %7016 = vmatprep.mubr.msk.bf16.mxu0 %vm635_vm3, %v10263_v43  ;;  %v9165_v21 = vpop.f32.mrf.mxu1  ;;  %v1407_v16 = vpop.f32.mrf.mxu0  ;;  %v3661_v53 = vsel %vm7434_vm4, %v3656_v31, %v9082_v23  ;;  %v3689_v6 = vor.u32 %v3688_v10, %v3685_v3  ;;  %v9198_v31 = vsel %vm7690_vm7, %v4215_v14, %v4216_v54  ;;  %v3708_v3 = vrot.slane %v3706_v62, 4 }
 0x12c   : > { %10264 = vst [vmem:[#allocation29_spill] sm:$0xff] %v9165_v21  ;;  %v3681_v10 = vsel %vm7434_vm4, %v3676_v20, %v3680_v40  ;;  %v3699_v41 = vor.u32 %v3698_v55, %v9173_v9  ;;  %v10268_v20 = vcombine.low %v8908_v8, %v8945_v45  ;;  %v10271_v8 = vcombine.low %v8952_v46, %v8956_v63 }
 0x12d   : > { %v6811_v21 = vpop.f32.mrf.mxu0  ;;  %v9214_v54 = vrot.slane %v3689_v6, 4  ;;  %v9228_v45 = vrot.slane %v3712_v24, 5  ;;  %v9230_v55 = vcombine.low %v3651_v1, %v3661_v53  ;;  %v9232_v6 = vcombine.low %v3671_v39, %v3681_v10 }
 0x12e   : > { %v6776_v43 = vpop.f32.mrf.mxu1  ;;  %v9240_v63 = vrot.slane %v3699_v41, 4  ;;  %v4229_v10 = vrot.slane %v9170_v47, 5 }
 0x12f   : > { %6979 = vmatmul.mubr.msk.bf16.vlgmr.msra.gmra.mxu1 %vm635_vm3, %v10265_v13  ;;  %v1023_v60 = vadd.f32 %v6776_v43, %v10266_v5  ;;  %v6403_v13 = vld [vmem:[%s7389_s28 + $0x8c] sm:$0xe]  ;;  %v1410_v23 = vpop.f32.mrf.mxu0  ;;  %v9207_v5 = vsel %vm7690_vm7, %v4218_v35, %v4219_v61  ;;  %v3718_v35 = vrot.slane %v3716_v51, 4  ;;  %v6355_v51 = vld [vmem:[%s7389_s28 + $0xa0] sm:$0xf] }
 0x130   : > { %6982 = vmatprep.mubr.msk.bf16.mxu1 %vm635_vm3, %v9003_v19  ;;  %v1014_v37 = vpop.f32.mrf.mxu1  ;;  %v9200_v19 = vrot.slane %v3702_v59, 5  ;;  %v6411_v14 = vrot.slane %v6403_v13, 9  ;;  %v10270_v59 = vld [vmem:[#allocation5_spill] sm:$0xff]  ;;  %v3730_v47 = vshll.u32 %v6355_v51, 16 }
 0x131   : > { %v9202_v43 = vadd.f32 %v6810_v0, %v1023_v60  ;;  %v1015_v15 = vadd.f32 %v1014_v37, %v10267_v34  ;;  %v6814_v25 = vpop.f32.mrf.mxu0  ;;  %v4223_v60 = vrot.slane %v9123_v48, 5  ;;  %v10190_v37 = vrot.slane %v9143_v27, 5  ;;  %v9219_v0 = vld [vmem:[%s7389_s28 + $0x9c] sm:$0x1]  ;;  %v10273_v34 = vld [vmem:[#allocation10_spill] sm:$0xff] }
 0x132   : > { %v6777_v30 = vpop.f32.mrf.mxu1  ;;  %7017 = vmatmul.mubr.msk.bf16.gmra.mxu0 %vm635_vm3, %v10268_v20  ;;  %v3709_v13 = vor.u32 %v3708_v3, %v9200_v19  ;;  %v3722_v24 = vshll.u32 %v9219_v0, 16  ;;  %v10275_v20 = vld [vmem:[#allocation12_spill] sm:$0xff] }
 0x133   : > { %v9221_v40 = vadd.f32 %v1407_v16, %v1015_v15  ;;  %v1026_v62 = vadd.f32 %v6777_v30, %v10270_v59  ;;  %7020 = vmatprep.mubr.msk.bf16.mxu0 %vm635_vm3, %v10271_v8  ;;  %v1423_v48 = vpop.f32.mrf.mxu0  ;;  %v9245_v15 = vld [vmem:[%s7389_s28 + $0xa4] sm:$0xf]  ;;  %v9251_v39 = vsel %vm7690_vm7, %v6411_v14, %v4223_v60  ;;  %v4228_v41 = vrot.slane %v10190_v37, 4 }
 0x134   : > { %v1017_v61 = vpop.f32.mrf.mxu1  ;;  %v3719_v14 = vor.u32 %v3718_v35, %v9228_v45  ;;  %v10278_v16 = vcombine.low %v8973_v50, %v8982_v38  ;;  %v4232_v37 = vrot.slane %v9219_v0, 5  ;;  %v3724_v38 = vrot.slane %v3722_v24, 5  ;;  %v6404_v24 = vld [vmem:[%s7389_s28 + $0xa0] sm:$0xe] }
 0x135   : > { %10269 = vst [vmem:[#allocation14_spill] sm:$0xff] %v9221_v40  ;;  %v9237_v30 = vadd.f32 %v6811_v21, %v1026_v62  ;;  %v1018_v46 = vadd.f32 %v1017_v61, %v10273_v34  ;;  %v6815_v53 = vpop.f32.mrf.mxu0  ;;  %v4225_v21 = vrot.slane %v4223_v60, 4  ;;  %v9267_v60 = vld [vmem:[%s7389_s28 + $0xa8] sm:$0xf]  ;;  %v3727_v61 = vshrl.u32 %v6355_v51, 16 }
 0x136   : > { %v6780_v1 = vpop.f32.mrf.mxu1  ;;  %v3740_v34 = vshrl.u32 %v9245_v15, 16  ;;  %v4231_v51 = vrot.slane %v4229_v10, 4  ;;  %v3720_v50 = vrot.slane %v3719_v14, 4  ;;  %v3732_v0 = vrot.slane %v3730_v47, 5 }
 0x137   : > { %10272 = vst [vmem:[#allocation7_spill] sm:$0xff] %v9237_v30  ;;  %6983 = vmatmul.mubr.msk.bf16.gmra.mxu1 %vm635_vm3, %v9010_v42  ;;  %v9256_v3 = vadd.f32 %v1410_v23, %v1018_v46  ;;  %v1039_v59 = vadd.f32 %v6780_v1, %v10275_v20  ;;  %v3695_v42 = vsel %vm7434_vm4, %v9214_v54, %v9173_v9  ;;  %v1426_v8 = vpop.f32.mrf.mxu0  ;;  %v3736_v23 = vshll.u32 %v9245_v15, 16 }
 0x138   : > { %6986 = vmatprep.mubr.msk.bf16.mxu1 %vm635_vm3, %v9020_v11  ;;  %v1030_v62 = vpop.f32.mrf.mxu1  ;;  %v10277_v11 = vld [vmem:[#allocation15_spill] sm:$0xff]  ;;  %v3705_v9 = vsel %vm7434_vm4, %v9240_v63, %v9200_v19  ;;  %v3710_v54 = vrot.slane %v3709_v13, 4  ;;  %v10280_v13 = vcombine.low %v9080_v12, %v9092_v56  ;;  %v3742_v30 = vrot.slane %v3740_v34, 4 }
 0x139   : > { %10274 = vst [vmem:[#allocation8_spill] sm:$0xff] %v9256_v3  ;;  %v9271_v46 = vadd.f32 %v6814_v25, %v1039_v59  ;;  %v1031_v1 = vadd.f32 %v1030_v62, %v10277_v11  ;;  %v6818_v20 = vpop.f32.mrf.mxu0  ;;  %v3746_v25 = vshll.u32 %v9267_v60, 16  ;;  %v3750_v59 = vshrl.u32 %v9267_v60, 16  ;;  %v10279_v11 = vld [vmem:[#allocation17_spill] sm:$0xff] }
 0x13a   : > { %v6781_v35 = vpop.f32.mrf.mxu1  ;;  %7021 = vmatmul.mubr.msk.bf16.gmra.mxu0 %vm635_vm3, %v10278_v16  ;;  %v9292_v3 = vrot.slane %v3736_v23, 5  ;;  %v3715_v56 = vsel %vm7434_vm4, %v3710_v54, %v9228_v45  ;;  %v10283_v45 = vld [vmem:[#allocation21_spill] sm:$0xff] }
 0x13b   : > { %10276 = vst [vmem:[#allocation5_spill] sm:$0xff] %v9271_v46  ;;  %v9285_v62 = vadd.f32 %v1423_v48, %v1031_v1  ;;  %v1042_v19 = vadd.f32 %v6781_v35, %v10279_v11  ;;  %7024 = vmatprep.mubr.msk.bf16.mxu0 %vm635_vm3, %v10280_v13  ;;  %v1439_v63 = vpop.f32.mrf.mxu0  ;;  %v3729_v46 = vrot.slane %v3727_v61, 4  ;;  %v10281_v48 = vld [vmem:[#allocation19_spill] sm:$0xff]  ;;  %v10282_v35 = vrot.slane %v9143_v27, 5 }
 0x13c   : > { %v1033_v16 = vpop.f32.mrf.mxu1  ;;  %v9311_v61 = vsel %vm7690_vm7, %v4228_v41, %v4229_v10  ;;  %v9315_v27 = vsel %vm7690_vm7, %v4231_v51, %v4232_v37  ;;  %v3752_v47 = vrot.slane %v3750_v59, 4  ;;  %v4236_v41 = vrot.slane %v9245_v15, 5  ;;  %v9328_v10 = vld [vmem:[%s7389_s28 + $0xac] sm:$0xf] }
 0x13d   : > { %v9294_v40 = vadd.f32 %v6815_v53, %v1042_v19  ;;  %v1034_v1 = vadd.f32 %v1033_v16, %v10281_v48  ;;  %v9301_v12 = vsel %vm7690_vm7, %v4225_v21, %v10282_v35  ;;  %v6819_v53 = vpop.f32.mrf.mxu0  ;;  %v9317_v21 = vrot.slane %v3746_v25, 5  ;;  %v9359_v16 = vld [vmem:[%s7389_s28 + $0xb8] sm:$0xf] }
 0x13e   : > { %v6784_v14 = vpop.f32.mrf.mxu1  ;;  %v3733_v51 = vor.u32 %v3732_v0, %v3729_v46  ;;  %v3743_v25 = vor.u32 %v3742_v30, %v9292_v3  ;;  %v4239_v59 = vrot.slane %v9267_v60, 5  ;;  %v9335_v19 = vcombine.low %v3695_v42, %v3705_v9  ;;  %v6360_v9 = vld [vmem:[%s7389_s28 + $0xb4] sm:$0xf] }
 0x13f   : > { %6987 = vmatmul.mubr.msk.bf16.gmra.mxu1 %vm635_vm3, %v9022_v22  ;;  %v9319_v23 = vadd.f32 %v1426_v8, %v1034_v1  ;;  %v1055_v34 = vadd.f32 %v6784_v14, %v10283_v45  ;;  %v3725_v22 = vsel %vm7434_vm4, %v3720_v50, %v3724_v38  ;;  %v1442_v37 = vpop.f32.mrf.mxu0  ;;  %v6412_v8 = vrot.slane %v6404_v24, 9 }
 0x140   : > { %6990 = vmatprep.mubr.msk.bf16.mxu1 %vm635_vm3, %v9088_v7  ;;  %v1046_v54 = vpop.f32.mrf.mxu1  ;;  %v6425_v15 = vcombine.low %v9251_v39, %v9301_v12  ;;  %v10284_v46 = vcombine.low %v9104_v17, %v9108_v29  ;;  %v9343_v30 = vcombine.low %v3715_v56, %v3725_v22  ;;  %v6426_v60 = vcombine.low %v9311_v61, %v9315_v27 }
 0x141   : > { %v9332_v11 = vadd.f32 %v6818_v20, %v1055_v34  ;;  %v1047_v7 = vadd.f32 %v1046_v54, %v8941_v28  ;;  %v6822_v50 = vpop.f32.mrf.mxu0  ;;  %v3753_v28 = vor.u32 %v3752_v47, %v9317_v21  ;;  %v3756_v42 = vshll.u32 %v9328_v10, 16 }
 0x142   : > { %v6785_v13 = vpop.f32.mrf.mxu1  ;;  %7025 = vmatmul.mubr.msk.bf16.gmra.mxu0 %vm635_vm3, %v10284_v46  ;;  %v10285_v17 = vcombine.low %v9159_v49, %v9163_v26  ;;  %v4238_v29 = vrot.slane %v4236_v41, 4  ;;  %v3760_v38 = vshrl.u32 %v9328_v10, 16  ;;  %v3734_v1 = vrot.slane %v3733_v51, 4  ;;  %v9371_v26 = vld [vmem:[%s7389_s28 + $0xb0] sm:$0x1] }
 0x143   : > { %v9350_v20 = vadd.f32 %v1439_v63, %v1047_v7  ;;  %v1058_v39 = vadd.f32 %v6785_v13, %v8991_v58  ;;  %v1455_v48 = vpop.f32.mrf.mxu0  ;;  %v3744_v35 = vrot.slane %v3743_v25, 4  ;;  %v9363_v63 = vsel %vm7690_vm7, %v6412_v8, %v4236_v41  ;;  %v9402_v13 = vld [vmem:[%s7389_s28 + $0xbc] sm:$0xf] }
 0x144   : > { %7028 = vmatprep.mubr.msk.bf16.mxu0 %vm635_vm3, %v10285_v17  ;;  %v1049_v0 = vpop.f32.mrf.mxu1  ;;  %v9365_v12 = vrot.slane %v4239_v59, 4  ;;  %v3771_v56 = vshrl.u32 %v6360_v9, 16  ;;  %v3774_v24 = vshll.u32 %v6360_v9, 16  ;;  %v9375_v45 = vrot.slane %v3753_v28, 4 }
 0x145   : > { %v9367_v58 = vadd.f32 %v6819_v53, %v1058_v39  ;;  %v1050_v49 = vadd.f32 %v1049_v0, %v9047_v2  ;;  %v6823_v47 = vpop.f32.mrf.mxu0  ;;  %v9377_v34 = vrot.slane %v3756_v42, 5  ;;  %v3780_v22 = vshll.u32 %v9359_v16, 16  ;;  %v6405_v39 = vld [vmem:[%s7389_s28 + $0xb4] sm:$0xe] }
 0x146   : > { %v6788_v14 = vpop.f32.mrf.mxu1  ;;  %v3784_v53 = vshrl.u32 %v9359_v16, 16  ;;  %v3762_v54 = vrot.slane %v3760_v38, 4  ;;  %v3739_v8 = vsel %vm7434_vm4, %v3734_v1, %v9292_v3  ;;  %v3773_v46 = vrot.slane %v3771_v56, 4 }
 0x147   : > { %6991 = vmatmul.mubr.msk.bf16.gmra.mxu1 %vm635_vm3, %v9139_v36  ;;  %v9381_v41 = vadd.f32 %v1442_v37, %v1050_v49  ;;  %v1071_v2 = vadd.f32 %v6788_v14, %v9069_v57  ;;  %v9388_v36 = vsel %vm7690_vm7, %v4238_v29, %v4239_v59  ;;  %v1458_v25 = vpop.f32.mrf.mxu0  ;;  %v3749_v37 = vsel %vm7434_vm4, %v3744_v35, %v9317_v21 }
 0x148   : > { %6994 = vmatprep.mubr.msk.bf16.mxu1 %vm635_vm3, %v9230_v55  ;;  %v1062_v51 = vpop.f32.mrf.mxu1  ;;  %v3766_v57 = vshll.u32 %v9371_v26, 16  ;;  %v4242_v55 = vrot.slane %v9328_v10, 5  ;;  %v3776_v28 = vrot.slane %v3774_v24, 5  ;;  %v10286_v3 = vcombine.low %v9198_v31, %v9207_v5  ;;  %v9422_v5 = vld [vmem:[%s7389_s28 + $0xc0] sm:$0xf] }
 0x149   : > { %v9398_v7 = vadd.f32 %v6822_v50, %v1071_v2  ;;  %v1063_v59 = vadd.f32 %v1062_v51, %v9086_v32  ;;  %v6826_v9 = vpop.f32.mrf.mxu0  ;;  %v6427_v21 = vcombine.low %v9363_v63, %v9388_v36  ;;  %v9410_v10 = vrot.slane %v3780_v22, 5 }
 0x14a   : > { %v6789_v42 = vpop.f32.mrf.mxu1  ;;  %7029 = vmatmul.mubr.msk.bf16.gmra.mxu0 %vm635_vm3, %v10286_v3  ;;  %v3786_v50 = vrot.slane %v3784_v53, 4  ;;  %v4249_v32 = vrot.slane %v9359_v16, 5  ;;  %v9418_v38 = vcombine.low %v3739_v8, %v3749_v37  ;;  %v3763_v31 = vor.u32 %v3762_v54, %v9377_v34 }
 0x14b   : > { %v9414_v17 = vadd.f32 %v1455_v48, %v1063_v59  ;;  %v1074_v29 = vadd.f32 %v6789_v42, %v9119_v44  ;;  %7032 = vmatprep.mubr.msk.bf16.mxu0 %vm635_vm3, %v6425_v15  ;;  %v1471_v1 = vpop.f32.mrf.mxu0  ;;  %v4244_v35 = vrot.slane %v4242_v55, 4  ;;  %v4245_v63 = vrot.slane %v9371_v26, 5 }
 0x14c   : > { %v1065_v0 = vpop.f32.mrf.mxu1  ;;  %v3790_v49 = vshll.u32 %v9402_v13, 16  ;;  %v3794_v16 = vshrl.u32 %v9402_v13, 16  ;;  %v3777_v15 = vor.u32 %v3776_v28, %v3773_v46  ;;  %v6413_v56 = vrot.slane %v6405_v39, 9  ;;  %v10288_v28 = vld [vmem:[#allocation6_spill] sm:$0xff] }
 0x14d   : > { %v9427_v48 = vadd.f32 %v6823_v47, %v1074_v29  ;;  %v1066_v44 = vadd.f32 %v1065_v0, %v9131_v52  ;;  %v6827_v14 = vpop.f32.mrf.mxu0  ;;  %v3787_v22 = vor.u32 %v3786_v50, %v9410_v10  ;;  %v4251_v53 = vrot.slane %v4249_v32, 4  ;;  %v10287_v47 = vld [vmem:[#allocation9_spill] sm:$0xff] }
 0x14e   : > { %v6792_v24 = vpop.f32.mrf.mxu1  ;;  %v4252_v26 = vrot.slane %v9402_v13, 5  ;;  %v3800_v2 = vshll.u32 %v9422_v5, 16  ;;  %v3768_v52 = vrot.slane %v3766_v57, 5  ;;  %v3804_v51 = vshrl.u32 %v9422_v5, 16 }
 0x14f   : > { %6995 = vmatmul.mubr.msk.bf16.gmra.mxu1 %vm635_vm3, %v9232_v6  ;;  %v9435_v36 = vadd.f32 %v1458_v25, %v1066_v44  ;;  %v1087_v54 = vadd.f32 %v6792_v24, %v10287_v47  ;;  %v1474_v6 = vpop.f32.mrf.mxu0  ;;  %v3764_v37 = vrot.slane %v3763_v31, 4  ;;  %v4243_v59 = vsel %vm7690_vm7, %v9365_v12, %v4242_v55  ;;  %v10289_v31 = vld [vmem:[#allocation11_spill] sm:$0xff]  ;;  %v10291_v47 = vld [vmem:[#allocation16_spill] sm:$0xff] }
 0x150   : > { %6998 = vmatprep.mubr.msk.bf16.mxu1 %vm635_vm3, %v9335_v19  ;;  %v1078_v8 = vpop.f32.mrf.mxu1  ;;  %v3792_v13 = vrot.slane %v3790_v49, 5  ;;  %v3796_v46 = vrot.slane %v3794_v16, 4  ;;  %v4246_v19 = vsel %vm7690_vm7, %v4244_v35, %v4245_v63  ;;  %v3778_v57 = vrot.slane %v3777_v15, 4  ;;  %v6364_v35 = vld [vmem:[%s7389_s28 + $0xc4] sm:$0x1]  ;;  %s7275_s28 = smov [#allocation2]  }
 0x151   : > { %v9444_v25 = vadd.f32 %v6826_v9, %v1087_v54  ;;  %v1079_v42 = vadd.f32 %v1078_v8, %v10288_v28  ;;  %v6830_v50 = vpop.f32.mrf.mxu0  ;;  %v3788_v39 = vrot.slane %v3787_v22, 4  ;;  %v4250_v12 = vsel %vm7690_vm7, %v6413_v56, %v4249_v32  ;;  %v10290_v15 = vld [vmem:[#allocation13_spill] sm:$0xff]  ;;  %v10292_v8 = vld [vmem:[#allocation18_spill] sm:$0xff]  ;;  %s7184_s4 = sshll.u32 %s7275_s28, 4  ;;  %s7185_s4 = int_to_ptr.vmem [resolvable:$false] %s7184_s4 }
 0x152   : > { %v6793_v3 = vpop.f32.mrf.mxu1  ;;  %7033 = vmatmul.mubr.msk.bf16.gmra.mxu0 %vm635_vm3, %v6426_v60  ;;  %v4253_v55 = vsel %vm7690_vm7, %v4251_v53, %v4252_v26  ;;  %v9457_v9 = vrot.slane %v3800_v2, 5  ;;  %v3806_v63 = vrot.slane %v3804_v51, 4  ;;  %v4255_v61 = vrot.slane %v9422_v5, 5  ;;  %s7186_s6 = scalar_lea.vmem %s7185_s4, 1024  ;;  %p7187_p2 = scmp.lt.s32.totalorder %s10120_s10, %s7185_s4 }
 0x153   : > { %v9459_v29 = vadd.f32 %v1471_v1, %v1079_v42  ;;  %v1090_v0 = vadd.f32 %v6793_v3, %v10289_v31  ;;  %7036 = vmatprep.mubr.msk.bf16.mxu0 %vm635_vm3, %v6427_v21  ;;  %v1487_v60 = vpop.f32.mrf.mxu0  ;;  %v3759_v32 = vsel %vm7434_vm4, %v9375_v45, %v9377_v34  ;;  %v3769_v49 = vsel %vm7434_vm4, %v3764_v37, %v3768_v52  ;;  %p7188_p4 = scmp.lt.s32.totalorder %s7186_s6, %s7180_s27 }
 0x154   : > { %v1081_v27 = vpop.f32.mrf.mxu1  ;;  %v6428_v1 = vcombine.low %v4243_v59, %v4246_v19  ;;  %v3797_v16 = vor.u32 %v3796_v46, %v3792_v13  ;;  %v3783_v5 = vsel %vm7434_vm4, %v3778_v57, %v9410_v10  ;;  %v4254_v56 = vrot.slane %v4252_v26, 4  ;;  %v10293_v57 = vld [vmem:[#allocation20_spill] sm:$0xff] }
 0x155   : > { %v9471_v44 = vadd.f32 %v6827_v14, %v1090_v0  ;;  %v1082_v21 = vadd.f32 %v1081_v27, %v10290_v15  ;;  %v6831_v22 = vpop.f32.mrf.mxu0  ;;  %v3793_v45 = vsel %vm7434_vm4, %v3788_v39, %v3792_v13  ;;  %v6429_v34 = vcombine.low %v4250_v12, %v4253_v55  ;;  %v10294_v0 = vld [vmem:[#allocation22_spill] sm:$0xff]  ;;  %p7189_p5 = por %p7188_p4, %p7187_p2 }
 0x156   : > { %v6796_v24 = vpop.f32.mrf.mxu1  ;;  %v3810_v53 = vshll.u32 %v6364_v35, 16  ;;  %v4258_v2 = vrot.slane %v6364_v35, 5  ;;  %v3807_v10 = vor.u32 %v3806_v63, %v9457_v9  ;;  %v4257_v26 = vrot.slane %v4255_v61, 4 }
 0x157   : > { %6999 = vmatmul.mubr.msk.bf16.gmra.mxu1 %vm635_vm3, %v9343_v30  ;;  %v9481_v14 = vadd.f32 %v1474_v6, %v1082_v21  ;;  %v1103_v54 = vadd.f32 %v6796_v24, %v10291_v47  ;;  %v1490_v51 = vpop.f32.mrf.mxu0  ;;  %v6379_v59 = vcombine.low %v3759_v32, %v3769_v49  ;;  %v3798_v6 = vrot.slane %v3797_v16, 4  ;;  %v10295_v21 = vld [vmem:[#allocation23_spill] sm:$0xff]  ;;  %p7190_p6 = pnand %p7189_p5, %p7183_p1 }
 0x158   : > { %7002 = vmatprep.mubr.msk.bf16.mxu1 %vm635_vm3, %v9418_v38  ;;  %v1094_v52 = vpop.f32.mrf.mxu1  ;;  %v6380_v28 = vcombine.low %v3783_v5, %v3793_v45  ;;  %v3812_v42 = vrot.slane %v3810_v53, 5  ;;  %v4256_v38 = vsel %vm7690_vm7, %v4254_v56, %v4255_v61  ;;  %v4259_v39 = vsel %vm7690_vm7, %v4257_v26, %v4258_v2  ;;  %v10296_v45 = vld [vmem:[#allocation24_spill] sm:$0xff] }
 0x159   : > { %v9487_v30 = vadd.f32 %v6830_v50, %v1103_v54  ;;  %v1095_v37 = vadd.f32 %v1094_v52, %v10292_v8  ;;  %v6834_v46 = vpop.f32.mrf.mxu0  ;;  %v3808_v50 = vrot.slane %v3807_v10, 4  ;;  %v6430_v27 = vcombine.low %v4256_v38, %v4259_v39  ;;  %v10298_v52 = vld [vmem:[#allocation26_spill] sm:$0xff]  ;;  %v10300_v38 = vld [vmem:[#allocation28_spill] sm:$0xff] }
 0x15a   : > { %v6797_v13 = vpop.f32.mrf.mxu1  ;;  %7037 = vmatmul.mubr.msk.bf16.gmra.mxu0 %vm635_vm3, %v6428_v1  ;;  %v3803_v4 = vsel %vm7434_vm4, %v3798_v6, %v9457_v9 }
 0x15b   : > { %v9493_v19 = vadd.f32 %v1487_v60, %v1095_v37  ;;  %v1106_v3 = vadd.f32 %v6797_v13, %v10293_v57  ;;  %7040 = vmatprep.mubr.msk.bf16.mxu0 %vm635_vm3, %v6429_v34  ;;  %v1503_v55 = vpop.f32.mrf.mxu0  ;;  %v3813_v49 = vsel %vm7434_vm4, %v3808_v50, %v3812_v42  ;;  %v10299_v13 = vld [vmem:[#allocation27_spill] sm:$0xff] }
 0x15c   : > { %v1097_v12 = vpop.f32.mrf.mxu1 }
 0x15d   : > { %v9499_v31 = vadd.f32 %v6831_v22, %v1106_v3  ;;  %v1098_v35 = vadd.f32 %v1097_v12, %v10294_v0  ;;  %v6835_v61 = vpop.f32.mrf.mxu0  ;;  %v6381_v22 = vcombine.low %v3803_v4, %v3813_v49  ;;  %v10301_v12 = vld [vmem:[#allocation29_spill] sm:$0xff]  ;;  %v10302_v49 = vld [vmem:[#allocation14_spill] sm:$0xff] }
 0x15e   : > { %v6800_v63 = vpop.f32.mrf.mxu1 }
 0x15f   : > { %7003 = vmatmul.mubr.msk.bf16.gmra.mxu1 %vm635_vm3, %v6379_v59  ;;  %v9503_v60 = vadd.f32 %v1490_v51, %v1098_v35  ;;  %v1119_v32 = vadd.f32 %v6800_v63, %v8962_v18  ;;  %v1506_v16 = vpop.f32.mrf.mxu0 }
 0x160   : > { %7006 = vmatprep.mubr.msk.bf16.mxu1 %vm635_vm3, %v6380_v28  ;;  %v1110_v1 = vpop.f32.mrf.mxu1 }
 0x161   : > { %v9512_v15 = vadd.f32 %v6834_v46, %v1119_v32  ;;  %v1111_v5 = vadd.f32 %v1110_v1, %v10295_v21 }
 0x162   : > { %v6801_v56 = vpop.f32.mrf.mxu1  ;;  %v6838_v24 = vpop.f32.mrf.mxu0  ;;  %7041 = vmatmul.mubr.msk.bf16.gmra.mxu0 %vm635_vm3, %v6430_v27 }
 0x163   : > { %v9516_v18 = vadd.f32 %v1503_v55, %v1111_v5  ;;  %v1122_v34 = vadd.f32 %v6801_v56, %v10296_v45  ;;  %v10303_v56 = vld [vmem:[#allocation7_spill] sm:$0xff] }
 0x164   : > { %v1113_v53 = vpop.f32.mrf.mxu1  ;;  %v1519_v9 = vpop.f32.mrf.mxu0 }
 0x165   : > { %v9519_v2 = vadd.f32 %v6835_v61, %v1122_v34  ;;  %v1114_v47 = vadd.f32 %v1113_v53, %v10297_v33  ;;  %v10304_v53 = vld [vmem:[#allocation8_spill] sm:$0xff] }
 0x166   : > { %v6839_v10 = vpop.f32.mrf.mxu0 }
 0x167   : > { %v6804_v54 = vpop.f32.mrf.mxu1  ;;  %7007 = vmatmul.mubr.msk.bf16.gmra.mxu1 %vm635_vm3, %v6381_v22  ;;  %v9523_v26 = vadd.f32 %v1506_v16, %v1114_v47 }
 0x168   : > { %v1135_v51 = vadd.f32 %v6804_v54, %v10298_v52  ;;  %v1522_v37 = vpop.f32.mrf.mxu0  ;;  %v10305_v54 = vld [vmem:[#allocation5_spill] sm:$0xff] }
 0x169   : > { %v1126_v8 = vpop.f32.mrf.mxu1 }
 0x16a   : > { %v9526_v59 = vadd.f32 %v6838_v24, %v1135_v51  ;;  %v1127_v46 = vadd.f32 %v1126_v8, %v10299_v13  ;;  %v6878_v28 = vpop.f32.mrf.mxu0 }
 0x16b   : > { %v6805_v6 = vpop.f32.mrf.mxu1 }
 0x16c   : > { %v9529_v42 = vadd.f32 %v1519_v9, %v1127_v46  ;;  %v1138_v57 = vadd.f32 %v6805_v6, %v10300_v38  ;;  %v2455_v50 = vpop.f32.mrf.mxu0 }
 0x16d   : > { %v1129_v3 = vpop.f32.mrf.mxu1 }
 0x16e   : > { %v9532_v39 = vadd.f32 %v6839_v10, %v1138_v57  ;;  %v1130_v55 = vadd.f32 %v1129_v3, %v10301_v12  ;;  %v6879_v35 = vpop.f32.mrf.mxu0 }
 0x16f   : > { %v6844_v0 = vpop.f32.mrf.mxu1 }
 0x170   : > { %v9535_v63 = vadd.f32 %v1522_v37, %v1130_v55  ;;  %v1898_v61 = vadd.f32 %v6844_v0, %v9202_v43  ;;  %v2458_v32 = vpop.f32.mrf.mxu0 }
 0x171   : > { %v1769_v27 = vpop.f32.mrf.mxu1 }
 0x172   : > { %v9538_v4 = vadd.f32 %v6878_v28, %v1898_v61  ;;  %v1896_v1 = vadd.f32 %v1769_v27, %v10302_v49  ;;  %v6882_v21 = vpop.f32.mrf.mxu0 }
 0x173   : > { %v6845_v16 = vpop.f32.mrf.mxu1 }
 0x174   : > { %v9541_v5 = vadd.f32 %v2455_v50, %v1896_v1  ;;  %v1899_v24 = vadd.f32 %v6845_v16, %v10303_v56  ;;  %v2471_v45 = vpop.f32.mrf.mxu0 }
 0x175   : > { %v1772_v22 = vpop.f32.mrf.mxu1 }
 0x176   : > { %v9544_v34 = vadd.f32 %v6879_v35, %v1899_v24  ;;  %v1897_v9 = vadd.f32 %v1772_v22, %v10304_v53  ;;  %v6883_v43 = vpop.f32.mrf.mxu0 }
 0x177   : > { %v6848_v33 = vpop.f32.mrf.mxu1 }
 0x178   : > { %v9547_v47 = vadd.f32 %v2458_v32, %v1897_v9  ;;  %v1902_v10 = vadd.f32 %v6848_v33, %v10305_v54  ;;  %v2474_v51 = vpop.f32.mrf.mxu0 }
 0x179   : > { %v1785_v52 = vpop.f32.mrf.mxu1 }
 0x17a   : > { %v9550_v8 = vadd.f32 %v6882_v21, %v1902_v10  ;;  %v1900_v37 = vadd.f32 %v1785_v52, %v9285_v62  ;;  %v6886_v46 = vpop.f32.mrf.mxu0 }
 0x17b   : > { %v6849_v13 = vpop.f32.mrf.mxu1 }
 0x17c   : > { %v9553_v6 = vadd.f32 %v2471_v45, %v1900_v37  ;;  %v1903_v28 = vadd.f32 %v6849_v13, %v9294_v40  ;;  %v2487_v57 = vpop.f32.mrf.mxu0 }
 0x17d   : > { %v1788_v38 = vpop.f32.mrf.mxu1 }
 0x17e   : > { %v9556_v3 = vadd.f32 %v6883_v43, %v1903_v28  ;;  %v1901_v50 = vadd.f32 %v1788_v38, %v9319_v23  ;;  %v6887_v55 = vpop.f32.mrf.mxu0 }
 0x17f   : > { %v6852_v12 = vpop.f32.mrf.mxu1 }
 0x180   : > { %v9559_v0 = vadd.f32 %v2474_v51, %v1901_v50  ;;  %v1906_v35 = vadd.f32 %v6852_v12, %v9332_v11  ;;  %v2490_v62 = vpop.f32.mrf.mxu0 }
 0x181   : > { %v1801_v61 = vpop.f32.mrf.mxu1 }
 0x182   : > { %v9562_v27 = vadd.f32 %v6886_v46, %v1906_v35  ;;  %v1904_v32 = vadd.f32 %v1801_v61, %v9350_v20  ;;  %v6890_v40 = vpop.f32.mrf.mxu0 }
 0x183   : > { %v6853_v49 = vpop.f32.mrf.mxu1 }
 0x184   : > { %v9565_v1 = vadd.f32 %v2487_v57, %v1904_v32  ;;  %v1907_v16 = vadd.f32 %v6853_v49, %v9367_v58  ;;  %v2503_v23 = vpop.f32.mrf.mxu0 }
 0x185   : > { %v1804_v21 = vpop.f32.mrf.mxu1 }
 0x186   : > { %v9568_v56 = vadd.f32 %v6887_v55, %v1907_v16  ;;  %v1905_v24 = vadd.f32 %v1804_v21, %v9381_v41  ;;  %v6891_v11 = vpop.f32.mrf.mxu0 }
 0x187   : > { %v6856_v22 = vpop.f32.mrf.mxu1 }
 0x188   : > { %v9571_v45 = vadd.f32 %v2490_v62, %v1905_v24  ;;  %v1910_v53 = vadd.f32 %v6856_v22, %v9398_v7  ;;  %v2506_v20 = vpop.f32.mrf.mxu0 }
 0x189   : > { %v1817_v9 = vpop.f32.mrf.mxu1 }
 0x18a   : > { %v9574_v33 = vadd.f32 %v6890_v40, %v1910_v53  ;;  %v1908_v43 = vadd.f32 %v1817_v9, %v9414_v17  ;;  %v6894_v58 = vpop.f32.mrf.mxu0 }
 0x18b   : > { %v6857_v54 = vpop.f32.mrf.mxu1 }
 0x18c   : > { %v9577_v10 = vadd.f32 %v2503_v23, %v1908_v43  ;;  %v1911_v52 = vadd.f32 %v6857_v54, %v9427_v48  ;;  %v2519_v41 = vpop.f32.mrf.mxu0 }
 0x18d   : > { %v1820_v51 = vpop.f32.mrf.mxu1 }
 0x18e   : > { %v9580_v37 = vadd.f32 %v6891_v11, %v1911_v52  ;;  %v1909_v13 = vadd.f32 %v1820_v51, %v9435_v36  ;;  %v6895_v7 = vpop.f32.mrf.mxu0 }
 0x18f   : > { %v6860_v46 = vpop.f32.mrf.mxu1 }
 0x190   : > { %v9583_v28 = vadd.f32 %v2506_v20, %v1909_v13  ;;  %v1914_v38 = vadd.f32 %v6860_v46, %v9444_v25  ;;  %v2522_v17 = vpop.f32.mrf.mxu0 }
 0x191   : > { %v1833_v57 = vpop.f32.mrf.mxu1 }
 0x192   : > { %v9586_v50 = vadd.f32 %v6894_v58, %v1914_v38  ;;  %v1912_v12 = vadd.f32 %v1833_v57, %v9459_v29  ;;  %v6898_v48 = vpop.f32.mrf.mxu0 }
 0x193   : > { %v6861_v55 = vpop.f32.mrf.mxu1 }
 0x194   : > { %v9589_v35 = vadd.f32 %v2519_v41, %v1912_v12  ;;  %v1915_v61 = vadd.f32 %v6861_v55, %v9471_v44  ;;  %v2535_v36 = vpop.f32.mrf.mxu0 }
 0x195   : > { %v1836_v62 = vpop.f32.mrf.mxu1 }
 0x196   : > { %v9592_v32 = vadd.f32 %v6895_v7, %v1915_v61  ;;  %v1913_v49 = vadd.f32 %v1836_v62, %v9481_v14  ;;  %v6899_v25 = vpop.f32.mrf.mxu0 }
 0x197   : > { %v6864_v40 = vpop.f32.mrf.mxu1 }
 0x198   : > { %v9595_v16 = vadd.f32 %v2522_v17, %v1913_v49  ;;  %v1918_v21 = vadd.f32 %v6864_v40, %v9487_v30  ;;  %v2538_v29 = vpop.f32.mrf.mxu0 }
 0x199   : > { %v1849_v23 = vpop.f32.mrf.mxu1 }
 0x19a   : > { %v9598_v24 = vadd.f32 %v6898_v48, %v1918_v21  ;;  %v1916_v22 = vadd.f32 %v1849_v23, %v9493_v19  ;;  %v6902_v44 = vpop.f32.mrf.mxu0 }
 0x19b   : > { %v6865_v11 = vpop.f32.mrf.mxu1 }
 0x19c   : > { %v9601_v53 = vadd.f32 %v2535_v36, %v1916_v22  ;;  %v1919_v9 = vadd.f32 %v6865_v11, %v9499_v31  ;;  %v2551_v14 = vpop.f32.mrf.mxu0 }
 0x19d   : > { %v1852_v20 = vpop.f32.mrf.mxu1 }
 0x19e   : > { %v9604_v43 = vadd.f32 %v6899_v25, %v1919_v9  ;;  %v1917_v54 = vadd.f32 %v1852_v20, %v9503_v60  ;;  %v6903_v30 = vpop.f32.mrf.mxu0 }
 0x19f   : > { %v6868_v58 = vpop.f32.mrf.mxu1 }
 0x1a0   : > { %v9607_v52 = vadd.f32 %v2538_v29, %v1917_v54  ;;  %v1922_v51 = vadd.f32 %v6868_v58, %v9512_v15  ;;  %v2554_v19 = vpop.f32.mrf.mxu0 }
 0x1a1   : > { %v1865_v41 = vpop.f32.mrf.mxu1 }
 0x1a2   : > { %v9610_v13 = vadd.f32 %v6902_v44, %v1922_v51  ;;  %v1920_v46 = vadd.f32 %v1865_v41, %v9516_v18  ;;  %v6906_v31 = vpop.f32.mrf.mxu0 }
 0x1a3   : > { %v6869_v7 = vpop.f32.mrf.mxu1 }
 0x1a4   : > { %v9613_v38 = vadd.f32 %v2551_v14, %v1920_v46  ;;  %v1923_v57 = vadd.f32 %v6869_v7, %v9519_v2  ;;  %v2567_v60 = vpop.f32.mrf.mxu0 }
 0x1a5   : > { %v1868_v17 = vpop.f32.mrf.mxu1 }
 0x1a6   : > { %v9616_v12 = vadd.f32 %v6903_v30, %v1923_v57  ;;  %v1921_v55 = vadd.f32 %v1868_v17, %v9523_v26  ;;  %v6907_v15 = vpop.f32.mrf.mxu0 }
 0x1a7   : > { %v6872_v48 = vpop.f32.mrf.mxu1 }
 0x1a8   : > { %v9619_v61 = vadd.f32 %v2554_v19, %v1921_v55  ;;  %v1926_v62 = vadd.f32 %v6872_v48, %v9526_v59  ;;  %v2570_v18 = vpop.f32.mrf.mxu0 }
 0x1a9   : > { %v1881_v36 = vpop.f32.mrf.mxu1 }
 0x1aa   : > { %v9622_v49 = vadd.f32 %v6906_v31, %v1926_v62  ;;  %v1924_v40 = vadd.f32 %v1881_v36, %v9529_v42  ;;  %v6946_v2 = vpop.f32.mrf.mxu0 }
 0x1ab   : > { %v6873_v25 = vpop.f32.mrf.mxu1 }
 0x1ac   : > { %v9625_v21 = vadd.f32 %v2567_v60, %v1924_v40  ;;  %v1927_v23 = vadd.f32 %v6873_v25, %v9532_v39  ;;  %v3263_v26 = vpop.f32.mrf.mxu0 }
 0x1ad   : > { %v1884_v29 = vpop.f32.mrf.mxu1 }
 0x1ae   : > { %v9628_v22 = vadd.f32 %v6907_v15, %v1927_v23  ;;  %v1925_v11 = vadd.f32 %v1884_v29, %v9535_v63  ;;  %v6947_v59 = vpop.f32.mrf.mxu0 }
 0x1af   : > { %v6912_v44 = vpop.f32.mrf.mxu1 }
 0x1b0   : > { %v9631_v9 = vadd.f32 %v2570_v18, %v1925_v11  ;;  %v3030_v20 = vadd.f32 %v6912_v44, %v9538_v4  ;;  %v3266_v42 = vpop.f32.mrf.mxu0 }
 0x1b1   : > { %v2901_v14 = vpop.f32.mrf.mxu1 }
 0x1b2   : > { %v9634_v54 = vadd.f32 %v6946_v2, %v3030_v20  ;;  %v3028_v58 = vadd.f32 %v2901_v14, %v9541_v5  ;;  %v9637_v39 = vpop.f32.mrf.mxu0 }
 0x1b3   : > { %v6913_v30 = vpop.f32.mrf.mxu1 }
 0x1b4   : > { %v9639_v51 = vadd.f32 %v3263_v26, %v3028_v58  ;;  %v3031_v41 = vadd.f32 %v6913_v30, %v9544_v34  ;;  %v3279_v19 = vpop.f32.mrf.mxu0 }
 0x1b5   : > { %v2904_v63 = vpop.f32.mrf.mxu1 }
 0x1b6   : > { %v9642_v46 = vadd.f32 %v6947_v59, %v3031_v41  ;;  %v3029_v7 = vadd.f32 %v2904_v63, %v9547_v47  ;;  %v9647_v31 = vpop.f32.mrf.mxu0 }
 0x1b7   : > { %v9645_v4 = vpop.f32.mrf.mxu1 }
 0x1b8   : > { %v9649_v57 = vadd.f32 %v3266_v42, %v3029_v7  ;;  %v3282_v17 = vpop.f32.mrf.mxu0 }
 0x1b9   : > { %v2917_v5 = vpop.f32.mrf.mxu1 }
 0x1ba   : > { %v3032_v60 = vadd.f32 %v2917_v5, %v9553_v6  ;;  %v6954_v48 = vpop.f32.mrf.mxu0 }
 0x1bb   : > { %v9652_v55 = vpop.f32.mrf.mxu1 }
 0x1bc   : > { %v9654_v34 = vadd.f32 %v3279_v19, %v3032_v60  ;;  %v3295_v62 = vpop.f32.mrf.mxu0 }
 0x1bd   : > { %v2920_v15 = vpop.f32.mrf.mxu1 }
 0x1be   : > { %v3033_v36 = vadd.f32 %v2920_v15, %v9559_v0  ;;  %v6955_v18 = vpop.f32.mrf.mxu0 }
 0x1bf   : > { %v6920_v47 = vpop.f32.mrf.mxu1 }
 0x1c0   : > { %v9657_v40 = vadd.f32 %v3282_v17, %v3033_v36  ;;  %v3038_v25 = vadd.f32 %v6920_v47, %v9562_v27  ;;  %v3298_v23 = vpop.f32.mrf.mxu0 }
 0x1c1   : > { %v2933_v2 = vpop.f32.mrf.mxu1 }
 0x1c2   : > { %v9660_v29 = vadd.f32 %v6954_v48, %v3038_v25  ;;  %v3036_v6 = vadd.f32 %v2933_v2, %v9565_v1  ;;  %v6958_v11 = vpop.f32.mrf.mxu0 }
 0x1c3   : > { %v6921_v26 = vpop.f32.mrf.mxu1 }
 0x1c4   : > { %v9663_v44 = vadd.f32 %v3295_v62, %v3036_v6  ;;  %v3039_v59 = vadd.f32 %v6921_v26, %v9568_v56  ;;  %v3311_v0 = vpop.f32.mrf.mxu0 }
 0x1c5   : > { %v2936_v20 = vpop.f32.mrf.mxu1 }
 0x1c6   : > { %v9666_v14 = vadd.f32 %v6955_v18, %v3039_v59  ;;  %v3037_v42 = vadd.f32 %v2936_v20, %v9571_v45  ;;  %v6959_v27 = vpop.f32.mrf.mxu0 }
 0x1c7   : > { %v6924_v58 = vpop.f32.mrf.mxu1 }
 0x1c8   : > { %v9669_v30 = vadd.f32 %v3298_v23, %v3037_v42  ;;  %v3042_v41 = vadd.f32 %v6924_v58, %v9574_v33  ;;  %v3314_v1 = vpop.f32.mrf.mxu0 }
 0x1c9   : > { %v2949_v63 = vpop.f32.mrf.mxu1 }
 0x1ca   : > { %v9672_v19 = vadd.f32 %v6958_v11, %v3042_v41  ;;  %v3040_v7 = vadd.f32 %v2949_v63, %v9577_v10  ;;  %v6962_v56 = vpop.f32.mrf.mxu0 }
 0x1cb   : > { %v6925_v5 = vpop.f32.mrf.mxu1 }
 0x1cc   : > { %v9675_v17 = vadd.f32 %v3311_v0, %v3040_v7  ;;  %v3043_v60 = vadd.f32 %v6925_v5, %v9580_v37  ;;  %v3327_v45 = vpop.f32.mrf.mxu0 }
 0x1cd   : > { %v2952_v48 = vpop.f32.mrf.mxu1 }
 0x1ce   : > { %v9678_v15 = vadd.f32 %v6959_v27, %v3043_v60  ;;  %v3041_v62 = vadd.f32 %v2952_v48, %v9583_v28  ;;  %v6963_v33 = vpop.f32.mrf.mxu0 }
 0x1cf   : > { %v6928_v36 = vpop.f32.mrf.mxu1 }
 0x1d0   : > { %v9681_v47 = vadd.f32 %v3314_v1, %v3041_v62  ;;  %v3046_v18 = vadd.f32 %v6928_v36, %v9586_v50  ;;  %v3330_v10 = vpop.f32.mrf.mxu0 }
 0x1d1   : > { %v2965_v25 = vpop.f32.mrf.mxu1 }
 0x1d2   : > { %v9684_v2 = vadd.f32 %v6962_v56, %v3046_v18  ;;  %v3044_v23 = vadd.f32 %v2965_v25, %v9589_v35  ;;  %v6966_v37 = vpop.f32.mrf.mxu0 }
 0x1d3   : > { %v6929_v6 = vpop.f32.mrf.mxu1 }
 0x1d4   : > { %v9687_v26 = vadd.f32 %v3327_v45, %v3044_v23  ;;  %v3047_v11 = vadd.f32 %v6929_v6, %v9592_v32  ;;  %v3343_v28 = vpop.f32.mrf.mxu0 }
 0x1d5   : > { %v2968_v59 = vpop.f32.mrf.mxu1 }
 0x1d6   : > { %v9690_v20 = vadd.f32 %v6963_v33, %v3047_v11  ;;  %v3045_v0 = vadd.f32 %v2968_v59, %v9595_v16  ;;  %v6967_v50 = vpop.f32.mrf.mxu0 }
 0x1d7   : > { %v6932_v42 = vpop.f32.mrf.mxu1 }
 0x1d8   : > { %v9693_v58 = vadd.f32 %v3330_v10, %v3045_v0  ;;  %v3050_v27 = vadd.f32 %v6932_v42, %v9598_v24  ;;  %v3346_v35 = vpop.f32.mrf.mxu0 }
 0x1d9   : > { %v2981_v41 = vpop.f32.mrf.mxu1 }
 0x1da   : > { %v9696_v63 = vadd.f32 %v6966_v37, %v3050_v27  ;;  %v3048_v1 = vadd.f32 %v2981_v41, %v9601_v53  ;;  %v6970_v32 = vpop.f32.mrf.mxu0 }
 0x1db   : > { %v6933_v7 = vpop.f32.mrf.mxu1 }
 0x1dc   : > { %v9699_v5 = vadd.f32 %v3343_v28, %v3048_v1  ;;  %v3051_v56 = vadd.f32 %v6933_v7, %v9604_v43  ;;  %v3359_v16 = vpop.f32.mrf.mxu0 }
 0x1dd   : > { %v2984_v60 = vpop.f32.mrf.mxu1 }
 0x1de   : > { %v9702_v48 = vadd.f32 %v6967_v50, %v3051_v56  ;;  %v3049_v45 = vadd.f32 %v2984_v60, %v9607_v52  ;;  %v6971_v24 = vpop.f32.mrf.mxu0 }
 0x1df   : > { %v6936_v62 = vpop.f32.mrf.mxu1 }
 0x1e0   : > { %v9705_v36 = vadd.f32 %v3346_v35, %v3049_v45  ;;  %v3054_v33 = vadd.f32 %v6936_v62, %v9610_v13  ;;  %v3362_v53 = vpop.f32.mrf.mxu0 }
 0x1e1   : > { %v2997_v18 = vpop.f32.mrf.mxu1 }
 0x1e2   : > { %v9708_v25 = vadd.f32 %v6970_v32, %v3054_v33  ;;  %v3052_v10 = vadd.f32 %v2997_v18, %v9613_v38  ;;  %v6974_v43 = vpop.f32.mrf.mxu0  ;;  %v3034_v18 = vadd.f32 %v9645_v4, %v9550_v8 }
 0x1e3   : > { %v6937_v23 = vpop.f32.mrf.mxu1 }
 0x1e4   : > { %v9711_v6 = vadd.f32 %v3359_v16, %v3052_v10  ;;  %v3055_v37 = vadd.f32 %v6937_v23, %v9616_v12  ;;  %v3375_v52 = vpop.f32.mrf.mxu0 }
 0x1e5   : > { %v3000_v11 = vpop.f32.mrf.mxu1 }
 0x1e6   : > { %v9714_v59 = vadd.f32 %v6971_v24, %v3055_v37  ;;  %v3053_v28 = vadd.f32 %v3000_v11, %v9619_v61  ;;  %v6975_v13 = vpop.f32.mrf.mxu0  ;;  %v7274_v37 = vmov 1983009808  }
 0x1e7   : > { %v6940_v0 = vpop.f32.mrf.mxu1  ;;  %v4659_v11 = vunpack.c.l.s4 %v7274_v37 }
 0x1e8   : > { %v9717_v42 = vadd.f32 %v3362_v53, %v3053_v28  ;;  %v3058_v50 = vadd.f32 %v6940_v0, %v9622_v49  ;;  %v3378_v38 = vpop.f32.mrf.mxu0  ;;  %v3035_v28 = vadd.f32 %v9652_v55, %v9556_v3 }
 0x1e9   : > { %v3013_v27 = vpop.f32.mrf.mxu1 }
 0x1ea   : > { %v9720_v41 = vadd.f32 %v6974_v43, %v3058_v50  ;;  %v3056_v35 = vadd.f32 %v3013_v27, %v9625_v21  ;;  %v7014_v12 = vpop.f32.mrf.mxu0  ;;  %v3397_v3 = vadd.f32 %v9647_v31, %v3035_v28 }
 0x1eb   : > { %v6941_v1 = vpop.f32.mrf.mxu1 }
 0x1ec   : > { %v9723_v7 = vadd.f32 %v3375_v52, %v3056_v35  ;;  %v3059_v32 = vadd.f32 %v6941_v1, %v9628_v22  ;;  %v4395_v61 = vpop.f32.mrf.mxu0  ;;  %v3396_v52 = vadd.f32 %v9637_v39, %v3034_v18 }
 0x1ed   : > { %v3016_v56 = vpop.f32.mrf.mxu1 }
 0x1ee   : > { %v9726_v60 = vadd.f32 %v6975_v13, %v3059_v32  ;;  %v3057_v16 = vadd.f32 %v3016_v56, %v9631_v9  ;;  %v7015_v49 = vpop.f32.mrf.mxu0  ;;  %v4661_v9 = vlaneseq }
 0x1ef   : > { %v6980_v45 = vpop.f32.mrf.mxu1 }
 0x1f0   : > { %v9729_v62 = vadd.f32 %v3378_v38, %v3057_v16  ;;  %v4078_v24 = vadd.f32 %v6980_v45, %v9634_v54  ;;  %v4398_v21 = vpop.f32.mrf.mxu0  ;;  %v9741_v54 = vld [vmem:[%s10179_s2] ss:$0 sm:$0xff]  ;;  %v4660_v38 = vunpack.c.0.s8 %v4659_v11  ;;  %v4662_v39 = vshrl.u32 %v4661_v9, 7 }
 0x1f1   : > { %v3949_v33 = vpop.f32.mrf.mxu1 }
 0x1f2   : > { %v4076_v53 = vadd.f32 %v3949_v33, %v9639_v51  ;;  %v7018_v10 = vpop.f32.mrf.mxu0  ;;  %v4524_v23 = vadd.f32 %v7014_v12, %v4078_v24  ;;  %v9750_v33 = vsub.s32 %v4660_v38, %v4662_v39 }
 0x1f3   : > { %v6981_v22 = vpop.f32.mrf.mxu1 }
 0x1f4   : > { %v4522_v8 = vadd.f32 %v4395_v61, %v4076_v53  ;;  %v4079_v51 = vadd.f32 %v6981_v22, %v9642_v46  ;;  %v4411_v13 = vpop.f32.mrf.mxu0  ;;  %v4563_v27 = vadd.f32 %v9741_v54, %v4524_v23 }
 0x1f5   : > { %v3952_v43 = vpop.f32.mrf.mxu1 }
 0x1f6   : > { %v4077_v4 = vadd.f32 %v3952_v43, %v9649_v57  ;;  %v4561_v12 = vadd.f32 %v9741_v54, %v4522_v8  ;;  %v4525_v32 = vadd.f32 %v7015_v49, %v4079_v51  ;;  %v7019_v61 = vpop.f32.mrf.mxu0  ;;  %v4595_v24 = vmax.f32 %v4563_v27, 0.0 }
 0x1f7   : > { %v6984_v0 = vpop.f32.mrf.mxu1 }
 0x1f8   : > { %v4082_v50 = vadd.f32 %v6984_v0, %v3396_v52  ;;  %v4523_v56 = vadd.f32 %v4398_v21, %v4077_v4  ;;  %v4564_v49 = vadd.f32 %v9741_v54, %v4525_v32  ;;  %v4414_v23 = vpop.f32.mrf.mxu0 }
 0x1f9   : > { %v3965_v35 = vpop.f32.mrf.mxu1 }
 0x1fa   : > { %v4528_v55 = vadd.f32 %v7018_v10, %v4082_v50  ;;  %v4080_v1 = vadd.f32 %v3965_v35, %v9654_v34  ;;  %v4593_v10 = vmax.f32 %v4561_v12, 0.0  ;;  %v9756_v21 = vadd.f32 %v9741_v54, %v4523_v56 }
 0x1fb   : > { %v6985_v46 = vpop.f32.mrf.mxu1  ;;  %v4596_v0 = vmax.f32 %v4564_v49, 0.0 }
 0x1fc   : > { %v4567_v57 = vadd.f32 %v9741_v54, %v4528_v55  ;;  %v4526_v16 = vadd.f32 %v4411_v13, %v4080_v1  ;;  %v4083_v45 = vadd.f32 %v6985_v46, %v3397_v3  ;;  %v4594_v13 = vmax.f32 %v9756_v21, 0.0  ;;  %v7022_v3 = vpop.f32.mrf.mxu0 }
 0x1fd   : > { %v3968_v18 = vpop.f32.mrf.mxu1 }
 0x1fe   : > { %v4599_v53 = vmax.f32 %v4567_v57, 0.0  ;;  %v4565_v31 = vadd.f32 %v9741_v54, %v4526_v16  ;;  %v4529_v22 = vadd.f32 %v7019_v61, %v4083_v45  ;;  %v4081_v34 = vadd.f32 %v3968_v18, %v9657_v40 }
 0x1ff   : > { %v6988_v43 = vpop.f32.mrf.mxu1 }
 0x200   : > { %v4627_v37 = vmax.f32 %v4595_v24, %v4599_v53  ;;  %v4597_v11 = vmax.f32 %v4565_v31, 0.0  ;;  %v4568_v9 = vadd.f32 %v9741_v54, %v4529_v22  ;;  %v4527_v52 = vadd.f32 %v4414_v23, %v4081_v34 }
 0x201   : > { %v4086_v28 = vadd.f32 %v6988_v43, %v9660_v29 }
 0x202   : > { %v4691_v8 = vcombine.high %v4627_v37, %v4627_v37  ;;  %v4698_v51 = vrot.slane %v4627_v37, %v9750_v33  ;;  %v4625_v40 = vmax.f32 %v4593_v10, %v4597_v11  ;;  %v4600_v4 = vmax.f32 %v4568_v9, 0.0 }
 0x203   : > { %v9763_v50 = vadd.f32 %v9741_v54, %v4527_v52  ;;  %v9770_v12 = vadd.f32 %v7022_v3, %v4086_v28 }
 0x204   : > { %v4705_v27 = vrot.slane %v4691_v8, %v9750_v33  ;;  %v4706_v38 = vcombine.high %v4698_v51, %v4698_v51  ;;  %v5050_v39 = vsel %vm4993_vm8, %v4698_v51, -inf  ;;  %v4657_v35 = vcombine.high %v4625_v40, %v4625_v40 }
 0x205   : > { %v5051_v55 = vrot.slane %v5050_v39, 4  ;;  %v4664_v29 = vrot.slane %v4625_v40, %v9750_v33  ;;  %v9768_v1 = vmax.f32 %v4596_v0, %v4600_v4 }
 0x206   : > { %v4707_v32 = vcombine.high %v4705_v27, %v4705_v27  ;;  %v5057_v56 = vsel %vm4993_vm8, %v4706_v38, -inf  ;;  %v5064_v46 = vsel %vm4993_vm8, %v4705_v27, -inf  ;;  %v4671_v61 = vrot.slane %v4657_v35, %v9750_v33 }
 0x207   : > { %v5052_v57 = vmax.f32 %v5050_v39, %v5051_v55  ;;  %v5058_v16 = vrot.slane %v5057_v56, 4  ;;  %v5065_v45 = vrot.slane %v5064_v46, 4  ;;  %v4672_v24 = vcombine.high %v4664_v29, %v4664_v29 }
 0x208   : > { %v5071_v18 = vsel %vm4993_vm8, %v4707_v32, -inf  ;;  %v4673_v53 = vcombine.high %v4671_v61, %v4671_v61  ;;  %v4994_v31 = vsel %vm4993_vm8, %v4664_v29, -inf  ;;  %v5008_v22 = vsel %vm4993_vm8, %v4671_v61, -inf }
 0x209   : > { %v5053_v34 = vrot.slane %v5052_v57, 2  ;;  %v5059_v10 = vmax.f32 %v5057_v56, %v5058_v16  ;;  %v5066_v49 = vmax.f32 %v5064_v46, %v5065_v45  ;;  %v5072_v23 = vrot.slane %v5071_v18, 4 }
 0x20a   : > { %v4995_v43 = vrot.slane %v4994_v31, 4  ;;  %v5001_v37 = vsel %vm4993_vm8, %v4672_v24, -inf  ;;  %v5009_v11 = vrot.slane %v5008_v22, 4  ;;  %v5015_v9 = vsel %vm4993_vm8, %v4673_v53, -inf }
 0x20b   : > { %v5054_v52 = vmax.f32 %v5052_v57, %v5053_v34  ;;  %v5060_v28 = vrot.slane %v5059_v10, 2  ;;  %v5067_v8 = vrot.slane %v5066_v49, 2  ;;  %v5073_v51 = vmax.f32 %v5071_v18, %v5072_v23 }
 0x20c   : > { %v4996_v40 = vmax.f32 %v4994_v31, %v4995_v43  ;;  %v5002_v4 = vrot.slane %v5001_v37, 4  ;;  %v5010_v0 = vmax.f32 %v5008_v22, %v5009_v11  ;;  %v5016_v27 = vrot.slane %v5015_v9, 4 }
 0x20d   : > { %v5055_v38 = vrot.slane %v5054_v52, 1  ;;  %v5061_v39 = vmax.f32 %v5059_v10, %v5060_v28  ;;  %v5068_v35 = vmax.f32 %v5066_v49, %v5067_v8  ;;  %v5074_v3 = vrot.slane %v5073_v51, 2 }
 0x20e   : > { %v4997_v55 = vrot.slane %v4996_v40, 2  ;;  %v5003_v29 = vmax.f32 %v5001_v37, %v5002_v4  ;;  %v5011_v32 = vrot.slane %v5010_v0, 2  ;;  %v5017_v56 = vmax.f32 %v5015_v9, %v5016_v27  ;;  %v3981_v27 = vpop.f32.mrf.mxu1 }
 0x20f   : > { %v5056_v46 = vmax.f32 %v5054_v52, %v5055_v38  ;;  %v5062_v61 = vrot.slane %v5061_v39, 1  ;;  %v5069_v57 = vrot.slane %v5068_v35, 1  ;;  %v5075_v16 = vmax.f32 %v5073_v51, %v5074_v3 }
 0x210   : > { %v4998_v45 = vmax.f32 %v4996_v40, %v4997_v55  ;;  %v5004_v24 = vrot.slane %v5003_v29, 2  ;;  %v5012_v18 = vmax.f32 %v5010_v0, %v5011_v32  ;;  %v5018_v53 = vrot.slane %v5017_v56, 2 }
 0x211   : > { %v5063_v31 = vmax.f32 %v5061_v39, %v5062_v61  ;;  %v5070_v22 = vmax.f32 %v5068_v35, %v5069_v57  ;;  %v5076_v34 = vrot.slane %v5075_v16, 1  ;;  %v6528_v23 = vpack.c.bf16 %v5056_v46, %v5056_v46 }
 0x212   : > { %v4999_v10 = vrot.slane %v4998_v45, 1  ;;  %v5005_v49 = vmax.f32 %v5003_v29, %v5004_v24  ;;  %v5013_v43 = vrot.slane %v5012_v18, 1  ;;  %v5019_v11 = vmax.f32 %v5017_v56, %v5018_v53  ;;  %v9788_v53 = vpop.f32.mrf.mxu1 }
 0x213   : > { %v5077_v37 = vmax.f32 %v5075_v16, %v5076_v34  ;;  %v6529_v28 = vpack.c.bf16 %v5063_v31, %v5063_v31  ;;  %v6530_v9 = vpack.c.bf16 %v5070_v22, %v5070_v22  ;;  %v5706_v52 = vunpack.c.l.b16 %v6528_v23 }
 0x214   : > { %v5000_v8 = vmax.f32 %v4998_v45, %v4999_v10  ;;  %v5006_v4 = vrot.slane %v5005_v49, 1  ;;  %v5014_v51 = vmax.f32 %v5012_v18, %v5013_v43  ;;  %v5020_v40 = vrot.slane %v5019_v11, 1 }
 0x215   : > { %v6531_v0 = vpack.c.bf16 %v5077_v37, %v5077_v37  ;;  %v5707_v38 = vunpack.c.l.b16 %v6529_v28  ;;  %v5708_v39 = vunpack.c.l.b16 %v6530_v9  ;;  %v4708_v35 = vcombine.high %v9768_v1, %v9768_v1 }
 0x216   : > { %v5007_v3 = vmax.f32 %v5005_v49, %v5006_v4  ;;  %v5021_v55 = vmax.f32 %v5019_v11, %v5020_v40  ;;  %v6520_v29 = vpack.c.bf16 %v5000_v8, %v5000_v8  ;;  %v6522_v32 = vpack.c.bf16 %v5014_v51, %v5014_v51  ;;  %v4427_v11 = vpop.f32.mrf.mxu0  ;;  %v9796_v40 = vpop.f32.mrf.mxu1 }
 0x217   : > { %v5776_v56 = vsel %vm5762_vm9, %v5707_v38, %v5706_v52  ;;  %v4715_v46 = vrot.slane %v9768_v1, %v9750_v33  ;;  %v4722_v61 = vrot.slane %v4708_v35, %v9750_v33  ;;  %v4598_v57 = vmax.f32 %v9763_v50, 0.0 }
 0x218   : > { %v5709_v16 = vunpack.c.l.b16 %v6531_v0  ;;  %v5777_v45 = vsel %vm5764_vm10, %v5708_v39, %v5776_v56  ;;  %v6521_v24 = vpack.c.bf16 %v5007_v3, %v5007_v3  ;;  %v6523_v18 = vpack.c.bf16 %v5021_v55, %v5021_v55 }
 0x219   : > { %v5698_v31 = vunpack.c.l.b16 %v6520_v29  ;;  %v4723_v22 = vcombine.high %v4715_v46, %v4715_v46  ;;  %v4724_v34 = vcombine.high %v4722_v61, %v4722_v61  ;;  %v5078_v23 = vsel %vm4993_vm8, %v4715_v46, -inf  ;;  %v9808_v29 = vpop.f32.mrf.mxu0 }
 0x21a   : > { %v5699_v10 = vunpack.c.l.b16 %v6521_v24  ;;  %v5700_v49 = vunpack.c.l.b16 %v6522_v32  ;;  %v5079_v43 = vrot.slane %v5078_v23, 4  ;;  %v5092_v1 = vsel %vm4993_vm8, %v4722_v61, -inf }
 0x21b   : > { %v5085_v50 = vsel %vm4993_vm8, %v4723_v22, -inf  ;;  %v5093_v37 = vrot.slane %v5092_v1, 4  ;;  %v5099_v28 = vsel %vm4993_vm8, %v4724_v34, -inf  ;;  %v4084_v9 = vadd.f32 %v3981_v27, %v9663_v44 }
 0x21c   : > { %v5763_v52 = vsel %vm5762_vm9, %v5699_v10, %v5698_v31  ;;  %v5080_v8 = vmax.f32 %v5078_v23, %v5079_v43  ;;  %v5086_v4 = vrot.slane %v5085_v50, 4  ;;  %v5100_v51 = vrot.slane %v5099_v28, 4 }
 0x21d   : > { %v9798_v0 = vunpack.c.l.b16 %v6523_v18  ;;  %v5094_v38 = vmax.f32 %v5092_v1, %v5093_v37  ;;  %v9801_v39 = vsel %vm5766_vm11, %v5709_v16, %v5777_v45  ;;  %v4626_v35 = vmax.f32 %v4594_v13, %v4598_v57  ;;  %v9817_v45 = vpop.f32.mrf.mxu1 }
 0x21e   : > { %v9806_v3 = vsel %vm5764_vm10, %v5700_v49, %v5763_v52  ;;  %v5081_v44 = vrot.slane %v5080_v8, 2  ;;  %v5087_v27 = vmax.f32 %v5085_v50, %v5086_v4  ;;  %v5101_v55 = vmax.f32 %v5099_v28, %v5100_v51  ;;  %v9821_v49 = vpop.f32.mrf.mxu0 }
 0x21f   : > { %v5095_v32 = vrot.slane %v5094_v38, 2  ;;  %v4674_v56 = vcombine.high %v4626_v35, %v4626_v35  ;;  %v4681_v46 = vrot.slane %v4626_v35, %v9750_v33  ;;  %v9813_v61 = vadd.f32 %v9741_v54, %v9770_v12 }
 0x220   : > { %v5082_v16 = vmax.f32 %v5080_v8, %v5081_v44  ;;  %v5088_v21 = vrot.slane %v5087_v27, 2  ;;  %v5102_v13 = vrot.slane %v5101_v55, 2  ;;  %v9815_v57 = vadd.f32 %v4427_v11, %v4084_v9  ;;  %v9825_v8 = vpop.f32.mrf.mxu1 }
 0x221   : > { %v5096_v24 = vmax.f32 %v5094_v38, %v5095_v32  ;;  %v4688_v18 = vrot.slane %v4674_v56, %v9750_v33  ;;  %v4689_v31 = vcombine.high %v4681_v46, %v4681_v46  ;;  %v5022_v22 = vsel %vm4993_vm8, %v4681_v46, -inf  ;;  %v7026_v56 = vpop.f32.mrf.mxu0 }
 0x222   : > { %v5083_v34 = vrot.slane %v5082_v16, 1  ;;  %v5089_v23 = vmax.f32 %v5087_v27, %v5088_v21  ;;  %v5103_v10 = vmax.f32 %v5101_v55, %v5102_v13  ;;  %v5023_v12 = vrot.slane %v5022_v22, 4 }
 0x223   : > { %v5097_v43 = vrot.slane %v5096_v24, 1  ;;  %v4690_v1 = vcombine.high %v4688_v18, %v4688_v18  ;;  %v5029_v11 = vsel %vm4993_vm8, %v4689_v31, -inf  ;;  %v5036_v50 = vsel %vm4993_vm8, %v4688_v18, -inf }
 0x224   : > { %v5084_v37 = vmax.f32 %v5082_v16, %v5083_v34  ;;  %v5090_v28 = vrot.slane %v5089_v23, 1  ;;  %v5104_v9 = vrot.slane %v5103_v10, 1  ;;  %v5024_v52 = vmax.f32 %v5022_v22, %v5023_v12  ;;  %v6993_v34 = vpop.f32.mrf.mxu1 }
 0x225   : > { %v5098_v4 = vmax.f32 %v5096_v24, %v5097_v43  ;;  %v5030_v51 = vrot.slane %v5029_v11, 4  ;;  %v5037_v38 = vrot.slane %v5036_v50, 4  ;;  %v5043_v35 = vsel %vm4993_vm8, %v4690_v1, -inf }
 0x226   : > { %v5091_v44 = vmax.f32 %v5089_v23, %v5090_v28  ;;  %v5105_v27 = vmax.f32 %v5103_v10, %v5104_v9  ;;  %v6532_v55 = vpack.c.bf16 %v5084_v37, %v5084_v37  ;;  %v5025_v32 = vrot.slane %v5024_v52, 2 }
 0x227   : > { %v6534_v46 = vpack.c.bf16 %v5098_v4, %v5098_v4  ;;  %v5031_v21 = vmax.f32 %v5029_v11, %v5030_v51  ;;  %v5038_v16 = vmax.f32 %v5036_v50, %v5037_v38  ;;  %v5044_v13 = vrot.slane %v5043_v35, 4  ;;  %v4443_v11 = vpop.f32.mrf.mxu0 }
 0x228   : > { %v6533_v18 = vpack.c.bf16 %v5091_v44, %v5091_v44  ;;  %v6535_v31 = vpack.c.bf16 %v5105_v27, %v5105_v27  ;;  %v5710_v22 = vunpack.c.l.b16 %v6532_v55  ;;  %v5026_v24 = vmax.f32 %v5024_v52, %v5025_v32  ;;  %v4000_v27 = vpop.f32.mrf.mxu1 }
 0x229   : > { %v5712_v12 = vunpack.c.l.b16 %v6534_v46  ;;  %v5032_v43 = vrot.slane %v5031_v21, 2  ;;  %v5039_v1 = vrot.slane %v5038_v16, 2  ;;  %v5045_v23 = vmax.f32 %v5043_v35, %v5044_v13 }
 0x22a   : > { %v5711_v10 = vunpack.c.l.b16 %v6533_v18  ;;  %v5713_v37 = vunpack.c.l.b16 %v6535_v31  ;;  %v5779_v28 = vsel %vm5768_vm12, %v5710_v22, %v9801_v39  ;;  %v5027_v9 = vrot.slane %v5026_v24, 1  ;;  %v7027_v18 = vpop.f32.mrf.mxu0 }
 0x22b   : > { %v5033_v50 = vmax.f32 %v5031_v21, %v5032_v43  ;;  %v5040_v4 = vmax.f32 %v5038_v16, %v5039_v1  ;;  %v5046_v51 = vrot.slane %v5045_v23, 2  ;;  %v5767_v52 = vsel %vm5766_vm11, %v9798_v0, %v9806_v3  ;;  %v6996_v43 = vpop.f32.mrf.mxu1 }
 0x22c   : > { %v5780_v38 = vsel %vm5770_vm13, %v5711_v10, %v5779_v28  ;;  %v5028_v44 = vmax.f32 %v5026_v24, %v5027_v9  ;;  %v4087_v35 = vadd.f32 %v9788_v53, %v9666_v14  ;;  %v4085_v39 = vadd.f32 %v9796_v40, %v9669_v30  ;;  %v4446_v28 = vpop.f32.mrf.mxu0 }
 0x22d   : > { %v5781_v55 = vsel %vm5772_vm14, %v5712_v12, %v5780_v38  ;;  %v5034_v32 = vrot.slane %v5033_v50, 1  ;;  %v5041_v46 = vrot.slane %v5040_v4, 1  ;;  %v5047_v21 = vmax.f32 %v5045_v23, %v5046_v51 }
 0x22e   : > { %v5782_v16 = vsel %vm5774_vm15, %v5713_v37, %v5781_v55  ;;  %v6524_v13 = vpack.c.bf16 %v5028_v44, %v5028_v44  ;;  %v4569_v0 = vadd.f32 %v9741_v54, %v9815_v57  ;;  %v4533_v3 = vadd.f32 %v9808_v29, %v4087_v35 }
 0x22f   : > { %v5826_v31 = vpack.c.b16 %v5782_v16, %v5782_v16  ;;  %v5035_v14 = vmax.f32 %v5033_v50, %v5034_v32  ;;  %v5042_v53 = vmax.f32 %v5040_v4, %v5041_v46  ;;  %v5048_v22 = vrot.slane %v5047_v21, 1  ;;  %v7030_v46 = vpop.f32.mrf.mxu0 }
 0x230   : > { %v5702_v30 = vunpack.c.l.b16 %v6524_v13  ;;  %v4603_v40 = vmax.f32 %v9813_v61, 0.0  ;;  %v4531_v24 = vadd.f32 %v9821_v49, %v4085_v39  ;;  %v4090_v12 = vadd.f32 %v9817_v45, %v9672_v19 }
 0x231   : > { %5843 = vst.msk [vmem:[%s9850_s5 + $0x4] sm:$0xf] %vm5841_vm0, %v5826_v31  ;;  %v5049_v29 = vmax.f32 %v5047_v21, %v5048_v22  ;;  %v6525_v57 = vpack.c.bf16 %v5035_v14, %v5035_v14  ;;  %v6526_v1 = vpack.c.bf16 %v5042_v53, %v5042_v53  ;;  %v4088_v23 = vadd.f32 %v9825_v8, %v9675_v17  ;;  %v4013_v8 = vpop.f32.mrf.mxu1 }
 0x232   : > { %v5769_v10 = vsel %vm5768_vm12, %v5702_v30, %v5767_v52  ;;  %v4601_v61 = vmax.f32 %v4569_v0, 0.0  ;;  %v4572_v49 = vadd.f32 %v9741_v54, %v4533_v3  ;;  %v4536_v37 = vadd.f32 %v7026_v56, %v4090_v12  ;;  %v4459_v30 = vpop.f32.mrf.mxu0 }
 0x233   : > { %v6527_v19 = vpack.c.bf16 %v5049_v29, %v5049_v29  ;;  %v5703_v45 = vunpack.c.l.b16 %v6525_v57  ;;  %v5704_v9 = vunpack.c.l.b16 %v6526_v1  ;;  %v4534_v50 = vadd.f32 %v4443_v11, %v4088_v23  ;;  %v6997_v0 = vpop.f32.mrf.mxu1 }
 0x234   : > { %v9859_v4 = vadd.f32 %v9741_v54, %v4531_v24  ;;  %v4575_v51 = vadd.f32 %v9741_v54, %v4536_v37  ;;  %v4091_v38 = vadd.f32 %v6993_v34, %v9678_v15  ;;  %v4089_v17 = vadd.f32 %v4000_v27, %v9681_v47 }
 0x235   : > { %v5705_v52 = vunpack.c.l.b16 %v6527_v19  ;;  %v5771_v44 = vsel %vm5770_vm13, %v5703_v45, %v5769_v10  ;;  %v4573_v56 = vadd.f32 %v9741_v54, %v4534_v50  ;;  %v4094_v35 = vadd.f32 %v6996_v43, %v9684_v2 }
 0x236   : > { %v5773_v39 = vsel %vm5772_vm14, %v5704_v9, %v5771_v44  ;;  %v4607_v11 = vmax.f32 %v4575_v51, 0.0  ;;  %v4537_v55 = vadd.f32 %v7027_v18, %v4091_v38  ;;  %v4535_v32 = vadd.f32 %v4446_v28, %v4089_v17 }
 0x237   : > { %v5775_v21 = vsel %vm5774_vm15, %v5705_v52, %v5773_v39  ;;  %v4605_v15 = vmax.f32 %v4573_v56, 0.0  ;;  %v4540_v34 = vadd.f32 %v7030_v46, %v4094_v35  ;;  %v4092_v47 = vadd.f32 %v4013_v8, %v9687_v26 }
 0x238   : > { %v5825_v27 = vpack.c.b16 %v5775_v21, %v5775_v21  ;;  %v4631_v16 = vmax.f32 %v4603_v40, %v4607_v11  ;;  %v4576_v13 = vadd.f32 %v9741_v54, %v4537_v55  ;;  %v4604_v3 = vmax.f32 %v4572_v49, 0.0 }
 0x239   : > { %v4602_v2 = vmax.f32 %v9859_v4, 0.0  ;;  %v4629_v31 = vmax.f32 %v4601_v61, %v4605_v15  ;;  %v9873_v14 = vadd.f32 %v9741_v54, %v4535_v32  ;;  %v9879_v26 = vadd.f32 %v9741_v54, %v4540_v34 }
 0x23a   : > { %5842 = vst.msk [vmem:[%s9850_s5] sm:$0xf] %vm5841_vm0, %v5825_v27  ;;  %v4759_v18 = vcombine.high %v4631_v16, %v4631_v16  ;;  %v4766_v53 = vrot.slane %v4631_v16, %v9750_v33  ;;  %v4608_v22 = vmax.f32 %v4576_v13, 0.0  ;;  %v9882_v12 = vadd.f32 %v4459_v30, %v4092_v47 }
 0x23b   : > { %v4725_v40 = vcombine.high %v4629_v31, %v4629_v31  ;;  %v4732_v24 = vrot.slane %v4629_v31, %v9750_v33  ;;  %v9885_v43 = vadd.f32 %v6997_v0, %v9690_v20 }
 0x23c   : > { %v4773_v29 = vrot.slane %v4759_v18, %v9750_v33  ;;  %v4774_v57 = vcombine.high %v4766_v53, %v4766_v53  ;;  %v5162_v1 = vsel %vm4993_vm8, %v4766_v53, -inf  ;;  %v9889_v23 = vmax.f32 %v4604_v3, %v4608_v22 }
 0x23d   : > { %v5163_v10 = vrot.slane %v5162_v1, 4  ;;  %v4739_v61 = vrot.slane %v4725_v40, %v9750_v33  ;;  %v4740_v49 = vcombine.high %v4732_v24, %v4732_v24  ;;  %v5106_v37 = vsel %vm4993_vm8, %v4732_v24, -inf }
 0x23e   : > { %v4775_v28 = vcombine.high %v4773_v29, %v4773_v29  ;;  %v5169_v19 = vsel %vm4993_vm8, %v4774_v57, -inf  ;;  %v5176_v45 = vsel %vm4993_vm8, %v4773_v29, -inf  ;;  %v5107_v20 = vrot.slane %v5106_v37, 4 }
 0x23f   : > { %v5164_v9 = vmax.f32 %v5162_v1, %v5163_v10  ;;  %v5170_v50 = vrot.slane %v5169_v19, 4  ;;  %v5177_v51 = vrot.slane %v5176_v45, 4  ;;  %v4741_v38 = vcombine.high %v4739_v61, %v4739_v61 }
 0x240   : > { %v5183_v17 = vsel %vm4993_vm8, %v4775_v28, -inf  ;;  %v5108_v8 = vmax.f32 %v5106_v37, %v5107_v20  ;;  %v5113_v52 = vsel %vm4993_vm8, %v4740_v49, -inf  ;;  %v5120_v44 = vsel %vm4993_vm8, %v4739_v61, -inf }
 0x241   : > { %v5165_v56 = vrot.slane %v5164_v9, 2  ;;  %v5171_v35 = vmax.f32 %v5169_v19, %v5170_v50  ;;  %v5178_v39 = vmax.f32 %v5176_v45, %v5177_v51  ;;  %v5184_v11 = vrot.slane %v5183_v17, 4 }
 0x242   : > { %v5109_v55 = vrot.slane %v5108_v8, 2  ;;  %v5114_v32 = vrot.slane %v5113_v52, 4  ;;  %v5121_v46 = vrot.slane %v5120_v44, 4  ;;  %v5127_v21 = vsel %vm4993_vm8, %v4741_v38, -inf }
 0x243   : > { %v5166_v15 = vmax.f32 %v5164_v9, %v5165_v56  ;;  %v5172_v34 = vrot.slane %v5171_v35, 2  ;;  %v5179_v47 = vrot.slane %v5178_v39, 2  ;;  %v5185_v27 = vmax.f32 %v5183_v17, %v5184_v11 }
 0x244   : > { %v5110_v16 = vmax.f32 %v5108_v8, %v5109_v55  ;;  %v5115_v13 = vmax.f32 %v5113_v52, %v5114_v32  ;;  %v5122_v0 = vmax.f32 %v5120_v44, %v5121_v46  ;;  %v5128_v3 = vrot.slane %v5127_v21, 4 }
 0x245   : > { %v5167_v31 = vrot.slane %v5166_v15, 1  ;;  %v5173_v18 = vmax.f32 %v5171_v35, %v5172_v34  ;;  %v5180_v53 = vmax.f32 %v5178_v39, %v5179_v47  ;;  %v5186_v22 = vrot.slane %v5185_v27, 2 }
 0x246   : > { %v5111_v30 = vrot.slane %v5110_v16, 1  ;;  %v5116_v40 = vrot.slane %v5115_v13, 2  ;;  %v5123_v24 = vrot.slane %v5122_v0, 2  ;;  %v5129_v29 = vmax.f32 %v5127_v21, %v5128_v3 }
 0x247   : > { %v5168_v57 = vmax.f32 %v5166_v15, %v5167_v31  ;;  %v5174_v1 = vrot.slane %v5173_v18, 1  ;;  %v5181_v10 = vrot.slane %v5180_v53, 1  ;;  %v5187_v61 = vmax.f32 %v5185_v27, %v5186_v22 }
 0x248   : > { %v5112_v49 = vmax.f32 %v5110_v16, %v5111_v30  ;;  %v5117_v37 = vmax.f32 %v5115_v13, %v5116_v40  ;;  %v5124_v28 = vmax.f32 %v5122_v0, %v5123_v24  ;;  %v5130_v19 = vrot.slane %v5129_v29, 2 }
 0x249   : > { %v5175_v45 = vmax.f32 %v5173_v18, %v5174_v1  ;;  %v5182_v20 = vmax.f32 %v5180_v53, %v5181_v10  ;;  %v5188_v9 = vrot.slane %v5187_v61, 1  ;;  %v6544_v50 = vpack.c.bf16 %v5168_v57, %v5168_v57 }
 0x24a   : > { %v5118_v51 = vrot.slane %v5117_v37, 1  ;;  %v5125_v38 = vrot.slane %v5124_v28, 1  ;;  %v5131_v17 = vmax.f32 %v5129_v29, %v5130_v19  ;;  %v6536_v8 = vpack.c.bf16 %v5112_v49, %v5112_v49 }
 0x24b   : > { %v5189_v52 = vmax.f32 %v5187_v61, %v5188_v9  ;;  %v6545_v44 = vpack.c.bf16 %v5175_v45, %v5175_v45  ;;  %v6546_v56 = vpack.c.bf16 %v5182_v20, %v5182_v20  ;;  %v4606_v35 = vmax.f32 %v9873_v14, 0.0  ;;  %v9919_v9 = vpop.f32.mrf.mxu1 }
 0x24c   : > { %v5119_v39 = vmax.f32 %v5117_v37, %v5118_v51  ;;  %v5126_v11 = vmax.f32 %v5124_v28, %v5125_v38  ;;  %v5132_v55 = vrot.slane %v5131_v17, 1  ;;  %v4611_v32 = vmax.f32 %v9879_v26, 0.0 }
 0x24d   : > { %v5722_v46 = vunpack.c.l.b16 %v6544_v50  ;;  %v5723_v21 = vunpack.c.l.b16 %v6545_v44  ;;  %v5714_v15 = vunpack.c.l.b16 %v6536_v8  ;;  %v4776_v34 = vcombine.high %v9889_v23, %v9889_v23 }
 0x24e   : > { %v5133_v47 = vmax.f32 %v5131_v17, %v5132_v55  ;;  %v6537_v27 = vpack.c.bf16 %v5119_v39, %v5119_v39  ;;  %v6538_v16 = vpack.c.bf16 %v5126_v11, %v5126_v11  ;;  %v4783_v13 = vrot.slane %v9889_v23, %v9750_v33  ;;  %v7031_v55 = vpop.f32.mrf.mxu0 }
 0x24f   : > { %v6547_v0 = vpack.c.bf16 %v5189_v52, %v5189_v52  ;;  %v5724_v3 = vunpack.c.l.b16 %v6546_v56  ;;  %v4790_v14 = vrot.slane %v4776_v34, %v9750_v33  ;;  %v4630_v31 = vmax.f32 %v4602_v2, %v4606_v35 }
 0x250   : > { %v5790_v18 = vsel %vm5762_vm9, %v5723_v21, %v5722_v46  ;;  %v6539_v53 = vpack.c.bf16 %v5133_v47, %v5133_v47  ;;  %v5715_v22 = vunpack.c.l.b16 %v6537_v27  ;;  %v5716_v30 = vunpack.c.l.b16 %v6538_v16  ;;  %v7000_v47 = vpop.f32.mrf.mxu1 }
 0x251   : > { %v4791_v40 = vcombine.high %v4783_v13, %v4783_v13  ;;  %v4792_v24 = vcombine.high %v4790_v14, %v4790_v14  ;;  %v5190_v29 = vsel %vm4993_vm8, %v4783_v13, -inf  ;;  %v5204_v57 = vsel %vm4993_vm8, %v4790_v14, -inf }
 0x252   : > { %v5783_v23 = vsel %vm5762_vm9, %v5715_v22, %v5714_v15  ;;  %v5191_v1 = vrot.slane %v5190_v29, 4  ;;  %v5205_v10 = vrot.slane %v5204_v57, 4  ;;  %v9914_v61 = vadd.f32 %v9741_v54, %v9882_v12 }
 0x253   : > { %v5725_v4 = vunpack.c.l.b16 %v6547_v0  ;;  %v5791_v2 = vsel %vm5764_vm10, %v5724_v3, %v5790_v18  ;;  %v5197_v49 = vsel %vm4993_vm8, %v4791_v40, -inf  ;;  %v5211_v37 = vsel %vm4993_vm8, %v4792_v24, -inf  ;;  %v4462_v24 = vpop.f32.mrf.mxu0 }
 0x254   : > { %v5192_v28 = vmax.f32 %v5190_v29, %v5191_v1  ;;  %v5198_v19 = vrot.slane %v5197_v49, 4  ;;  %v5206_v45 = vmax.f32 %v5204_v57, %v5205_v10  ;;  %v5212_v20 = vrot.slane %v5211_v37, 4  ;;  %v4029_v10 = vpop.f32.mrf.mxu1 }
 0x255   : > { %v5717_v50 = vunpack.c.l.b16 %v6539_v53  ;;  %v5784_v51 = vsel %vm5764_vm10, %v5716_v30, %v5783_v23  ;;  %v4742_v38 = vcombine.high %v4630_v31, %v4630_v31  ;;  %v4749_v12 = vrot.slane %v4630_v31, %v9750_v33 }
 0x256   : > { %v5193_v17 = vrot.slane %v5192_v28, 2  ;;  %v5199_v8 = vmax.f32 %v5197_v49, %v5198_v19  ;;  %v5207_v52 = vrot.slane %v5206_v45, 2  ;;  %v5213_v44 = vmax.f32 %v5211_v37, %v5212_v20 }
 0x257   : > { %v5792_v56 = vsel %vm5766_vm11, %v5725_v4, %v5791_v2  ;;  %v4756_v35 = vrot.slane %v4742_v38, %v9750_v33  ;;  %v4757_v39 = vcombine.high %v4749_v12, %v4749_v12  ;;  %v5134_v11 = vsel %vm4993_vm8, %v4749_v12, -inf }
 0x258   : > { %v5194_v46 = vmax.f32 %v5192_v28, %v5193_v17  ;;  %v5200_v21 = vrot.slane %v5199_v8, 2  ;;  %v5208_v15 = vmax.f32 %v5206_v45, %v5207_v52  ;;  %v5214_v34 = vrot.slane %v5213_v44, 2  ;;  %v7034_v52 = vpop.f32.mrf.mxu0 }
 0x259   : > { %v4758_v27 = vcombine.high %v4756_v35, %v4756_v35  ;;  %v5135_v16 = vrot.slane %v5134_v11, 4  ;;  %v5141_v13 = vsel %vm4993_vm8, %v4757_v39, -inf  ;;  %v5148_v0 = vsel %vm4993_vm8, %v4756_v35, -inf }
 0x25a   : > { %v5195_v3 = vrot.slane %v5194_v46, 1  ;;  %v5201_v14 = vmax.f32 %v5199_v8, %v5200_v21  ;;  %v5209_v31 = vrot.slane %v5208_v15, 1  ;;  %v5215_v18 = vmax.f32 %v5213_v44, %v5214_v34 }
 0x25b   : > { %v5136_v53 = vmax.f32 %v5134_v11, %v5135_v16  ;;  %v5142_v22 = vrot.slane %v5141_v13, 4  ;;  %v5149_v30 = vrot.slane %v5148_v0, 4  ;;  %v5155_v40 = vsel %vm4993_vm8, %v4758_v27, -inf }
 0x25c   : > { %v5196_v29 = vmax.f32 %v5194_v46, %v5195_v3  ;;  %v5202_v57 = vrot.slane %v5201_v14, 1  ;;  %v5210_v23 = vmax.f32 %v5208_v15, %v5209_v31  ;;  %v5216_v1 = vrot.slane %v5215_v18, 1  ;;  %v7001_v46 = vpop.f32.mrf.mxu1 }
 0x25d   : > { %v5137_v4 = vrot.slane %v5136_v53, 2  ;;  %v5143_v2 = vmax.f32 %v5141_v13, %v5142_v22  ;;  %v5150_v49 = vmax.f32 %v5148_v0, %v5149_v30  ;;  %v5156_v37 = vrot.slane %v5155_v40, 4  ;;  %v4475_v22 = vpop.f32.mrf.mxu0 }
 0x25e   : > { %v5203_v28 = vmax.f32 %v5201_v14, %v5202_v57  ;;  %v5217_v19 = vmax.f32 %v5215_v18, %v5216_v1  ;;  %v6548_v45 = vpack.c.bf16 %v5196_v29, %v5196_v29  ;;  %v6550_v20 = vpack.c.bf16 %v5210_v23, %v5210_v23  ;;  %v4032_v23 = vpop.f32.mrf.mxu1 }
 0x25f   : > { %v5138_v38 = vmax.f32 %v5136_v53, %v5137_v4  ;;  %v5144_v12 = vrot.slane %v5143_v2, 2  ;;  %v5151_v17 = vrot.slane %v5150_v49, 2  ;;  %v5157_v8 = vmax.f32 %v5155_v40, %v5156_v37 }
 0x260   : > { %v6549_v44 = vpack.c.bf16 %v5203_v28, %v5203_v28  ;;  %v6551_v35 = vpack.c.bf16 %v5217_v19, %v5217_v19  ;;  %v5726_v39 = vunpack.c.l.b16 %v6548_v45  ;;  %v5728_v11 = vunpack.c.l.b16 %v6550_v20  ;;  %v7035_v45 = vpop.f32.mrf.mxu0  ;;  %v7004_v20 = vpop.f32.mrf.mxu1 }
 0x261   : > { %v5139_v21 = vrot.slane %v5138_v38, 1  ;;  %v5145_v15 = vmax.f32 %v5143_v2, %v5144_v12  ;;  %v5152_v34 = vmax.f32 %v5150_v49, %v5151_v17  ;;  %v5158_v27 = vrot.slane %v5157_v8, 2 }
 0x262   : > { %v5727_v16 = vunpack.c.l.b16 %v6549_v44  ;;  %v5729_v13 = vunpack.c.l.b16 %v6551_v35  ;;  %v5793_v0 = vsel %vm5768_vm12, %v5726_v39, %v5792_v56  ;;  %v5785_v3 = vsel %vm5766_vm11, %v5717_v50, %v5784_v51 }
 0x263   : > { %v5140_v14 = vmax.f32 %v5138_v38, %v5139_v21  ;;  %v5146_v31 = vrot.slane %v5145_v15, 1  ;;  %v5153_v18 = vrot.slane %v5152_v34, 1  ;;  %v5159_v53 = vmax.f32 %v5157_v8, %v5158_v27  ;;  %v4045_v27 = vpop.f32.mrf.mxu1 }
 0x264   : > { %v5794_v30 = vsel %vm5770_vm13, %v5727_v16, %v5793_v0  ;;  %v4541_v40 = vadd.f32 %v7031_v55, %v9885_v43  ;;  %v4093_v29 = vadd.f32 %v9919_v9, %v9693_v58  ;;  %v4098_v57 = vadd.f32 %v7000_v47, %v9696_v63 }
 0x265   : > { %v5795_v1 = vsel %vm5772_vm14, %v5728_v11, %v5794_v30  ;;  %v5147_v56 = vmax.f32 %v5145_v15, %v5146_v31  ;;  %v5154_v4 = vmax.f32 %v5152_v34, %v5153_v18  ;;  %v5160_v50 = vrot.slane %v5159_v53, 1 }
 0x266   : > { %v5796_v51 = vsel %vm5774_vm15, %v5729_v13, %v5795_v1  ;;  %v6540_v2 = vpack.c.bf16 %v5140_v14, %v5140_v14  ;;  %v4539_v49 = vadd.f32 %v4462_v24, %v4093_v29  ;;  %v4544_v37 = vadd.f32 %v7034_v52, %v4098_v57  ;;  %v9959_v13 = vld [vmem:[%s10179_s2] ss:$0 sm:$0xff] }
 0x267   : > { %v5828_v28 = vpack.c.b16 %v5796_v51, %v5796_v51  ;;  %v5161_v19 = vmax.f32 %v5159_v53, %v5160_v50  ;;  %v6541_v43 = vpack.c.bf16 %v5147_v56, %v5147_v56  ;;  %v6542_v55 = vpack.c.bf16 %v5154_v4, %v5154_v4 }
 0x268   : > { %v5718_v58 = vunpack.c.l.b16 %v6540_v2  ;;  %v4580_v63 = vadd.f32 %v9741_v54, %v4541_v40  ;;  %v4583_v9 = vadd.f32 %v9741_v54, %v4544_v37  ;;  %v4096_v47 = vadd.f32 %v4029_v10, %v9699_v5  ;;  %v4478_v10 = vpop.f32.mrf.mxu0 }
 0x269   : > { %5845 = vst.msk [vmem:[%s9850_s5 + $0xc] sm:$0xf] %vm5841_vm0, %v5828_v28  ;;  %v6543_v38 = vpack.c.bf16 %v5161_v19, %v5161_v19  ;;  %v5719_v12 = vunpack.c.l.b16 %v6541_v43  ;;  %v5720_v17 = vunpack.c.l.b16 %v6542_v55  ;;  %v4099_v24 = vadd.f32 %v7001_v46, %v9702_v48 }
 0x26a   : > { %v5786_v8 = vsel %vm5768_vm12, %v5718_v58, %v5785_v3  ;;  %v9946_v52 = vadd.f32 %v9741_v54, %v4539_v49  ;;  %v4615_v44 = vmax.f32 %v4583_v9, 0.0  ;;  %v4542_v35 = vadd.f32 %v4475_v22, %v4096_v47  ;;  %v7038_v53 = vpop.f32.mrf.mxu0 }
 0x26b   : > { %v5721_v39 = vunpack.c.l.b16 %v6543_v38  ;;  %v5787_v11 = vsel %vm5770_vm13, %v5719_v12, %v5786_v8  ;;  %v4545_v21 = vadd.f32 %v7035_v45, %v4099_v24  ;;  %v4097_v5 = vadd.f32 %v4032_v23, %v9705_v36 }
 0x26c   : > { %v5788_v15 = vsel %vm5772_vm14, %v5720_v17, %v5787_v11  ;;  %v4609_v34 = vmax.f32 %v9914_v61, 0.0  ;;  %v4635_v48 = vmax.f32 %v4611_v32, %v4615_v44  ;;  %v4581_v46 = vadd.f32 %v9741_v54, %v4542_v35  ;;  %v4491_v19 = vpop.f32.mrf.mxu0 }
 0x26d   : > { %v5789_v16 = vsel %vm5774_vm15, %v5721_v39, %v5788_v15  ;;  %v4584_v36 = vadd.f32 %v9959_v13, %v4545_v21  ;;  %v4543_v0 = vadd.f32 %v4478_v10, %v4097_v5  ;;  %v4102_v3 = vadd.f32 %v7004_v20, %v9708_v25 }
 0x26e   : > { %v5827_v61 = vpack.c.b16 %v5789_v16, %v5789_v16  ;;  %v4827_v14 = vcombine.high %v4635_v48, %v4635_v48  ;;  %v4834_v26 = vrot.slane %v4635_v48, %v9750_v33  ;;  %v4613_v32 = vmax.f32 %v4581_v46, 0.0 }
 0x26f   : > { %v4612_v54 = vmax.f32 %v4580_v63, 0.0  ;;  %v4610_v31 = vmax.f32 %v9946_v52, 0.0  ;;  %v4616_v18 = vmax.f32 %v4584_v36, 0.0  ;;  %v4100_v22 = vadd.f32 %v4045_v27, %v9711_v6 }
 0x270   : > { %5844 = vst.msk [vmem:[%s9850_s5 + $0x8] sm:$0xf] %vm5841_vm0, %v5827_v61  ;;  %v4841_v30 = vrot.slane %v4827_v14, %v9750_v33  ;;  %v4842_v40 = vcombine.high %v4834_v26, %v4834_v26  ;;  %v5274_v29 = vsel %vm4993_vm8, %v4834_v26, -inf  ;;  %v4633_v25 = vmax.f32 %v4609_v34, %v4613_v32 }
 0x271   : > { %v5275_v57 = vrot.slane %v5274_v29, 4  ;;  %v9970_v23 = vmax.f32 %v4612_v54, %v4616_v18  ;;  %v9973_v1 = vadd.f32 %v9959_v13, %v4543_v0  ;;  %v9975_v56 = vadd.f32 %v7038_v53, %v4102_v3 }
 0x272   : > { %v4843_v4 = vcombine.high %v4841_v30, %v4841_v30  ;;  %v5281_v50 = vsel %vm4993_vm8, %v4842_v40, -inf  ;;  %v5288_v6 = vsel %vm4993_vm8, %v4841_v30, -inf  ;;  %v4793_v51 = vcombine.high %v4633_v25, %v4633_v25 }
 0x273   : > { %v5276_v2 = vmax.f32 %v5274_v29, %v5275_v57  ;;  %v5282_v49 = vrot.slane %v5281_v50, 4  ;;  %v5289_v37 = vrot.slane %v5288_v6, 4  ;;  %v4800_v28 = vrot.slane %v4633_v25, %v9750_v33 }
 0x274   : > { %v5295_v43 = vsel %vm4993_vm8, %v4843_v4, -inf  ;;  %v4807_v55 = vrot.slane %v4793_v51, %v9750_v33  ;;  %v4844_v45 = vcombine.high %v9970_v23, %v9970_v23  ;;  %v9984_v58 = vadd.f32 %v4491_v19, %v4100_v22 }
 0x275   : > { %v5277_v63 = vrot.slane %v5276_v2, 2  ;;  %v5283_v9 = vmax.f32 %v5281_v50, %v5282_v49  ;;  %v5290_v47 = vmax.f32 %v5288_v6, %v5289_v37  ;;  %v5296_v20 = vrot.slane %v5295_v43, 4 }
 0x276   : > { %v4808_v38 = vcombine.high %v4800_v28, %v4800_v28  ;;  %v4809_v12 = vcombine.high %v4807_v55, %v4807_v55  ;;  %v5218_v17 = vsel %vm4993_vm8, %v4800_v28, -inf  ;;  %v5232_v24 = vsel %vm4993_vm8, %v4807_v55, -inf }
 0x277   : > { %v5278_v8 = vmax.f32 %v5276_v2, %v5277_v63  ;;  %v5284_v44 = vrot.slane %v5283_v9, 2  ;;  %v5291_v35 = vrot.slane %v5290_v47, 2  ;;  %v5297_v39 = vmax.f32 %v5295_v43, %v5296_v20 }
 0x278   : > { %v5219_v11 = vrot.slane %v5218_v17, 4  ;;  %v5225_v21 = vsel %vm4993_vm8, %v4808_v38, -inf  ;;  %v5233_v5 = vrot.slane %v5232_v24, 4  ;;  %v5239_v10 = vsel %vm4993_vm8, %v4809_v12, -inf }
 0x279   : > { %v5279_v15 = vrot.slane %v5278_v8, 1  ;;  %v5285_v34 = vmax.f32 %v5283_v9, %v5284_v44  ;;  %v5292_v48 = vmax.f32 %v5290_v47, %v5291_v35  ;;  %v5298_v46 = vrot.slane %v5297_v39, 2 }
 0x27a   : > { %v5220_v27 = vmax.f32 %v5218_v17, %v5219_v11  ;;  %v5226_v16 = vrot.slane %v5225_v21, 4  ;;  %v5234_v36 = vmax.f32 %v5232_v24, %v5233_v5  ;;  %v5240_v0 = vrot.slane %v5239_v10, 4 }
 0x27b   : > { %v5280_v3 = vmax.f32 %v5278_v8, %v5279_v15  ;;  %v5286_v61 = vrot.slane %v5285_v34, 1  ;;  %v5293_v14 = vrot.slane %v5292_v48, 1  ;;  %v5299_v26 = vmax.f32 %v5297_v39, %v5298_v46 }
 0x27c   : > { %v5221_v32 = vrot.slane %v5220_v27, 2  ;;  %v5227_v54 = vmax.f32 %v5225_v21, %v5226_v16  ;;  %v5235_v18 = vrot.slane %v5234_v36, 2  ;;  %v5241_v53 = vmax.f32 %v5239_v10, %v5240_v0 }
 0x27d   : > { %v5287_v22 = vmax.f32 %v5285_v34, %v5286_v61  ;;  %v5294_v30 = vmax.f32 %v5292_v48, %v5293_v14  ;;  %v5300_v40 = vrot.slane %v5299_v26, 1  ;;  %v6560_v29 = vpack.c.bf16 %v5280_v3, %v5280_v3 }
 0x27e   : > { %v5222_v25 = vmax.f32 %v5220_v27, %v5221_v32  ;;  %v5228_v57 = vrot.slane %v5227_v54, 2  ;;  %v5236_v4 = vmax.f32 %v5234_v36, %v5235_v18  ;;  %v5242_v50 = vrot.slane %v5241_v53, 2 }
 0x27f   : > { %v5301_v6 = vmax.f32 %v5299_v26, %v5300_v40  ;;  %v6561_v51 = vpack.c.bf16 %v5287_v22, %v5287_v22  ;;  %v6562_v2 = vpack.c.bf16 %v5294_v30, %v5294_v30  ;;  %v4851_v49 = vrot.slane %v9970_v23, %v9750_v33 }
 0x280   : > { %v5223_v37 = vrot.slane %v5222_v25, 1  ;;  %v5229_v28 = vmax.f32 %v5227_v54, %v5228_v57  ;;  %v5237_v19 = vrot.slane %v5236_v4, 1  ;;  %v5243_v43 = vmax.f32 %v5241_v53, %v5242_v50 }
 0x281   : > { %v5738_v55 = vunpack.c.l.b16 %v6560_v29  ;;  %v5739_v63 = vunpack.c.l.b16 %v6561_v51  ;;  %v4858_v9 = vrot.slane %v4844_v45, %v9750_v33  ;;  %v4614_v47 = vmax.f32 %v9973_v1, 0.0  ;;  %v7005_v29 = vpop.f32.mrf.mxu1 }
 0x282   : > { %v5224_v20 = vmax.f32 %v5222_v25, %v5223_v37  ;;  %v5230_v38 = vrot.slane %v5229_v28, 1  ;;  %v5238_v12 = vmax.f32 %v5236_v4, %v5237_v19  ;;  %v5244_v17 = vrot.slane %v5243_v43, 1 }
 0x283   : > { %v6563_v24 = vpack.c.bf16 %v5301_v6, %v5301_v6  ;;  %v4859_v8 = vcombine.high %v4851_v49, %v4851_v49  ;;  %v4860_v44 = vcombine.high %v4858_v9, %v4858_v9  ;;  %v9996_v23 = vadd.f32 %v9959_v13, %v9975_v56 }
 0x284   : > { %v5740_v35 = vunpack.c.l.b16 %v6562_v2  ;;  %v5804_v39 = vsel %vm5762_vm9, %v5739_v63, %v5738_v55  ;;  %v5231_v11 = vmax.f32 %v5229_v28, %v5230_v38  ;;  %v5245_v21 = vmax.f32 %v5243_v43, %v5244_v17 }
 0x285   : > { %v6552_v5 = vpack.c.bf16 %v5224_v20, %v5224_v20  ;;  %v5302_v45 = vsel %vm4993_vm8, %v4851_v49, -inf  ;;  %v5309_v1 = vsel %vm4993_vm8, %v4859_v8, -inf  ;;  %v5316_v10 = vsel %vm4993_vm8, %v4858_v9, -inf  ;;  %v7039_v9 = vpop.f32.mrf.mxu0 }
 0x286   : > { %v6553_v15 = vpack.c.bf16 %v5231_v11, %v5231_v11  ;;  %v6554_v34 = vpack.c.bf16 %v5238_v12, %v5238_v12  ;;  %v6555_v48 = vpack.c.bf16 %v5245_v21, %v5245_v21  ;;  %v5303_v46 = vrot.slane %v5302_v45, 4 }
 0x287   : > { %v5741_v27 = vunpack.c.l.b16 %v6563_v24  ;;  %v5310_v16 = vrot.slane %v5309_v1, 4  ;;  %v5317_v56 = vrot.slane %v5316_v10, 4  ;;  %v5323_v36 = vsel %vm4993_vm8, %v4860_v44, -inf }
 0x288   : > { %v5805_v0 = vsel %vm5764_vm10, %v5740_v35, %v5804_v39  ;;  %v5731_v3 = vunpack.c.l.b16 %v6553_v15  ;;  %v5304_v61 = vmax.f32 %v5302_v45, %v5303_v46  ;;  %v5324_v14 = vrot.slane %v5323_v36, 4 }
 0x289   : > { %v5730_v26 = vunpack.c.l.b16 %v6552_v5  ;;  %v5311_v32 = vmax.f32 %v5309_v1, %v5310_v16  ;;  %v5318_v54 = vmax.f32 %v5316_v10, %v5317_v56  ;;  %v4634_v18 = vmax.f32 %v4610_v31, %v4614_v47  ;;  %v4048_v47 = vpop.f32.mrf.mxu1 }
 0x28a   : > { %v5732_v53 = vunpack.c.l.b16 %v6554_v34  ;;  %v10006_v22 = vunpack.c.l.b16 %v6555_v48  ;;  %v5305_v30 = vrot.slane %v5304_v61, 2  ;;  %v5325_v40 = vmax.f32 %v5323_v36, %v5324_v14  ;;  %v4494_v34 = vpop.f32.mrf.mxu0 }
 0x28b   : > { %v5312_v25 = vrot.slane %v5311_v32, 2  ;;  %v5319_v57 = vrot.slane %v5318_v54, 2  ;;  %v5806_v4 = vsel %vm5766_vm11, %v5741_v27, %v5805_v0  ;;  %v4810_v50 = vcombine.high %v4634_v18, %v4634_v18  ;;  %v7008_v48 = vpop.f32.mrf.mxu1 }
 0x28c   : > { %v5797_v6 = vsel %vm5762_vm9, %v5731_v3, %v5730_v26  ;;  %v5306_v51 = vmax.f32 %v5304_v61, %v5305_v30  ;;  %v5326_v2 = vrot.slane %v5325_v40, 2  ;;  %v4817_v49 = vrot.slane %v4634_v18, %v9750_v33 }
 0x28d   : > { %v5313_v37 = vmax.f32 %v5311_v32, %v5312_v25  ;;  %v5320_v52 = vmax.f32 %v5318_v54, %v5319_v57  ;;  %v4824_v31 = vrot.slane %v4810_v50, %v9750_v33  ;;  %v4619_v28 = vmax.f32 %v9996_v23, 0.0  ;;  %v7042_v57 = vpop.f32.mrf.mxu0  ;;  %v4061_v50 = vpop.f32.mrf.mxu1 }
 0x28e   : > { %v5307_v19 = vrot.slane %v5306_v51, 1  ;;  %v5327_v43 = vmax.f32 %v5325_v40, %v5326_v2  ;;  %v4825_v55 = vcombine.high %v4817_v49, %v4817_v49  ;;  %v5246_v63 = vsel %vm4993_vm8, %v4817_v49, -inf }
 0x28f   : > { %v5314_v20 = vrot.slane %v5313_v37, 1  ;;  %v5321_v38 = vrot.slane %v5320_v52, 1  ;;  %v4826_v12 = vcombine.high %v4824_v31, %v4824_v31  ;;  %v5247_v17 = vrot.slane %v5246_v63, 4 }
 0x290   : > { %v5308_v24 = vmax.f32 %v5306_v51, %v5307_v19  ;;  %v5328_v8 = vrot.slane %v5327_v43, 1  ;;  %v5253_v44 = vsel %vm4993_vm8, %v4825_v55, -inf  ;;  %v5260_v35 = vsel %vm4993_vm8, %v4824_v31, -inf }
 0x291   : > { %v5315_v39 = vmax.f32 %v5313_v37, %v5314_v20  ;;  %v5322_v11 = vmax.f32 %v5320_v52, %v5321_v38  ;;  %v5248_v21 = vmax.f32 %v5246_v63, %v5247_v17  ;;  %v5254_v5 = vrot.slane %v5253_v44, 4  ;;  %v4507_v17 = vpop.f32.mrf.mxu0 }
 0x292   : > { %v5329_v45 = vmax.f32 %v5327_v43, %v5328_v8  ;;  %v6564_v1 = vpack.c.bf16 %v5308_v24, %v5308_v24  ;;  %v5261_v10 = vrot.slane %v5260_v35, 4  ;;  %v5267_v15 = vsel %vm4993_vm8, %v4826_v12, -inf  ;;  %v7009_v24 = vpop.f32.mrf.mxu1 }
 0x293   : > { %v6565_v46 = vpack.c.bf16 %v5315_v39, %v5315_v39  ;;  %v6566_v27 = vpack.c.bf16 %v5322_v11, %v5322_v11  ;;  %v5249_v16 = vrot.slane %v5248_v21, 2  ;;  %v5255_v56 = vmax.f32 %v5253_v44, %v5254_v5 }
 0x294   : > { %v6567_v36 = vpack.c.bf16 %v5329_v45, %v5329_v45  ;;  %v5742_v0 = vunpack.c.l.b16 %v6564_v1  ;;  %v5262_v3 = vmax.f32 %v5260_v35, %v5261_v10  ;;  %v5268_v61 = vrot.slane %v5267_v15, 4 }
 0x295   : > { %v5743_v14 = vunpack.c.l.b16 %v6565_v46  ;;  %v5744_v26 = vunpack.c.l.b16 %v6566_v27  ;;  %v5250_v32 = vmax.f32 %v5248_v21, %v5249_v16  ;;  %v5256_v54 = vrot.slane %v5255_v56, 2  ;;  %v4064_v46 = vpop.f32.mrf.mxu1 }
 0x296   : > { %v5745_v18 = vunpack.c.l.b16 %v6567_v36  ;;  %v5807_v30 = vsel %vm5768_vm12, %v5742_v0, %v5806_v4  ;;  %v5263_v40 = vrot.slane %v5262_v3, 2  ;;  %v5269_v25 = vmax.f32 %v5267_v15, %v5268_v61 }
 0x297   : > { %v5798_v51 = vsel %vm5764_vm10, %v5732_v53, %v5797_v6  ;;  %v5808_v2 = vsel %vm5770_vm13, %v5743_v14, %v5807_v30  ;;  %v5251_v49 = vrot.slane %v5250_v32, 1  ;;  %v5257_v37 = vmax.f32 %v5255_v56, %v5256_v54 }
 0x298   : > { %v5809_v52 = vsel %vm5772_vm14, %v5744_v26, %v5808_v2  ;;  %v5264_v31 = vmax.f32 %v5262_v3, %v5263_v40  ;;  %v5270_v19 = vrot.slane %v5269_v25, 2  ;;  %v4103_v43 = vadd.f32 %v7005_v29, %v9714_v59 }
 0x299   : > { %v5810_v55 = vsel %vm5774_vm15, %v5745_v18, %v5809_v52  ;;  %v5252_v4 = vmax.f32 %v5250_v32, %v5251_v49  ;;  %v5258_v63 = vrot.slane %v5257_v37, 1  ;;  %v4101_v20 = vadd.f32 %v4048_v47, %v9717_v42 }
 0x29a   : > { %v5830_v38 = vpack.c.b16 %v5810_v55, %v5810_v55  ;;  %v5265_v12 = vrot.slane %v5264_v31, 1  ;;  %v5271_v53 = vmax.f32 %v5269_v25, %v5270_v19  ;;  %v4585_v6 = vadd.f32 %v9959_v13, %v9984_v58 }
 0x29b   : > { %v5259_v8 = vmax.f32 %v5257_v37, %v5258_v63  ;;  %v6556_v44 = vpack.c.bf16 %v5252_v4, %v5252_v4  ;;  %v4549_v35 = vadd.f32 %v7039_v9, %v4103_v43  ;;  %v4106_v39 = vadd.f32 %v7008_v48, %v9720_v41  ;;  %v7043_v9 = vpop.f32.mrf.mxu0 }
 0x29c   : > { %5847 = vst.msk [vmem:[%s9850_s5 + $0x14] sm:$0xf] %vm5841_vm0, %v5830_v38  ;;  %v5266_v59 = vmax.f32 %v5264_v31, %v5265_v12  ;;  %v5272_v29 = vrot.slane %v5271_v53, 1  ;;  %v5799_v42 = vsel %vm5766_vm11, %v10006_v22, %v5798_v51  ;;  %v4104_v47 = vadd.f32 %v4061_v50, %v9723_v7 }
 0x29d   : > { %v6557_v11 = vpack.c.bf16 %v5259_v8, %v5259_v8  ;;  %v5734_v21 = vunpack.c.l.b16 %v6556_v44  ;;  %v4547_v5 = vadd.f32 %v4494_v34, %v4101_v20  ;;  %v4552_v58 = vadd.f32 %v7042_v57, %v4106_v39  ;;  %v4510_v18 = vpop.f32.mrf.mxu0 }
 0x29e   : > { %v5273_v45 = vmax.f32 %v5271_v53, %v5272_v29  ;;  %v6558_v1 = vpack.c.bf16 %v5266_v59, %v5266_v59  ;;  %v4617_v10 = vmax.f32 %v4585_v6, 0.0  ;;  %v4550_v15 = vadd.f32 %v4507_v17, %v4104_v47 }
 0x29f   : > { %v5735_v41 = vunpack.c.l.b16 %v6557_v11  ;;  %v5800_v48 = vsel %vm5768_vm12, %v5734_v21, %v5799_v42  ;;  %v10034_v27 = vadd.f32 %v9959_v13, %v4549_v35  ;;  %v4591_v22 = vadd.f32 %v9959_v13, %v4552_v58 }
 0x2a0   : > { %v6559_v16 = vpack.c.bf16 %v5273_v45, %v5273_v45  ;;  %v5736_v7 = vunpack.c.l.b16 %v6558_v1  ;;  %v4589_v56 = vadd.f32 %v9959_v13, %v4550_v15  ;;  %v4107_v34 = vadd.f32 %v7009_v24, %v9726_v60 }
 0x2a1   : > { %v5801_v36 = vsel %vm5770_vm13, %v5735_v41, %v5800_v48  ;;  %v10041_v0 = vadd.f32 %v9959_v13, %v4547_v5  ;;  %v4623_v3 = vmax.f32 %v4591_v22, 0.0  ;;  %v4105_v61 = vadd.f32 %v4064_v46, %v9729_v62 }
 0x2a2   : > { %v5737_v14 = vunpack.c.l.b16 %v6559_v16  ;;  %v5802_v26 = vsel %vm5772_vm14, %v5736_v7, %v5801_v36  ;;  %v4621_v32 = vmax.f32 %v4589_v56, 0.0  ;;  %v4553_v54 = vadd.f32 %v7043_v9, %v4107_v34 }
 0x2a3   : > { %v4639_v30 = vmax.f32 %v4619_v28, %v4623_v3  ;;  %v4551_v40 = vadd.f32 %v4510_v18, %v4105_v61  ;;  %v4620_v62 = vmax.f32 %v10034_v27, 0.0  ;;  %v4618_v49 = vmax.f32 %v10041_v0, 0.0 }
 0x2a4   : > { %v5803_v60 = vsel %vm5774_vm15, %v5737_v14, %v5802_v26  ;;  %v4637_v25 = vmax.f32 %v4617_v10, %v4621_v32  ;;  %v10049_v57 = vadd.f32 %v9959_v13, %v4553_v54 }
 0x2a5   : > { %v5829_v50 = vpack.c.b16 %v5803_v60, %v5803_v60  ;;  %v4895_v51 = vcombine.high %v4639_v30, %v4639_v30  ;;  %v4902_v2 = vrot.slane %v4639_v30, %v9750_v33  ;;  %v10056_v23 = vadd.f32 %v9959_v13, %v4551_v40 }
 0x2a6   : > { %v4861_v37 = vcombine.high %v4637_v25, %v4637_v25  ;;  %v4868_v52 = vrot.slane %v4637_v25, %v9750_v33  ;;  %v4624_v43 = vmax.f32 %v10049_v57, 0.0 }
 0x2a7   : > { %5846 = vst.msk [vmem:[%s9850_s5 + $0x10] sm:$0xf] %vm5841_vm0, %v5829_v50  ;;  %v4909_v28 = vrot.slane %v4895_v51, %v9750_v33  ;;  %v4910_v31 = vcombine.high %v4902_v2, %v4902_v2  ;;  %v5386_v19 = vsel %vm4993_vm8, %v4902_v2, -inf }
 0x2a8   : > { %v5387_v55 = vrot.slane %v5386_v19, 4  ;;  %v4875_v4 = vrot.slane %v4861_v37, %v9750_v33  ;;  %v4876_v63 = vcombine.high %v4868_v52, %v4868_v52  ;;  %v5330_v20 = vsel %vm4993_vm8, %v4868_v52, -inf }
 0x2a9   : > { %v4911_v38 = vcombine.high %v4909_v28, %v4909_v28  ;;  %v5393_v12 = vsel %vm4993_vm8, %v4910_v31, -inf  ;;  %v5400_v13 = vsel %vm4993_vm8, %v4909_v28, -inf  ;;  %v5331_v53 = vrot.slane %v5330_v20, 4 }
 0x2aa   : > { %v5388_v6 = vmax.f32 %v5386_v19, %v5387_v55  ;;  %v5394_v17 = vrot.slane %v5393_v12, 4  ;;  %v5401_v24 = vrot.slane %v5400_v13, 4  ;;  %v4877_v8 = vcombine.high %v4875_v4, %v4875_v4 }
 0x2ab   : > { %v5407_v44 = vsel %vm4993_vm8, %v4911_v38, -inf  ;;  %v5332_v35 = vmax.f32 %v5330_v20, %v5331_v53  ;;  %v5337_v39 = vsel %vm4993_vm8, %v4876_v63, -inf  ;;  %v5344_v59 = vsel %vm4993_vm8, %v4875_v4, -inf }
 0x2ac   : > { %v5389_v29 = vrot.slane %v5388_v6, 2  ;;  %v5395_v42 = vmax.f32 %v5393_v12, %v5394_v17  ;;  %v5402_v47 = vmax.f32 %v5400_v13, %v5401_v24  ;;  %v5408_v11 = vrot.slane %v5407_v44, 4 }
 0x2ad   : > { %v5333_v21 = vrot.slane %v5332_v35, 2  ;;  %v5338_v5 = vrot.slane %v5337_v39, 4  ;;  %v5345_v58 = vrot.slane %v5344_v59, 4  ;;  %v5351_v45 = vsel %vm4993_vm8, %v4877_v8, -inf }
 0x2ae   : > { %v5390_v1 = vmax.f32 %v5388_v6, %v5389_v29  ;;  %v5396_v10 = vrot.slane %v5395_v42, 2  ;;  %v5403_v15 = vrot.slane %v5402_v47, 2  ;;  %v5409_v9 = vmax.f32 %v5407_v44, %v5408_v11 }
 0x2af   : > { %v5334_v46 = vmax.f32 %v5332_v35, %v5333_v21  ;;  %v5339_v41 = vmax.f32 %v5337_v39, %v5338_v5  ;;  %v5346_v48 = vmax.f32 %v5344_v59, %v5345_v58  ;;  %v5352_v22 = vrot.slane %v5351_v45, 4 }
 0x2b0   : > { %v5391_v16 = vrot.slane %v5390_v1, 1  ;;  %v5397_v7 = vmax.f32 %v5395_v42, %v5396_v10  ;;  %v5404_v56 = vmax.f32 %v5402_v47, %v5403_v15  ;;  %v5410_v34 = vrot.slane %v5409_v9, 2 }
 0x2b1   : > { %v5335_v36 = vrot.slane %v5334_v46, 1  ;;  %v5340_v3 = vrot.slane %v5339_v41, 2  ;;  %v5347_v61 = vrot.slane %v5346_v48, 2  ;;  %v5353_v14 = vmax.f32 %v5351_v45, %v5352_v22 }
 0x2b2   : > { %v5392_v26 = vmax.f32 %v5390_v1, %v5391_v16  ;;  %v5398_v32 = vrot.slane %v5397_v7, 1  ;;  %v5405_v54 = vrot.slane %v5404_v56, 1  ;;  %v5411_v18 = vmax.f32 %v5409_v9, %v5410_v34 }
 0x2b3   : > { %v5336_v30 = vmax.f32 %v5334_v46, %v5335_v36  ;;  %v5341_v40 = vmax.f32 %v5339_v41, %v5340_v3  ;;  %v5348_v60 = vmax.f32 %v5346_v48, %v5347_v61  ;;  %v5354_v25 = vrot.slane %v5353_v14, 2 }
 0x2b4   : > { %v5399_v50 = vmax.f32 %v5397_v7, %v5398_v32  ;;  %v5406_v51 = vmax.f32 %v5404_v56, %v5405_v54  ;;  %v5412_v2 = vrot.slane %v5411_v18, 1  ;;  %v6576_v37 = vpack.c.bf16 %v5392_v26, %v5392_v26 }
 0x2b5   : > { %v5342_v52 = vrot.slane %v5341_v40, 1  ;;  %v5349_v28 = vrot.slane %v5348_v60, 1  ;;  %v5355_v31 = vmax.f32 %v5353_v14, %v5354_v25  ;;  %v4622_v19 = vmax.f32 %v10056_v23, 0.0 }
 0x2b6   : > { %v5413_v55 = vmax.f32 %v5411_v18, %v5412_v2  ;;  %v6577_v4 = vpack.c.bf16 %v5399_v50, %v5399_v50  ;;  %v6578_v63 = vpack.c.bf16 %v5406_v51, %v5406_v51  ;;  %v6568_v20 = vpack.c.bf16 %v5336_v30, %v5336_v30 }
 0x2b7   : > { %v5754_v38 = vunpack.c.l.b16 %v6576_v37  ;;  %v5343_v12 = vmax.f32 %v5341_v40, %v5342_v52  ;;  %v5350_v13 = vmax.f32 %v5348_v60, %v5349_v28  ;;  %v5356_v53 = vrot.slane %v5355_v31, 1 }
 0x2b8   : > { %v6579_v6 = vpack.c.bf16 %v5413_v55, %v5413_v55  ;;  %v5755_v17 = vunpack.c.l.b16 %v6577_v4  ;;  %v5756_v24 = vunpack.c.l.b16 %v6578_v63  ;;  %v4640_v8 = vmax.f32 %v4620_v62, %v4624_v43 }
 0x2b9   : > { %v5357_v44 = vmax.f32 %v5355_v31, %v5356_v53  ;;  %v6569_v35 = vpack.c.bf16 %v5343_v12, %v5343_v12  ;;  %v6570_v39 = vpack.c.bf16 %v5350_v13, %v5350_v13  ;;  %v4638_v23 = vmax.f32 %v4618_v49, %v4622_v19 }
 0x2ba   : > { %v5757_v59 = vunpack.c.l.b16 %v6579_v6  ;;  %v5818_v29 = vsel %vm5762_vm9, %v5755_v17, %v5754_v38  ;;  %v4912_v42 = vcombine.high %v4640_v8, %v4640_v8  ;;  %v4919_v47 = vrot.slane %v4640_v8, %v9750_v33 }
 0x2bb   : > { %v5819_v11 = vsel %vm5764_vm10, %v5756_v24, %v5818_v29  ;;  %v6571_v21 = vpack.c.bf16 %v5357_v44, %v5357_v44  ;;  %v5746_v5 = vunpack.c.l.b16 %v6568_v20  ;;  %v5747_v57 = vunpack.c.l.b16 %v6569_v35 }
 0x2bc   : > { %v5748_v58 = vunpack.c.l.b16 %v6570_v39  ;;  %v4926_v27 = vrot.slane %v4912_v42, %v9750_v33  ;;  %v4927_v62 = vcombine.high %v4919_v47, %v4919_v47  ;;  %v5414_v43 = vsel %vm4993_vm8, %v4919_v47, -inf }
 0x2bd   : > { %v5811_v0 = vsel %vm5762_vm9, %v5747_v57, %v5746_v5  ;;  %v5415_v49 = vrot.slane %v5414_v43, 4  ;;  %v4878_v45 = vcombine.high %v4638_v23, %v4638_v23  ;;  %v5820_v9 = vsel %vm5766_vm11, %v5757_v59, %v5819_v11 }
 0x2be   : > { %v4928_v1 = vcombine.high %v4926_v27, %v4926_v27  ;;  %v5421_v10 = vsel %vm4993_vm8, %v4927_v62, -inf  ;;  %v5428_v15 = vsel %vm4993_vm8, %v4926_v27, -inf  ;;  %v4885_v22 = vrot.slane %v4638_v23, %v9750_v33 }
 0x2bf   : > { %v5416_v46 = vmax.f32 %v5414_v43, %v5415_v49  ;;  %v5422_v41 = vrot.slane %v5421_v10, 4  ;;  %v5429_v48 = vrot.slane %v5428_v15, 4  ;;  %v10088_v16 = vunpack.c.l.b16 %v6571_v21 }
 0x2c0   : > { %v10091_v7 = vsel %vm5764_vm10, %v5748_v58, %v5811_v0  ;;  %v5435_v56 = vsel %vm4993_vm8, %v4928_v1, -inf  ;;  %v4892_v34 = vrot.slane %v4878_v45, %v9750_v33  ;;  %v4893_v26 = vcombine.high %v4885_v22, %v4885_v22 }
 0x2c1   : > { %v5417_v36 = vrot.slane %v5416_v46, 2  ;;  %v5423_v3 = vmax.f32 %v5421_v10, %v5422_v41  ;;  %v5430_v61 = vmax.f32 %v5428_v15, %v5429_v48  ;;  %v5436_v14 = vrot.slane %v5435_v56, 4 }
 0x2c2   : > { %v4894_v32 = vcombine.high %v4892_v34, %v4892_v34  ;;  %v5358_v54 = vsel %vm4993_vm8, %v4885_v22, -inf  ;;  %v5372_v18 = vsel %vm4993_vm8, %v4892_v34, -inf  ;;  %v5365_v51 = vsel %vm4993_vm8, %v4893_v26, -inf }
 0x2c3   : > { %v5418_v30 = vmax.f32 %v5416_v46, %v5417_v36  ;;  %v5424_v40 = vrot.slane %v5423_v3, 2  ;;  %v5431_v60 = vrot.slane %v5430_v61, 2  ;;  %v5437_v25 = vmax.f32 %v5435_v56, %v5436_v14 }
 0x2c4   : > { %v5359_v50 = vrot.slane %v5358_v54, 4  ;;  %v5373_v2 = vrot.slane %v5372_v18, 4  ;;  %v5379_v33 = vsel %vm4993_vm8, %v4894_v32, -inf  ;;  %v5366_v55 = vrot.slane %v5365_v51, 4 }
 0x2c5   : > { %v5419_v37 = vrot.slane %v5418_v30, 1  ;;  %v5425_v52 = vmax.f32 %v5423_v3, %v5424_v40  ;;  %v5432_v28 = vmax.f32 %v5430_v61, %v5431_v60  ;;  %v5438_v31 = vrot.slane %v5437_v25, 2 }
 0x2c6   : > { %v5360_v19 = vmax.f32 %v5358_v54, %v5359_v50  ;;  %v5374_v4 = vmax.f32 %v5372_v18, %v5373_v2  ;;  %v5380_v63 = vrot.slane %v5379_v33, 4  ;;  %v5367_v6 = vmax.f32 %v5365_v51, %v5366_v55 }
 0x2c7   : > { %v5420_v20 = vmax.f32 %v5418_v30, %v5419_v37  ;;  %v5426_v38 = vrot.slane %v5425_v52, 1  ;;  %v5433_v12 = vrot.slane %v5432_v28, 1  ;;  %v5439_v13 = vmax.f32 %v5437_v25, %v5438_v31 }
 0x2c8   : > { %v5361_v53 = vrot.slane %v5360_v19, 2  ;;  %v5375_v17 = vrot.slane %v5374_v4, 2  ;;  %v5381_v24 = vmax.f32 %v5379_v33, %v5380_v63  ;;  %v5368_v59 = vrot.slane %v5367_v6, 2 }
 0x2c9   : > { %v5427_v8 = vmax.f32 %v5425_v52, %v5426_v38  ;;  %v5434_v44 = vmax.f32 %v5432_v28, %v5433_v12  ;;  %v5440_v35 = vrot.slane %v5439_v13, 1  ;;  %v6580_v39 = vpack.c.bf16 %v5420_v20, %v5420_v20 }
 0x2ca   : > { %v5362_v23 = vmax.f32 %v5360_v19, %v5361_v53  ;;  %v5376_v29 = vmax.f32 %v5374_v4, %v5375_v17  ;;  %v5382_v42 = vrot.slane %v5381_v24, 2  ;;  %v5369_v58 = vmax.f32 %v5367_v6, %v5368_v59 }
 0x2cb   : > { %v5441_v47 = vmax.f32 %v5439_v13, %v5440_v35  ;;  %v6581_v11 = vpack.c.bf16 %v5427_v8, %v5427_v8  ;;  %v6582_v21 = vpack.c.bf16 %v5434_v44, %v5434_v44  ;;  %v5758_v5 = vunpack.c.l.b16 %v6580_v39 }
 0x2cc   : > { %v5363_v57 = vrot.slane %v5362_v23, 1  ;;  %v5377_v27 = vrot.slane %v5376_v29, 1  ;;  %v5383_v62 = vmax.f32 %v5381_v24, %v5382_v42  ;;  %v5370_v10 = vrot.slane %v5369_v58, 1 }
 0x2cd   : > { %v6583_v43 = vpack.c.bf16 %v5441_v47, %v5441_v47  ;;  %v5759_v0 = vunpack.c.l.b16 %v6581_v11  ;;  %v5760_v49 = vunpack.c.l.b16 %v6582_v21  ;;  %v5821_v45 = vsel %vm5768_vm12, %v5758_v5, %v5820_v9 }
 0x2ce   : > { %v5364_v1 = vmax.f32 %v5362_v23, %v5363_v57  ;;  %v5378_v15 = vmax.f32 %v5376_v29, %v5377_v27  ;;  %v5384_v46 = vrot.slane %v5383_v62, 1  ;;  %v5371_v56 = vmax.f32 %v5369_v58, %v5370_v10 }
 0x2cf   : > { %v5761_v41 = vunpack.c.l.b16 %v6583_v43  ;;  %v5822_v48 = vsel %vm5770_vm13, %v5759_v0, %v5821_v45  ;;  %v5813_v9 = vsel %vm5766_vm11, %v10088_v16, %v10091_v7 }
 0x2d0   : > { %v5823_v22 = vsel %vm5772_vm14, %v5760_v49, %v5822_v48  ;;  %v5385_v34 = vmax.f32 %v5383_v62, %v5384_v46  ;;  %v6572_v36 = vpack.c.bf16 %v5364_v1, %v5364_v1  ;;  %v6574_v61 = vpack.c.bf16 %v5378_v15, %v5378_v15 }
 0x2d1   : > { %v5824_v3 = vsel %vm5774_vm15, %v5761_v41, %v5823_v22  ;;  %v6573_v26 = vpack.c.bf16 %v5371_v56, %v5371_v56 }
 0x2d2   : > { %v5832_v14 = vpack.c.b16 %v5824_v3, %v5824_v3  ;;  %v6575_v32 = vpack.c.bf16 %v5385_v34, %v5385_v34  ;;  %v5750_v54 = vunpack.c.l.b16 %v6572_v36  ;;  %v5752_v18 = vunpack.c.l.b16 %v6574_v61 }
 0x2d3   : > { %v5751_v30 = vunpack.c.l.b16 %v6573_v26 }
 0x2d4   : > { %5849 = vst.msk [vmem:[%s9850_s5 + $0x1c] sm:$0xf] %vm5841_vm0, %v5832_v14  ;;  %v5753_v40 = vunpack.c.l.b16 %v6575_v32  ;;  %v5814_v60 = vsel %vm5768_vm12, %v5750_v54, %v5813_v9 }
 0x2d5   : > { %v5815_v25 = vsel %vm5770_vm13, %v5751_v30, %v5814_v60 }
 0x2d6   : > { %v5816_v16 = vsel %vm5772_vm14, %v5752_v18, %v5815_v25 }
 0x2d7   : > { %v5817_v7 = vsel %vm5774_vm15, %v5753_v40, %v5816_v16 }
 0x2d8   : > { %v5831_v50 = vpack.c.b16 %v5817_v7, %v5817_v7 }
 0x2da   : > { %5848 = vst.msk [vmem:[%s9850_s5 + $0x18] sm:$0xf] %vm5841_vm0, %v5831_v50 }
 0x2db   : > { %7193 = shalt.err (!%p7190_p6)
}
 0x2dc   : > { %s7194_s29 = scalar_lea.hbm %s10118_s21, 512  ;;  %s7198_s8 = scalar_lea.hbm %s10180_s3, 4096 }
 0x2dd   : > { %p7195_p7 = scmp.ne.s32.totalorder %s10118_s21, %s7194_s29  ;;  %p7199_p11 = scmp.lt.s32.totalorder %s10118_s21, %s10180_s3 }
 0x2de   : > { %p7200_p12 = scmp.lt.s32.totalorder %s7198_s8, %s7194_s29 }
 0x2df   : > { %p7196_p9 = pnand %p7195_p7, %p7349_p3 }
 0x2e0   : > { %p7201_p13 = por %p7200_p12, %p7199_p11 }
 0x2e1   : > { %p7197_p10 = pneg %p7196_p9 }
 0x2e3   : > { %p7202_p0 = pnand %p7201_p13, %p7197_p10 }
 0x2e5   : > { %7205 = shalt.err (!%p7202_p0)
}
 0x2e6   : > { %s7276_s16 = smov 64   ;;  %s7277_s11 = smov 4  }
 0x2e7   : > { %7057 = dma.vmem_to_hbm [thread:$0]  (%p7349_p3), %s10120_s10, 512, %s10118_s21, %s10126_s24, %s7276_s16, %s7276_s16, %s7277_s11  }
 0x2e8 PF: > { %p7063_p1 = scmp.ge.s32.totalorder %s7272_s19, 2  ;;  %s5882_s20 = sand.u32 1, %s7244_s12  }
 0x2e9   : > { %s5883_s27 = scalar_lea.sflag [#allocation3], %s5882_s20 }
 0x2ea   : > { %p7060_p2 = pnand %p7063_p1, %p7358_p8 }
 0x2ec   : > { %p7061_p4 = pneg %p7060_p2 }
 0x2ee   : > { %7239 = dma.done.wait (%p7061_p4), %s5883_s27, 512  }
 0x2ef   : > { %7241 = vsyncadd (%p7061_p4), %s5883_s27, 4294966784  ;;  %s16_s19 = sadd.s32 1, %s7272_s19   ;;  %s10306_s12 = smov %s7248_s13 }
 0x2f0   : > { %p13_p5 = scmp.ge.s32.totalorder %s16_s19, 10   ;;  %s10307_s13 = smov %s7252_s14 }
 0x2f1   : > { %s10308_s14 = smov %s7367_s30  ;;  %s10309_s15 = smov %s7264_s17 }
 0x2f2   : > { %s10310_s16 = smov %s7268_s18  ;;  %s10311_s17 = smov %s10314_s22 }
 0x2f3   : > { %s10312_s18 = smov %s10318_s23  ;;  %15 = sbr.rel (!%p13_p5) target bundleno = 5 (0x5), region = 78 }
 0x2f8   :  { %5888 = vsyncpa [#allocation3], 1 }
 0x2f9   :  { %5890 = vsyncpa [#allocation3 + $0x1], 1 }

</bundles_post_ra>
